<compile_context>
chip_gen: v7x
topology: tpu7x:2x2x1
jax: 0.10.0
libtpu: 0.0.40
codegen_flags: <defaults>
</compile_context>

<pallas_src>
import functools

import jax
import jax.numpy as jnp
from jax.experimental import pallas as pl
from jax.experimental.pallas import tpu as pltpu

DEPTH = 8           # kept for parity with the PyTorch module signature
WIDTH = 256
HALF = WIDTH // 2
DIM_POS = 3
DIM_DIRC = 3
N_BLOCK_LAYERS = 6  # Linear+ReLU pairs inside `self.block`


def _nerf_kernel(pd_ref,
                 w1_ref, b1_ref,
                 wb_ref, bb_ref,
                 wf_ref, bf_ref,
                 w_hf_ref, w_hd_ref, b_h_ref,
                 wd_row_ref, w_rgb_t_ref, b_out_ref,
                 out_ref):
    f32 = jnp.float32
    bf16 = jnp.bfloat16

    pd = pd_ref[...]                           # [tm, 6] f32
    pos = pd[:, 0:DIM_POS]                     # [tm, 3]
    dirc = pd[:, DIM_POS:DIM_POS + DIM_DIRC]   # [tm, 3]

    # linear1: Linear(3 -> 256) + ReLU.  K=3 -> three broadcast multiply-adds
    # on the VPU instead of a padded MXU push.
    w1 = w1_ref[...]                           # [3, 256] f32
    x = (pos[:, 0:1] * w1[0:1, :]
         + pos[:, 1:2] * w1[1:2, :]
         + pos[:, 2:3] * w1[2:3, :]
         + b1_ref[...])
    x = jnp.maximum(x, 0.0)                    # [tm, 256] f32

    # block: 6 x (Linear(256 -> 256) + ReLU), weights packed [6,256,256] bf16.
    # bf16 MXU inputs, f32 accumulation, f32 bias+ReLU (v5e-safe epilogue).
    for l in range(N_BLOCK_LAYERS):
        x = jnp.dot(x.astype(bf16), wb_ref[l],
                    preferred_element_type=f32) + bb_ref[l]
        x = jnp.maximum(x, 0.0)

    # Feature head (256 -> 256) stays on the MXU.
    feature = jnp.dot(x.astype(bf16), wf_ref[...],
                      preferred_element_type=f32) + bf_ref[...]   # [tm, 256]

    # Density head (256 -> 1) on the VPU/XLU: an N=1 matmul would still burn a
    # full MXU push per M rows; the VPU has slack here.
    density = jnp.sum(x * wd_row_ref[...], axis=-1, keepdims=True)  # [tm, 1]

    # linearFromFeatureDensity: cat([feature, dirc], -1) @ W + b, ReLU.
    # Feature part (K=256) on the MXU, dirc part (K=3) on the VPU; summing the
    # partial products is identical to the concat matmul.
    w_hd = w_hd_ref[...]                       # [3, 128] f32
    h = jnp.dot(feature.astype(bf16), w_hf_ref[...],
                preferred_element_type=f32)
    h = h + (dirc[:, 0:1] * w_hd[0:1, :]
             + dirc[:, 1:2] * w_hd[1:2, :]
             + dirc[:, 2:3] * w_hd[2:3, :]
             + b_h_ref[...])
    h = jnp.maximum(h, 0.0)                    # [tm, 128] f32

    # linearLast: Linear(128 -> 3) on the VPU/XLU (broadcast multiplies + lane
    # reductions against the transposed [3,128] weight) -- keeps N=3 off MXU.
    w_rgb = w_rgb_t_ref[...]                   # [3, 128] f32
    r0 = jnp.sum(h * w_rgb[0:1, :], axis=-1, keepdims=True)
    r1 = jnp.sum(h * w_rgb[1:2, :], axis=-1, keepdims=True)
    r2 = jnp.sum(h * w_rgb[2:3, :], axis=-1, keepdims=True)

    # output = cat([rgb, density], -1) + packed bias, built in registers and
    # written with a single unmasked (tm, 4) block store.
    out = jnp.concatenate([r0, r1, r2, density], axis=-1) + b_out_ref[...]
    out_ref[...] = out


def pack_params(params):
    """Cast / pack natural-form f32 parameters into the kernel layout.

    Call ONCE and reuse the result: all casts/concats/transposes happen here,
    not on every forward call.
    """
    bf16 = jnp.bfloat16
    f32 = jnp.float32
    wb = jnp.stack([params[f"wb{i}"] for i in range(N_BLOCK_LAYERS)]).astype(bf16)
    bb = jnp.stack([params[f"bb{i}"] for i in range(N_BLOCK_LAYERS)]).astype(f32)
    # rgb bias + density bias packed into the [1, 4] output bias.
    b_out = jnp.concatenate([params["b_rgb"], params["bd"]], axis=-1).astype(f32)
    return [
        params["w1"].astype(f32),                # [3, 256]
        params["b1"].astype(f32),                # [1, 256]
        wb,                                      # [6, 256, 256] bf16
        bb,                                      # [6, 1, 256]   f32
        params["wf"].astype(bf16),               # [256, 256]    bf16
        params["bf"].astype(f32),                # [1, 256]
        params["w_half"][:WIDTH].astype(bf16),   # [256, 128] bf16 (MXU part)
        params["w_half"][WIDTH:].astype(f32),    # [3, 128]   f32  (VPU part)
        params["b_half"].astype(f32),            # [1, 128]
        params["wd"].T.astype(f32),              # [1, 256]  density row (VPU)
        params["w_rgb"].T.astype(f32),           # [3, 128]  rgb rows    (VPU)
        b_out,                                   # [1, 4]
    ]


def _cdiv(a, b):
    return -(-a // b)


def _round_up(a, m):
    return _cdiv(a, m) * m


def _pick_tm(n, max_tm):
    """Smallest EVEN tile count whose tile fits max_tm (keeps both v7x TCs fed)."""
    tiles = 2
    while _cdiv(n, tiles) > max_tm:
        tiles += 2
    return max(8, _round_up(_cdiv(n, tiles), 8))


@functools.partial(jax.jit, static_argnames=("tm", "max_tm"))
def nerf_forward(pos, dirc, packed_params, *, tm=None, max_tm=1024):
    """pos: [N, 3], dirc: [N, 3] -> [N, 4] (rgb, density).

    `tm` (row tile) defaults to an auto pick keeping grid_n >= 2 and even.
    Sweep max_tm 512-1024 on v6e/v7x; ~512 is enough on v5e.
    """
    n = pos.shape[0]
    if tm is None:
        tm = _pick_tm(n, max_tm)
    else:
        tm = max(8, _round_up(tm, 8))
    grid_n = _cdiv(n, tm)
    n_pad = grid_n * tm

    pd = jnp.concatenate([pos, dirc], axis=-1).astype(jnp.float32)  # [N, 6]
    if n_pad != n:
        pd = jnp.pad(pd, ((0, n_pad - n), (0, 0)))

    row_spec = pl.BlockSpec((tm, DIM_POS + DIM_DIRC), lambda i: (i, 0))
    out_spec = pl.BlockSpec((tm, 4), lambda i: (i, 0))

    def full_spec(arr):
        zeros = (0,) * arr.ndim
        return pl.BlockSpec(arr.shape, lambda i, _z=zeros: _z)

    in_specs = [row_spec] + [full_spec(p) for p in packed_params]

    fn = pl.pallas_call(
        _nerf_kernel,
        out_shape=jax.ShapeDtypeStruct((n_pad, 4), jnp.float32),
        grid=(grid_n,),
        in_specs=in_specs,
        out_specs=out_spec,
        compiler_params=pltpu.CompilerParams(
            dimension_semantics=("parallel",),
            # ~3-5 MiB live even at tm=1024; 32 MiB is safe on every
            # generation (<= ~48 MiB recommended cap on v7x's 64 MiB VMEM).
            vmem_limit_bytes=32 * 1024 * 1024,
        ),
    )
    out = fn(pd, *packed_params)
    return out[:n]


def init_params(key):
    """Deterministic synthetic parameters. Weights [in, out]; biases [1, out]."""
    keys = jax.random.split(key, 40)
    ki = iter(range(40))

    def dense(in_dim, out_dim):
        kw, kb = keys[next(ki)], keys[next(ki)]
        scale = 1.0 / jnp.sqrt(jnp.float32(in_dim))
        w = jax.random.normal(kw, (in_dim, out_dim), jnp.float32) * scale
        b = jax.random.normal(kb, (1, out_dim), jnp.float32) * 0.01
        return w, b

    p = {}
    p["w1"], p["b1"] = dense(DIM_POS, WIDTH)
    for i in range(N_BLOCK_LAYERS):
        p[f"wb{i}"], p[f"bb{i}"] = dense(WIDTH, WIDTH)
    p["wf"], p["bf"] = dense(WIDTH, WIDTH)                    # linearToFeature
    p["wd"], p["bd"] = dense(WIDTH, 1)                        # linearToDensity
    p["w_half"], p["b_half"] = dense(WIDTH + DIM_DIRC, HALF)  # FromFeatureDensity
    p["w_rgb"], p["b_rgb"] = dense(HALF, 3)                   # linearLast
    return p


def nerf_forward_ref(pos, dirc, params):
    """Pure-JAX f32 reference matching the PyTorch forward exactly."""
    relu = lambda v: jnp.maximum(v, 0.0)
    x = relu(pos @ params["w1"] + params["b1"])
    for i in range(N_BLOCK_LAYERS):
        x = relu(x @ params[f"wb{i}"] + params[f"bb{i}"])
    feature = x @ params["wf"] + params["bf"]
    density = (x @ params["wd"] + params["bd"]).reshape(-1, 1)
    cat = jnp.concatenate([feature, dirc], axis=-1)
    h = relu(cat @ params["w_half"] + params["b_half"])
    rgb = h @ params["w_rgb"] + params["b_rgb"]
    return jnp.concatenate([rgb, density], axis=-1)


if __name__ == "__main__":
    key = jax.random.PRNGKey(0)
    k_params, k_pos, k_dirc = jax.random.split(key, 3)

    params = init_params(k_params)
    packed = pack_params(params)   # pack / cast weights ONCE

    N = 500   # deliberately NOT a multiple of the tile: exercises the pad path
    pos = jax.random.normal(k_pos, (N, DIM_POS), jnp.float32)
    dirc = jax.random.normal(k_dirc, (N, DIM_DIRC), jnp.float32)

    # auto tm: N=500 -> tm=256, grid_n=2 (>=2 and even keeps both v7x TCs busy)
    out = jax.block_until_ready(nerf_forward(pos, dirc, packed))
    ref = jax.block_until_ready(nerf_forward_ref(pos, dirc, params))

    assert out.shape == (N, 4), out.shape

    # Separate rgb / density accuracy checks (bf16 MXU inputs, f32 accumulate).
    def _check(cols, name):
        err = float(jnp.max(jnp.abs(out[:, cols] - ref[:, cols])))
        scale = float(jnp.max(jnp.abs(ref[:, cols]))) + 1e-6
        assert err <= 5e-2 * scale + 1e-3, (name, err, scale)

    _check(slice(0, 3), "rgb")
    _check(slice(3, 4), "density")

    print("KERNEL_OK")
</pallas_src>

<mosaic_0001>
module attributes {stable_mosaic.version = 11 : i64} {
  func.func @_nerf_kernel(%arg0: i32, %arg1: memref<256x6xf32, #tpu.memory_space<vmem>>, %arg2: memref<3x256xf32, #tpu.memory_space<vmem>>, %arg3: memref<1x256xf32, #tpu.memory_space<vmem>>, %arg4: memref<6x256x256xbf16, #tpu.memory_space<vmem>>, %arg5: memref<6x1x256xf32, #tpu.memory_space<vmem>>, %arg6: memref<256x256xbf16, #tpu.memory_space<vmem>>, %arg7: memref<1x256xf32, #tpu.memory_space<vmem>>, %arg8: memref<256x128xbf16, #tpu.memory_space<vmem>>, %arg9: memref<3x128xf32, #tpu.memory_space<vmem>>, %arg10: memref<1x128xf32, #tpu.memory_space<vmem>>, %arg11: memref<1x256xf32, #tpu.memory_space<vmem>>, %arg12: memref<3x128xf32, #tpu.memory_space<vmem>>, %arg13: memref<1x4xf32, #tpu.memory_space<vmem>>, %arg14: memref<256x4xf32, #tpu.memory_space<vmem>>) attributes {dimension_semantics = [#tpu.dimension_semantics<parallel>], iteration_bounds = array<i64: 2>, scalar_prefetch = 0 : i64, scratch_operands = 0 : i64, tpu.core_type = #tpu.core_type<tc>, window_params = [{transform_indices = @transform_0, window_bounds = array<i64: 256, 6>}, {pipeline_mode = #tpu.pipeline_mode<synchronous>, transform_indices = @transform_1, window_bounds = array<i64: 3, 256>}, {pipeline_mode = #tpu.pipeline_mode<synchronous>, transform_indices = @transform_2, window_bounds = array<i64: 1, 256>}, {pipeline_mode = #tpu.pipeline_mode<synchronous>, transform_indices = @transform_3, window_bounds = array<i64: 6, 256, 256>}, {pipeline_mode = #tpu.pipeline_mode<synchronous>, transform_indices = @transform_4, window_bounds = array<i64: 6, 1, 256>}, {pipeline_mode = #tpu.pipeline_mode<synchronous>, transform_indices = @transform_5, window_bounds = array<i64: 256, 256>}, {pipeline_mode = #tpu.pipeline_mode<synchronous>, transform_indices = @transform_6, window_bounds = array<i64: 1, 256>}, {pipeline_mode = #tpu.pipeline_mode<synchronous>, transform_indices = @transform_7, window_bounds = array<i64: 256, 128>}, {pipeline_mode = #tpu.pipeline_mode<synchronous>, transform_indices = @transform_8, window_bounds = array<i64: 3, 128>}, {pipeline_mode = #tpu.pipeline_mode<synchronous>, transform_indices = @transform_9, window_bounds = array<i64: 1, 128>}, {pipeline_mode = #tpu.pipeline_mode<synchronous>, transform_indices = @transform_10, window_bounds = array<i64: 1, 256>}, {pipeline_mode = #tpu.pipeline_mode<synchronous>, transform_indices = @transform_11, window_bounds = array<i64: 3, 128>}, {pipeline_mode = #tpu.pipeline_mode<synchronous>, transform_indices = @transform_12, window_bounds = array<i64: 1, 4>}, {transform_indices = @transform_13, window_bounds = array<i64: 256, 4>}]} {
    %c0 = arith.constant 0 : index
    %c0_0 = arith.constant 0 : index
    %0 = vector.load %arg1[%c0, %c0_0] : memref<256x6xf32, #tpu.memory_space<vmem>>, vector<256x6xf32>
    %1 = vector.extract_strided_slice %0 {offsets = [0, 0], sizes = [256, 3], strides = [1, 1]} : vector<256x6xf32> to vector<256x3xf32>
    %2 = vector.extract_strided_slice %0 {offsets = [0, 3], sizes = [256, 3], strides = [1, 1]} : vector<256x6xf32> to vector<256x3xf32>
    %c0_1 = arith.constant 0 : index
    %c0_2 = arith.constant 0 : index
    %3 = vector.load %arg2[%c0_1, %c0_2] : memref<3x256xf32, #tpu.memory_space<vmem>>, vector<3x256xf32>
    %4 = vector.extract_strided_slice %1 {offsets = [0, 0], sizes = [256, 1], strides = [1, 1]} : vector<256x3xf32> to vector<256x1xf32>
    %5 = vector.extract_strided_slice %3 {offsets = [0, 0], sizes = [1, 256], strides = [1, 1]} : vector<3x256xf32> to vector<1x256xf32>
    %6 = vector.broadcast %4 : vector<256x1xf32> to vector<256x256xf32>
    %7 = vector.broadcast %5 : vector<1x256xf32> to vector<256x256xf32>
    %8 = arith.mulf %6, %7 : vector<256x256xf32>
    %9 = vector.extract_strided_slice %1 {offsets = [0, 1], sizes = [256, 1], strides = [1, 1]} : vector<256x3xf32> to vector<256x1xf32>
    %10 = vector.extract_strided_slice %3 {offsets = [1, 0], sizes = [1, 256], strides = [1, 1]} : vector<3x256xf32> to vector<1x256xf32>
    %11 = vector.broadcast %9 : vector<256x1xf32> to vector<256x256xf32>
    %12 = vector.broadcast %10 : vector<1x256xf32> to vector<256x256xf32>
    %13 = arith.mulf %11, %12 : vector<256x256xf32>
    %14 = arith.addf %8, %13 : vector<256x256xf32>
    %15 = vector.extract_strided_slice %1 {offsets = [0, 2], sizes = [256, 1], strides = [1, 1]} : vector<256x3xf32> to vector<256x1xf32>
    %16 = vector.extract_strided_slice %3 {offsets = [2, 0], sizes = [1, 256], strides = [1, 1]} : vector<3x256xf32> to vector<1x256xf32>
    %17 = vector.broadcast %15 : vector<256x1xf32> to vector<256x256xf32>
    %18 = vector.broadcast %16 : vector<1x256xf32> to vector<256x256xf32>
    %19 = arith.mulf %17, %18 : vector<256x256xf32>
    %20 = arith.addf %14, %19 : vector<256x256xf32>
    %c0_3 = arith.constant 0 : index
    %c0_4 = arith.constant 0 : index
    %21 = vector.load %arg3[%c0_3, %c0_4] : memref<1x256xf32, #tpu.memory_space<vmem>>, vector<1x256xf32>
    %22 = vector.broadcast %21 : vector<1x256xf32> to vector<256x256xf32>
    %23 = arith.addf %20, %22 : vector<256x256xf32>
    %cst = arith.constant 0.000000e+00 : f32
    %24 = vector.broadcast %cst : f32 to vector<256x256xf32>
    %25 = arith.maximumf %23, %24 : vector<256x256xf32>
    %26 = arith.truncf %25 : vector<256x256xf32> to vector<256x256xbf16>
    %c0_5 = arith.constant 0 : index
    %c0_6 = arith.constant 0 : index
    %c0_7 = arith.constant 0 : index
    %27 = vector.load %arg4[%c0_5, %c0_6, %c0_7] : memref<6x256x256xbf16, #tpu.memory_space<vmem>>, vector<1x256x256xbf16>
    %28 = vector.shape_cast %27 : vector<1x256x256xbf16> to vector<256x256xbf16>
    %cst_8 = arith.constant dense<0.000000e+00> : vector<256x256xf32>
    %29 = tpu.matmul %26, %28, %cst_8 {dimension_numbers = #tpu.dot_dimension_numbers<[1], [0], [0], [1], [0, 0, 1, 1], [], []>} : vector<256x256xbf16>, vector<256x256xbf16>, vector<256x256xf32> -> vector<256x256xf32>
    %c0_9 = arith.constant 0 : index
    %c0_10 = arith.constant 0 : index
    %c0_11 = arith.constant 0 : index
    %30 = vector.load %arg5[%c0_9, %c0_10, %c0_11] : memref<6x1x256xf32, #tpu.memory_space<vmem>>, vector<1x1x256xf32>
    %31 = vector.shape_cast %30 : vector<1x1x256xf32> to vector<1x256xf32>
    %32 = vector.broadcast %31 : vector<1x256xf32> to vector<256x256xf32>
    %33 = arith.addf %29, %32 : vector<256x256xf32>
    %cst_12 = arith.constant 0.000000e+00 : f32
    %34 = vector.broadcast %cst_12 : f32 to vector<256x256xf32>
    %35 = arith.maximumf %33, %34 : vector<256x256xf32>
    %36 = arith.truncf %35 : vector<256x256xf32> to vector<256x256xbf16>
    %c1 = arith.constant 1 : index
    %c0_13 = arith.constant 0 : index
    %c0_14 = arith.constant 0 : index
    %37 = vector.load %arg4[%c1, %c0_13, %c0_14] : memref<6x256x256xbf16, #tpu.memory_space<vmem>>, vector<1x256x256xbf16>
    %38 = vector.shape_cast %37 : vector<1x256x256xbf16> to vector<256x256xbf16>
    %cst_15 = arith.constant dense<0.000000e+00> : vector<256x256xf32>
    %39 = tpu.matmul %36, %38, %cst_15 {dimension_numbers = #tpu.dot_dimension_numbers<[1], [0], [0], [1], [0, 0, 1, 1], [], []>} : vector<256x256xbf16>, vector<256x256xbf16>, vector<256x256xf32> -> vector<256x256xf32>
    %c1_16 = arith.constant 1 : index
    %c0_17 = arith.constant 0 : index
    %c0_18 = arith.constant 0 : index
    %40 = vector.load %arg5[%c1_16, %c0_17, %c0_18] : memref<6x1x256xf32, #tpu.memory_space<vmem>>, vector<1x1x256xf32>
    %41 = vector.shape_cast %40 : vector<1x1x256xf32> to vector<1x256xf32>
    %42 = vector.broadcast %41 : vector<1x256xf32> to vector<256x256xf32>
    %43 = arith.addf %39, %42 : vector<256x256xf32>
    %cst_19 = arith.constant 0.000000e+00 : f32
    %44 = vector.broadcast %cst_19 : f32 to vector<256x256xf32>
    %45 = arith.maximumf %43, %44 : vector<256x256xf32>
    %46 = arith.truncf %45 : vector<256x256xf32> to vector<256x256xbf16>
    %c2 = arith.constant 2 : index
    %c0_20 = arith.constant 0 : index
    %c0_21 = arith.constant 0 : index
    %47 = vector.load %arg4[%c2, %c0_20, %c0_21] : memref<6x256x256xbf16, #tpu.memory_space<vmem>>, vector<1x256x256xbf16>
    %48 = vector.shape_cast %47 : vector<1x256x256xbf16> to vector<256x256xbf16>
    %cst_22 = arith.constant dense<0.000000e+00> : vector<256x256xf32>
    %49 = tpu.matmul %46, %48, %cst_22 {dimension_numbers = #tpu.dot_dimension_numbers<[1], [0], [0], [1], [0, 0, 1, 1], [], []>} : vector<256x256xbf16>, vector<256x256xbf16>, vector<256x256xf32> -> vector<256x256xf32>
    %c2_23 = arith.constant 2 : index
    %c0_24 = arith.constant 0 : index
    %c0_25 = arith.constant 0 : index
    %50 = vector.load %arg5[%c2_23, %c0_24, %c0_25] : memref<6x1x256xf32, #tpu.memory_space<vmem>>, vector<1x1x256xf32>
    %51 = vector.shape_cast %50 : vector<1x1x256xf32> to vector<1x256xf32>
    %52 = vector.broadcast %51 : vector<1x256xf32> to vector<256x256xf32>
    %53 = arith.addf %49, %52 : vector<256x256xf32>
    %cst_26 = arith.constant 0.000000e+00 : f32
    %54 = vector.broadcast %cst_26 : f32 to vector<256x256xf32>
    %55 = arith.maximumf %53, %54 : vector<256x256xf32>
    %56 = arith.truncf %55 : vector<256x256xf32> to vector<256x256xbf16>
    %c3 = arith.constant 3 : index
    %c0_27 = arith.constant 0 : index
    %c0_28 = arith.constant 0 : index
    %57 = vector.load %arg4[%c3, %c0_27, %c0_28] : memref<6x256x256xbf16, #tpu.memory_space<vmem>>, vector<1x256x256xbf16>
    %58 = vector.shape_cast %57 : vector<1x256x256xbf16> to vector<256x256xbf16>
    %cst_29 = arith.constant dense<0.000000e+00> : vector<256x256xf32>
    %59 = tpu.matmul %56, %58, %cst_29 {dimension_numbers = #tpu.dot_dimension_numbers<[1], [0], [0], [1], [0, 0, 1, 1], [], []>} : vector<256x256xbf16>, vector<256x256xbf16>, vector<256x256xf32> -> vector<256x256xf32>
    %c3_30 = arith.constant 3 : index
    %c0_31 = arith.constant 0 : index
    %c0_32 = arith.constant 0 : index
    %60 = vector.load %arg5[%c3_30, %c0_31, %c0_32] : memref<6x1x256xf32, #tpu.memory_space<vmem>>, vector<1x1x256xf32>
    %61 = vector.shape_cast %60 : vector<1x1x256xf32> to vector<1x256xf32>
    %62 = vector.broadcast %61 : vector<1x256xf32> to vector<256x256xf32>
    %63 = arith.addf %59, %62 : vector<256x256xf32>
    %cst_33 = arith.constant 0.000000e+00 : f32
    %64 = vector.broadcast %cst_33 : f32 to vector<256x256xf32>
    %65 = arith.maximumf %63, %64 : vector<256x256xf32>
    %66 = arith.truncf %65 : vector<256x256xf32> to vector<256x256xbf16>
    %c4 = arith.constant 4 : index
    %c0_34 = arith.constant 0 : index
    %c0_35 = arith.constant 0 : index
    %67 = vector.load %arg4[%c4, %c0_34, %c0_35] : memref<6x256x256xbf16, #tpu.memory_space<vmem>>, vector<1x256x256xbf16>
    %68 = vector.shape_cast %67 : vector<1x256x256xbf16> to vector<256x256xbf16>
    %cst_36 = arith.constant dense<0.000000e+00> : vector<256x256xf32>
    %69 = tpu.matmul %66, %68, %cst_36 {dimension_numbers = #tpu.dot_dimension_numbers<[1], [0], [0], [1], [0, 0, 1, 1], [], []>} : vector<256x256xbf16>, vector<256x256xbf16>, vector<256x256xf32> -> vector<256x256xf32>
    %c4_37 = arith.constant 4 : index
    %c0_38 = arith.constant 0 : index
    %c0_39 = arith.constant 0 : index
    %70 = vector.load %arg5[%c4_37, %c0_38, %c0_39] : memref<6x1x256xf32, #tpu.memory_space<vmem>>, vector<1x1x256xf32>
    %71 = vector.shape_cast %70 : vector<1x1x256xf32> to vector<1x256xf32>
    %72 = vector.broadcast %71 : vector<1x256xf32> to vector<256x256xf32>
    %73 = arith.addf %69, %72 : vector<256x256xf32>
    %cst_40 = arith.constant 0.000000e+00 : f32
    %74 = vector.broadcast %cst_40 : f32 to vector<256x256xf32>
    %75 = arith.maximumf %73, %74 : vector<256x256xf32>
    %76 = arith.truncf %75 : vector<256x256xf32> to vector<256x256xbf16>
    %c5 = arith.constant 5 : index
    %c0_41 = arith.constant 0 : index
    %c0_42 = arith.constant 0 : index
    %77 = vector.load %arg4[%c5, %c0_41, %c0_42] : memref<6x256x256xbf16, #tpu.memory_space<vmem>>, vector<1x256x256xbf16>
    %78 = vector.shape_cast %77 : vector<1x256x256xbf16> to vector<256x256xbf16>
    %cst_43 = arith.constant dense<0.000000e+00> : vector<256x256xf32>
    %79 = tpu.matmul %76, %78, %cst_43 {dimension_numbers = #tpu.dot_dimension_numbers<[1], [0], [0], [1], [0, 0, 1, 1], [], []>} : vector<256x256xbf16>, vector<256x256xbf16>, vector<256x256xf32> -> vector<256x256xf32>
    %c5_44 = arith.constant 5 : index
    %c0_45 = arith.constant 0 : index
    %c0_46 = arith.constant 0 : index
    %80 = vector.load %arg5[%c5_44, %c0_45, %c0_46] : memref<6x1x256xf32, #tpu.memory_space<vmem>>, vector<1x1x256xf32>
    %81 = vector.shape_cast %80 : vector<1x1x256xf32> to vector<1x256xf32>
    %82 = vector.broadcast %81 : vector<1x256xf32> to vector<256x256xf32>
    %83 = arith.addf %79, %82 : vector<256x256xf32>
    %cst_47 = arith.constant 0.000000e+00 : f32
    %84 = vector.broadcast %cst_47 : f32 to vector<256x256xf32>
    %85 = arith.maximumf %83, %84 : vector<256x256xf32>
    %86 = arith.truncf %85 : vector<256x256xf32> to vector<256x256xbf16>
    %c0_48 = arith.constant 0 : index
    %c0_49 = arith.constant 0 : index
    %87 = vector.load %arg6[%c0_48, %c0_49] : memref<256x256xbf16, #tpu.memory_space<vmem>>, vector<256x256xbf16>
    %cst_50 = arith.constant dense<0.000000e+00> : vector<256x256xf32>
    %88 = tpu.matmul %86, %87, %cst_50 {dimension_numbers = #tpu.dot_dimension_numbers<[1], [0], [0], [1], [0, 0, 1, 1], [], []>} : vector<256x256xbf16>, vector<256x256xbf16>, vector<256x256xf32> -> vector<256x256xf32>
    %c0_51 = arith.constant 0 : index
    %c0_52 = arith.constant 0 : index
    %89 = vector.load %arg7[%c0_51, %c0_52] : memref<1x256xf32, #tpu.memory_space<vmem>>, vector<1x256xf32>
    %90 = vector.broadcast %89 : vector<1x256xf32> to vector<256x256xf32>
    %91 = arith.addf %88, %90 : vector<256x256xf32>
    %c0_53 = arith.constant 0 : index
    %c0_54 = arith.constant 0 : index
    %92 = vector.load %arg11[%c0_53, %c0_54] : memref<1x256xf32, #tpu.memory_space<vmem>>, vector<1x256xf32>
    %93 = vector.broadcast %92 : vector<1x256xf32> to vector<256x256xf32>
    %94 = arith.mulf %85, %93 : vector<256x256xf32>
    %cst_55 = arith.constant dense<0.000000e+00> : vector<256xf32>
    %95 = vector.multi_reduction <add>, %94, %cst_55 [1] : vector<256x256xf32> to vector<256xf32>
    %96 = vector.shape_cast %95 : vector<256xf32> to vector<256x1xf32>
    %c0_56 = arith.constant 0 : index
    %c0_57 = arith.constant 0 : index
    %97 = vector.load %arg9[%c0_56, %c0_57] : memref<3x128xf32, #tpu.memory_space<vmem>>, vector<3x128xf32>
    %98 = arith.truncf %91 : vector<256x256xf32> to vector<256x256xbf16>
    %c0_58 = arith.constant 0 : index
    %c0_59 = arith.constant 0 : index
    %99 = vector.load %arg8[%c0_58, %c0_59] : memref<256x128xbf16, #tpu.memory_space<vmem>>, vector<256x128xbf16>
    %cst_60 = arith.constant dense<0.000000e+00> : vector<256x128xf32>
    %100 = tpu.matmul %98, %99, %cst_60 {dimension_numbers = #tpu.dot_dimension_numbers<[1], [0], [0], [1], [0, 0, 1, 1], [], []>} : vector<256x256xbf16>, vector<256x128xbf16>, vector<256x128xf32> -> vector<256x128xf32>
    %101 = vector.extract_strided_slice %2 {offsets = [0, 0], sizes = [256, 1], strides = [1, 1]} : vector<256x3xf32> to vector<256x1xf32>
    %102 = vector.extract_strided_slice %97 {offsets = [0, 0], sizes = [1, 128], strides = [1, 1]} : vector<3x128xf32> to vector<1x128xf32>
    %103 = vector.broadcast %101 : vector<256x1xf32> to vector<256x128xf32>
    %104 = vector.broadcast %102 : vector<1x128xf32> to vector<256x128xf32>
    %105 = arith.mulf %103, %104 : vector<256x128xf32>
    %106 = vector.extract_strided_slice %2 {offsets = [0, 1], sizes = [256, 1], strides = [1, 1]} : vector<256x3xf32> to vector<256x1xf32>
    %107 = vector.extract_strided_slice %97 {offsets = [1, 0], sizes = [1, 128], strides = [1, 1]} : vector<3x128xf32> to vector<1x128xf32>
    %108 = vector.broadcast %106 : vector<256x1xf32> to vector<256x128xf32>
    %109 = vector.broadcast %107 : vector<1x128xf32> to vector<256x128xf32>
    %110 = arith.mulf %108, %109 : vector<256x128xf32>
    %111 = arith.addf %105, %110 : vector<256x128xf32>
    %112 = vector.extract_strided_slice %2 {offsets = [0, 2], sizes = [256, 1], strides = [1, 1]} : vector<256x3xf32> to vector<256x1xf32>
    %113 = vector.extract_strided_slice %97 {offsets = [2, 0], sizes = [1, 128], strides = [1, 1]} : vector<3x128xf32> to vector<1x128xf32>
    %114 = vector.broadcast %112 : vector<256x1xf32> to vector<256x128xf32>
    %115 = vector.broadcast %113 : vector<1x128xf32> to vector<256x128xf32>
    %116 = arith.mulf %114, %115 : vector<256x128xf32>
    %117 = arith.addf %111, %116 : vector<256x128xf32>
    %c0_61 = arith.constant 0 : index
    %c0_62 = arith.constant 0 : index
    %118 = vector.load %arg10[%c0_61, %c0_62] : memref<1x128xf32, #tpu.memory_space<vmem>>, vector<1x128xf32>
    %119 = vector.broadcast %118 : vector<1x128xf32> to vector<256x128xf32>
    %120 = arith.addf %117, %119 : vector<256x128xf32>
    %121 = arith.addf %100, %120 : vector<256x128xf32>
    %cst_63 = arith.constant 0.000000e+00 : f32
    %122 = vector.broadcast %cst_63 : f32 to vector<256x128xf32>
    %123 = arith.maximumf %121, %122 : vector<256x128xf32>
    %c0_64 = arith.constant 0 : index
    %c0_65 = arith.constant 0 : index
    %124 = vector.load %arg12[%c0_64, %c0_65] : memref<3x128xf32, #tpu.memory_space<vmem>>, vector<3x128xf32>
    %125 = vector.extract_strided_slice %124 {offsets = [0, 0], sizes = [1, 128], strides = [1, 1]} : vector<3x128xf32> to vector<1x128xf32>
    %126 = vector.broadcast %125 : vector<1x128xf32> to vector<256x128xf32>
    %127 = arith.mulf %123, %126 : vector<256x128xf32>
    %cst_66 = arith.constant dense<0.000000e+00> : vector<256xf32>
    %128 = vector.multi_reduction <add>, %127, %cst_66 [1] : vector<256x128xf32> to vector<256xf32>
    %129 = vector.shape_cast %128 : vector<256xf32> to vector<256x1xf32>
    %130 = vector.extract_strided_slice %124 {offsets = [1, 0], sizes = [1, 128], strides = [1, 1]} : vector<3x128xf32> to vector<1x128xf32>
    %131 = vector.broadcast %130 : vector<1x128xf32> to vector<256x128xf32>
    %132 = arith.mulf %123, %131 : vector<256x128xf32>
    %cst_67 = arith.constant dense<0.000000e+00> : vector<256xf32>
    %133 = vector.multi_reduction <add>, %132, %cst_67 [1] : vector<256x128xf32> to vector<256xf32>
    %134 = vector.shape_cast %133 : vector<256xf32> to vector<256x1xf32>
    %135 = vector.extract_strided_slice %124 {offsets = [2, 0], sizes = [1, 128], strides = [1, 1]} : vector<3x128xf32> to vector<1x128xf32>
    %136 = vector.broadcast %135 : vector<1x128xf32> to vector<256x128xf32>
    %137 = arith.mulf %123, %136 : vector<256x128xf32>
    %cst_68 = arith.constant dense<0.000000e+00> : vector<256xf32>
    %138 = vector.multi_reduction <add>, %137, %cst_68 [1] : vector<256x128xf32> to vector<256xf32>
    %139 = vector.shape_cast %138 : vector<256xf32> to vector<256x1xf32>
    %140 = tpu.concatenate %129, %134, %139, %96 in 1 : vector<256x1xf32>, vector<256x1xf32>, vector<256x1xf32>, vector<256x1xf32> -> vector<256x4xf32>
    %c0_69 = arith.constant 0 : index
    %c0_70 = arith.constant 0 : index
    %141 = vector.load %arg13[%c0_69, %c0_70] : memref<1x4xf32, #tpu.memory_space<vmem>>, vector<1x4xf32>
    %142 = vector.broadcast %141 : vector<1x4xf32> to vector<256x4xf32>
    %143 = arith.addf %140, %142 : vector<256x4xf32>
    %c0_71 = arith.constant 0 : index
    %c0_72 = arith.constant 0 : index
    %144 = vector.load %arg14[%c0_71, %c0_72] : memref<256x4xf32, #tpu.memory_space<vmem>>, vector<256x4xf32>
    tpu.vector_store %arg14[%c0_71, %c0_72], %143 {strides = array<i32>} : memref<256x4xf32, #tpu.memory_space<vmem>>, vector<256x4xf32>,
    return
  }
  func.func @transform_0(%arg0: i32) -> (i32, i32) {
    %c0_i32 = arith.constant 0 : i32
    %c0_i32_0 = arith.constant 0 : i32
    return %arg0, %c0_i32 : i32, i32
  }
  func.func @transform_1(%arg0: i32) -> (i32, i32) {
    %c0_i32 = arith.constant 0 : i32
    %c0_i32_0 = arith.constant 0 : i32
    %c0_i32_1 = arith.constant 0 : i32
    return %c0_i32, %c0_i32_0 : i32, i32
  }
  func.func @transform_2(%arg0: i32) -> (i32, i32) {
    %c0_i32 = arith.constant 0 : i32
    %c0_i32_0 = arith.constant 0 : i32
    %c0_i32_1 = arith.constant 0 : i32
    return %c0_i32, %c0_i32_0 : i32, i32
  }
  func.func @transform_3(%arg0: i32) -> (i32, i32, i32) {
    %c0_i32 = arith.constant 0 : i32
    %c0_i32_0 = arith.constant 0 : i32
    %c0_i32_1 = arith.constant 0 : i32
    %c0_i32_2 = arith.constant 0 : i32
    return %c0_i32, %c0_i32_0, %c0_i32_1 : i32, i32, i32
  }
  func.func @transform_4(%arg0: i32) -> (i32, i32, i32) {
    %c0_i32 = arith.constant 0 : i32
    %c0_i32_0 = arith.constant 0 : i32
    %c0_i32_1 = arith.constant 0 : i32
    %c0_i32_2 = arith.constant 0 : i32
    return %c0_i32, %c0_i32_0, %c0_i32_1 : i32, i32, i32
  }
  func.func @transform_5(%arg0: i32) -> (i32, i32) {
    %c0_i32 = arith.constant 0 : i32
    %c0_i32_0 = arith.constant 0 : i32
    %c0_i32_1 = arith.constant 0 : i32
    return %c0_i32, %c0_i32_0 : i32, i32
  }
  func.func @transform_6(%arg0: i32) -> (i32, i32) {
    %c0_i32 = arith.constant 0 : i32
    %c0_i32_0 = arith.constant 0 : i32
    %c0_i32_1 = arith.constant 0 : i32
    return %c0_i32, %c0_i32_0 : i32, i32
  }
  func.func @transform_7(%arg0: i32) -> (i32, i32) {
    %c0_i32 = arith.constant 0 : i32
    %c0_i32_0 = arith.constant 0 : i32
    %c0_i32_1 = arith.constant 0 : i32
    return %c0_i32, %c0_i32_0 : i32, i32
  }
  func.func @transform_8(%arg0: i32) -> (i32, i32) {
    %c0_i32 = arith.constant 0 : i32
    %c0_i32_0 = arith.constant 0 : i32
    %c0_i32_1 = arith.constant 0 : i32
    return %c0_i32, %c0_i32_0 : i32, i32
  }
  func.func @transform_9(%arg0: i32) -> (i32, i32) {
    %c0_i32 = arith.constant 0 : i32
    %c0_i32_0 = arith.constant 0 : i32
    %c0_i32_1 = arith.constant 0 : i32
    return %c0_i32, %c0_i32_0 : i32, i32
  }
  func.func @transform_10(%arg0: i32) -> (i32, i32) {
    %c0_i32 = arith.constant 0 : i32
    %c0_i32_0 = arith.constant 0 : i32
    %c0_i32_1 = arith.constant 0 : i32
    return %c0_i32, %c0_i32_0 : i32, i32
  }
  func.func @transform_11(%arg0: i32) -> (i32, i32) {
    %c0_i32 = arith.constant 0 : i32
    %c0_i32_0 = arith.constant 0 : i32
    %c0_i32_1 = arith.constant 0 : i32
    return %c0_i32, %c0_i32_0 : i32, i32
  }
  func.func @transform_12(%arg0: i32) -> (i32, i32) {
    %c0_i32 = arith.constant 0 : i32
    %c0_i32_0 = arith.constant 0 : i32
    %c0_i32_1 = arith.constant 0 : i32
    return %c0_i32, %c0_i32_0 : i32, i32
  }
  func.func @transform_13(%arg0: i32) -> (i32, i32) {
    %c0_i32 = arith.constant 0 : i32
    %c0_i32_0 = arith.constant 0 : i32
    return %arg0, %c0_i32 : i32, i32
  }
}

</mosaic_0001>

<bundles_post_ra>
// kernel: nerf_forward.1
= control target key start
LH: loop header
LB: loop body
LE: loop exit
PB: predicated region body
PF: predicated region fallthrough
CT: control target
= control target key end

     0   :  { %18 = vsyncpa [#allocation3], 0  ;;  %s10603_s0 = inlined_call_operand.vmem [shape: f32[512,6], index: 0, kind: input, shape index: {}]   ;;  %s10604_s1 = inlined_call_operand.vmem [shape: f32[3,256], index: 1, kind: input, shape index: {}]   ;;  %s10605_s2 = inlined_call_operand.vmem [shape: f32[1,256], index: 2, kind: input, shape index: {}]   ;;  %s10606_s3 = inlined_call_operand.vmem [shape: bf16[6,256,256], index: 3, kind: input, shape index: {}]   ;;  %s10607_s4 = inlined_call_operand.vmem [shape: f32[6,1,256], index: 4, kind: input, shape index: {}]   ;;  %s10608_s5 = inlined_call_operand.hbm [shape: bf16[256,256], index: 5, kind: input, shape index: {}]   ;;  %s10609_s6 = inlined_call_operand.vmem [shape: f32[1,256], index: 6, kind: input, shape index: {}]   ;;  %s10610_s7 = inlined_call_operand.hbm [shape: bf16[256,128], index: 7, kind: input, shape index: {}]   ;;  %s10611_s8 = inlined_call_operand.vmem [shape: f32[3,128], index: 8, kind: input, shape index: {}]   ;;  %s10612_s9 = inlined_call_operand.vmem [shape: f32[1,128], index: 9, kind: input, shape index: {}]   ;;  %s10613_s10 = inlined_call_operand.vmem [shape: f32[1,256], index: 10, kind: input, shape index: {}]   ;;  %s10614_s11 = inlined_call_operand.vmem [shape: f32[3,128], index: 11, kind: input, shape index: {}]   ;;  %s10615_s12 = inlined_call_operand.vmem [shape: f32[1,4], index: 12, kind: input, shape index: {}]   ;;  %s10616_s13 = inlined_call_operand.vmem [shape: f32[512,4], index: 13, kind: output, shape index: {}]  }
   0x1   :  { %19 = vsyncpa [#allocation5], 0  ;;  %s7678_s25 = smov 0  }
   0x2 LB: > { %s7596_s26 = smov [#allocation2]   ;;  %s10620_s28 = sadd.s32 4294967295, %s7594_s25   ;;  %s7594_s25 = sphi %s7678_s25, %s25_s25  }
   0x3   : > { %s358_s27 = sshll.u32 %s7596_s26, 4  ;;  %p6509_p0 = scmp.ge.s32.totalorder %s7594_s25, 1  ;;  %s359_s27 = int_to_ptr.vmem [resolvable:$true] %s358_s27 }
   0x4   : > { %p334_p1 = scmp.lt.s32.totalorder %s7594_s25, 3  ;;  %p7692_p3 = scmp.eq.s32.totalorder %s10620_s28, 0 }
   0x5   : > { %s7597_s14 = smov [#allocation4]   ;;  %s7524_s19 = scalar_lea.hbm %s10608_s5, 4096 }
   0x6   : > { %p7686_p2 = pnand %p6509_p0, %p334_p1  ;;  %s374_s15 = sshll.u32 %s7597_s14, 4  ;;  %s7704_s15 = int_to_ptr.vmem [resolvable:$true] %s374_s15 }
   0x7   : > { %s10623_s30 = scalar_select %p7692_p3, 1, 0 }
   0x8   : > { %s10622_s29 = scalar_select %p7686_p2, 1, 0 }
   0x9   : > { %p7049_p4 = pneg %p7686_p2  ;;  %p7525_p6 = scmp.ne.s32.totalorder %s10608_s5, %s7524_s19 }
   0xa   : > { %p7531_p10 = scmp.lt.u32.totalorder %s7524_s19, %s10608_s5 }
   0xb   : > { %p7700_p5 = pnand %p7692_p3, %p7049_p4 }
   0xd   : > { %p7526_p7 = pneg %p7700_p5 }
   0xf   : > { %p7527_p8 = pnand %p7526_p7, %p7525_p6 }
  0x11   : > { %p7528_p9 = pneg %p7527_p8 }
  0x13   : > { %p7533_p11 = pnand %p7531_p10, %p7528_p9 }
  0x15   : > { %7536 = shalt.err (!%p7533_p11)
}
  0x16   : > { %s7537_s24 = scalar_lea.vmem %s359_s27, 4096  ;;  %p7545_p1 = scmp.lt.s32.totalorder %s359_s27, %s359_s27 }
  0x17   : > { %p7538_p12 = scmp.ne.s32.totalorder %s359_s27, %s7537_s24  ;;  %p7546_p4 = scmp.lt.s32.totalorder %s7537_s24, %s7537_s24 }
  0x19   : > { %p7540_p13 = pnand %p7538_p12, %p7526_p7  ;;  %p7547_p3 = por %p7546_p4, %p7545_p1 }
  0x1b   : > { %p7541_p0 = pneg %p7540_p13 }
  0x1d   : > { %p7548_p2 = pnand %p7547_p3, %p7541_p0 }
  0x1f   : > { %7551 = shalt.err (!%p7548_p2)
}
  0x20   : > { %s7598_s26 = smov 128   ;;  %s7599_s14 = smov 8  }
  0x21   : > { %7052 = dma.hbm_to_vmem [thread:$0]  (!%p7700_p5), %s10608_s5, 4096, %s359_s27, [#allocation3], %s7598_s26, %s7598_s26, %s7599_s14  }
  0x22   : > { %s7552_s21 = scalar_lea.hbm %s10610_s7, 2048 }
  0x23   : > { %p7553_p6 = scmp.ne.s32.totalorder %s10610_s7, %s7552_s21  ;;  %p7559_p8 = scmp.lt.u32.totalorder %s7552_s21, %s10610_s7 }
  0x25   : > { %p7555_p2 = pnand %p7553_p6, %p7526_p7 }
  0x27   : > { %p7556_p3 = pneg %p7555_p2 }
  0x29   : > { %p7561_p9 = pnand %p7559_p8, %p7556_p3 }
  0x2b   : > { %7564 = shalt.err (!%p7561_p9)
}
  0x2c   : > { %s7565_s27 = scalar_lea.vmem %s7704_s15, 2048  ;;  %p7573_p13 = scmp.lt.s32.totalorder %s7704_s15, %s7704_s15 }
  0x2d   : > { %p7566_p10 = scmp.ne.s32.totalorder %s7704_s15, %s7565_s27  ;;  %p7574_p0 = scmp.lt.s32.totalorder %s7565_s27, %s7565_s27 }
  0x2f   : > { %p7568_p11 = pnand %p7566_p10, %p7526_p7  ;;  %p7575_p1 = por %p7574_p0, %p7573_p13 }
  0x31   : > { %p7569_p12 = pneg %p7568_p11 }
  0x33   : > { %p7576_p4 = pnand %p7575_p1, %p7569_p12 }
  0x35   : > { %7579 = shalt.err (!%p7576_p4)
}
  0x36   : > { %s7600_s28 = smov 64   ;;  %s7601_s26 = smov 4  }
  0x37   : > { %7055 = dma.hbm_to_vmem [thread:$0]  (!%p7700_p5), %s10610_s7, 2048, %s7704_s15, [#allocation5], %s7600_s28, %s7600_s28, %s7601_s26  }
  0x38   : > { %p10625_p6 = scmp.ne.s32.totalorder %s10622_s29, 0 }
  0x3a   : > { %414 = sbr.rel (%p10625_p6) target bundleno = 2441 (0x989), region = 72 }
  0x41   : > { %p10626_p7 = scmp.ne.s32.totalorder %s10623_s30, 0 }
  0x43   : > { %7585 = dma.done.wait (%p10626_p7), [#allocation3], 4096  }
  0x44   : > { %7587 = vsyncadd (%p10626_p7), [#allocation3], 4294963200 }
  0x45   : > { %7589 = dma.done.wait (%p10626_p7), [#allocation5], 2048  }
  0x46   : > { %7591 = vsyncadd (%p10626_p7), [#allocation5], 4294965248  ;;  %s10627_s16 = sadd.s32 4294967295, %s7594_s25   ;;  %v7602_v0 = vmov 2   ;;  %v7603_v1 = vmov 1   ;;  %v7604_v12 = vmov 0  }
  0x47   : > { %s6516_s18 = sshll.u32 %s10627_s16, 5  ;;  %7081 = vset.pattern.permute.xlu0 %v7602_v0  ;;  %7080 = vset.pattern.permute.xlu1 %v7603_v1  ;;  %v7140_v6 = vld [vmem:[%s10606_s3 + $0x4] ss:$8 sps:$4 sm:$0xff]   ;;  %v7142_v7 = vld [vmem:[%s10606_s3] ss:$8 sps:$4 sm:$0xff]   ;;  %vm6258_vm0 = vcmask 7168  }
  0x48   : > { %p463_p5 = scmp.lt.s32.totalorder %s6516_s18, 63  ;;  %v7143_v8 = vld [vmem:[%s10606_s3 + $0x14] ss:$8 sps:$4 sm:$0xff]   ;;  %1675 = vmatprep.subr.bf16.mxu0 %v7140_v6  ;;  %v7145_v9 = vld [vmem:[%s10606_s3 + $0x10] ss:$8 sps:$4 sm:$0xff]   ;;  %vm6291_vm1 = vcmask 15360  }
  0x49   : > { %1676 = vmatpush1.bf16.msra.mxu0 %v7142_v7  ;;  %v7146_v10 = vld [vmem:[%s10606_s3 + $0x24] ss:$8 sps:$4 sm:$0xff]   ;;  %v7148_v11 = vld [vmem:[%s10606_s3 + $0x20] ss:$8 sps:$4 sm:$0xff]   ;;  %v7149_v13 = vld [vmem:[%s10606_s3 + $0x34] ss:$8 sps:$4 sm:$0xff]  }
  0x4a   : > { %s10701_s18 = smov (!%p463_p5, %s6516_s18), 63  ;;  %1677 = vmatprep.subr.bf16.mxu0 %v7143_v8  ;;  %v7151_v14 = vld [vmem:[%s10606_s3 + $0x30] ss:$8 sps:$4 sm:$0xff]   ;;  %v7152_v15 = vld [vmem:[%s10606_s3 + $0x44] ss:$8 sps:$4 sm:$0xff]   ;;  %vm6324_vm2 = vcmask 23552  }
  0x4b   : > { %s6517_s29 = sshll.u32 %s10701_s18, 3  ;;  %v7154_v17 = vld [vmem:[%s10606_s3 + $0x40] ss:$8 sps:$4 sm:$0xff]   ;;  %v7155_v18 = vld [vmem:[%s10606_s3 + $0x54] ss:$8 sps:$4 sm:$0xff]   ;;  %vm6396_vm3 = vcmask 31744  }
  0x4c   : > { %s7775_s30 = scalar_lea.vmem %s10603_s0, %s6517_s29  ;;  %v7157_v20 = vld [vmem:[%s10606_s3 + $0x50] ss:$8 sps:$4 sm:$0xff]   ;;  %v7158_v21 = vld [vmem:[%s10606_s3 + $0x64] ss:$8 sps:$4 sm:$0xff]   ;;  %v7160_v23 = vld [vmem:[%s10606_s3 + $0x60] ss:$8 sps:$4 sm:$0xff]   ;;  %s10318_s17 = scalar_lea.vmem %s10616_s13, %s6517_s29 }
  0x4d   : > { %v475_v2 = vld [vmem:[%s7775_s30] sm:$0xff]  ;;  %v477_v3 = vld [vmem:[%s7775_s30 + $0x10] sm:$0xff]  ;;  %v476_v4 = vld [vmem:[%s7775_s30 + $0x8] sm:$0xff]  ;;  %1678 = vmatpush1.bf16.msra.mxu0 %v7145_v9 }
  0x4e   : > { %1026 = vperm.xlu0 %7081, %v475_v2   ;;  %752 = vperm.xlu1 %7080, %v475_v2   ;;  %v7781_v5 = vld [vmem:[%s7775_s30 + $0x20] sm:$0xff]  ;;  %v478_v16 = vld [vmem:[%s7775_s30 + $0x18] sm:$0xff]  ;;  %v480_v19 = vld [vmem:[%s7775_s30 + $0x28] sm:$0xff] }
  0x4f   : > { %1679 = vmatprep.subr.bf16.mxu0 %v7146_v10  ;;  %v7830_v22 = vld [vmem:[%s7775_s30 + $0x38] sm:$0xff]  ;;  %v7840_v25 = vld [vmem:[%s7775_s30 + $0x48] sm:$0xff]  ;;  %v481_v38 = vld [vmem:[%s7775_s30 + $0x30] sm:$0xff] }
  0x50   : > { %v7161_v24 = vld [vmem:[%s10606_s3 + $0x74] ss:$8 sps:$4 sm:$0xff]   ;;  %v7163_v26 = vld [vmem:[%s10606_s3 + $0x70] ss:$8 sps:$4 sm:$0xff]   ;;  %v7164_v27 = vld [vmem:[%s10606_s3 + $0x84] ss:$8 sps:$4 sm:$0xff]  }
  0x51   : > { %1680 = vmatpush1.bf16.msra.mxu0 %v7148_v11  ;;  %v7851_v28 = vld [vmem:[%s7775_s30 + $0x58] sm:$0xff]  ;;  %v7166_v29 = vld [vmem:[%s10606_s3 + $0x80] ss:$8 sps:$4 sm:$0xff]   ;;  %v7170_v33 = vld [vmem:[%s10606_s3 + $0xa4] ss:$8 sps:$4 sm:$0xff]  }
  0x52   : > { %1034 = vperm.xlu0 %7081, %v477_v3   ;;  %756 = vperm.xlu1 %7080, %v476_v4   ;;  %v7167_v30 = vld [vmem:[%s10606_s3 + $0x94] ss:$8 sps:$4 sm:$0xff]   ;;  %v7862_v31 = vld [vmem:[%s7775_s30 + $0x68] sm:$0xff]  ;;  %v7169_v32 = vld [vmem:[%s10606_s3 + $0x90] ss:$8 sps:$4 sm:$0xff]  }
  0x53   : > { %1681 = vmatprep.subr.bf16.mxu0 %v7149_v13  ;;  %v7874_v34 = vld [vmem:[%s7775_s30 + $0x78] sm:$0xff]  ;;  %v7172_v35 = vld [vmem:[%s10606_s3 + $0xa0] ss:$8 sps:$4 sm:$0xff]   ;;  %v7176_v39 = vld [vmem:[%s10606_s3 + $0xc4] ss:$8 sps:$4 sm:$0xff]  }
  0x54   : > { %v7173_v36 = vld [vmem:[%s10606_s3 + $0xb4] ss:$8 sps:$4 sm:$0xff]   ;;  %v7175_v37 = vld [vmem:[%s10606_s3 + $0xb0] ss:$8 sps:$4 sm:$0xff]   ;;  %v7178_v40 = vld [vmem:[%s10606_s3 + $0xc0] ss:$8 sps:$4 sm:$0xff]  }
  0x55   : > { %1682 = vmatpush1.bf16.msra.mxu0 %v7151_v14  ;;  %v7179_v41 = vld [vmem:[%s10606_s3 + $0xd4] ss:$8 sps:$4 sm:$0xff]   ;;  %v483_v42 = vld [vmem:[%s7775_s30 + $0x40] sm:$0xff]  ;;  %v7181_v43 = vld [vmem:[%s10606_s3 + $0xd0] ss:$8 sps:$4 sm:$0xff]  }
  0x56   : > { %1042 = vperm.xlu0 %7081, %v7781_v5   ;;  %7082 = vset.pattern.permute.xlu1 %v7602_v0  ;;  %v7182_v44 = vld [vmem:[%s10606_s3 + $0xe4] ss:$8 sps:$4 sm:$0xff]   ;;  %v485_v45 = vld [vmem:[%s7775_s30 + $0x50] sm:$0xff]  ;;  %v7184_v46 = vld [vmem:[%s10606_s3 + $0xe0] ss:$8 sps:$4 sm:$0xff]  }
  0x57   : > { %1030 = vperm.xlu1 %7082, %v476_v4   ;;  %1683 = vmatprep.subr.bf16.mxu0 %v7152_v15  ;;  %v7185_v47 = vld [vmem:[%s10606_s3 + $0xf4] ss:$8 sps:$4 sm:$0xff]   ;;  %v487_v48 = vld [vmem:[%s7775_s30 + $0x60] sm:$0xff]  ;;  %v7187_v49 = vld [vmem:[%s10606_s3 + $0xf0] ss:$8 sps:$4 sm:$0xff]  }
  0x58   : > { %v7921_v50 = vld [vmem:[%s7775_s30 + $0x70] sm:$0xff]  ;;  %v7927_v51 = vld [vmem:[%s7775_s30 + $0x80] sm:$0xff]  ;;  %v7941_v54 = vld [vmem:[%s7775_s30 + $0x88] sm:$0xff] }
  0x59   : > { %1684 = vmatpush1.bf16.msra.mxu0 %v7154_v17  ;;  %v7932_v52 = vld [vmem:[%s7775_s30 + $0x90] sm:$0xff]  ;;  %v7935_v53 = vld [vmem:[%s7775_s30 + $0xa0] sm:$0xff]  ;;  %v7946_v55 = vld [vmem:[%s7775_s30 + $0x98] sm:$0xff] }
  0x5a   : > { %7088 = vset.pattern.permute.xlu0 %v7604_v12  ;;  %1685 = vmatprep.subr.bf16.mxu0 %v7155_v18  ;;  %v7952_v56 = vld [vmem:[%s7775_s30 + $0xa8] sm:$0xff]  ;;  %v7957_v57 = vld [vmem:[%s7775_s30 + $0xb8] sm:$0xff]  ;;  %v7974_v60 = vld [vmem:[%s7775_s30 + $0xb0] sm:$0xff] }
  0x5b   : > { %510 = vperm.xlu0 %7088, %v475_v2   ;;  %7083 = vset.pattern.permute.xlu1 %v7604_v12  ;;  %v7963_v58 = vld [vmem:[%s7775_s30 + $0xc8] sm:$0xff]  ;;  %v7966_v59 = vld [vmem:[%s7775_s30 + $0xd8] sm:$0xff]  ;;  %v7980_v61 = vld [vmem:[%s7775_s30 + $0xc0] sm:$0xff]  ;;  %v669_v2 = vlaneseq }
  0x5c   : > { %520 = vperm.xlu1 %7083, %v477_v3   ;;  %v7985_v62 = vld [vmem:[%s7775_s30 + $0xd0] sm:$0xff]  ;;  %v7990_v63 = vld [vmem:[%s7775_s30 + $0xe0] sm:$0xff] }
  0x5d   : > { %1686 = vmatpush1.bf16.msra.mxu0 %v7157_v20  ;;  %v507_v7 = vld [vmem:[%s10604_s1] sm:$0x77] }
  0x5e   : > { %1687 = vmatprep.subr.bf16.mxu0 %v7158_v21 }
  0x5f   : > { %515 = vperm.xlu0 %7088, %v476_v4  }
  0x60   : > { %7084 = vset.pattern.permute.xlu1 %v7603_v1 }
  0x61   : > { %760 = vperm.xlu1 %7084, %v477_v3   ;;  %1688 = vmatpush1.bf16.msra.mxu0 %v7160_v23  ;;  %v670_v3 = vshrl.u32 %v669_v2, 7 }
  0x62   : > { %1689 = vmatprep.subr.bf16.mxu0 %v7161_v24 }
  0x63   : > { %525 = vperm.xlu0 %7088, %v478_v16   ;;  %v7997_v6 = vsub.s32 1, %v670_v3  ;;  %v885_v8 = vsub.s32 5, %v670_v3  ;;  %v8003_v9 = vsub.s32 0, %v670_v3  ;;  %v675_v10 = vsub.s32 4, %v670_v3 }
  0x64   : > { %v1159_v11 = vsub.s32 6, %v670_v3 }
  0x65   : > { %764 = vperm.xlu1 %7084, %v478_v16   ;;  %1690 = vmatpush1.bf16.msra.mxu0 %v7163_v26  ;;  %v882_v15 = vrot.slane %v507_v7, %v7997_v6  ;;  %v886_v17 = vrot.slane %v507_v7, %v885_v8  ;;  %v672_v18 = vrot.slane %v507_v7, %v8003_v9 }
  0x66   : > { %1691 = vmatprep.subr.bf16.mxu0 %v7164_v27  ;;  %v1160_v20 = vrot.slane %v507_v7, %v1159_v11 }
  0x67   : > { %535 = vperm.xlu0 %7088, %v480_v19   ;;  %v8022_v26 = vrot.slane %v672_v18, %v8003_v9 }
  0x69   : > { %7085 = vset.pattern.permute.xlu1 %v7602_v0  ;;  %1692 = vmatpush1.bf16.msra.mxu0 %v7166_v29 }
  0x6a   : > { %1038 = vperm.xlu1 %7085, %v478_v16   ;;  %1693 = vmatprep.subr.bf16.mxu0 %v7167_v30  ;;  %v8006_v16 = vsub.s32 2, %v670_v3 }
  0x6b   : > { %545 = vperm.xlu0 %7088, %v7830_v22  }
  0x6c   : > { %10628 = vst [vmem:[#allocation8_spill] sm:$0xff] %v8006_v16  ;;  %v1156_v23 = vrot.slane %v507_v7, %v8006_v16 }
  0x6d   : > { %1694 = vmatpush1.bf16.msra.mxu0 %v7169_v32 }
  0x6e   : > { %7086 = vset.pattern.permute.xlu1 %v7604_v12  ;;  %1695 = vmatprep.subr.bf16.mxu0 %v7170_v33  ;;  %v8032_v30 = vrot.slane %v1156_v23, %v8006_v16 }
  0x6f   : > { %530 = vperm.xlu1 %7086, %v7781_v5   ;;  %555 = vperm.xlu0 %7088, %v7840_v25  }
  0x71   : > { %1696 = vmatpush1.bf16.msra.mxu0 %v7172_v35 }
  0x72   : > { %1697 = vmatprep.subr.bf16.mxu0 %v7173_v36 }
  0x73   : > { %7087 = vset.pattern.permute.xlu1 %v7603_v1  ;;  %565 = vperm.xlu0 %7088, %v7851_v28  }
  0x74   : > { %768 = vperm.xlu1 %7087, %v7781_v5  }
  0x75   : > { %1698 = vmatpush1.bf16.msra.mxu0 %v7175_v37 }
  0x76   : > { %1699 = vmatprep.subr.bf16.mxu0 %v7176_v39 }
  0x77   : > { %575 = vperm.xlu0 %7088, %v7862_v31  }
  0x78   : > { %772 = vperm.xlu1 %7087, %v480_v19  }
  0x79   : > { %1700 = vmatpush1.bf16.msra.mxu0 %v7178_v40 }
  0x7a   : > { %1701 = vmatprep.subr.bf16.mxu0 %v7179_v41 }
  0x7b   : > { %585 = vperm.xlu0 %7088, %v7874_v34  }
  0x7c   : > { %7089 = vset.pattern.permute.xlu1 %v7602_v0 }
  0x7d   : > { %1046 = vperm.xlu1 %7089, %v480_v19   ;;  %1702 = vmatpush1.bf16.msra.mxu0 %v7181_v43  ;;  %v676_v19 = vrot.slane %v507_v7, %v675_v10 }
  0x7e   : > { %1703 = vmatprep.subr.bf16.mxu0 %v7182_v44 }
  0x7f   : > { %7103 = vset.pattern.permute.xlu0 %v7602_v0  ;;  %v8025_v27 = vrot.slane %v676_v19, %v8003_v9 }
  0x80   : > { %1050 = vperm.xlu0 %7103, %v481_v38  }
  0x81   : > { %7090 = vset.pattern.permute.xlu1 %v7604_v12  ;;  %1704 = vmatpush1.bf16.msra.mxu0 %v7184_v46 }
  0x82   : > { %540 = vperm.xlu1 %7090, %v481_v38   ;;  %1705 = vmatprep.subr.bf16.mxu0 %v7185_v47 }
  0x84   : > { %1058 = vperm.xlu0 %7103, %v483_v42  }
  0x85   : > { %1706 = vmatpush1.bf16.msra.mxu0 %v7187_v49 }
  0x86   : > { %7091 = vset.pattern.permute.xlu1 %v7603_v1 }
  0x87   : > { %776 = vperm.xlu1 %7091, %v481_v38   ;;  %v1299_v38 = vld [vmem:[%s10605_s2] sm:$0x3] }
  0x88   : > { %1066 = vperm.xlu0 %7103, %v485_v45  }
  0x8b   : > { %780 = vperm.xlu1 %7091, %v7830_v22  }
  0x8c   : > { %1074 = vperm.xlu0 %7103, %v487_v48  }
  0x8f   : > { %7092 = vset.pattern.permute.xlu1 %v7602_v0 }
  0x90   : > { %1054 = vperm.xlu1 %7092, %v7830_v22   ;;  %1082 = vperm.xlu0 %7103, %v7921_v50   ;;  %v8014_v22 = vrot.slane %v882_v15, %v7997_v6 }
  0x94   : > { %7093 = vset.pattern.permute.xlu1 %v7604_v12  ;;  %1090 = vperm.xlu0 %7103, %v7927_v51  }
  0x95   : > { %550 = vperm.xlu1 %7093, %v483_v42  }
  0x98   : > { %1098 = vperm.xlu0 %7103, %v7932_v52  }
  0x99   : > { %7094 = vset.pattern.permute.xlu1 %v7603_v1 }
  0x9a   : > { %784 = vperm.xlu1 %7094, %v483_v42   ;;  %v8045_v42 = vld [vmem:[%s7775_s30 + $0xe8] sm:$0xff] }
  0x9c   : > { %1106 = vperm.xlu0 %7103, %v7935_v53  }
  0x9e   : > { %788 = vperm.xlu1 %7094, %v7840_v25  }
  0xa0   : > { %7114 = vset.pattern.permute.xlu0 %v7604_v12 }
  0xa1   : > { %595 = vperm.xlu0 %7114, %v7941_v54  }
  0xa2   : > { %7095 = vset.pattern.permute.xlu1 %v7602_v0 }
  0xa3   : > { %1062 = vperm.xlu1 %7095, %v7840_v25   ;;  %v8018_v25 = vrot.slane %v886_v17, %v7997_v6 }
  0xa5   : > { %605 = vperm.xlu0 %7114, %v7946_v55  }
  0xa7   : > { %7096 = vset.pattern.permute.xlu1 %v7604_v12 }
  0xa8   : > { %560 = vperm.xlu1 %7096, %v485_v45  }
  0xa9   : > { %615 = vperm.xlu0 %7114, %v7952_v56  }
  0xac   : > { %7097 = vset.pattern.permute.xlu1 %v7603_v1 }
  0xad   : > { %792 = vperm.xlu1 %7097, %v485_v45   ;;  %625 = vperm.xlu0 %7114, %v7957_v57   ;;  %v8049_v45 = vrot.slane %v1299_v38, %v7997_v6 }
  0xb1   : > { %796 = vperm.xlu1 %7097, %v7851_v28   ;;  %635 = vperm.xlu0 %7114, %v7963_v58  }
  0xb5   : > { %7098 = vset.pattern.permute.xlu1 %v7602_v0  ;;  %645 = vperm.xlu0 %7114, %v7966_v59  }
  0xb6   : > { %1070 = vperm.xlu1 %7098, %v7851_v28   ;;  %v8028_v28 = vrot.slane %v1160_v20, %v8006_v16 }
  0xb9   : > { %7123 = vset.pattern.permute.xlu0 %v7602_v0 }
  0xba   : > { %7099 = vset.pattern.permute.xlu1 %v7604_v12  ;;  %1114 = vperm.xlu0 %7123, %v7974_v60  }
  0xbb   : > { %570 = vperm.xlu1 %7099, %v487_v48  }
  0xbe   : > { %1122 = vperm.xlu0 %7123, %v7980_v61  }
  0xbf   : > { %7100 = vset.pattern.permute.xlu1 %v7603_v1 }
  0xc0   : > { %800 = vperm.xlu1 %7100, %v487_v48  }
  0xc2   : > { %1130 = vperm.xlu0 %7123, %v7985_v62  }
  0xc4   : > { %804 = vperm.xlu1 %7100, %v7862_v31  }
  0xc6   : > { %1138 = vperm.xlu0 %7123, %v7990_v63  }
  0xc8   : > { %7101 = vset.pattern.permute.xlu1 %v7602_v0 }
  0xc9   : > { %1078 = vperm.xlu1 %7101, %v7862_v31  }
  0xca   : > { %7128 = vset.pattern.permute.xlu0 %v7604_v12 }
  0xcb   : > { %655 = vperm.xlu0 %7128, %v8045_v42  }
  0xcd   : > { %7102 = vset.pattern.permute.xlu1 %v7604_v12  ;;  %v753_v4 = vpop.permute.xlu1 %752  ;;  %v1027_v5 = vpop.permute.xlu0 %1026 }
  0xce   : > { %580 = vperm.xlu1 %7102, %v7921_v50   ;;  %v897_v29 = vmul.f32 %v8014_v22, %v753_v4  ;;  %v898_v32 = vmul.f32 %v8018_v25, %v753_v4  ;;  %v1172_v33 = vmul.f32 %v8028_v28, %v1027_v5  ;;  %v1171_v39 = vmul.f32 %v8032_v30, %v1027_v5 }
  0xcf   : > { %v8059_v4 = vrot.slane %v1299_v38, %v8003_v9 }
  0xd1   : > { %v757_v13 = vpop.permute.xlu1 %756  ;;  %v1035_v14 = vpop.permute.xlu0 %1034 }
  0xd2   : > { %7104 = vset.pattern.permute.xlu1 %v7603_v1  ;;  %v899_v43 = vmul.f32 %v8014_v22, %v757_v13  ;;  %v900_v46 = vmul.f32 %v8018_v25, %v757_v13  ;;  %v1176_v17 = vmul.f32 %v8028_v28, %v1035_v14  ;;  %v1175_v23 = vmul.f32 %v8032_v30, %v1035_v14 }
  0xd3   : > { %808 = vperm.xlu1 %7104, %v7921_v50  }
  0xd5   : > { %v8011_v21 = vpop.permute.xlu0 %1042 }
  0xd6   : > { %v1031_v24 = vpop.permute.xlu1 %1030 }
  0xd7   : > { %812 = vperm.xlu1 %7104, %v7874_v34   ;;  %v1174_v11 = vmul.f32 %v8028_v28, %v1031_v24 }
  0xda   : > { %v511_v31 = vpop.permute.xlu0 %510 }
  0xdb   : > { %v687_v35 = vmul.f32 %v8022_v26, %v511_v31  ;;  %v688_v36 = vmul.f32 %v8025_v27, %v511_v31  ;;  %7105 = vset.pattern.permute.xlu1 %v7602_v0  ;;  %v521_v37 = vpop.permute.xlu1 %520 }
  0xdc   : > { %1086 = vperm.xlu1 %7105, %v7874_v34   ;;  %v1173_v34 = vmul.f32 %v8032_v30, %v1031_v24  ;;  %v692_v2 = vmul.f32 %v8025_v27, %v521_v37  ;;  %v691_v13 = vmul.f32 %v8022_v26, %v521_v37 }
  0xdd   : > { %v961_v40 = vadd.f32 %v897_v29, %v687_v35  ;;  %v962_v41 = vadd.f32 %v898_v32, %v688_v36 }
  0xde   : > { %v516_v44 = vpop.permute.xlu0 %515 }
  0xdf   : > { %v689_v47 = vmul.f32 %v8022_v26, %v516_v44  ;;  %v690_v48 = vmul.f32 %v8025_v27, %v516_v44  ;;  %v1236_v49 = vadd.f32 %v1172_v33, %v962_v41  ;;  %v1235_v50 = vadd.f32 %v1171_v39, %v961_v40 }
  0xe0   : > { %7106 = vset.pattern.permute.xlu1 %v7604_v12  ;;  %v761_v3 = vpop.permute.xlu1 %760 }
  0xe1   : > { %v963_v5 = vadd.f32 %v899_v43, %v689_v47  ;;  %v964_v7 = vadd.f32 %v900_v46, %v690_v48  ;;  %v901_v8 = vmul.f32 %v8014_v22, %v761_v3  ;;  %v902_v10 = vmul.f32 %v8018_v25, %v761_v3  ;;  %590 = vperm.xlu1 %7106, %v7927_v51   ;;  %v8079_v43 = vld [vmem:[%s7775_s30 + $0xf8] sm:$0xff] }
  0xe2   : > { %v526_v15 = vpop.permute.xlu0 %525  ;;  %v1312_v20 = vadd.f32 %v8049_v45, %v1236_v49  ;;  %v1311_v33 = vadd.f32 %v8059_v4, %v1235_v50  ;;  %665 = vperm.xlu0 %7128, %v8079_v43  }
  0xe3   : > { %v1237_v18 = vadd.f32 %v1173_v34, %v963_v5  ;;  %v966_v19 = vadd.f32 %v902_v10, %v692_v2  ;;  %v965_v29 = vadd.f32 %v901_v8, %v691_v13  ;;  %v1238_v32 = vadd.f32 %v1174_v11, %v964_v7 }
  0xe4   : > { %v765_v31 = vpop.permute.xlu1 %764  ;;  %v693_v35 = vmul.f32 %v8022_v26, %v526_v15  ;;  %v694_v24 = vmul.f32 %v8025_v27, %v526_v15  ;;  %v1376_v41 = vmax.f32 %v1312_v20, 0.0  ;;  %v1375_v47 = vmax.f32 %v1311_v33, 0.0  ;;  %v8090_v15 = vld [vmem:[%s7775_s30 + $0xf0] sm:$0xff] }
  0xe5   : > { %v903_v36 = vmul.f32 %v8014_v22, %v765_v31  ;;  %v904_v37 = vmul.f32 %v8018_v25, %v765_v31  ;;  %7107 = vset.pattern.permute.xlu1 %v7603_v1  ;;  %v1314_v14 = vadd.f32 %v8049_v45, %v1238_v32  ;;  %v1313_v38 = vadd.f32 %v8059_v4, %v1237_v18 }
  0xe6   : > { %816 = vperm.xlu1 %7107, %v7927_v51   ;;  %v536_v39 = vpop.permute.xlu0 %535  ;;  %v1240_v40 = vadd.f32 %v1176_v17, %v966_v19  ;;  %v1239_v44 = vadd.f32 %v1175_v23, %v965_v29  ;;  %7132 = vset.pattern.permute.xlu0 %v7602_v0 }
  0xe7   : > { %v1378_v46 = vmax.f32 %v1314_v14, 0.0  ;;  %v1377_v48 = vmax.f32 %v1313_v38, 0.0  ;;  %v967_v49 = vadd.f32 %v903_v36, %v693_v35  ;;  %v968_v34 = vadd.f32 %v904_v37, %v694_v24  ;;  %1146 = vperm.xlu0 %7132, %v8090_v15  }
  0xe8   : > { %v1316_v8 = vadd.f32 %v8049_v45, %v1240_v40  ;;  %v1315_v13 = vadd.f32 %v8059_v4, %v1239_v44  ;;  %v1179_v40 = vmul.f32 %v8032_v30, %v8011_v21 }
  0xe9   : > { %v1039_v50 = vpop.permute.xlu1 %1038  ;;  %v1440_v3 = vpack.c.bf16 %v1378_v46, %v1376_v41  ;;  %v1439_v5 = vpack.c.bf16 %v1377_v48, %v1375_v47  ;;  %v1180_v41 = vmul.f32 %v8028_v28, %v8011_v21  ;;  %v697_v48 = vmul.f32 %v8022_v26, %v536_v39 }
  0xea   : > { %v1177_v51 = vmul.f32 %v8032_v30, %v1039_v50  ;;  %v1178_v2 = vmul.f32 %v8028_v28, %v1039_v50  ;;  %820 = vperm.xlu1 %7107, %v7941_v54   ;;  %v8085_v7 = vpop.permute.xlu0 %545  ;;  %v1380_v23 = vmax.f32 %v1316_v8, 0.0  ;;  %v1379_v31 = vmax.f32 %v1315_v13, 0.0 }
  0xeb   : > { %1707 = vmatprep.mubr.bf16.mxu0 %v1440_v3 }
  0xec   : > { %v1241_v10 = vadd.f32 %v1177_v51, %v967_v49  ;;  %v1242_v11 = vadd.f32 %v1178_v2, %v968_v34  ;;  %1708 = vmatmul.mubr.bf16.vlgmr.msra.gmra.mrb[0].mxu0 %v1439_v5  ;;  %v698_v49 = vmul.f32 %v8025_v27, %v536_v39 }
  0xee   : > { %7108 = vset.pattern.permute.xlu1 %v7602_v0  ;;  %v531_v17 = vpop.permute.xlu1 %530  ;;  %v1318_v18 = vadd.f32 %v8049_v45, %v1242_v11  ;;  %v1317_v19 = vadd.f32 %v8059_v4, %v1241_v10  ;;  %v8098_v20 = vpop.permute.xlu0 %555 }
  0xef   : > { %1094 = vperm.xlu1 %7108, %v7941_v54   ;;  %v695_v54 = vmul.f32 %v8022_v26, %v531_v17  ;;  %v696_v14 = vmul.f32 %v8025_v27, %v531_v17 }
  0xf0   : > { %v1382_v29 = vmax.f32 %v1318_v18, 0.0  ;;  %v1381_v32 = vmax.f32 %v1317_v19, 0.0 }
  0xf2   : > { %v1442_v33 = vpack.c.bf16 %v1382_v29, %v1380_v23  ;;  %v1441_v35 = vpack.c.bf16 %v1381_v32, %v1379_v31  ;;  %v8106_v38 = vpop.permute.xlu0 %565 }
  0xf3   : > { %7109 = vset.pattern.permute.xlu1 %v7604_v12  ;;  %v769_v24 = vpop.permute.xlu1 %768 }
  0xf4   : > { %v905_v36 = vmul.f32 %v8014_v22, %v769_v24  ;;  %v906_v37 = vmul.f32 %v8018_v25, %v769_v24  ;;  %600 = vperm.xlu1 %7109, %v7932_v52   ;;  %1717 = vmatprep.mubr.bf16.mxu0 %v1442_v33 }
  0xf5   : > { %1718 = vmatmul.mubr.bf16.gmra.mrb[4].mxu0 %v1441_v35 }
  0xf6   : > { %v969_v44 = vadd.f32 %v905_v36, %v695_v54  ;;  %v970_v46 = vadd.f32 %v906_v37, %v696_v14  ;;  %v8118_v3 = vpop.permute.xlu0 %575 }
  0xf7   : > { %v773_v47 = vpop.permute.xlu1 %772 }
  0xf8   : > { %7110 = vset.pattern.permute.xlu1 %v7603_v1  ;;  %v907_v34 = vmul.f32 %v8014_v22, %v773_v47  ;;  %v908_v50 = vmul.f32 %v8018_v25, %v773_v47  ;;  %v1243_v51 = vadd.f32 %v1179_v40, %v969_v44  ;;  %v1244_v2 = vadd.f32 %v1180_v41, %v970_v46  ;;  %v7190_v41 = vld [vmem:[%s10606_s3 + $0x100] ss:$8 sps:$4 sm:$0xff]  }
  0xf9   : > { %824 = vperm.xlu1 %7110, %v7932_v52  }
  0xfa   : > { %v971_v5 = vadd.f32 %v907_v34, %v697_v48  ;;  %v972_v8 = vadd.f32 %v908_v50, %v698_v49  ;;  %v1320_v17 = vadd.f32 %v8049_v45, %v1244_v2  ;;  %v1319_v18 = vadd.f32 %v8059_v4, %v1243_v51  ;;  %v8126_v19 = vpop.permute.xlu0 %585 }
  0xfb   : > { %v701_v51 = vmul.f32 %v8022_v26, %v8085_v7  ;;  %v702_v2 = vmul.f32 %v8025_v27, %v8085_v7 }
  0xfc   : > { %v1047_v21 = vpop.permute.xlu1 %1046  ;;  %v1384_v31 = vmax.f32 %v1320_v17, 0.0  ;;  %v1383_v33 = vmax.f32 %v1319_v18, 0.0 }
  0xfd   : > { %v1181_v10 = vmul.f32 %v8032_v30, %v1047_v21  ;;  %v1182_v11 = vmul.f32 %v8028_v28, %v1047_v21  ;;  %828 = vperm.xlu1 %7110, %v7946_v55  }
  0xff   : > { %v1245_v39 = vadd.f32 %v1181_v10, %v971_v5  ;;  %v1246_v13 = vadd.f32 %v1182_v11, %v972_v8  ;;  %v1051_v40 = vpop.permute.xlu0 %1050  ;;  %v7191_v11 = vld [vmem:[%s10606_s3 + $0x114] ss:$8 sps:$4 sm:$0xff]  }
 0x100   : > { %v1183_v49 = vmul.f32 %v8032_v30, %v1051_v40  ;;  %v1184_v34 = vmul.f32 %v8028_v28, %v1051_v40 }
 0x101   : > { %7111 = vset.pattern.permute.xlu1 %v7602_v0  ;;  %v541_v52 = vpop.permute.xlu1 %540  ;;  %v1322_v23 = vadd.f32 %v8049_v45, %v1246_v13  ;;  %v1321_v29 = vadd.f32 %v8059_v4, %v1245_v39  ;;  %v7193_v13 = vld [vmem:[%s10606_s3 + $0x110] ss:$8 sps:$4 sm:$0xff]  }
 0x102   : > { %1102 = vperm.xlu1 %7111, %v7946_v55   ;;  %v7188_v55 = vld [vmem:[%s10606_s3 + $0x104] ss:$8 sps:$4 sm:$0xff]   ;;  %v699_v44 = vmul.f32 %v8022_v26, %v541_v52  ;;  %v700_v46 = vmul.f32 %v8025_v27, %v541_v52 }
 0x103   : > { %v1386_v32 = vmax.f32 %v1322_v23, 0.0  ;;  %v1385_v35 = vmax.f32 %v1321_v29, 0.0  ;;  %2170 = vmatprep.subr.bf16.mxu1 %v7188_v55  ;;  %v7197_v55 = vld [vmem:[%s10606_s3 + $0x134] ss:$8 sps:$4 sm:$0xff]  }
 0x104   : > { %2171 = vmatpush1.bf16.msra.mxu1 %v7190_v41  ;;  %v7199_v41 = vld [vmem:[%s10606_s3 + $0x130] ss:$8 sps:$4 sm:$0xff]  }
 0x105   : > { %v1444_v24 = vpack.c.bf16 %v1386_v32, %v1384_v31  ;;  %v1443_v36 = vpack.c.bf16 %v1385_v35, %v1383_v33  ;;  %2172 = vmatprep.subr.bf16.mxu1 %v7191_v11  ;;  %v7194_v32 = vld [vmem:[%s10606_s3 + $0x124] ss:$8 sps:$4 sm:$0xff]   ;;  %v7196_v33 = vld [vmem:[%s10606_s3 + $0x120] ss:$8 sps:$4 sm:$0xff]  }
 0x106   : > { %7112 = vset.pattern.permute.xlu1 %v7604_v12  ;;  %v777_v37 = vpop.permute.xlu1 %776 }
 0x107   : > { %v909_v54 = vmul.f32 %v8014_v22, %v777_v37  ;;  %v910_v14 = vmul.f32 %v8018_v25, %v777_v37  ;;  %610 = vperm.xlu1 %7112, %v7935_v53   ;;  %1727 = vmatprep.mubr.bf16.mxu0 %v1444_v24 }
 0x108   : > { %1728 = vmatmul.mubr.bf16.gmra.mrb[8].mxu0 %v1443_v36  ;;  %2173 = vmatpush1.bf16.msra.mxu1 %v7193_v13  ;;  %v705_v13 = vmul.f32 %v8022_v26, %v8098_v20 }
 0x109   : > { %v973_v47 = vadd.f32 %v909_v54, %v699_v44  ;;  %v974_v48 = vadd.f32 %v910_v14, %v700_v46  ;;  %2174 = vmatprep.subr.bf16.mxu1 %v7194_v32  ;;  %v7206_v32 = vld [vmem:[%s10606_s3 + $0x164] ss:$8 sps:$4 sm:$0xff]  }
 0x10a   : > { %v781_v50 = vpop.permute.xlu1 %780 }
 0x10b   : > { %7113 = vset.pattern.permute.xlu1 %v7603_v1  ;;  %v911_v21 = vmul.f32 %v8014_v22, %v781_v50  ;;  %v912_v5 = vmul.f32 %v8018_v25, %v781_v50  ;;  %v1247_v8 = vadd.f32 %v1183_v49, %v973_v47  ;;  %v1248_v10 = vadd.f32 %v1184_v34, %v974_v48  ;;  %v1059_v49 = vpop.permute.xlu0 %1058  ;;  %v7200_v34 = vld [vmem:[%s10606_s3 + $0x144] ss:$8 sps:$4 sm:$0xff]  }
 0x10c   : > { %832 = vperm.xlu1 %7113, %v7935_v53   ;;  %2175 = vmatpush1.bf16.msra.mxu1 %v7196_v33  ;;  %v1188_v11 = vmul.f32 %v8028_v28, %v1059_v49 }
 0x10d   : > { %v975_v17 = vadd.f32 %v911_v21, %v701_v51  ;;  %v976_v18 = vadd.f32 %v912_v5, %v702_v2  ;;  %v1324_v29 = vadd.f32 %v8049_v45, %v1248_v10  ;;  %v1323_v31 = vadd.f32 %v8059_v4, %v1247_v8  ;;  %2176 = vmatprep.subr.bf16.mxu1 %v7197_v55  ;;  %v7202_v2 = vld [vmem:[%s10606_s3 + $0x140] ss:$8 sps:$4 sm:$0xff]   ;;  %v7203_v21 = vld [vmem:[%s10606_s3 + $0x154] ss:$8 sps:$4 sm:$0xff]  }
 0x10e   : > { %v1187_v10 = vmul.f32 %v8032_v30, %v1059_v49  ;;  %v7212_v49 = vld [vmem:[%s10606_s3 + $0x184] ss:$8 sps:$4 sm:$0xff]  }
 0x10f   : > { %v1055_v39 = vpop.permute.xlu1 %1054  ;;  %v1388_v37 = vmax.f32 %v1324_v29, 0.0  ;;  %v1387_v14 = vmax.f32 %v1323_v31, 0.0 }
 0x110   : > { %v1185_v7 = vmul.f32 %v8032_v30, %v1055_v39  ;;  %v1186_v52 = vmul.f32 %v8028_v28, %v1055_v39  ;;  %836 = vperm.xlu1 %7113, %v7952_v56   ;;  %2177 = vmatpush1.bf16.msra.mxu1 %v7199_v41 }
 0x111   : > { %2178 = vmatprep.subr.bf16.mxu1 %v7200_v34 }
 0x112   : > { %v1249_v53 = vadd.f32 %v1185_v7, %v975_v17  ;;  %v1250_v23 = vadd.f32 %v1186_v52, %v976_v18  ;;  %v706_v18 = vmul.f32 %v8025_v27, %v8098_v20  ;;  %v7205_v52 = vld [vmem:[%s10606_s3 + $0x150] ss:$8 sps:$4 sm:$0xff]  }
 0x114   : > { %7115 = vset.pattern.permute.xlu1 %v7602_v0  ;;  %v551_v35 = vpop.permute.xlu1 %550  ;;  %v1326_v24 = vadd.f32 %v8049_v45, %v1250_v23  ;;  %v1325_v36 = vadd.f32 %v8059_v4, %v1249_v53  ;;  %2179 = vmatpush1.bf16.msra.mxu1 %v7202_v2 }
 0x115   : > { %1110 = vperm.xlu1 %7115, %v7952_v56   ;;  %v703_v50 = vmul.f32 %v8022_v26, %v551_v35  ;;  %v704_v51 = vmul.f32 %v8025_v27, %v551_v35  ;;  %2180 = vmatprep.subr.bf16.mxu1 %v7203_v21 }
 0x116   : > { %v1390_v54 = vmax.f32 %v1326_v24, 0.0  ;;  %v1389_v40 = vmax.f32 %v1325_v36, 0.0 }
 0x118   : > { %v1446_v44 = vpack.c.bf16 %v1390_v54, %v1388_v37  ;;  %v1445_v46 = vpack.c.bf16 %v1389_v40, %v1387_v14  ;;  %2181 = vmatpush1.bf16.msra.mxu1 %v7205_v52  ;;  %v7209_v14 = vld [vmem:[%s10606_s3 + $0x174] ss:$8 sps:$4 sm:$0xff]  }
 0x119   : > { %7116 = vset.pattern.permute.xlu1 %v7604_v12  ;;  %v785_v56 = vpop.permute.xlu1 %784  ;;  %2182 = vmatprep.subr.bf16.mxu1 %v7206_v32  ;;  %v7218_v32 = vld [vmem:[%s10606_s3 + $0x1a4] ss:$8 sps:$4 sm:$0xff]  }
 0x11a   : > { %v913_v47 = vmul.f32 %v8014_v22, %v785_v56  ;;  %v914_v48 = vmul.f32 %v8018_v25, %v785_v56  ;;  %620 = vperm.xlu1 %7116, %v7974_v60   ;;  %1737 = vmatprep.mubr.bf16.mxu0 %v1446_v44  ;;  %v7211_v44 = vld [vmem:[%s10606_s3 + $0x170] ss:$8 sps:$4 sm:$0xff]  }
 0x11b   : > { %1738 = vmatmul.mubr.bf16.gmra.mrb[12].mxu0 %v1445_v46 }
 0x11c   : > { %v977_v5 = vadd.f32 %v913_v47, %v703_v50  ;;  %v978_v8 = vadd.f32 %v914_v48, %v704_v51  ;;  %v7214_v51 = vld [vmem:[%s10606_s3 + $0x180] ss:$8 sps:$4 sm:$0xff]  }
 0x11d   : > { %v789_v39 = vpop.permute.xlu1 %788 }
 0x11e   : > { %v915_v17 = vmul.f32 %v8014_v22, %v789_v39  ;;  %7117 = vset.pattern.permute.xlu1 %v7603_v1  ;;  %v916_v7 = vmul.f32 %v8018_v25, %v789_v39  ;;  %v1251_v53 = vadd.f32 %v1187_v10, %v977_v5  ;;  %v1252_v23 = vadd.f32 %v1188_v11, %v978_v8  ;;  %v1067_v5 = vpop.permute.xlu0 %1066  ;;  %v7215_v8 = vld [vmem:[%s10606_s3 + $0x194] ss:$8 sps:$4 sm:$0xff]   ;;  %v7217_v39 = vld [vmem:[%s10606_s3 + $0x190] ss:$8 sps:$4 sm:$0xff]  }
 0x11f   : > { %840 = vperm.xlu1 %7117, %v7974_v60   ;;  %v7208_v60 = vld [vmem:[%s10606_s3 + $0x160] ss:$8 sps:$4 sm:$0xff]  }
 0x120   : > { %v979_v29 = vadd.f32 %v915_v17, %v705_v13  ;;  %v980_v33 = vadd.f32 %v916_v7, %v706_v18  ;;  %v1328_v37 = vadd.f32 %v8049_v45, %v1252_v23  ;;  %v1327_v54 = vadd.f32 %v8059_v4, %v1251_v53  ;;  %2183 = vmatpush1.bf16.msra.mxu1 %v7208_v60 }
 0x121   : > { %2184 = vmatprep.subr.bf16.mxu1 %v7209_v14  ;;  %v1191_v18 = vmul.f32 %v8032_v30, %v1067_v5  ;;  %v1192_v7 = vmul.f32 %v8028_v28, %v1067_v5  ;;  %v709_v53 = vmul.f32 %v8022_v26, %v8106_v38  ;;  %v710_v23 = vmul.f32 %v8025_v27, %v8106_v38 }
 0x122   : > { %v1063_v31 = vpop.permute.xlu1 %1062  ;;  %v1392_v46 = vmax.f32 %v1328_v37, 0.0  ;;  %v1391_v47 = vmax.f32 %v1327_v54, 0.0  ;;  %v7223_v54 = vld [vmem:[%s10606_s3 + $0x1b0] ss:$8 sps:$4 sm:$0xff]  }
 0x123   : > { %v1189_v20 = vmul.f32 %v8032_v30, %v1063_v31  ;;  %v1190_v35 = vmul.f32 %v8028_v28, %v1063_v31  ;;  %844 = vperm.xlu1 %7117, %v7957_v57  }
 0x124   : > { %2185 = vmatpush1.bf16.msra.mxu1 %v7211_v44  ;;  %v7224_v44 = vld [vmem:[%s10606_s3 + $0x1c4] ss:$8 sps:$4 sm:$0xff]  }
 0x125   : > { %v1253_v24 = vadd.f32 %v1189_v20, %v979_v29  ;;  %v1254_v36 = vadd.f32 %v1190_v35, %v980_v33  ;;  %2186 = vmatprep.subr.bf16.mxu1 %v7212_v49  ;;  %v7220_v33 = vld [vmem:[%s10606_s3 + $0x1a0] ss:$8 sps:$4 sm:$0xff]  }
 0x127   : > { %7118 = vset.pattern.permute.xlu1 %v7602_v0  ;;  %v561_v40 = vpop.permute.xlu1 %560  ;;  %v1330_v55 = vadd.f32 %v8049_v45, %v1254_v36  ;;  %v1329_v41 = vadd.f32 %v8059_v4, %v1253_v24 }
 0x128   : > { %1118 = vperm.xlu1 %7118, %v7957_v57   ;;  %v707_v10 = vmul.f32 %v8022_v26, %v561_v40  ;;  %v708_v11 = vmul.f32 %v8025_v27, %v561_v40  ;;  %2187 = vmatpush1.bf16.msra.mxu1 %v7214_v51 }
 0x129   : > { %v1394_v56 = vmax.f32 %v1330_v55, 0.0  ;;  %v1393_v48 = vmax.f32 %v1329_v41, 0.0  ;;  %2188 = vmatprep.subr.bf16.mxu1 %v7215_v8 }
 0x12b   : > { %v1448_v34 = vpack.c.bf16 %v1394_v56, %v1392_v46  ;;  %v1447_v50 = vpack.c.bf16 %v1393_v48, %v1391_v47  ;;  %v7226_v48 = vld [vmem:[%s10606_s3 + $0x1c0] ss:$8 sps:$4 sm:$0xff]  }
 0x12c   : > { %7119 = vset.pattern.permute.xlu1 %v7604_v12  ;;  %v793_v2 = vpop.permute.xlu1 %792  ;;  %2189 = vmatpush1.bf16.msra.mxu1 %v7217_v39 }
 0x12d   : > { %v917_v57 = vmul.f32 %v8014_v22, %v793_v2  ;;  %v918_v21 = vmul.f32 %v8018_v25, %v793_v2  ;;  %630 = vperm.xlu1 %7119, %v7980_v61   ;;  %1747 = vmatprep.mubr.bf16.mxu0 %v1448_v34  ;;  %v7227_v2 = vld [vmem:[%s10606_s3 + $0x1d4] ss:$8 sps:$4 sm:$0xff]  }
 0x12e   : > { %1748 = vmatmul.mubr.bf16.gmra.mrb[16].mxu0 %v1447_v50  ;;  %2190 = vmatprep.subr.bf16.mxu1 %v7218_v32 }
 0x12f   : > { %v981_v13 = vadd.f32 %v917_v57, %v707_v10  ;;  %v982_v17 = vadd.f32 %v918_v21, %v708_v11  ;;  %v1075_v11 = vpop.permute.xlu0 %1074 }
 0x130   : > { %v797_v52 = vpop.permute.xlu1 %796  ;;  %2191 = vmatpush1.bf16.msra.mxu1 %v7220_v33  ;;  %v7233_v33 = vld [vmem:[%s10606_s3 + $0x1f4] ss:$8 sps:$4 sm:$0xff]  }
 0x131   : > { %7120 = vset.pattern.permute.xlu1 %v7603_v1  ;;  %v919_v29 = vmul.f32 %v8014_v22, %v797_v52  ;;  %v920_v31 = vmul.f32 %v8018_v25, %v797_v52  ;;  %v1255_v20 = vadd.f32 %v1191_v18, %v981_v13  ;;  %v1256_v35 = vadd.f32 %v1192_v7, %v982_v17  ;;  %v7230_v17 = vld [vmem:[%s10606_s3 + $0x1e4] ss:$8 sps:$4 sm:$0xff]  }
 0x132   : > { %848 = vperm.xlu1 %7120, %v7980_v61   ;;  %v7221_v61 = vld [vmem:[%s10606_s3 + $0x1b4] ss:$8 sps:$4 sm:$0xff]   ;;  %v1195_v52 = vmul.f32 %v8032_v30, %v1075_v11 }
 0x133   : > { %v983_v38 = vadd.f32 %v919_v29, %v709_v53  ;;  %v984_v24 = vadd.f32 %v920_v31, %v710_v23  ;;  %v1332_v55 = vadd.f32 %v8049_v45, %v1256_v35  ;;  %v1331_v41 = vadd.f32 %v8059_v4, %v1255_v20  ;;  %2192 = vmatprep.subr.bf16.mxu1 %v7221_v61  ;;  %v7232_v29 = vld [vmem:[%s10606_s3 + $0x1e0] ss:$8 sps:$4 sm:$0xff]  }
 0x134   : > { %2193 = vmatpush1.bf16.msra.mxu1 %v7223_v54  ;;  %v1196_v53 = vmul.f32 %v8028_v28, %v1075_v11  ;;  %v713_v20 = vmul.f32 %v8022_v26, %v8118_v3  ;;  %v714_v35 = vmul.f32 %v8025_v27, %v8118_v3 }
 0x135   : > { %v1071_v60 = vpop.permute.xlu1 %1070  ;;  %v1396_v49 = vmax.f32 %v1332_v55, 0.0  ;;  %v1395_v50 = vmax.f32 %v1331_v41, 0.0  ;;  %2194 = vmatprep.subr.bf16.mxu1 %v7224_v44 }
 0x136   : > { %v1193_v36 = vmul.f32 %v8032_v30, %v1071_v60  ;;  %v1194_v37 = vmul.f32 %v8028_v28, %v1071_v60  ;;  %852 = vperm.xlu1 %7120, %v7963_v58  }
 0x138   : > { %v1257_v14 = vadd.f32 %v1193_v36, %v983_v38  ;;  %v1258_v40 = vadd.f32 %v1194_v37, %v984_v24  ;;  %2195 = vmatpush1.bf16.msra.mxu1 %v7226_v48  ;;  %v7235_v24 = vld [vmem:[%s10606_s3 + $0x1f0] ss:$8 sps:$4 sm:$0xff]  }
 0x139   : > { %2196 = vmatprep.subr.bf16.mxu1 %v7227_v2 }
 0x13a   : > { %7121 = vset.pattern.permute.xlu1 %v7602_v0  ;;  %v571_v46 = vpop.permute.xlu1 %570  ;;  %v1334_v56 = vadd.f32 %v8049_v45, %v1258_v40  ;;  %v1333_v47 = vadd.f32 %v8059_v4, %v1257_v14 }
 0x13b   : > { %1126 = vperm.xlu1 %7121, %v7963_v58   ;;  %v7229_v58 = vld [vmem:[%s10606_s3 + $0x1d0] ss:$8 sps:$4 sm:$0xff]   ;;  %v711_v39 = vmul.f32 %v8022_v26, %v571_v46  ;;  %v712_v13 = vmul.f32 %v8025_v27, %v571_v46 }
 0x13c   : > { %v1398_v34 = vmax.f32 %v1334_v56, 0.0  ;;  %v1397_v51 = vmax.f32 %v1333_v47, 0.0  ;;  %2197 = vmatpush1.bf16.msra.mxu1 %v7229_v58 }
 0x13d   : > { %2198 = vmatprep.subr.bf16.mxu1 %v7230_v17 }
 0x13e   : > { %v1450_v57 = vpack.c.bf16 %v1398_v34, %v1396_v49  ;;  %v1449_v21 = vpack.c.bf16 %v1397_v51, %v1395_v50 }
 0x13f   : > { %7122 = vset.pattern.permute.xlu1 %v7604_v12  ;;  %v801_v5 = vpop.permute.xlu1 %800 }
 0x140   : > { %v921_v8 = vmul.f32 %v8014_v22, %v801_v5  ;;  %v922_v10 = vmul.f32 %v8018_v25, %v801_v5  ;;  %640 = vperm.xlu1 %7122, %v7985_v62   ;;  %1757 = vmatprep.mubr.bf16.mxu0 %v1450_v57 }
 0x141   : > { %1758 = vmatmul.mubr.bf16.gmra.mrb[20].mxu0 %v1449_v21  ;;  %2199 = vmatpush1.bf16.msra.mxu1 %v7232_v29  ;;  %v1083_v21 = vpop.permute.xlu0 %1082 }
 0x142   : > { %v985_v18 = vadd.f32 %v921_v8, %v711_v39  ;;  %v986_v7 = vadd.f32 %v922_v10, %v712_v13  ;;  %2200 = vmatprep.subr.bf16.mxu1 %v7233_v33  ;;  %v1199_v10 = vmul.f32 %v8032_v30, %v1083_v21  ;;  %v1200_v11 = vmul.f32 %v8028_v28, %v1083_v21 }
 0x143   : > { %v805_v23 = vpop.permute.xlu1 %804 }
 0x144   : > { %7124 = vset.pattern.permute.xlu1 %v7603_v1  ;;  %v923_v31 = vmul.f32 %v8014_v22, %v805_v23  ;;  %v924_v32 = vmul.f32 %v8018_v25, %v805_v23  ;;  %v1259_v60 = vadd.f32 %v1195_v52, %v985_v18  ;;  %v1260_v38 = vadd.f32 %v1196_v53, %v986_v7 }
 0x145   : > { %856 = vperm.xlu1 %7124, %v7985_v62   ;;  %2201 = vmatpush1.bf16.msra.mxu1 %v7235_v24  ;;  %v1091_v18 = vpop.permute.xlu0 %1090  ;;  %v717_v7 = vmul.f32 %v8022_v26, %v8126_v19  ;;  %v718_v52 = vmul.f32 %v8025_v27, %v8126_v19 }
 0x146   : > { %v987_v62 = vadd.f32 %v923_v31, %v713_v20  ;;  %v988_v37 = vadd.f32 %v924_v32, %v714_v35  ;;  %v1336_v3 = vadd.f32 %v8049_v45, %v1260_v38  ;;  %v1335_v55 = vadd.f32 %v8059_v4, %v1259_v60 }
 0x148   : > { %v1079_v36 = vpop.permute.xlu1 %1078  ;;  %v1400_v56 = vmax.f32 %v1336_v3, 0.0  ;;  %v1399_v48 = vmax.f32 %v1335_v55, 0.0 }
 0x149   : > { %v1197_v61 = vmul.f32 %v8032_v30, %v1079_v36  ;;  %v1198_v54 = vmul.f32 %v8028_v28, %v1079_v36  ;;  %860 = vperm.xlu1 %7124, %v7966_v59   ;;  %v8346_v60 = vpop.permute.xlu0 %1098 }
 0x14b   : > { %v1261_v14 = vadd.f32 %v1197_v61, %v987_v62  ;;  %v1262_v40 = vadd.f32 %v1198_v54, %v988_v37 }
 0x14d   : > { %7125 = vset.pattern.permute.xlu1 %v7602_v0  ;;  %v581_v41 = vpop.permute.xlu1 %580  ;;  %v1338_v44 = vadd.f32 %v8049_v45, %v1262_v40  ;;  %v1337_v46 = vadd.f32 %v8059_v4, %v1261_v14  ;;  %v8354_v40 = vpop.permute.xlu0 %1106 }
 0x14e   : > { %1134 = vperm.xlu1 %7125, %v7966_v59   ;;  %v715_v5 = vmul.f32 %v8022_v26, %v581_v41  ;;  %v716_v59 = vmul.f32 %v8025_v27, %v581_v41 }
 0x14f   : > { %v1402_v47 = vmax.f32 %v1338_v44, 0.0  ;;  %v1401_v49 = vmax.f32 %v1337_v46, 0.0 }
 0x151   : > { %v1452_v34 = vpack.c.bf16 %v1402_v47, %v1400_v56  ;;  %v1451_v50 = vpack.c.bf16 %v1401_v49, %v1399_v48  ;;  %v596_v47 = vpop.permute.xlu0 %595 }
 0x152   : > { %7126 = vset.pattern.permute.xlu1 %v7604_v12  ;;  %v809_v51 = vpop.permute.xlu1 %808 }
 0x153   : > { %v925_v2 = vmul.f32 %v8014_v22, %v809_v51  ;;  %v926_v57 = vmul.f32 %v8018_v25, %v809_v51  ;;  %650 = vperm.xlu1 %7126, %v7990_v63   ;;  %1767 = vmatprep.mubr.bf16.mxu0 %v1452_v34  ;;  %v721_v51 = vmul.f32 %v8022_v26, %v596_v47 }
 0x154   : > { %1768 = vmatmul.mubr.bf16.gmra.mrb[24].mxu0 %v1451_v50  ;;  %v1203_v50 = vmul.f32 %v8032_v30, %v1091_v18 }
 0x155   : > { %v989_v58 = vadd.f32 %v925_v2, %v715_v5  ;;  %v990_v8 = vadd.f32 %v926_v57, %v716_v59  ;;  %v722_v2 = vmul.f32 %v8025_v27, %v596_v47 }
 0x156   : > { %v813_v39 = vpop.permute.xlu1 %812 }
 0x157   : > { %7127 = vset.pattern.permute.xlu1 %v7603_v1  ;;  %v927_v13 = vmul.f32 %v8014_v22, %v813_v39  ;;  %v928_v17 = vmul.f32 %v8018_v25, %v813_v39  ;;  %v1263_v53 = vadd.f32 %v1199_v10, %v989_v58  ;;  %v1264_v23 = vadd.f32 %v1200_v11, %v990_v8 }
 0x158   : > { %864 = vperm.xlu1 %7127, %v7990_v63  }
 0x159   : > { %v991_v31 = vadd.f32 %v927_v13, %v717_v7  ;;  %v992_v32 = vadd.f32 %v928_v17, %v718_v52  ;;  %v1340_v38 = vadd.f32 %v8049_v45, %v1264_v23  ;;  %v1339_v24 = vadd.f32 %v8059_v4, %v1263_v53 }
 0x15b   : > { %v1087_v29 = vpop.permute.xlu1 %1086  ;;  %v1404_v37 = vmax.f32 %v1340_v38, 0.0  ;;  %v1403_v54 = vmax.f32 %v1339_v24, 0.0  ;;  %v606_v24 = vpop.permute.xlu0 %605 }
 0x15c   : > { %v1201_v33 = vmul.f32 %v8032_v30, %v1087_v29  ;;  %v1202_v20 = vmul.f32 %v8028_v28, %v1087_v29  ;;  %868 = vperm.xlu1 %7127, %v8045_v42  }
 0x15e   : > { %v1265_v35 = vadd.f32 %v1201_v33, %v991_v31  ;;  %v1266_v63 = vadd.f32 %v1202_v20, %v992_v32 }
 0x160   : > { %7129 = vset.pattern.permute.xlu1 %v7602_v0  ;;  %v591_v19 = vpop.permute.xlu1 %590  ;;  %v1342_v36 = vadd.f32 %v8049_v45, %v1266_v63  ;;  %v1341_v62 = vadd.f32 %v8059_v4, %v1265_v35 }
 0x161   : > { %1142 = vperm.xlu1 %7129, %v8045_v42   ;;  %v719_v42 = vmul.f32 %v8022_v26, %v591_v19  ;;  %v720_v56 = vmul.f32 %v8025_v27, %v591_v19 }
 0x162   : > { %v1406_v61 = vmax.f32 %v1342_v36, 0.0  ;;  %v1405_v14 = vmax.f32 %v1341_v62, 0.0  ;;  %v1207_v62 = vmul.f32 %v8032_v30, %v8346_v60 }
 0x164   : > { %v1454_v3 = vpack.c.bf16 %v1406_v61, %v1404_v37  ;;  %v1453_v55 = vpack.c.bf16 %v1405_v14, %v1403_v54  ;;  %v1208_v37 = vmul.f32 %v8028_v28, %v8346_v60  ;;  %v725_v61 = vmul.f32 %v8022_v26, %v606_v24 }
 0x165   : > { %7130 = vset.pattern.permute.xlu1 %v7604_v12  ;;  %v817_v41 = vpop.permute.xlu1 %816  ;;  %v1204_v12 = vmul.f32 %v8028_v28, %v1091_v18  ;;  %v726_v54 = vmul.f32 %v8025_v27, %v606_v24 }
 0x166   : > { %v929_v44 = vmul.f32 %v8014_v22, %v817_v41  ;;  %v930_v46 = vmul.f32 %v8018_v25, %v817_v41  ;;  %660 = vperm.xlu1 %7130, %v8090_v15   ;;  %1777 = vmatprep.mubr.bf16.mxu0 %v1454_v3 }
 0x167   : > { %1778 = vmatmul.mubr.bf16.gmra.mrb[28].mxu0 %v1453_v55 }
 0x168   : > { %v993_v48 = vadd.f32 %v929_v44, %v719_v42  ;;  %v994_v49 = vadd.f32 %v930_v46, %v720_v56 }
 0x169   : > { %v821_v34 = vpop.permute.xlu1 %820 }
 0x16a   : > { %7131 = vset.pattern.permute.xlu1 %v7603_v1  ;;  %v931_v57 = vmul.f32 %v8014_v22, %v821_v34  ;;  %v932_v21 = vmul.f32 %v8018_v25, %v821_v34  ;;  %v1267_v5 = vadd.f32 %v1203_v50, %v993_v48  ;;  %v1268_v59 = vadd.f32 %v1204_v12, %v994_v49 }
 0x16b   : > { %872 = vperm.xlu1 %7131, %v8090_v15  }
 0x16c   : > { %v995_v8 = vadd.f32 %v931_v57, %v721_v51  ;;  %v996_v10 = vadd.f32 %v932_v21, %v722_v2  ;;  %v1344_v17 = vadd.f32 %v8049_v45, %v1268_v59  ;;  %v1343_v18 = vadd.f32 %v8059_v4, %v1267_v5  ;;  %v616_v2 = vpop.permute.xlu0 %615 }
 0x16e   : > { %v1095_v58 = vpop.permute.xlu1 %1094  ;;  %v1408_v53 = vmax.f32 %v1344_v17, 0.0  ;;  %v1407_v29 = vmax.f32 %v1343_v18, 0.0 }
 0x16f   : > { %v1205_v11 = vmul.f32 %v8032_v30, %v1095_v58  ;;  %v1206_v39 = vmul.f32 %v8028_v28, %v1095_v58  ;;  %876 = vperm.xlu1 %7131, %v8079_v43  }
 0x170   : > { %v626_v17 = vpop.permute.xlu0 %625 }
 0x171   : > { %v1269_v1 = vadd.f32 %v1205_v11, %v995_v8  ;;  %v1270_v13 = vadd.f32 %v1206_v39, %v996_v10 }
 0x173   : > { %7133 = vset.pattern.permute.xlu1 %v7602_v0  ;;  %v601_v15 = vpop.permute.xlu1 %600  ;;  %v1346_v7 = vadd.f32 %v8049_v45, %v1270_v13  ;;  %v1345_v52 = vadd.f32 %v8059_v4, %v1269_v1 }
 0x174   : > { %1150 = vperm.xlu1 %7133, %v8079_v43   ;;  %v723_v0 = vmul.f32 %v8022_v26, %v601_v15  ;;  %v724_v38 = vmul.f32 %v8025_v27, %v601_v15 }
 0x175   : > { %v1410_v23 = vmax.f32 %v1346_v7, 0.0  ;;  %v1409_v31 = vmax.f32 %v1345_v52, 0.0  ;;  %v1211_v52 = vmul.f32 %v8032_v30, %v8354_v40 }
 0x177   : > { %v1456_v32 = vpack.c.bf16 %v1410_v23, %v1408_v53  ;;  %v1455_v33 = vpack.c.bf16 %v1409_v31, %v1407_v29  ;;  %v1212_v53 = vmul.f32 %v8028_v28, %v8354_v40  ;;  %v729_v23 = vmul.f32 %v8022_v26, %v616_v2 }
 0x178   : > { %v825_v20 = vpop.permute.xlu1 %824  ;;  %v730_v29 = vmul.f32 %v8025_v27, %v616_v2 }
 0x179   : > { %v933_v35 = vmul.f32 %v8014_v22, %v825_v20  ;;  %v934_v63 = vmul.f32 %v8018_v25, %v825_v20  ;;  %1787 = vmatprep.mubr.bf16.mxu0 %v1456_v32 }
 0x17a   : > { %1788 = vmatmul.mubr.bf16.gmra.mrb[32].mxu0 %v1455_v33 }
 0x17b   : > { %v997_v19 = vadd.f32 %v933_v35, %v723_v0  ;;  %v998_v43 = vadd.f32 %v934_v63, %v724_v38  ;;  %v8409_v35 = vpop.permute.xlu0 %635 }
 0x17c   : > { %v829_v36 = vpop.permute.xlu1 %828 }
 0x17d   : > { %v935_v14 = vmul.f32 %v8014_v22, %v829_v36  ;;  %v936_v3 = vmul.f32 %v8018_v25, %v829_v36  ;;  %v1271_v55 = vadd.f32 %v1207_v62, %v997_v19  ;;  %v1272_v41 = vadd.f32 %v1208_v37, %v998_v43 }
 0x17f   : > { %v999_v46 = vadd.f32 %v935_v14, %v725_v61  ;;  %v1000_v42 = vadd.f32 %v936_v3, %v726_v54  ;;  %v1348_v60 = vadd.f32 %v8049_v45, %v1272_v41  ;;  %v1347_v34 = vadd.f32 %v8059_v4, %v1271_v55  ;;  %v8415_v61 = vpop.permute.xlu0 %645 }
 0x181   : > { %v1103_v44 = vpop.permute.xlu1 %1102  ;;  %v1412_v57 = vmax.f32 %v1348_v60, 0.0  ;;  %v1411_v5 = vmax.f32 %v1347_v34, 0.0 }
 0x182   : > { %v1209_v56 = vmul.f32 %v8032_v30, %v1103_v44  ;;  %v1210_v47 = vmul.f32 %v8028_v28, %v1103_v44 }
 0x184   : > { %v1273_v48 = vadd.f32 %v1209_v56, %v999_v46  ;;  %v1274_v49 = vadd.f32 %v1210_v47, %v1000_v42 }
 0x186   : > { %v611_v50 = vpop.permute.xlu1 %610  ;;  %v1350_v12 = vadd.f32 %v8049_v45, %v1274_v49  ;;  %v1349_v51 = vadd.f32 %v8059_v4, %v1273_v48  ;;  %v1115_v49 = vpop.permute.xlu0 %1114 }
 0x187   : > { %v727_v1 = vmul.f32 %v8022_v26, %v611_v50  ;;  %v728_v13 = vmul.f32 %v8025_v27, %v611_v50  ;;  %v1216_v2 = vmul.f32 %v8028_v28, %v1115_v49 }
 0x188   : > { %v1414_v21 = vmax.f32 %v1350_v12, 0.0  ;;  %v1413_v59 = vmax.f32 %v1349_v51, 0.0  ;;  %v1215_v51 = vmul.f32 %v8032_v30, %v1115_v49 }
 0x18a   : > { %v1458_v58 = vpack.c.bf16 %v1414_v21, %v1412_v57  ;;  %v1457_v8 = vpack.c.bf16 %v1413_v59, %v1411_v5  ;;  %v733_v59 = vmul.f32 %v8022_v26, %v626_v17 }
 0x18b   : > { %v833_v10 = vpop.permute.xlu1 %832 }
 0x18c   : > { %v937_v11 = vmul.f32 %v8014_v22, %v833_v10  ;;  %v938_v39 = vmul.f32 %v8018_v25, %v833_v10  ;;  %1797 = vmatprep.mubr.bf16.mxu0 %v1458_v58  ;;  %v734_v58 = vmul.f32 %v8025_v27, %v626_v17 }
 0x18d   : > { %1798 = vmatmul.mubr.bf16.gmra.mrb[36].mxu0 %v1457_v8 }
 0x18e   : > { %v1001_v18 = vadd.f32 %v937_v11, %v727_v1  ;;  %v1002_v15 = vadd.f32 %v938_v39, %v728_v13 }
 0x18f   : > { %v837_v7 = vpop.permute.xlu1 %836 }
 0x190   : > { %v939_v31 = vmul.f32 %v8014_v22, %v837_v7  ;;  %v940_v32 = vmul.f32 %v8018_v25, %v837_v7  ;;  %v1275_v33 = vadd.f32 %v1211_v52, %v1001_v18  ;;  %v1276_v20 = vadd.f32 %v1212_v53, %v1002_v15 }
 0x192   : > { %v1003_v0 = vadd.f32 %v939_v31, %v729_v23  ;;  %v1004_v38 = vadd.f32 %v940_v32, %v730_v29  ;;  %v1352_v36 = vadd.f32 %v8049_v45, %v1276_v20  ;;  %v1351_v62 = vadd.f32 %v8059_v4, %v1275_v33 }
 0x194   : > { %v1111_v63 = vpop.permute.xlu1 %1110  ;;  %v1416_v3 = vmax.f32 %v1352_v36, 0.0  ;;  %v1415_v41 = vmax.f32 %v1351_v62, 0.0 }
 0x195   : > { %v1213_v24 = vmul.f32 %v8032_v30, %v1111_v63  ;;  %v1214_v19 = vmul.f32 %v8028_v28, %v1111_v63 }
 0x197   : > { %v1277_v40 = vadd.f32 %v1213_v24, %v1003_v0  ;;  %v1278_v43 = vadd.f32 %v1214_v19, %v1004_v38  ;;  %v1123_v24 = vpop.permute.xlu0 %1122 }
 0x199   : > { %v621_v37 = vpop.permute.xlu1 %620  ;;  %v1354_v54 = vadd.f32 %v8049_v45, %v1278_v43  ;;  %v1353_v14 = vadd.f32 %v8059_v4, %v1277_v40 }
 0x19a   : > { %v731_v60 = vmul.f32 %v8022_v26, %v621_v37  ;;  %v732_v34 = vmul.f32 %v8025_v27, %v621_v37  ;;  %v1220_v37 = vmul.f32 %v8028_v28, %v1123_v24 }
 0x19b   : > { %v1418_v55 = vmax.f32 %v1354_v54, 0.0  ;;  %v1417_v44 = vmax.f32 %v1353_v14, 0.0  ;;  %v1219_v14 = vmul.f32 %v8032_v30, %v1123_v24 }
 0x19d   : > { %v1460_v46 = vpack.c.bf16 %v1418_v55, %v1416_v3  ;;  %v1459_v42 = vpack.c.bf16 %v1417_v44, %v1415_v41 }
 0x19e   : > { %v841_v56 = vpop.permute.xlu1 %840 }
 0x19f   : > { %v941_v47 = vmul.f32 %v8014_v22, %v841_v56  ;;  %v942_v48 = vmul.f32 %v8018_v25, %v841_v56  ;;  %1807 = vmatprep.mubr.bf16.mxu0 %v1460_v46  ;;  %v737_v46 = vmul.f32 %v8022_v26, %v8409_v35 }
 0x1a0   : > { %1808 = vmatmul.mubr.bf16.gmra.mrb[40].mxu0 %v1459_v42  ;;  %v738_v42 = vmul.f32 %v8025_v27, %v8409_v35 }
 0x1a1   : > { %v1005_v50 = vadd.f32 %v941_v47, %v731_v60  ;;  %v1006_v12 = vadd.f32 %v942_v48, %v732_v34  ;;  %v1503_v48 = vld [vmem:[%s10607_s4] sm:$0x3] }
 0x1a2   : > { %v845_v57 = vpop.permute.xlu1 %844 }
 0x1a3   : > { %v943_v21 = vmul.f32 %v8014_v22, %v845_v57  ;;  %v944_v5 = vmul.f32 %v8018_v25, %v845_v57  ;;  %v1279_v8 = vadd.f32 %v1215_v51, %v1005_v50  ;;  %v1280_v10 = vadd.f32 %v1216_v2, %v1006_v12 }
 0x1a4   : > { %v8454_v57 = vrot.slane %v1503_v48, %v8003_v9 }
 0x1a5   : > { %v1007_v39 = vadd.f32 %v943_v21, %v733_v59  ;;  %v1008_v1 = vadd.f32 %v944_v5, %v734_v58  ;;  %v1356_v52 = vadd.f32 %v8049_v45, %v1280_v10  ;;  %v1355_v53 = vadd.f32 %v8059_v4, %v1279_v8 }
 0x1a6   : > { %v8458_v21 = vrot.slane %v1503_v48, %v7997_v6  ;;  %v741_v48 = vmul.f32 %v8022_v26, %v8415_v61 }
 0x1a7   : > { %v1119_v11 = vpop.permute.xlu1 %1118  ;;  %v1420_v31 = vmax.f32 %v1356_v52, 0.0  ;;  %v1419_v33 = vmax.f32 %v1355_v53, 0.0 }
 0x1a8   : > { %v1217_v13 = vmul.f32 %v8032_v30, %v1119_v11  ;;  %v1218_v18 = vmul.f32 %v8028_v28, %v1119_v11 }
 0x1aa   : > { %v1281_v15 = vadd.f32 %v1217_v13, %v1007_v39  ;;  %v1282_v7 = vadd.f32 %v1218_v18, %v1008_v1 }
 0x1ac   : > { %v631_v23 = vpop.permute.xlu1 %630  ;;  %v1358_v29 = vadd.f32 %v8049_v45, %v1282_v7  ;;  %v1357_v17 = vadd.f32 %v8059_v4, %v1281_v15 }
 0x1ad   : > { %v736_v19 = vmul.f32 %v8025_v27, %v631_v23  ;;  %v735_v36 = vmul.f32 %v8022_v26, %v631_v23 }
 0x1ae   : > { %v1422_v32 = vmax.f32 %v1358_v29, 0.0  ;;  %v1421_v20 = vmax.f32 %v1357_v17, 0.0 }
 0x1b0   : > { %v1462_v63 = vpack.c.bf16 %v1422_v32, %v1420_v31  ;;  %v1461_v0 = vpack.c.bf16 %v1421_v20, %v1419_v33 }
 0x1b1   : > { %v849_v38 = vpop.permute.xlu1 %848 }
 0x1b2   : > { %v945_v40 = vmul.f32 %v8014_v22, %v849_v38  ;;  %v946_v43 = vmul.f32 %v8018_v25, %v849_v38  ;;  %1817 = vmatprep.mubr.bf16.mxu0 %v1462_v63 }
 0x1b3   : > { %1818 = vmatmul.mubr.bf16.gmra.mrb[44].mxu0 %v1461_v0 }
 0x1b4   : > { %v1010_v62 = vadd.f32 %v946_v43, %v736_v19  ;;  %v1009_v54 = vadd.f32 %v945_v40, %v735_v36  ;;  %v1131_v40 = vpop.permute.xlu0 %1130 }
 0x1b5   : > { %v853_v3 = vpop.permute.xlu1 %852 }
 0x1b6   : > { %v947_v55 = vmul.f32 %v8014_v22, %v853_v3  ;;  %v948_v41 = vmul.f32 %v8018_v25, %v853_v3  ;;  %v1284_v44 = vadd.f32 %v1220_v37, %v1010_v62  ;;  %v1283_v56 = vadd.f32 %v1219_v14, %v1009_v54 }
 0x1b7   : > { %v1224_v3 = vmul.f32 %v8028_v28, %v1131_v40 }
 0x1b8   : > { %v1011_v49 = vadd.f32 %v947_v55, %v737_v46  ;;  %v1012_v60 = vadd.f32 %v948_v41, %v738_v42  ;;  %v1360_v12 = vadd.f32 %v8049_v45, %v1284_v44  ;;  %v1359_v35 = vadd.f32 %v8059_v4, %v1283_v56 }
 0x1b9   : > { %v1223_v46 = vmul.f32 %v8032_v30, %v1131_v40 }
 0x1ba   : > { %v1127_v47 = vpop.permute.xlu1 %1126  ;;  %v1424_v10 = vmax.f32 %v1360_v12, 0.0  ;;  %v1423_v13 = vmax.f32 %v1359_v35, 0.0 }
 0x1bb   : > { %v1221_v34 = vmul.f32 %v8032_v30, %v1127_v47  ;;  %v1222_v50 = vmul.f32 %v8028_v28, %v1127_v47 }
 0x1bd   : > { %v1285_v51 = vadd.f32 %v1221_v34, %v1011_v49  ;;  %v1286_v2 = vadd.f32 %v1222_v50, %v1012_v60  ;;  %v742_v49 = vmul.f32 %v8025_v27, %v8415_v61 }
 0x1bf   : > { %v641_v5 = vpop.permute.xlu1 %640  ;;  %v1362_v59 = vadd.f32 %v8049_v45, %v1286_v2  ;;  %v1361_v58 = vadd.f32 %v8059_v4, %v1285_v51  ;;  %v1709_v8 = vpop.f32.mrb[0].mxu0 }
 0x1c0   : > { %v1710_v11 = vadd.f32 %v1709_v8, %v8454_v57  ;;  %v1711_v39 = vpop.f32.mrb[1].mxu0  ;;  %v740_v17 = vmul.f32 %v8025_v27, %v641_v5  ;;  %v739_v38 = vmul.f32 %v8022_v26, %v641_v5 }
 0x1c1   : > { %v1426_v1 = vmax.f32 %v1362_v59, 0.0  ;;  %v1425_v18 = vmax.f32 %v1361_v58, 0.0  ;;  %v1712_v15 = vadd.f32 %v1711_v39, %v8458_v21  ;;  %v1713_v7 = vpop.f32.mrb[2].mxu0 }
 0x1c2   : > { %v1714_v52 = vadd.f32 %v1713_v7, %v8454_v57  ;;  %v1715_v53 = vpop.f32.mrb[3].mxu0  ;;  %v1868_v33 = vmax.f32 %v1710_v11, 0.0 }
 0x1c3   : > { %v1464_v23 = vpack.c.bf16 %v1426_v1, %v1424_v10  ;;  %v1463_v29 = vpack.c.bf16 %v1425_v18, %v1423_v13  ;;  %v1716_v31 = vadd.f32 %v1715_v53, %v8458_v21  ;;  %v1869_v24 = vmax.f32 %v1712_v15, 0.0 }
 0x1c4   : > { %v857_v32 = vpop.permute.xlu1 %856  ;;  %v1870_v20 = vmax.f32 %v1714_v52, 0.0 }
 0x1c5   : > { %v949_v63 = vmul.f32 %v8014_v22, %v857_v32  ;;  %v950_v0 = vmul.f32 %v8018_v25, %v857_v32  ;;  %1827 = vmatprep.mubr.bf16.mxu0 %v1464_v23  ;;  %v1871_v19 = vmax.f32 %v1716_v31, 0.0 }
 0x1c6   : > { %1828 = vmatmul.mubr.bf16.gmra.mrb[48].mxu0 %v1463_v29  ;;  %v1932_v43 = vpack.c.bf16 %v1870_v20, %v1868_v33  ;;  %v1139_v33 = vpop.permute.xlu0 %1138 }
 0x1c7   : > { %v1014_v36 = vadd.f32 %v950_v0, %v740_v17  ;;  %v1013_v62 = vadd.f32 %v949_v63, %v739_v38  ;;  %v1933_v14 = vpack.c.bf16 %v1871_v19, %v1869_v24 }
 0x1c8   : > { %v1719_v37 = vpop.f32.mrb[4].mxu0  ;;  %v861_v54 = vpop.permute.xlu1 %860 }
 0x1c9   : > { %v1720_v55 = vadd.f32 %v1719_v37, %v8454_v57  ;;  %v951_v41 = vmul.f32 %v8014_v22, %v861_v54  ;;  %v1721_v44 = vpop.f32.mrb[5].mxu0  ;;  %v952_v42 = vmul.f32 %v8018_v25, %v861_v54  ;;  %2202 = vmatprep.mubr.bf16.mxu1 %v1933_v14  ;;  %v1288_v60 = vadd.f32 %v1224_v3, %v1014_v36 }
 0x1ca   : > { %v1722_v56 = vadd.f32 %v1721_v44, %v8458_v21  ;;  %v1723_v47 = vpop.f32.mrb[6].mxu0  ;;  %2203 = vmatmul.mubr.bf16.vlgmr.msra.gmra.mrb[0].mxu1 %v1932_v43  ;;  %v1287_v12 = vadd.f32 %v1223_v46, %v1013_v62  ;;  %v656_v43 = vpop.permute.xlu0 %655  ;;  %v1228_v62 = vmul.f32 %v8028_v28, %v1139_v33 }
 0x1cb   : > { %v1724_v34 = vadd.f32 %v1723_v47, %v8454_v57  ;;  %v1725_v50 = vpop.f32.mrb[7].mxu0  ;;  %v1872_v2 = vmax.f32 %v1720_v55, 0.0  ;;  %v1015_v35 = vadd.f32 %v951_v41, %v741_v48  ;;  %v1016_v5 = vadd.f32 %v952_v42, %v742_v49 }
 0x1cc   : > { %v1726_v51 = vadd.f32 %v1725_v50, %v8458_v21  ;;  %v1873_v8 = vmax.f32 %v1722_v56, 0.0  ;;  %v1364_v1 = vadd.f32 %v8049_v45, %v1288_v60  ;;  %v1363_v7 = vadd.f32 %v8059_v4, %v1287_v12 }
 0x1cd   : > { %v1874_v59 = vmax.f32 %v1724_v34, 0.0  ;;  %v1135_v58 = vpop.permute.xlu1 %1134  ;;  %v745_v3 = vmul.f32 %v8022_v26, %v656_v43  ;;  %v746_v55 = vmul.f32 %v8025_v27, %v656_v43  ;;  %v1227_v42 = vmul.f32 %v8032_v30, %v1139_v33  ;;  %v7236_v33 = vld [vmem:[%s10606_s3 + $0x200] ss:$8 sps:$4 sm:$0xff]  }
 0x1ce   : > { %v1875_v10 = vmax.f32 %v1726_v51, 0.0  ;;  %v1225_v11 = vmul.f32 %v8032_v30, %v1135_v58  ;;  %v1226_v39 = vmul.f32 %v8028_v28, %v1135_v58  ;;  %v1428_v29 = vmax.f32 %v1364_v1, 0.0 }
 0x1cf   : > { %v1934_v61 = vpack.c.bf16 %v1874_v59, %v1872_v2  ;;  %v1427_v31 = vmax.f32 %v1363_v7, 0.0 }
 0x1d0   : > { %v1935_v13 = vpack.c.bf16 %v1875_v10, %v1873_v8  ;;  %v1289_v18 = vadd.f32 %v1225_v11, %v1015_v35  ;;  %v1290_v15 = vadd.f32 %v1226_v39, %v1016_v5 }
 0x1d2   : > { %2212 = vmatprep.mubr.bf16.mxu1 %v1935_v13  ;;  %v651_v52 = vpop.permute.xlu1 %650  ;;  %v1366_v53 = vadd.f32 %v8049_v45, %v1290_v15  ;;  %v1365_v23 = vadd.f32 %v8059_v4, %v1289_v18 }
 0x1d3   : > { %2213 = vmatmul.mubr.bf16.gmra.mrb[4].mxu1 %v1934_v61  ;;  %v744_v38 = vmul.f32 %v8025_v27, %v651_v52  ;;  %v743_v40 = vmul.f32 %v8022_v26, %v651_v52 }
 0x1d4   : > { %v1430_v17 = vmax.f32 %v1366_v53, 0.0  ;;  %v1429_v32 = vmax.f32 %v1365_v23, 0.0  ;;  %v666_v23 = vpop.permute.xlu0 %665 }
 0x1d6   : > { %v1466_v20 = vpack.c.bf16 %v1430_v17, %v1428_v29  ;;  %v1465_v63 = vpack.c.bf16 %v1429_v32, %v1427_v31 }
 0x1d7   : > { %v865_v0 = vpop.permute.xlu1 %864 }
 0x1d8   : > { %v953_v24 = vmul.f32 %v8014_v22, %v865_v0  ;;  %v954_v19 = vmul.f32 %v8018_v25, %v865_v0  ;;  %1837 = vmatprep.mubr.bf16.mxu0 %v1466_v20  ;;  %v7238_v20 = vld [vmem:[%s10606_s3 + $0x204] ss:$8 sps:$4 sm:$0xff]  }
 0x1d9   : > { %1838 = vmatmul.mubr.bf16.gmra.mrb[52].mxu0 %v1465_v63  ;;  %2665 = vmatprep.subr.bf16.mxu0 %v7238_v20 }
 0x1da   : > { %v1018_v36 = vadd.f32 %v954_v19, %v744_v38  ;;  %v1017_v37 = vadd.f32 %v953_v24, %v743_v40  ;;  %v1147_v24 = vpop.permute.xlu0 %1146  ;;  %2666 = vmatpush1.bf16.msra.mxu0 %v7236_v33 }
 0x1db   : > { %v1729_v54 = vpop.f32.mrb[8].mxu0  ;;  %v869_v14 = vpop.permute.xlu1 %868 }
 0x1dc   : > { %v1730_v41 = vadd.f32 %v1729_v54, %v8454_v57  ;;  %v955_v44 = vmul.f32 %v8014_v22, %v869_v14  ;;  %v1731_v46 = vpop.f32.mrb[9].mxu0  ;;  %v956_v56 = vmul.f32 %v8018_v25, %v869_v14  ;;  %v1292_v49 = vadd.f32 %v1228_v62, %v1018_v36  ;;  %v7239_v36 = vld [vmem:[%s10606_s3 + $0x210] ss:$8 sps:$4 sm:$0xff]   ;;  %v7241_v62 = vld [vmem:[%s10606_s3 + $0x214] ss:$8 sps:$4 sm:$0xff]  }
 0x1dd   : > { %v1732_v47 = vadd.f32 %v1731_v46, %v8458_v21  ;;  %v1733_v48 = vpop.f32.mrb[10].mxu0  ;;  %v1291_v50 = vadd.f32 %v1227_v42, %v1017_v37  ;;  %v7244_v54 = vld [vmem:[%s10606_s3 + $0x224] ss:$8 sps:$4 sm:$0xff]   ;;  %2667 = vmatprep.subr.bf16.mxu0 %v7241_v62 }
 0x1de   : > { %v1734_v60 = vadd.f32 %v1733_v48, %v8454_v57  ;;  %v1735_v34 = vpop.f32.mrb[11].mxu0  ;;  %v1876_v51 = vmax.f32 %v1730_v41, 0.0  ;;  %v1019_v2 = vadd.f32 %v955_v44, %v745_v3  ;;  %v1020_v35 = vadd.f32 %v956_v56, %v746_v55  ;;  %2668 = vmatpush1.bf16.msra.mxu0 %v7239_v36  ;;  %v7242_v48 = vld [vmem:[%s10606_s3 + $0x220] ss:$8 sps:$4 sm:$0xff]  }
 0x1df   : > { %v1736_v12 = vadd.f32 %v1735_v34, %v8458_v21  ;;  %v1877_v58 = vmax.f32 %v1732_v47, 0.0  ;;  %v1368_v61 = vadd.f32 %v8049_v45, %v1292_v49  ;;  %v1367_v15 = vadd.f32 %v8059_v4, %v1291_v50  ;;  %2669 = vmatprep.subr.bf16.mxu0 %v7244_v54 }
 0x1e0   : > { %v1878_v5 = vmax.f32 %v1734_v60, 0.0  ;;  %v1143_v59 = vpop.permute.xlu1 %1142  ;;  %v1232_v3 = vmul.f32 %v8028_v28, %v1147_v24  ;;  %v1231_v41 = vmul.f32 %v8032_v30, %v1147_v24  ;;  %v749_v50 = vmul.f32 %v8022_v26, %v666_v23 }
 0x1e1   : > { %v1879_v8 = vmax.f32 %v1736_v12, 0.0  ;;  %v1229_v10 = vmul.f32 %v8032_v30, %v1143_v59  ;;  %v1230_v11 = vmul.f32 %v8028_v28, %v1143_v59  ;;  %v1432_v29 = vmax.f32 %v1368_v61, 0.0 }
 0x1e2   : > { %v1936_v39 = vpack.c.bf16 %v1878_v5, %v1876_v51  ;;  %v1431_v31 = vmax.f32 %v1367_v15, 0.0  ;;  %v750_v12 = vmul.f32 %v8025_v27, %v666_v23  ;;  %2670 = vmatpush1.bf16.msra.mxu0 %v7242_v48  ;;  %v7250_v23 = vld [vmem:[%s10606_s3 + $0x244] ss:$8 sps:$4 sm:$0xff]   ;;  %v7260_v48 = vld [vmem:[%s10606_s3 + $0x280] ss:$8 sps:$4 sm:$0xff]  }
 0x1e3   : > { %v1937_v1 = vpack.c.bf16 %v1879_v8, %v1877_v58  ;;  %v1293_v13 = vadd.f32 %v1229_v10, %v1019_v2  ;;  %v1294_v18 = vadd.f32 %v1230_v11, %v1020_v35 }
 0x1e5   : > { %2222 = vmatprep.mubr.bf16.mxu1 %v1937_v1  ;;  %v661_v7 = vpop.permute.xlu1 %660  ;;  %v1370_v52 = vadd.f32 %v8049_v45, %v1294_v18  ;;  %v1369_v53 = vadd.f32 %v8059_v4, %v1293_v13  ;;  %v7245_v18 = vld [vmem:[%s10606_s3 + $0x230] ss:$8 sps:$4 sm:$0xff]  }
 0x1e6   : > { %2223 = vmatmul.mubr.bf16.gmra.mrb[8].mxu1 %v1936_v39  ;;  %v748_v19 = vmul.f32 %v8025_v27, %v661_v7  ;;  %v747_v37 = vmul.f32 %v8022_v26, %v661_v7  ;;  %v7247_v27 = vld [vmem:[%s10606_s3 + $0x234] ss:$8 sps:$4 sm:$0xff]  }
 0x1e7   : > { %v1434_v17 = vmax.f32 %v1370_v52, 0.0  ;;  %v1433_v32 = vmax.f32 %v1369_v53, 0.0  ;;  %2671 = vmatprep.subr.bf16.mxu0 %v7247_v27 }
 0x1e8   : > { %2672 = vmatpush1.bf16.msra.mxu0 %v7245_v18  ;;  %v7277_v18 = vld [vmem:[%s10606_s3 + $0x2d4] ss:$8 sps:$4 sm:$0xff]  }
 0x1e9   : > { %v1468_v63 = vpack.c.bf16 %v1434_v17, %v1432_v29  ;;  %v1467_v0 = vpack.c.bf16 %v1433_v32, %v1431_v31  ;;  %v7248_v29 = vld [vmem:[%s10606_s3 + $0x240] ss:$8 sps:$4 sm:$0xff]   ;;  %2673 = vmatprep.subr.bf16.mxu0 %v7250_v23 }
 0x1ea   : > { %v873_v38 = vpop.permute.xlu1 %872 }
 0x1eb   : > { %v957_v40 = vmul.f32 %v8014_v22, %v873_v38  ;;  %v958_v43 = vmul.f32 %v8018_v25, %v873_v38  ;;  %1847 = vmatprep.mubr.bf16.mxu0 %v1468_v63  ;;  %v7251_v63 = vld [vmem:[%s10606_s3 + $0x250] ss:$8 sps:$4 sm:$0xff]   ;;  %v7254_v38 = vld [vmem:[%s10606_s3 + $0x260] ss:$8 sps:$4 sm:$0xff]  }
 0x1ec   : > { %1848 = vmatmul.mubr.bf16.gmra.mrb[56].mxu0 %v1467_v0  ;;  %v7256_v0 = vld [vmem:[%s10606_s3 + $0x264] ss:$8 sps:$4 sm:$0xff]  }
 0x1ed   : > { %v1022_v14 = vadd.f32 %v958_v43, %v748_v19  ;;  %v1021_v55 = vadd.f32 %v957_v40, %v747_v37  ;;  %2674 = vmatpush1.bf16.msra.mxu0 %v7248_v29  ;;  %v7259_v19 = vld [vmem:[%s10606_s3 + $0x274] ss:$8 sps:$4 sm:$0xff]  }
 0x1ee   : > { %v1739_v44 = vpop.f32.mrb[12].mxu0  ;;  %v877_v46 = vpop.permute.xlu1 %876 }
 0x1ef   : > { %v1740_v42 = vadd.f32 %v1739_v44, %v8454_v57  ;;  %v959_v56 = vmul.f32 %v8014_v22, %v877_v46  ;;  %v1741_v47 = vpop.f32.mrb[13].mxu0  ;;  %v960_v49 = vmul.f32 %v8018_v25, %v877_v46  ;;  %v1296_v51 = vadd.f32 %v1232_v3, %v1022_v14  ;;  %v7257_v14 = vld [vmem:[%s10606_s3 + $0x270] ss:$8 sps:$4 sm:$0xff]  }
 0x1f0   : > { %v1742_v60 = vadd.f32 %v1741_v47, %v8458_v21  ;;  %v1743_v34 = vpop.f32.mrb[14].mxu0  ;;  %v1295_v35 = vadd.f32 %v1231_v41, %v1021_v55 }
 0x1f1   : > { %v1744_v2 = vadd.f32 %v1743_v34, %v8454_v57  ;;  %v1745_v22 = vpop.f32.mrb[15].mxu0  ;;  %v1880_v59 = vmax.f32 %v1740_v42, 0.0  ;;  %v1023_v58 = vadd.f32 %v959_v56, %v749_v50  ;;  %v1024_v8 = vadd.f32 %v960_v49, %v750_v12  ;;  %v7262_v56 = vld [vmem:[%s10606_s3 + $0x284] ss:$8 sps:$4 sm:$0xff]   ;;  %v7265_v49 = vld [vmem:[%s10606_s3 + $0x294] ss:$8 sps:$4 sm:$0xff]  }
 0x1f2   : > { %v1746_v5 = vadd.f32 %v1745_v22, %v8458_v21  ;;  %v1881_v11 = vmax.f32 %v1742_v60, 0.0  ;;  %v1372_v13 = vadd.f32 %v8049_v45, %v1296_v51  ;;  %v1371_v53 = vadd.f32 %v8059_v4, %v1295_v35  ;;  %v7263_v60 = vld [vmem:[%s10606_s3 + $0x290] ss:$8 sps:$4 sm:$0xff]   ;;  %v7266_v34 = vld [vmem:[%s10606_s3 + $0x2a0] ss:$8 sps:$4 sm:$0xff]  }
 0x1f3   : > { %v1882_v10 = vmax.f32 %v1744_v2, 0.0  ;;  %v1151_v25 = vpop.permute.xlu1 %1150  ;;  %v7268_v50 = vld [vmem:[%s10606_s3 + $0x2a4] ss:$8 sps:$4 sm:$0xff]   ;;  %v7271_v12 = vld [vmem:[%s10606_s3 + $0x2b4] ss:$8 sps:$4 sm:$0xff]  }
 0x1f4   : > { %v1883_v39 = vmax.f32 %v1746_v5, 0.0  ;;  %v1233_v61 = vmul.f32 %v8032_v30, %v1151_v25  ;;  %v1234_v26 = vmul.f32 %v8028_v28, %v1151_v25  ;;  %v1436_v17 = vmax.f32 %v1372_v13, 0.0  ;;  %v7269_v2 = vld [vmem:[%s10606_s3 + $0x2b0] ss:$8 sps:$4 sm:$0xff]   ;;  %v7274_v5 = vld [vmem:[%s10606_s3 + $0x2c4] ss:$8 sps:$4 sm:$0xff]  }
 0x1f5   : > { %v1938_v1 = vpack.c.bf16 %v1882_v10, %v1880_v59  ;;  %v1435_v32 = vmax.f32 %v1371_v53, 0.0  ;;  %v7283_v53 = vld [vmem:[%s10606_s3 + $0x2f4] ss:$8 sps:$4 sm:$0xff]  }
 0x1f6   : > { %v1939_v15 = vpack.c.bf16 %v1883_v39, %v1881_v11  ;;  %v1297_v7 = vadd.f32 %v1233_v61, %v1023_v58  ;;  %v1298_v52 = vadd.f32 %v1234_v26, %v1024_v8  ;;  %v7272_v11 = vld [vmem:[%s10606_s3 + $0x2c0] ss:$8 sps:$4 sm:$0xff]  }
 0x1f8   : > { %2232 = vmatprep.mubr.bf16.mxu1 %v1939_v15  ;;  %v1374_v28 = vadd.f32 %v8049_v45, %v1298_v52  ;;  %v1373_v30 = vadd.f32 %v8059_v4, %v1297_v7  ;;  %v7253_v45 = vld [vmem:[%s10606_s3 + $0x254] ss:$8 sps:$4 sm:$0xff]   ;;  %v7275_v15 = vld [vmem:[%s10606_s3 + $0x2d0] ss:$8 sps:$4 sm:$0xff]   ;;  %v7280_v7 = vld [vmem:[%s10606_s3 + $0x2e4] ss:$8 sps:$4 sm:$0xff]  }
 0x1f9   : > { %2233 = vmatmul.mubr.bf16.gmra.mrb[12].mxu1 %v1938_v1  ;;  %2675 = vmatprep.subr.bf16.mxu0 %v7253_v45  ;;  %v7278_v52 = vld [vmem:[%s10606_s3 + $0x2e0] ss:$8 sps:$4 sm:$0xff]  }
 0x1fa   : > { %v1438_v31 = vmax.f32 %v1374_v28, 0.0  ;;  %v1437_v33 = vmax.f32 %v1373_v30, 0.0  ;;  %2676 = vmatpush1.bf16.msra.mxu0 %v7251_v63  ;;  %v7281_v28 = vld [vmem:[%s10606_s3 + $0x2f0] ss:$8 sps:$4 sm:$0xff]  }
 0x1fb   : > { %2677 = vmatprep.subr.bf16.mxu0 %v7256_v0 }
 0x1fc   : > { %v1470_v4 = vpack.c.bf16 %v1438_v31, %v1436_v17  ;;  %v1469_v20 = vpack.c.bf16 %v1437_v33, %v1435_v32 }
 0x1fe   : > { %1857 = vmatprep.mubr.bf16.mxu0 %v1470_v4  ;;  %2678 = vmatpush1.bf16.msra.mxu0 %v7254_v38 }
 0x1ff   : > { %1858 = vmatmul.mubr.bf16.gmra.mrb[60].mxu0 %v1469_v20  ;;  %2679 = vmatprep.subr.bf16.mxu0 %v7259_v19 }
 0x201   : > { %v1749_v24 = vpop.f32.mrb[16].mxu0 }
 0x202   : > { %v1750_v40 = vadd.f32 %v1749_v24, %v8454_v57  ;;  %v1751_v43 = vpop.f32.mrb[17].mxu0  ;;  %2680 = vmatpush1.bf16.msra.mxu0 %v7257_v14 }
 0x203   : > { %v1752_v36 = vadd.f32 %v1751_v43, %v8458_v21  ;;  %v1753_v62 = vpop.f32.mrb[18].mxu0  ;;  %2681 = vmatprep.subr.bf16.mxu0 %v7262_v56 }
 0x204   : > { %v1754_v37 = vadd.f32 %v1753_v62, %v8454_v57  ;;  %v1755_v54 = vpop.f32.mrb[19].mxu0  ;;  %v1884_v55 = vmax.f32 %v1750_v40, 0.0 }
 0x205   : > { %v1756_v3 = vadd.f32 %v1755_v54, %v8458_v21  ;;  %v1885_v44 = vmax.f32 %v1752_v36, 0.0 }
 0x206   : > { %v1886_v41 = vmax.f32 %v1754_v37, 0.0  ;;  %2682 = vmatpush1.bf16.msra.mxu0 %v7260_v48 }
 0x207   : > { %v1887_v46 = vmax.f32 %v1756_v3, 0.0  ;;  %2683 = vmatprep.subr.bf16.mxu0 %v7265_v49 }
 0x208   : > { %v1940_v42 = vpack.c.bf16 %v1886_v41, %v1884_v55 }
 0x209   : > { %v1941_v47 = vpack.c.bf16 %v1887_v46, %v1885_v44 }
 0x20a   : > { %2684 = vmatpush1.bf16.msra.mxu0 %v7263_v60 }
 0x20b   : > { %2242 = vmatprep.mubr.bf16.mxu1 %v1941_v47  ;;  %2685 = vmatprep.subr.bf16.mxu0 %v7268_v50 }
 0x20c   : > { %2243 = vmatmul.mubr.bf16.gmra.mrb[16].mxu1 %v1940_v42 }
 0x20e   : > { %2686 = vmatpush1.bf16.msra.mxu0 %v7266_v34 }
 0x20f   : > { %2687 = vmatprep.subr.bf16.mxu0 %v7271_v12 }
 0x212   : > { %2688 = vmatpush1.bf16.msra.mxu0 %v7269_v2 }
 0x213   : > { %2689 = vmatprep.subr.bf16.mxu0 %v7274_v5 }
 0x214   : > { %v1759_v51 = vpop.f32.mrb[20].mxu0 }
 0x215   : > { %v1760_v22 = vadd.f32 %v1759_v51, %v8454_v57  ;;  %v1761_v35 = vpop.f32.mrb[21].mxu0 }
 0x216   : > { %v1762_v59 = vadd.f32 %v1761_v35, %v8458_v21  ;;  %v1763_v58 = vpop.f32.mrb[22].mxu0  ;;  %2690 = vmatpush1.bf16.msra.mxu0 %v7272_v11 }
 0x217   : > { %v1764_v8 = vadd.f32 %v1763_v58, %v8454_v57  ;;  %v1765_v10 = vpop.f32.mrb[23].mxu0  ;;  %v1888_v39 = vmax.f32 %v1760_v22, 0.0  ;;  %2691 = vmatprep.subr.bf16.mxu0 %v7277_v18 }
 0x218   : > { %v1766_v25 = vadd.f32 %v1765_v10, %v8458_v21  ;;  %v1889_v26 = vmax.f32 %v1762_v59, 0.0 }
 0x219   : > { %v1890_v61 = vmax.f32 %v1764_v8, 0.0 }
 0x21a   : > { %v1891_v27 = vmax.f32 %v1766_v25, 0.0  ;;  %2692 = vmatpush1.bf16.msra.mxu0 %v7275_v15 }
 0x21b   : > { %v1942_v1 = vpack.c.bf16 %v1890_v61, %v1888_v39  ;;  %2693 = vmatprep.subr.bf16.mxu0 %v7280_v7 }
 0x21c   : > { %v1943_v13 = vpack.c.bf16 %v1891_v27, %v1889_v26 }
 0x21e   : > { %2252 = vmatprep.mubr.bf16.mxu1 %v1943_v13  ;;  %2694 = vmatpush1.bf16.msra.mxu0 %v7278_v52 }
 0x21f   : > { %2253 = vmatmul.mubr.bf16.gmra.mrb[20].mxu1 %v1942_v1  ;;  %2695 = vmatprep.subr.bf16.mxu0 %v7283_v53 }
 0x222   : > { %2696 = vmatpush1.bf16.msra.mxu0 %v7281_v28 }
 0x227   : > { %v1769_v30 = vpop.f32.mrb[24].mxu0 }
 0x228   : > { %v1770_v23 = vadd.f32 %v1769_v30, %v8454_v57  ;;  %v1771_v29 = vpop.f32.mrb[25].mxu0 }
 0x229   : > { %v1772_v17 = vadd.f32 %v1771_v29, %v8458_v21  ;;  %v1773_v31 = vpop.f32.mrb[26].mxu0 }
 0x22a   : > { %v1774_v32 = vadd.f32 %v1773_v31, %v8454_v57  ;;  %v1775_v33 = vpop.f32.mrb[27].mxu0  ;;  %v1892_v4 = vmax.f32 %v1770_v23, 0.0 }
 0x22b   : > { %v1776_v45 = vadd.f32 %v1775_v33, %v8458_v21  ;;  %v1893_v63 = vmax.f32 %v1772_v17, 0.0 }
 0x22c   : > { %v1894_v20 = vmax.f32 %v1774_v32, 0.0 }
 0x22d   : > { %v1895_v0 = vmax.f32 %v1776_v45, 0.0 }
 0x22e   : > { %v1944_v38 = vpack.c.bf16 %v1894_v20, %v1892_v4 }
 0x22f   : > { %v1945_v24 = vpack.c.bf16 %v1895_v0, %v1893_v63 }
 0x231   : > { %2262 = vmatprep.mubr.bf16.mxu1 %v1945_v24 }
 0x232   : > { %2263 = vmatmul.mubr.bf16.gmra.mrb[24].mxu1 %v1944_v38 }
 0x23a   : > { %v1779_v19 = vpop.f32.mrb[28].mxu0 }
 0x23b   : > { %v1780_v40 = vadd.f32 %v1779_v19, %v8454_v57  ;;  %v1781_v43 = vpop.f32.mrb[29].mxu0 }
 0x23c   : > { %v1782_v36 = vadd.f32 %v1781_v43, %v8458_v21  ;;  %v1783_v62 = vpop.f32.mrb[30].mxu0 }
 0x23d   : > { %v1784_v37 = vadd.f32 %v1783_v62, %v8454_v57  ;;  %v1785_v54 = vpop.f32.mrb[31].mxu0  ;;  %v1896_v3 = vmax.f32 %v1780_v40, 0.0 }
 0x23e   : > { %v1786_v14 = vadd.f32 %v1785_v54, %v8458_v21  ;;  %v1897_v41 = vmax.f32 %v1782_v36, 0.0 }
 0x23f   : > { %v1898_v55 = vmax.f32 %v1784_v37, 0.0 }
 0x240   : > { %v1899_v44 = vmax.f32 %v1786_v14, 0.0 }
 0x241   : > { %v1946_v46 = vpack.c.bf16 %v1898_v55, %v1896_v3 }
 0x242   : > { %v1947_v42 = vpack.c.bf16 %v1899_v44, %v1897_v41  ;;  %v6584_v44 = vld [vmem:[%s10607_s4 + $0x2] sm:$0x3] }
 0x244   : > { %2272 = vmatprep.mubr.bf16.mxu1 %v1947_v42 }
 0x245   : > { %2273 = vmatmul.mubr.bf16.gmra.mrb[28].mxu1 %v1946_v46 }
 0x24d   : > { %v1789_v56 = vpop.f32.mrb[32].mxu0 }
 0x24e   : > { %v1790_v47 = vadd.f32 %v1789_v56, %v8454_v57  ;;  %v1791_v48 = vpop.f32.mrb[33].mxu0 }
 0x24f   : > { %v1792_v49 = vadd.f32 %v1791_v48, %v8458_v21  ;;  %v1793_v60 = vpop.f32.mrb[34].mxu0 }
 0x250   : > { %v1794_v34 = vadd.f32 %v1793_v60, %v8454_v57  ;;  %v1795_v50 = vpop.f32.mrb[35].mxu0  ;;  %v1900_v51 = vmax.f32 %v1790_v47, 0.0 }
 0x251   : > { %v1796_v12 = vadd.f32 %v1795_v50, %v8458_v21  ;;  %v1901_v22 = vmax.f32 %v1792_v49, 0.0  ;;  %v8662_v49 = vrot.slane %v6584_v44, %v8003_v9  ;;  %v8666_v50 = vrot.slane %v6584_v44, %v7997_v6 }
 0x252   : > { %v1902_v2 = vmax.f32 %v1794_v34, 0.0 }
 0x253   : > { %v1903_v35 = vmax.f32 %v1796_v12, 0.0 }
 0x254   : > { %v1948_v5 = vpack.c.bf16 %v1902_v2, %v1900_v51 }
 0x255   : > { %v1949_v59 = vpack.c.bf16 %v1903_v35, %v1901_v22 }
 0x257   : > { %2282 = vmatprep.mubr.bf16.mxu1 %v1949_v59 }
 0x258   : > { %2283 = vmatmul.mubr.bf16.gmra.mrb[32].mxu1 %v1948_v5 }
 0x260   : > { %v1799_v58 = vpop.f32.mrb[36].mxu0 }
 0x261   : > { %v1800_v8 = vadd.f32 %v1799_v58, %v8454_v57  ;;  %v1801_v10 = vpop.f32.mrb[37].mxu0 }
 0x262   : > { %v1802_v25 = vadd.f32 %v1801_v10, %v8458_v21  ;;  %v1803_v11 = vpop.f32.mrb[38].mxu0 }
 0x263   : > { %v1804_v39 = vadd.f32 %v1803_v11, %v8454_v57  ;;  %v1805_v61 = vpop.f32.mrb[39].mxu0  ;;  %v1904_v27 = vmax.f32 %v1800_v8, 0.0 }
 0x264   : > { %v1806_v26 = vadd.f32 %v1805_v61, %v8458_v21  ;;  %v1905_v13 = vmax.f32 %v1802_v25, 0.0 }
 0x265   : > { %v1906_v1 = vmax.f32 %v1804_v39, 0.0 }
 0x266   : > { %v1907_v18 = vmax.f32 %v1806_v26, 0.0 }
 0x267   : > { %v1950_v15 = vpack.c.bf16 %v1906_v1, %v1904_v27 }
 0x268   : > { %v1951_v7 = vpack.c.bf16 %v1907_v18, %v1905_v13 }
 0x26a   : > { %2292 = vmatprep.mubr.bf16.mxu1 %v1951_v7 }
 0x26b   : > { %2293 = vmatmul.mubr.bf16.gmra.mrb[36].mxu1 %v1950_v15 }
 0x273   : > { %v1809_v52 = vpop.f32.mrb[40].mxu0 }
 0x274   : > { %v1810_v53 = vadd.f32 %v1809_v52, %v8454_v57  ;;  %v1811_v28 = vpop.f32.mrb[41].mxu0 }
 0x275   : > { %v1812_v30 = vadd.f32 %v1811_v28, %v8458_v21  ;;  %v1813_v23 = vpop.f32.mrb[42].mxu0 }
 0x276   : > { %v1814_v29 = vadd.f32 %v1813_v23, %v8454_v57  ;;  %v1815_v17 = vpop.f32.mrb[43].mxu0  ;;  %v1908_v32 = vmax.f32 %v1810_v53, 0.0 }
 0x277   : > { %v1816_v31 = vadd.f32 %v1815_v17, %v8458_v21  ;;  %v1909_v45 = vmax.f32 %v1812_v30, 0.0 }
 0x278   : > { %v1910_v33 = vmax.f32 %v1814_v29, 0.0 }
 0x279   : > { %v1911_v4 = vmax.f32 %v1816_v31, 0.0 }
 0x27a   : > { %v1952_v20 = vpack.c.bf16 %v1910_v33, %v1908_v32 }
 0x27b   : > { %v1953_v63 = vpack.c.bf16 %v1911_v4, %v1909_v45 }
 0x27d   : > { %2302 = vmatprep.mubr.bf16.mxu1 %v1953_v63 }
 0x27e   : > { %2303 = vmatmul.mubr.bf16.gmra.mrb[40].mxu1 %v1952_v20 }
 0x286   : > { %v1819_v0 = vpop.f32.mrb[44].mxu0 }
 0x287   : > { %v1820_v38 = vadd.f32 %v1819_v0, %v8454_v57  ;;  %v1821_v24 = vpop.f32.mrb[45].mxu0 }
 0x288   : > { %v1822_v19 = vadd.f32 %v1821_v24, %v8458_v21  ;;  %v1823_v40 = vpop.f32.mrb[46].mxu0 }
 0x289   : > { %v1824_v43 = vadd.f32 %v1823_v40, %v8454_v57  ;;  %v1825_v36 = vpop.f32.mrb[47].mxu0  ;;  %v1912_v37 = vmax.f32 %v1820_v38, 0.0 }
 0x28a   : > { %v1826_v62 = vadd.f32 %v1825_v36, %v8458_v21  ;;  %v1913_v14 = vmax.f32 %v1822_v19, 0.0 }
 0x28b   : > { %v1914_v54 = vmax.f32 %v1824_v43, 0.0 }
 0x28c   : > { %v1915_v3 = vmax.f32 %v1826_v62, 0.0 }
 0x28d   : > { %v1954_v55 = vpack.c.bf16 %v1914_v54, %v1912_v37 }
 0x28e   : > { %v1955_v41 = vpack.c.bf16 %v1915_v3, %v1913_v14 }
 0x290   : > { %2312 = vmatprep.mubr.bf16.mxu1 %v1955_v41 }
 0x291   : > { %2313 = vmatmul.mubr.bf16.gmra.mrb[44].mxu1 %v1954_v55 }
 0x299   : > { %v1829_v46 = vpop.f32.mrb[48].mxu0 }
 0x29a   : > { %v1830_v42 = vadd.f32 %v1829_v46, %v8454_v57  ;;  %v1831_v56 = vpop.f32.mrb[49].mxu0 }
 0x29b   : > { %v1832_v47 = vadd.f32 %v1831_v56, %v8458_v21  ;;  %v1833_v48 = vpop.f32.mrb[50].mxu0 }
 0x29c   : > { %v1834_v60 = vadd.f32 %v1833_v48, %v8454_v57  ;;  %v1835_v34 = vpop.f32.mrb[51].mxu0  ;;  %v1916_v51 = vmax.f32 %v1830_v42, 0.0 }
 0x29d   : > { %v1836_v12 = vadd.f32 %v1835_v34, %v8458_v21  ;;  %v2204_v22 = vpop.f32.mrb[0].mxu1  ;;  %v1917_v35 = vmax.f32 %v1832_v47, 0.0 }
 0x29e   : > { %v1918_v2 = vmax.f32 %v1834_v60, 0.0  ;;  %v2205_v59 = vadd.f32 %v2204_v22, %v8662_v49  ;;  %v2206_v58 = vpop.f32.mrb[1].mxu1 }
 0x29f   : > { %v1919_v5 = vmax.f32 %v1836_v12, 0.0  ;;  %v2207_v10 = vadd.f32 %v2206_v58, %v8666_v50  ;;  %v2208_v25 = vpop.f32.mrb[2].mxu1 }
 0x2a0   : > { %v1956_v8 = vpack.c.bf16 %v1918_v2, %v1916_v51  ;;  %v2209_v39 = vadd.f32 %v2208_v25, %v8662_v49  ;;  %v2210_v61 = vpop.f32.mrb[3].mxu1  ;;  %v2363_v27 = vmax.f32 %v2205_v59, 0.0 }
 0x2a1   : > { %v1957_v11 = vpack.c.bf16 %v1919_v5, %v1917_v35  ;;  %v2211_v26 = vadd.f32 %v2210_v61, %v8666_v50  ;;  %v2364_v13 = vmax.f32 %v2207_v10, 0.0 }
 0x2a2   : > { %v2365_v1 = vmax.f32 %v2209_v39, 0.0 }
 0x2a3   : > { %2322 = vmatprep.mubr.bf16.mxu1 %v1957_v11  ;;  %v2366_v18 = vmax.f32 %v2211_v26, 0.0 }
 0x2a4   : > { %2323 = vmatmul.mubr.bf16.gmra.mrb[48].mxu1 %v1956_v8  ;;  %v2427_v15 = vpack.c.bf16 %v2365_v1, %v2363_v27 }
 0x2a5   : > { %v2428_v7 = vpack.c.bf16 %v2366_v18, %v2364_v13 }
 0x2a6   : > { %v2214_v52 = vpop.f32.mrb[4].mxu1 }
 0x2a7   : > { %v2215_v53 = vadd.f32 %v2214_v52, %v8662_v49  ;;  %v2216_v28 = vpop.f32.mrb[5].mxu1  ;;  %2697 = vmatprep.mubr.bf16.mxu0 %v2428_v7  ;;  %v7286_v7 = vld [vmem:[%s10606_s3 + $0x304] ss:$8 sps:$4 sm:$0xff]  }
 0x2a8   : > { %v2217_v30 = vadd.f32 %v2216_v28, %v8666_v50  ;;  %v2218_v23 = vpop.f32.mrb[6].mxu1  ;;  %2698 = vmatmul.mubr.bf16.vlgmr.msra.gmra.mrb[64].mxu0 %v2427_v15  ;;  %v7284_v15 = vld [vmem:[%s10606_s3 + $0x300] ss:$8 sps:$4 sm:$0xff]   ;;  %3160 = vmatprep.subr.bf16.mxu1 %v7286_v7  ;;  %v7289_v28 = vld [vmem:[%s10606_s3 + $0x314] ss:$8 sps:$4 sm:$0xff]  }
 0x2a9   : > { %v2219_v29 = vadd.f32 %v2218_v23, %v8662_v49  ;;  %v2220_v17 = vpop.f32.mrb[7].mxu1  ;;  %v2367_v32 = vmax.f32 %v2215_v53, 0.0  ;;  %3161 = vmatpush1.bf16.msra.mxu1 %v7284_v15  ;;  %v7287_v53 = vld [vmem:[%s10606_s3 + $0x310] ss:$8 sps:$4 sm:$0xff]   ;;  %v7308_v7 = vld [vmem:[%s10606_s3 + $0x380] ss:$8 sps:$4 sm:$0xff]  }
 0x2aa   : > { %v2221_v31 = vadd.f32 %v2220_v17, %v8666_v50  ;;  %v2368_v45 = vmax.f32 %v2217_v30, 0.0  ;;  %v7292_v30 = vld [vmem:[%s10606_s3 + $0x324] ss:$8 sps:$4 sm:$0xff]   ;;  %3162 = vmatprep.subr.bf16.mxu1 %v7289_v28  ;;  %v7314_v28 = vld [vmem:[%s10606_s3 + $0x3a0] ss:$8 sps:$4 sm:$0xff]  }
 0x2ab   : > { %v2369_v33 = vmax.f32 %v2219_v29, 0.0 }
 0x2ac   : > { %v2370_v4 = vmax.f32 %v2221_v31, 0.0  ;;  %v1839_v20 = vpop.f32.mrb[52].mxu0  ;;  %v7290_v31 = vld [vmem:[%s10606_s3 + $0x320] ss:$8 sps:$4 sm:$0xff]  }
 0x2ad   : > { %v2429_v63 = vpack.c.bf16 %v2369_v33, %v2367_v32  ;;  %v1840_v0 = vadd.f32 %v1839_v20, %v8454_v57  ;;  %v1841_v38 = vpop.f32.mrb[53].mxu0  ;;  %3163 = vmatpush1.bf16.msra.mxu1 %v7287_v53  ;;  %v7311_v53 = vld [vmem:[%s10606_s3 + $0x390] ss:$8 sps:$4 sm:$0xff]  }
 0x2ae   : > { %v2430_v24 = vpack.c.bf16 %v2370_v4, %v2368_v45  ;;  %v1842_v19 = vadd.f32 %v1841_v38, %v8458_v21  ;;  %v1843_v40 = vpop.f32.mrb[54].mxu0  ;;  %3164 = vmatprep.subr.bf16.mxu1 %v7292_v30  ;;  %v7316_v30 = vld [vmem:[%s10606_s3 + $0x3a4] ss:$8 sps:$4 sm:$0xff]  }
 0x2af   : > { %v1844_v43 = vadd.f32 %v1843_v40, %v8454_v57  ;;  %v1845_v36 = vpop.f32.mrb[55].mxu0  ;;  %v1920_v37 = vmax.f32 %v1840_v0, 0.0  ;;  %v7295_v40 = vld [vmem:[%s10606_s3 + $0x334] ss:$8 sps:$4 sm:$0xff]  }
 0x2b0   : > { %v1846_v62 = vadd.f32 %v1845_v36, %v8458_v21  ;;  %2707 = vmatprep.mubr.bf16.mxu0 %v2430_v24  ;;  %v1921_v14 = vmax.f32 %v1842_v19, 0.0 }
 0x2b1   : > { %v1922_v54 = vmax.f32 %v1844_v43, 0.0  ;;  %2708 = vmatmul.mubr.bf16.gmra.mrb[68].mxu0 %v2429_v63  ;;  %3165 = vmatpush1.bf16.msra.mxu1 %v7290_v31 }
 0x2b2   : > { %v1923_v3 = vmax.f32 %v1846_v62, 0.0  ;;  %3166 = vmatprep.subr.bf16.mxu1 %v7295_v40 }
 0x2b3   : > { %v1958_v55 = vpack.c.bf16 %v1922_v54, %v1920_v37  ;;  %v7293_v37 = vld [vmem:[%s10606_s3 + $0x330] ss:$8 sps:$4 sm:$0xff]  }
 0x2b4   : > { %v1959_v41 = vpack.c.bf16 %v1923_v3, %v1921_v14 }
 0x2b5   : > { %3167 = vmatpush1.bf16.msra.mxu1 %v7293_v37  ;;  %v7325_v37 = vld [vmem:[%s10606_s3 + $0x3d4] ss:$8 sps:$4 sm:$0xff]  }
 0x2b6   : > { %2332 = vmatprep.mubr.bf16.mxu1 %v1959_v41 }
 0x2b7   : > { %2333 = vmatmul.mubr.bf16.gmra.mrb[52].mxu1 %v1958_v55 }
 0x2b9   : > { %v2224_v44 = vpop.f32.mrb[8].mxu1 }
 0x2ba   : > { %v2225_v46 = vadd.f32 %v2224_v44, %v8662_v49  ;;  %v2226_v42 = vpop.f32.mrb[9].mxu1 }
 0x2bb   : > { %v2227_v56 = vadd.f32 %v2226_v42, %v8666_v50  ;;  %v2228_v47 = vpop.f32.mrb[10].mxu1 }
 0x2bc   : > { %v2229_v48 = vadd.f32 %v2228_v47, %v8662_v49  ;;  %v2230_v60 = vpop.f32.mrb[11].mxu1  ;;  %v2371_v12 = vmax.f32 %v2225_v46, 0.0  ;;  %v7298_v46 = vld [vmem:[%s10606_s3 + $0x344] ss:$8 sps:$4 sm:$0xff]   ;;  %v7296_v47 = vld [vmem:[%s10606_s3 + $0x340] ss:$8 sps:$4 sm:$0xff]  }
 0x2bd   : > { %v2231_v34 = vadd.f32 %v2230_v60, %v8666_v50  ;;  %v2372_v2 = vmax.f32 %v2227_v56, 0.0  ;;  %3168 = vmatprep.subr.bf16.mxu1 %v7298_v46 }
 0x2be   : > { %v2373_v51 = vmax.f32 %v2229_v48, 0.0  ;;  %3169 = vmatpush1.bf16.msra.mxu1 %v7296_v47 }
 0x2bf   : > { %v2374_v22 = vmax.f32 %v2231_v34, 0.0  ;;  %v1849_v35 = vpop.f32.mrb[56].mxu0 }
 0x2c0   : > { %v2431_v5 = vpack.c.bf16 %v2373_v51, %v2371_v12  ;;  %v1850_v59 = vadd.f32 %v1849_v35, %v8454_v57  ;;  %v1851_v58 = vpop.f32.mrb[57].mxu0  ;;  %v7299_v12 = vld [vmem:[%s10606_s3 + $0x350] ss:$8 sps:$4 sm:$0xff]   ;;  %v7304_v51 = vld [vmem:[%s10606_s3 + $0x364] ss:$8 sps:$4 sm:$0xff]  }
 0x2c1   : > { %v2432_v8 = vpack.c.bf16 %v2374_v22, %v2372_v2  ;;  %v1852_v10 = vadd.f32 %v1851_v58, %v8458_v21  ;;  %v1853_v25 = vpop.f32.mrb[58].mxu0  ;;  %v7302_v2 = vld [vmem:[%s10606_s3 + $0x360] ss:$8 sps:$4 sm:$0xff]   ;;  %v7307_v35 = vld [vmem:[%s10606_s3 + $0x374] ss:$8 sps:$4 sm:$0xff]  }
 0x2c2   : > { %v1854_v11 = vadd.f32 %v1853_v25, %v8454_v57  ;;  %v1855_v39 = vpop.f32.mrb[59].mxu0  ;;  %v1924_v26 = vmax.f32 %v1850_v59, 0.0 }
 0x2c3   : > { %v1856_v61 = vadd.f32 %v1855_v39, %v8458_v21  ;;  %2717 = vmatprep.mubr.bf16.mxu0 %v2432_v8  ;;  %v1925_v1 = vmax.f32 %v1852_v10, 0.0 }
 0x2c4   : > { %v1926_v27 = vmax.f32 %v1854_v11, 0.0  ;;  %2718 = vmatmul.mubr.bf16.gmra.mrb[72].mxu0 %v2431_v5  ;;  %v7305_v11 = vld [vmem:[%s10606_s3 + $0x370] ss:$8 sps:$4 sm:$0xff]  }
 0x2c5   : > { %v1927_v13 = vmax.f32 %v1856_v61, 0.0 }
 0x2c6   : > { %v1960_v18 = vpack.c.bf16 %v1926_v27, %v1924_v26 }
 0x2c7   : > { %v1961_v52 = vpack.c.bf16 %v1927_v13, %v1925_v1 }
 0x2c9   : > { %2342 = vmatprep.mubr.bf16.mxu1 %v1961_v52  ;;  %v7313_v52 = vld [vmem:[%s10606_s3 + $0x394] ss:$8 sps:$4 sm:$0xff]  }
 0x2ca   : > { %2343 = vmatmul.mubr.bf16.gmra.mrb[56].mxu1 %v1960_v18  ;;  %v7310_v18 = vld [vmem:[%s10606_s3 + $0x384] ss:$8 sps:$4 sm:$0xff]  }
 0x2cc   : > { %v2234_v23 = vpop.f32.mrb[12].mxu1 }
 0x2cd   : > { %v2235_v29 = vadd.f32 %v2234_v23, %v8662_v49  ;;  %v2236_v17 = vpop.f32.mrb[13].mxu1  ;;  %v7319_v23 = vld [vmem:[%s10606_s3 + $0x3b4] ss:$8 sps:$4 sm:$0xff]  }
 0x2ce   : > { %v2237_v32 = vadd.f32 %v2236_v17, %v8666_v50  ;;  %v2238_v33 = vpop.f32.mrb[14].mxu1  ;;  %v7317_v17 = vld [vmem:[%s10606_s3 + $0x3b0] ss:$8 sps:$4 sm:$0xff]  }
 0x2cf   : > { %v2239_v45 = vadd.f32 %v2238_v33, %v8662_v49  ;;  %v2240_v4 = vpop.f32.mrb[15].mxu1  ;;  %v2375_v63 = vmax.f32 %v2235_v29, 0.0  ;;  %v7322_v33 = vld [vmem:[%s10606_s3 + $0x3c4] ss:$8 sps:$4 sm:$0xff]  }
 0x2d0   : > { %v2241_v20 = vadd.f32 %v2240_v4, %v8666_v50  ;;  %v2376_v38 = vmax.f32 %v2237_v32, 0.0 }
 0x2d1   : > { %v2377_v0 = vmax.f32 %v2239_v45, 0.0 }
 0x2d2   : > { %v2378_v24 = vmax.f32 %v2241_v20, 0.0  ;;  %v1859_v19 = vpop.f32.mrb[60].mxu0 }
 0x2d3   : > { %v2433_v43 = vpack.c.bf16 %v2377_v0, %v2375_v63  ;;  %v1860_v36 = vadd.f32 %v1859_v19, %v8454_v57  ;;  %v1861_v62 = vpop.f32.mrb[61].mxu0 }
 0x2d4   : > { %v2434_v54 = vpack.c.bf16 %v2378_v24, %v2376_v38  ;;  %v1862_v14 = vadd.f32 %v1861_v62, %v8458_v21  ;;  %v1863_v3 = vpop.f32.mrb[62].mxu0  ;;  %v7320_v38 = vld [vmem:[%s10606_s3 + $0x3c0] ss:$8 sps:$4 sm:$0xff]  }
 0x2d5   : > { %v1864_v55 = vadd.f32 %v1863_v3, %v8454_v57  ;;  %v1865_v41 = vpop.f32.mrb[63].mxu0  ;;  %v1928_v42 = vmax.f32 %v1860_v36, 0.0  ;;  %v7326_v3 = vld [vmem:[%s10606_s3 + $0x3e0] ss:$8 sps:$4 sm:$0xff]  }
 0x2d6   : > { %v1866_v44 = vadd.f32 %v1865_v41, %v8458_v21  ;;  %2727 = vmatprep.mubr.bf16.mxu0 %v2434_v54  ;;  %v1929_v48 = vmax.f32 %v1862_v14, 0.0  ;;  %v7301_v21 = vld [vmem:[%s10606_s3 + $0x354] ss:$8 sps:$4 sm:$0xff]   ;;  %v7323_v54 = vld [vmem:[%s10606_s3 + $0x3d0] ss:$8 sps:$4 sm:$0xff]  }
 0x2d7   : > { %v1930_v56 = vmax.f32 %v1864_v55, 0.0  ;;  %2728 = vmatmul.mubr.bf16.gmra.mrb[76].mxu0 %v2433_v43  ;;  %3170 = vmatprep.subr.bf16.mxu1 %v7301_v21  ;;  %v7328_v14 = vld [vmem:[%s10606_s3 + $0x3e4] ss:$8 sps:$4 sm:$0xff]   ;;  %v7331_v55 = vld [vmem:[%s10606_s3 + $0x3f4] ss:$8 sps:$4 sm:$0xff]  }
 0x2d8   : > { %v1931_v60 = vmax.f32 %v1866_v44, 0.0  ;;  %3171 = vmatpush1.bf16.msra.mxu1 %v7299_v12  ;;  %v7329_v41 = vld [vmem:[%s10606_s3 + $0x3f0] ss:$8 sps:$4 sm:$0xff]  }
 0x2d9   : > { %v1962_v57 = vpack.c.bf16 %v1930_v56, %v1928_v42  ;;  %3172 = vmatprep.subr.bf16.mxu1 %v7304_v51 }
 0x2da   : > { %v1963_v34 = vpack.c.bf16 %v1931_v60, %v1929_v48 }
 0x2dc   : > { %2352 = vmatprep.mubr.bf16.mxu1 %v1963_v34  ;;  %3173 = vmatpush1.bf16.msra.mxu1 %v7302_v2 }
 0x2dd   : > { %2353 = vmatmul.mubr.bf16.gmra.mrb[60].mxu1 %v1962_v57  ;;  %3174 = vmatprep.subr.bf16.mxu1 %v7307_v35 }
 0x2df   : > { %v2244_v22 = vpop.f32.mrb[16].mxu1 }
 0x2e0   : > { %v2245_v5 = vadd.f32 %v2244_v22, %v8662_v49  ;;  %v2246_v59 = vpop.f32.mrb[17].mxu1  ;;  %3175 = vmatpush1.bf16.msra.mxu1 %v7305_v11 }
 0x2e1   : > { %v2247_v58 = vadd.f32 %v2246_v59, %v8666_v50  ;;  %v2248_v8 = vpop.f32.mrb[18].mxu1  ;;  %3176 = vmatprep.subr.bf16.mxu1 %v7310_v18 }
 0x2e2   : > { %v2249_v10 = vadd.f32 %v2248_v8, %v8662_v49  ;;  %v2250_v25 = vpop.f32.mrb[19].mxu1  ;;  %v2379_v61 = vmax.f32 %v2245_v5, 0.0 }
 0x2e3   : > { %v2251_v39 = vadd.f32 %v2250_v25, %v8666_v50  ;;  %v2380_v27 = vmax.f32 %v2247_v58, 0.0 }
 0x2e4   : > { %v2381_v26 = vmax.f32 %v2249_v10, 0.0  ;;  %3177 = vmatpush1.bf16.msra.mxu1 %v7308_v7 }
 0x2e5   : > { %v2382_v1 = vmax.f32 %v2251_v39, 0.0  ;;  %3178 = vmatprep.subr.bf16.mxu1 %v7313_v52 }
 0x2e6   : > { %v2435_v13 = vpack.c.bf16 %v2381_v26, %v2379_v61 }
 0x2e7   : > { %v2436_v15 = vpack.c.bf16 %v2382_v1, %v2380_v27 }
 0x2e8   : > { %3179 = vmatpush1.bf16.msra.mxu1 %v7311_v53 }
 0x2e9   : > { %2737 = vmatprep.mubr.bf16.mxu0 %v2436_v15  ;;  %3180 = vmatprep.subr.bf16.mxu1 %v7316_v30 }
 0x2ea   : > { %2738 = vmatmul.mubr.bf16.gmra.mrb[80].mxu0 %v2435_v13 }
 0x2ec   : > { %3181 = vmatpush1.bf16.msra.mxu1 %v7314_v28 }
 0x2ed   : > { %3182 = vmatprep.subr.bf16.mxu1 %v7319_v23 }
 0x2f0   : > { %3183 = vmatpush1.bf16.msra.mxu1 %v7317_v17 }
 0x2f1   : > { %3184 = vmatprep.subr.bf16.mxu1 %v7322_v33 }
 0x2f2   : > { %v2254_v29 = vpop.f32.mrb[20].mxu1 }
 0x2f3   : > { %v2255_v31 = vadd.f32 %v2254_v29, %v8662_v49  ;;  %v2256_v32 = vpop.f32.mrb[21].mxu1 }
 0x2f4   : > { %v2257_v45 = vadd.f32 %v2256_v32, %v8666_v50  ;;  %v2258_v4 = vpop.f32.mrb[22].mxu1  ;;  %3185 = vmatpush1.bf16.msra.mxu1 %v7320_v38 }
 0x2f5   : > { %v2259_v20 = vadd.f32 %v2258_v4, %v8662_v49  ;;  %v2260_v63 = vpop.f32.mrb[23].mxu1  ;;  %v2383_v24 = vmax.f32 %v2255_v31, 0.0  ;;  %3186 = vmatprep.subr.bf16.mxu1 %v7325_v37 }
 0x2f6   : > { %v2261_v0 = vadd.f32 %v2260_v63, %v8666_v50  ;;  %v2384_v40 = vmax.f32 %v2257_v45, 0.0 }
 0x2f7   : > { %v2385_v19 = vmax.f32 %v2259_v20, 0.0 }
 0x2f8   : > { %v2386_v43 = vmax.f32 %v2261_v0, 0.0  ;;  %3187 = vmatpush1.bf16.msra.mxu1 %v7323_v54 }
 0x2f9   : > { %v2437_v36 = vpack.c.bf16 %v2385_v19, %v2383_v24  ;;  %3188 = vmatprep.subr.bf16.mxu1 %v7328_v14 }
 0x2fa   : > { %v2438_v62 = vpack.c.bf16 %v2386_v43, %v2384_v40 }
 0x2fc   : > { %2747 = vmatprep.mubr.bf16.mxu0 %v2438_v62  ;;  %3189 = vmatpush1.bf16.msra.mxu1 %v7326_v3 }
 0x2fd   : > { %2748 = vmatmul.mubr.bf16.gmra.mrb[84].mxu0 %v2437_v36  ;;  %3190 = vmatprep.subr.bf16.mxu1 %v7331_v55 }
 0x300   : > { %3191 = vmatpush1.bf16.msra.mxu1 %v7329_v41 }
 0x305   : > { %v2264_v44 = vpop.f32.mrb[24].mxu1 }
 0x306   : > { %v2265_v46 = vadd.f32 %v2264_v44, %v8662_v49  ;;  %v2266_v42 = vpop.f32.mrb[25].mxu1 }
 0x307   : > { %v2267_v56 = vadd.f32 %v2266_v42, %v8666_v50  ;;  %v2268_v47 = vpop.f32.mrb[26].mxu1 }
 0x308   : > { %v2269_v48 = vadd.f32 %v2268_v47, %v8662_v49  ;;  %v2270_v60 = vpop.f32.mrb[27].mxu1  ;;  %v2387_v21 = vmax.f32 %v2265_v46, 0.0 }
 0x309   : > { %v2271_v57 = vadd.f32 %v2270_v60, %v8666_v50  ;;  %v2388_v12 = vmax.f32 %v2267_v56, 0.0 }
 0x30a   : > { %v2389_v34 = vmax.f32 %v2269_v48, 0.0 }
 0x30b   : > { %v2390_v51 = vmax.f32 %v2271_v57, 0.0 }
 0x30c   : > { %v2439_v2 = vpack.c.bf16 %v2389_v34, %v2387_v21 }
 0x30d   : > { %v2440_v22 = vpack.c.bf16 %v2390_v51, %v2388_v12 }
 0x30f   : > { %2757 = vmatprep.mubr.bf16.mxu0 %v2440_v22 }
 0x310   : > { %2758 = vmatmul.mubr.bf16.gmra.mrb[88].mxu0 %v2439_v2 }
 0x318   : > { %v2274_v35 = vpop.f32.mrb[28].mxu1 }
 0x319   : > { %v2275_v5 = vadd.f32 %v2274_v35, %v8662_v49  ;;  %v2276_v59 = vpop.f32.mrb[29].mxu1 }
 0x31a   : > { %v2277_v58 = vadd.f32 %v2276_v59, %v8666_v50  ;;  %v2278_v8 = vpop.f32.mrb[30].mxu1 }
 0x31b   : > { %v2279_v10 = vadd.f32 %v2278_v8, %v8662_v49  ;;  %v2280_v25 = vpop.f32.mrb[31].mxu1  ;;  %v2391_v39 = vmax.f32 %v2275_v5, 0.0 }
 0x31c   : > { %v2281_v11 = vadd.f32 %v2280_v25, %v8666_v50  ;;  %v2392_v26 = vmax.f32 %v2277_v58, 0.0 }
 0x31d   : > { %v2393_v61 = vmax.f32 %v2279_v10, 0.0 }
 0x31e   : > { %v2394_v27 = vmax.f32 %v2281_v11, 0.0 }
 0x31f   : > { %v2441_v1 = vpack.c.bf16 %v2393_v61, %v2391_v39 }
 0x320   : > { %v2442_v13 = vpack.c.bf16 %v2394_v27, %v2392_v26  ;;  %v6649_v27 = vld [vmem:[%s10607_s4 + $0x4] sm:$0x3] }
 0x322   : > { %2767 = vmatprep.mubr.bf16.mxu0 %v2442_v13 }
 0x323   : > { %2768 = vmatmul.mubr.bf16.gmra.mrb[92].mxu0 %v2441_v1 }
 0x32b   : > { %v2284_v18 = vpop.f32.mrb[32].mxu1 }
 0x32c   : > { %v2285_v15 = vadd.f32 %v2284_v18, %v8662_v49  ;;  %v2286_v7 = vpop.f32.mrb[33].mxu1 }
 0x32d   : > { %v2287_v52 = vadd.f32 %v2286_v7, %v8666_v50  ;;  %v2288_v53 = vpop.f32.mrb[34].mxu1 }
 0x32e   : > { %v2289_v28 = vadd.f32 %v2288_v53, %v8662_v49  ;;  %v2290_v30 = vpop.f32.mrb[35].mxu1  ;;  %v2395_v29 = vmax.f32 %v2285_v15, 0.0 }
 0x32f   : > { %v2291_v23 = vadd.f32 %v2290_v30, %v8666_v50  ;;  %v2396_v31 = vmax.f32 %v2287_v52, 0.0  ;;  %v8831_v52 = vrot.slane %v6649_v27, %v8003_v9  ;;  %v8835_v30 = vrot.slane %v6649_v27, %v7997_v6 }
 0x330   : > { %v2397_v17 = vmax.f32 %v2289_v28, 0.0 }
 0x331   : > { %v2398_v32 = vmax.f32 %v2291_v23, 0.0 }
 0x332   : > { %v2443_v33 = vpack.c.bf16 %v2397_v17, %v2395_v29 }
 0x333   : > { %v2444_v45 = vpack.c.bf16 %v2398_v32, %v2396_v31 }
 0x335   : > { %2777 = vmatprep.mubr.bf16.mxu0 %v2444_v45 }
 0x336   : > { %2778 = vmatmul.mubr.bf16.gmra.mrb[96].mxu0 %v2443_v33 }
 0x33e   : > { %v2294_v4 = vpop.f32.mrb[36].mxu1 }
 0x33f   : > { %v2295_v20 = vadd.f32 %v2294_v4, %v8662_v49  ;;  %v2296_v63 = vpop.f32.mrb[37].mxu1 }
 0x340   : > { %v2297_v0 = vadd.f32 %v2296_v63, %v8666_v50  ;;  %v2298_v38 = vpop.f32.mrb[38].mxu1 }
 0x341   : > { %v2299_v24 = vadd.f32 %v2298_v38, %v8662_v49  ;;  %v2300_v19 = vpop.f32.mrb[39].mxu1  ;;  %v2399_v43 = vmax.f32 %v2295_v20, 0.0 }
 0x342   : > { %v2301_v40 = vadd.f32 %v2300_v19, %v8666_v50  ;;  %v2400_v62 = vmax.f32 %v2297_v0, 0.0 }
 0x343   : > { %v2401_v36 = vmax.f32 %v2299_v24, 0.0 }
 0x344   : > { %v2402_v37 = vmax.f32 %v2301_v40, 0.0 }
 0x345   : > { %v2445_v54 = vpack.c.bf16 %v2401_v36, %v2399_v43 }
 0x346   : > { %v2446_v14 = vpack.c.bf16 %v2402_v37, %v2400_v62 }
 0x348   : > { %2787 = vmatprep.mubr.bf16.mxu0 %v2446_v14 }
 0x349   : > { %2788 = vmatmul.mubr.bf16.gmra.mrb[100].mxu0 %v2445_v54 }
 0x351   : > { %v2304_v3 = vpop.f32.mrb[40].mxu1 }
 0x352   : > { %v2305_v55 = vadd.f32 %v2304_v3, %v8662_v49  ;;  %v2306_v41 = vpop.f32.mrb[41].mxu1 }
 0x353   : > { %v2307_v44 = vadd.f32 %v2306_v41, %v8666_v50  ;;  %v2308_v46 = vpop.f32.mrb[42].mxu1 }
 0x354   : > { %v2309_v42 = vadd.f32 %v2308_v46, %v8662_v49  ;;  %v2310_v56 = vpop.f32.mrb[43].mxu1  ;;  %v2403_v48 = vmax.f32 %v2305_v55, 0.0 }
 0x355   : > { %v2311_v47 = vadd.f32 %v2310_v56, %v8666_v50  ;;  %v2404_v57 = vmax.f32 %v2307_v44, 0.0 }
 0x356   : > { %v2405_v60 = vmax.f32 %v2309_v42, 0.0 }
 0x357   : > { %v2406_v21 = vmax.f32 %v2311_v47, 0.0 }
 0x358   : > { %v2447_v34 = vpack.c.bf16 %v2405_v60, %v2403_v48 }
 0x359   : > { %v2448_v12 = vpack.c.bf16 %v2406_v21, %v2404_v57 }
 0x35b   : > { %2797 = vmatprep.mubr.bf16.mxu0 %v2448_v12 }
 0x35c   : > { %2798 = vmatmul.mubr.bf16.gmra.mrb[104].mxu0 %v2447_v34 }
 0x364   : > { %v2314_v51 = vpop.f32.mrb[44].mxu1 }
 0x365   : > { %v2315_v2 = vadd.f32 %v2314_v51, %v8662_v49  ;;  %v2316_v22 = vpop.f32.mrb[45].mxu1 }
 0x366   : > { %v2317_v35 = vadd.f32 %v2316_v22, %v8666_v50  ;;  %v2318_v5 = vpop.f32.mrb[46].mxu1 }
 0x367   : > { %v2319_v59 = vadd.f32 %v2318_v5, %v8662_v49  ;;  %v2320_v58 = vpop.f32.mrb[47].mxu1  ;;  %v2407_v10 = vmax.f32 %v2315_v2, 0.0 }
 0x368   : > { %v2321_v8 = vadd.f32 %v2320_v58, %v8666_v50  ;;  %v2408_v11 = vmax.f32 %v2317_v35, 0.0 }
 0x369   : > { %v2409_v25 = vmax.f32 %v2319_v59, 0.0 }
 0x36a   : > { %v2410_v39 = vmax.f32 %v2321_v8, 0.0 }
 0x36b   : > { %v2449_v61 = vpack.c.bf16 %v2409_v25, %v2407_v10 }
 0x36c   : > { %v2450_v26 = vpack.c.bf16 %v2410_v39, %v2408_v11 }
 0x36e   : > { %2807 = vmatprep.mubr.bf16.mxu0 %v2450_v26 }
 0x36f   : > { %2808 = vmatmul.mubr.bf16.gmra.mrb[108].mxu0 %v2449_v61 }
 0x377   : > { %v2324_v1 = vpop.f32.mrb[48].mxu1 }
 0x378   : > { %v2325_v13 = vadd.f32 %v2324_v1, %v8662_v49  ;;  %v2326_v18 = vpop.f32.mrb[49].mxu1 }
 0x379   : > { %v2327_v15 = vadd.f32 %v2326_v18, %v8666_v50  ;;  %v2328_v7 = vpop.f32.mrb[50].mxu1 }
 0x37a   : > { %v2329_v53 = vadd.f32 %v2328_v7, %v8662_v49  ;;  %v2330_v28 = vpop.f32.mrb[51].mxu1  ;;  %v2411_v29 = vmax.f32 %v2325_v13, 0.0 }
 0x37b   : > { %v2331_v23 = vadd.f32 %v2330_v28, %v8666_v50  ;;  %v2699_v31 = vpop.f32.mrb[64].mxu0  ;;  %v2412_v32 = vmax.f32 %v2327_v15, 0.0 }
 0x37c   : > { %v2413_v17 = vmax.f32 %v2329_v53, 0.0  ;;  %v2700_v45 = vadd.f32 %v2699_v31, %v8831_v52  ;;  %v2701_v4 = vpop.f32.mrb[65].mxu0 }
 0x37d   : > { %v2414_v33 = vmax.f32 %v2331_v23, 0.0  ;;  %v2702_v63 = vadd.f32 %v2701_v4, %v8835_v30  ;;  %v2703_v0 = vpop.f32.mrb[66].mxu0 }
 0x37e   : > { %v2451_v20 = vpack.c.bf16 %v2413_v17, %v2411_v29  ;;  %v2704_v24 = vadd.f32 %v2703_v0, %v8831_v52  ;;  %v2705_v19 = vpop.f32.mrb[67].mxu0  ;;  %v2858_v43 = vmax.f32 %v2700_v45, 0.0 }
 0x37f   : > { %v2452_v38 = vpack.c.bf16 %v2414_v33, %v2412_v32  ;;  %v2706_v40 = vadd.f32 %v2705_v19, %v8835_v30  ;;  %v2859_v62 = vmax.f32 %v2702_v63, 0.0 }
 0x380   : > { %v2860_v36 = vmax.f32 %v2704_v24, 0.0 }
 0x381   : > { %2817 = vmatprep.mubr.bf16.mxu0 %v2452_v38  ;;  %v2861_v37 = vmax.f32 %v2706_v40, 0.0 }
 0x382   : > { %2818 = vmatmul.mubr.bf16.gmra.mrb[112].mxu0 %v2451_v20  ;;  %v2922_v54 = vpack.c.bf16 %v2860_v36, %v2858_v43 }
 0x383   : > { %v2923_v14 = vpack.c.bf16 %v2861_v37, %v2859_v62 }
 0x384   : > { %v2709_v3 = vpop.f32.mrb[68].mxu0 }
 0x385   : > { %v2710_v55 = vadd.f32 %v2709_v3, %v8831_v52  ;;  %v2711_v41 = vpop.f32.mrb[69].mxu0  ;;  %3192 = vmatprep.mubr.bf16.mxu1 %v2923_v14  ;;  %v7334_v14 = vld [vmem:[%s10606_s3 + $0x404] ss:$8 sps:$4 sm:$0xff]  }
 0x386   : > { %v2712_v44 = vadd.f32 %v2711_v41, %v8835_v30  ;;  %v2713_v46 = vpop.f32.mrb[70].mxu0  ;;  %3193 = vmatmul.mubr.bf16.vlgmr.msra.gmra.mrb[64].mxu1 %v2922_v54  ;;  %v7332_v54 = vld [vmem:[%s10606_s3 + $0x400] ss:$8 sps:$4 sm:$0xff]   ;;  %3655 = vmatprep.subr.bf16.mxu0 %v7334_v14  ;;  %v7337_v41 = vld [vmem:[%s10606_s3 + $0x414] ss:$8 sps:$4 sm:$0xff]  }
 0x387   : > { %v2714_v42 = vadd.f32 %v2713_v46, %v8831_v52  ;;  %v2715_v56 = vpop.f32.mrb[71].mxu0  ;;  %v2862_v48 = vmax.f32 %v2710_v55, 0.0  ;;  %3656 = vmatpush1.bf16.msra.mxu0 %v7332_v54  ;;  %v7335_v55 = vld [vmem:[%s10606_s3 + $0x410] ss:$8 sps:$4 sm:$0xff]   ;;  %v7356_v14 = vld [vmem:[%s10606_s3 + $0x480] ss:$8 sps:$4 sm:$0xff]  }
 0x388   : > { %v2716_v47 = vadd.f32 %v2715_v56, %v8835_v30  ;;  %v2863_v57 = vmax.f32 %v2712_v44, 0.0  ;;  %v7340_v44 = vld [vmem:[%s10606_s3 + $0x424] ss:$8 sps:$4 sm:$0xff]   ;;  %3657 = vmatprep.subr.bf16.mxu0 %v7337_v41  ;;  %v7362_v41 = vld [vmem:[%s10606_s3 + $0x4a0] ss:$8 sps:$4 sm:$0xff]  }
 0x389   : > { %v2864_v60 = vmax.f32 %v2714_v42, 0.0 }
 0x38a   : > { %v2865_v21 = vmax.f32 %v2716_v47, 0.0  ;;  %v2334_v34 = vpop.f32.mrb[52].mxu1  ;;  %v7338_v47 = vld [vmem:[%s10606_s3 + $0x420] ss:$8 sps:$4 sm:$0xff]  }
 0x38b   : > { %v2924_v12 = vpack.c.bf16 %v2864_v60, %v2862_v48  ;;  %v2335_v51 = vadd.f32 %v2334_v34, %v8662_v49  ;;  %v2336_v2 = vpop.f32.mrb[53].mxu1  ;;  %3658 = vmatpush1.bf16.msra.mxu0 %v7335_v55  ;;  %v7359_v55 = vld [vmem:[%s10606_s3 + $0x490] ss:$8 sps:$4 sm:$0xff]  }
 0x38c   : > { %v2925_v22 = vpack.c.bf16 %v2865_v21, %v2863_v57  ;;  %v2337_v35 = vadd.f32 %v2336_v2, %v8666_v50  ;;  %v2338_v5 = vpop.f32.mrb[54].mxu1  ;;  %3659 = vmatprep.subr.bf16.mxu0 %v7340_v44  ;;  %v7364_v44 = vld [vmem:[%s10606_s3 + $0x4a4] ss:$8 sps:$4 sm:$0xff]  }
 0x38d   : > { %v2339_v59 = vadd.f32 %v2338_v5, %v8662_v49  ;;  %v2340_v58 = vpop.f32.mrb[55].mxu1  ;;  %v2415_v10 = vmax.f32 %v2335_v51, 0.0  ;;  %v7343_v5 = vld [vmem:[%s10606_s3 + $0x434] ss:$8 sps:$4 sm:$0xff]  }
 0x38e   : > { %v2341_v8 = vadd.f32 %v2340_v58, %v8666_v50  ;;  %3202 = vmatprep.mubr.bf16.mxu1 %v2925_v22  ;;  %v2416_v11 = vmax.f32 %v2337_v35, 0.0 }
 0x38f   : > { %v2417_v25 = vmax.f32 %v2339_v59, 0.0  ;;  %3203 = vmatmul.mubr.bf16.gmra.mrb[68].mxu1 %v2924_v12  ;;  %3660 = vmatpush1.bf16.msra.mxu0 %v7338_v47 }
 0x390   : > { %v2418_v39 = vmax.f32 %v2341_v8, 0.0  ;;  %3661 = vmatprep.subr.bf16.mxu0 %v7343_v5 }
 0x391   : > { %v2453_v61 = vpack.c.bf16 %v2417_v25, %v2415_v10  ;;  %v7341_v10 = vld [vmem:[%s10606_s3 + $0x430] ss:$8 sps:$4 sm:$0xff]  }
 0x392   : > { %v2454_v26 = vpack.c.bf16 %v2418_v39, %v2416_v11 }
 0x393   : > { %3662 = vmatpush1.bf16.msra.mxu0 %v7341_v10  ;;  %v7373_v10 = vld [vmem:[%s10606_s3 + $0x4d4] ss:$8 sps:$4 sm:$0xff]  }
 0x394   : > { %2827 = vmatprep.mubr.bf16.mxu0 %v2454_v26 }
 0x395   : > { %2828 = vmatmul.mubr.bf16.gmra.mrb[116].mxu0 %v2453_v61 }
 0x397   : > { %v2719_v27 = vpop.f32.mrb[72].mxu0 }
 0x398   : > { %v2720_v1 = vadd.f32 %v2719_v27, %v8831_v52  ;;  %v2721_v13 = vpop.f32.mrb[73].mxu0 }
 0x399   : > { %v2722_v18 = vadd.f32 %v2721_v13, %v8835_v30  ;;  %v2723_v15 = vpop.f32.mrb[74].mxu0 }
 0x39a   : > { %v2724_v7 = vadd.f32 %v2723_v15, %v8831_v52  ;;  %v2725_v53 = vpop.f32.mrb[75].mxu0  ;;  %v2866_v23 = vmax.f32 %v2720_v1, 0.0  ;;  %v7346_v1 = vld [vmem:[%s10606_s3 + $0x444] ss:$8 sps:$4 sm:$0xff]   ;;  %v7344_v15 = vld [vmem:[%s10606_s3 + $0x440] ss:$8 sps:$4 sm:$0xff]  }
 0x39b   : > { %v2726_v28 = vadd.f32 %v2725_v53, %v8835_v30  ;;  %v2867_v17 = vmax.f32 %v2722_v18, 0.0  ;;  %3663 = vmatprep.subr.bf16.mxu0 %v7346_v1 }
 0x39c   : > { %v2868_v29 = vmax.f32 %v2724_v7, 0.0  ;;  %3664 = vmatpush1.bf16.msra.mxu0 %v7344_v15 }
 0x39d   : > { %v2869_v31 = vmax.f32 %v2726_v28, 0.0  ;;  %v2344_v32 = vpop.f32.mrb[56].mxu1 }
 0x39e   : > { %v2926_v33 = vpack.c.bf16 %v2868_v29, %v2866_v23  ;;  %v2345_v45 = vadd.f32 %v2344_v32, %v8662_v49  ;;  %v2346_v4 = vpop.f32.mrb[57].mxu1  ;;  %v7347_v23 = vld [vmem:[%s10606_s3 + $0x450] ss:$8 sps:$4 sm:$0xff]   ;;  %v7352_v29 = vld [vmem:[%s10606_s3 + $0x464] ss:$8 sps:$4 sm:$0xff]  }
 0x39f   : > { %v2927_v20 = vpack.c.bf16 %v2869_v31, %v2867_v17  ;;  %v2347_v63 = vadd.f32 %v2346_v4, %v8666_v50  ;;  %v2348_v0 = vpop.f32.mrb[58].mxu1  ;;  %v7350_v17 = vld [vmem:[%s10606_s3 + $0x460] ss:$8 sps:$4 sm:$0xff]   ;;  %v7355_v32 = vld [vmem:[%s10606_s3 + $0x474] ss:$8 sps:$4 sm:$0xff]  }
 0x3a0   : > { %v2349_v38 = vadd.f32 %v2348_v0, %v8662_v49  ;;  %v2350_v24 = vpop.f32.mrb[59].mxu1  ;;  %v2419_v40 = vmax.f32 %v2345_v45, 0.0 }
 0x3a1   : > { %v2351_v19 = vadd.f32 %v2350_v24, %v8666_v50  ;;  %3212 = vmatprep.mubr.bf16.mxu1 %v2927_v20  ;;  %v2420_v36 = vmax.f32 %v2347_v63, 0.0 }
 0x3a2   : > { %v2421_v43 = vmax.f32 %v2349_v38, 0.0  ;;  %3213 = vmatmul.mubr.bf16.gmra.mrb[72].mxu1 %v2926_v33  ;;  %v7353_v38 = vld [vmem:[%s10606_s3 + $0x470] ss:$8 sps:$4 sm:$0xff]  }
 0x3a3   : > { %v2422_v62 = vmax.f32 %v2351_v19, 0.0 }
 0x3a4   : > { %v2455_v37 = vpack.c.bf16 %v2421_v43, %v2419_v40 }
 0x3a5   : > { %v2456_v3 = vpack.c.bf16 %v2422_v62, %v2420_v36 }
 0x3a7   : > { %2837 = vmatprep.mubr.bf16.mxu0 %v2456_v3  ;;  %v7361_v3 = vld [vmem:[%s10606_s3 + $0x494] ss:$8 sps:$4 sm:$0xff]  }
 0x3a8   : > { %2838 = vmatmul.mubr.bf16.gmra.mrb[120].mxu0 %v2455_v37  ;;  %v7358_v37 = vld [vmem:[%s10606_s3 + $0x484] ss:$8 sps:$4 sm:$0xff]  }
 0x3aa   : > { %v2729_v46 = vpop.f32.mrb[76].mxu0 }
 0x3ab   : > { %v2730_v42 = vadd.f32 %v2729_v46, %v8831_v52  ;;  %v2731_v56 = vpop.f32.mrb[77].mxu0  ;;  %v7367_v46 = vld [vmem:[%s10606_s3 + $0x4b4] ss:$8 sps:$4 sm:$0xff]  }
 0x3ac   : > { %v2732_v48 = vadd.f32 %v2731_v56, %v8835_v30  ;;  %v2733_v60 = vpop.f32.mrb[78].mxu0  ;;  %v7365_v56 = vld [vmem:[%s10606_s3 + $0x4b0] ss:$8 sps:$4 sm:$0xff]  }
 0x3ad   : > { %v2734_v57 = vadd.f32 %v2733_v60, %v8831_v52  ;;  %v2735_v21 = vpop.f32.mrb[79].mxu0  ;;  %v2870_v12 = vmax.f32 %v2730_v42, 0.0  ;;  %v7370_v60 = vld [vmem:[%s10606_s3 + $0x4c4] ss:$8 sps:$4 sm:$0xff]  }
 0x3ae   : > { %v2736_v34 = vadd.f32 %v2735_v21, %v8835_v30  ;;  %v2871_v2 = vmax.f32 %v2732_v48, 0.0 }
 0x3af   : > { %v2872_v51 = vmax.f32 %v2734_v57, 0.0 }
 0x3b0   : > { %v2873_v22 = vmax.f32 %v2736_v34, 0.0  ;;  %v2354_v35 = vpop.f32.mrb[60].mxu1 }
 0x3b1   : > { %v2928_v59 = vpack.c.bf16 %v2872_v51, %v2870_v12  ;;  %v2355_v58 = vadd.f32 %v2354_v35, %v8662_v49  ;;  %v2356_v8 = vpop.f32.mrb[61].mxu1 }
 0x3b2   : > { %v2929_v25 = vpack.c.bf16 %v2873_v22, %v2871_v2  ;;  %v2357_v11 = vadd.f32 %v2356_v8, %v8666_v50  ;;  %v2358_v39 = vpop.f32.mrb[62].mxu1  ;;  %v7368_v2 = vld [vmem:[%s10606_s3 + $0x4c0] ss:$8 sps:$4 sm:$0xff]  }
 0x3b3   : > { %v2359_v61 = vadd.f32 %v2358_v39, %v8662_v49  ;;  %v2360_v26 = vpop.f32.mrb[63].mxu1  ;;  %v2423_v13 = vmax.f32 %v2355_v58, 0.0  ;;  %v7374_v39 = vld [vmem:[%s10606_s3 + $0x4e0] ss:$8 sps:$4 sm:$0xff]  }
 0x3b4   : > { %v2361_v27 = vadd.f32 %v2360_v26, %v8666_v50  ;;  %3222 = vmatprep.mubr.bf16.mxu1 %v2929_v25  ;;  %v2424_v7 = vmax.f32 %v2357_v11, 0.0  ;;  %v7349_v50 = vld [vmem:[%s10606_s3 + $0x454] ss:$8 sps:$4 sm:$0xff]   ;;  %v7371_v25 = vld [vmem:[%s10606_s3 + $0x4d0] ss:$8 sps:$4 sm:$0xff]  }
 0x3b5   : > { %v2425_v18 = vmax.f32 %v2359_v61, 0.0  ;;  %3223 = vmatmul.mubr.bf16.gmra.mrb[76].mxu1 %v2928_v59  ;;  %3665 = vmatprep.subr.bf16.mxu0 %v7349_v50  ;;  %v7376_v11 = vld [vmem:[%s10606_s3 + $0x4e4] ss:$8 sps:$4 sm:$0xff]   ;;  %v7379_v61 = vld [vmem:[%s10606_s3 + $0x4f4] ss:$8 sps:$4 sm:$0xff]  }
 0x3b6   : > { %v2426_v53 = vmax.f32 %v2361_v27, 0.0  ;;  %3666 = vmatpush1.bf16.msra.mxu0 %v7347_v23  ;;  %v7377_v26 = vld [vmem:[%s10606_s3 + $0x4f0] ss:$8 sps:$4 sm:$0xff]  }
 0x3b7   : > { %v2457_v49 = vpack.c.bf16 %v2425_v18, %v2423_v13  ;;  %3667 = vmatprep.subr.bf16.mxu0 %v7352_v29 }
 0x3b8   : > { %v2458_v28 = vpack.c.bf16 %v2426_v53, %v2424_v7 }
 0x3ba   : > { %2847 = vmatprep.mubr.bf16.mxu0 %v2458_v28  ;;  %3668 = vmatpush1.bf16.msra.mxu0 %v7350_v17 }
 0x3bb   : > { %2848 = vmatmul.mubr.bf16.gmra.mrb[124].mxu0 %v2457_v49  ;;  %3669 = vmatprep.subr.bf16.mxu0 %v7355_v32 }
 0x3bd   : > { %v2739_v31 = vpop.f32.mrb[80].mxu0 }
 0x3be   : > { %v2740_v33 = vadd.f32 %v2739_v31, %v8831_v52  ;;  %v2741_v45 = vpop.f32.mrb[81].mxu0  ;;  %3670 = vmatpush1.bf16.msra.mxu0 %v7353_v38 }
 0x3bf   : > { %v2742_v4 = vadd.f32 %v2741_v45, %v8835_v30  ;;  %v2743_v20 = vpop.f32.mrb[82].mxu0  ;;  %3671 = vmatprep.subr.bf16.mxu0 %v7358_v37 }
 0x3c0   : > { %v2744_v63 = vadd.f32 %v2743_v20, %v8831_v52  ;;  %v2745_v0 = vpop.f32.mrb[83].mxu0  ;;  %v2874_v19 = vmax.f32 %v2740_v33, 0.0 }
 0x3c1   : > { %v2746_v24 = vadd.f32 %v2745_v0, %v8835_v30  ;;  %v2875_v43 = vmax.f32 %v2742_v4, 0.0 }
 0x3c2   : > { %v2876_v40 = vmax.f32 %v2744_v63, 0.0  ;;  %3672 = vmatpush1.bf16.msra.mxu0 %v7356_v14 }
 0x3c3   : > { %v2877_v36 = vmax.f32 %v2746_v24, 0.0  ;;  %3673 = vmatprep.subr.bf16.mxu0 %v7361_v3 }
 0x3c4   : > { %v2930_v62 = vpack.c.bf16 %v2876_v40, %v2874_v19 }
 0x3c5   : > { %v2931_v54 = vpack.c.bf16 %v2877_v36, %v2875_v43 }
 0x3c6   : > { %3674 = vmatpush1.bf16.msra.mxu0 %v7359_v55 }
 0x3c7   : > { %3232 = vmatprep.mubr.bf16.mxu1 %v2931_v54  ;;  %3675 = vmatprep.subr.bf16.mxu0 %v7364_v44 }
 0x3c8   : > { %3233 = vmatmul.mubr.bf16.gmra.mrb[80].mxu1 %v2930_v62 }
 0x3ca   : > { %3676 = vmatpush1.bf16.msra.mxu0 %v7362_v41 }
 0x3cb   : > { %3677 = vmatprep.subr.bf16.mxu0 %v7367_v46 }
 0x3ce   : > { %3678 = vmatpush1.bf16.msra.mxu0 %v7365_v56 }
 0x3cf   : > { %3679 = vmatprep.subr.bf16.mxu0 %v7370_v60 }
 0x3d0   : > { %v2749_v42 = vpop.f32.mrb[84].mxu0 }
 0x3d1   : > { %v2750_v47 = vadd.f32 %v2749_v42, %v8831_v52  ;;  %v2751_v48 = vpop.f32.mrb[85].mxu0 }
 0x3d2   : > { %v2752_v57 = vadd.f32 %v2751_v48, %v8835_v30  ;;  %v2753_v21 = vpop.f32.mrb[86].mxu0  ;;  %3680 = vmatpush1.bf16.msra.mxu0 %v7368_v2 }
 0x3d3   : > { %v2754_v34 = vadd.f32 %v2753_v21, %v8831_v52  ;;  %v2755_v12 = vpop.f32.mrb[87].mxu0  ;;  %v2878_v22 = vmax.f32 %v2750_v47, 0.0  ;;  %3681 = vmatprep.subr.bf16.mxu0 %v7373_v10 }
 0x3d4   : > { %v2756_v51 = vadd.f32 %v2755_v12, %v8835_v30  ;;  %v2879_v5 = vmax.f32 %v2752_v57, 0.0 }
 0x3d5   : > { %v2880_v35 = vmax.f32 %v2754_v34, 0.0 }
 0x3d6   : > { %v2881_v59 = vmax.f32 %v2756_v51, 0.0  ;;  %3682 = vmatpush1.bf16.msra.mxu0 %v7371_v25 }
 0x3d7   : > { %v2932_v58 = vpack.c.bf16 %v2880_v35, %v2878_v22  ;;  %3683 = vmatprep.subr.bf16.mxu0 %v7376_v11 }
 0x3d8   : > { %v2933_v8 = vpack.c.bf16 %v2881_v59, %v2879_v5 }
 0x3da   : > { %3242 = vmatprep.mubr.bf16.mxu1 %v2933_v8  ;;  %3684 = vmatpush1.bf16.msra.mxu0 %v7374_v39 }
 0x3db   : > { %3243 = vmatmul.mubr.bf16.gmra.mrb[84].mxu1 %v2932_v58  ;;  %3685 = vmatprep.subr.bf16.mxu0 %v7379_v61 }
 0x3de   : > { %3686 = vmatpush1.bf16.msra.mxu0 %v7377_v26 }
 0x3e3   : > { %v2759_v27 = vpop.f32.mrb[88].mxu0 }
 0x3e4   : > { %v2760_v1 = vadd.f32 %v2759_v27, %v8831_v52  ;;  %v2761_v13 = vpop.f32.mrb[89].mxu0 }
 0x3e5   : > { %v2762_v18 = vadd.f32 %v2761_v13, %v8835_v30  ;;  %v2763_v15 = vpop.f32.mrb[90].mxu0 }
 0x3e6   : > { %v2764_v7 = vadd.f32 %v2763_v15, %v8831_v52  ;;  %v2765_v53 = vpop.f32.mrb[91].mxu0  ;;  %v2882_v50 = vmax.f32 %v2760_v1, 0.0 }
 0x3e7   : > { %v2766_v49 = vadd.f32 %v2765_v53, %v8835_v30  ;;  %v2883_v23 = vmax.f32 %v2762_v18, 0.0 }
 0x3e8   : > { %v2884_v28 = vmax.f32 %v2764_v7, 0.0 }
 0x3e9   : > { %v2885_v29 = vmax.f32 %v2766_v49, 0.0 }
 0x3ea   : > { %v2934_v17 = vpack.c.bf16 %v2884_v28, %v2882_v50 }
 0x3eb   : > { %v2935_v31 = vpack.c.bf16 %v2885_v29, %v2883_v23 }
 0x3ed   : > { %3252 = vmatprep.mubr.bf16.mxu1 %v2935_v31 }
 0x3ee   : > { %3253 = vmatmul.mubr.bf16.gmra.mrb[88].mxu1 %v2934_v17 }
 0x3f6   : > { %v2769_v32 = vpop.f32.mrb[92].mxu0 }
 0x3f7   : > { %v2770_v33 = vadd.f32 %v2769_v32, %v8831_v52  ;;  %v2771_v45 = vpop.f32.mrb[93].mxu0 }
 0x3f8   : > { %v2772_v4 = vadd.f32 %v2771_v45, %v8835_v30  ;;  %v2773_v20 = vpop.f32.mrb[94].mxu0 }
 0x3f9   : > { %v2774_v63 = vadd.f32 %v2773_v20, %v8831_v52  ;;  %v2775_v0 = vpop.f32.mrb[95].mxu0  ;;  %v2886_v24 = vmax.f32 %v2770_v33, 0.0 }
 0x3fa   : > { %v2776_v38 = vadd.f32 %v2775_v0, %v8835_v30  ;;  %v2887_v40 = vmax.f32 %v2772_v4, 0.0 }
 0x3fb   : > { %v2888_v19 = vmax.f32 %v2774_v63, 0.0 }
 0x3fc   : > { %v2889_v43 = vmax.f32 %v2776_v38, 0.0 }
 0x3fd   : > { %v2936_v36 = vpack.c.bf16 %v2888_v19, %v2886_v24 }
 0x3fe   : > { %v2937_v62 = vpack.c.bf16 %v2889_v43, %v2887_v40  ;;  %v6714_v43 = vld [vmem:[%s10607_s4 + $0x6] sm:$0x3] }
 0x400   : > { %3262 = vmatprep.mubr.bf16.mxu1 %v2937_v62 }
 0x401   : > { %3263 = vmatmul.mubr.bf16.gmra.mrb[92].mxu1 %v2936_v36 }
 0x409   : > { %v2779_v37 = vpop.f32.mrb[96].mxu0 }
 0x40a   : > { %v2780_v54 = vadd.f32 %v2779_v37, %v8831_v52  ;;  %v2781_v14 = vpop.f32.mrb[97].mxu0 }
 0x40b   : > { %v2782_v3 = vadd.f32 %v2781_v14, %v8835_v30  ;;  %v2783_v55 = vpop.f32.mrb[98].mxu0 }
 0x40c   : > { %v2784_v41 = vadd.f32 %v2783_v55, %v8831_v52  ;;  %v2785_v44 = vpop.f32.mrb[99].mxu0  ;;  %v2890_v42 = vmax.f32 %v2780_v54, 0.0 }
 0x40d   : > { %v2786_v46 = vadd.f32 %v2785_v44, %v8835_v30  ;;  %v2891_v47 = vmax.f32 %v2782_v3, 0.0  ;;  %v9000_v3 = vrot.slane %v6714_v43, %v8003_v9  ;;  %v9004_v44 = vrot.slane %v6714_v43, %v7997_v6 }
 0x40e   : > { %v2892_v56 = vmax.f32 %v2784_v41, 0.0 }
 0x40f   : > { %v2893_v48 = vmax.f32 %v2786_v46, 0.0 }
 0x410   : > { %v2938_v60 = vpack.c.bf16 %v2892_v56, %v2890_v42 }
 0x411   : > { %v2939_v57 = vpack.c.bf16 %v2893_v48, %v2891_v47 }
 0x413   : > { %3272 = vmatprep.mubr.bf16.mxu1 %v2939_v57 }
 0x414   : > { %3273 = vmatmul.mubr.bf16.gmra.mrb[96].mxu1 %v2938_v60 }
 0x41c   : > { %v2789_v21 = vpop.f32.mrb[100].mxu0 }
 0x41d   : > { %v2790_v34 = vadd.f32 %v2789_v21, %v8831_v52  ;;  %v2791_v12 = vpop.f32.mrb[101].mxu0 }
 0x41e   : > { %v2792_v51 = vadd.f32 %v2791_v12, %v8835_v30  ;;  %v2793_v2 = vpop.f32.mrb[102].mxu0 }
 0x41f   : > { %v2794_v22 = vadd.f32 %v2793_v2, %v8831_v52  ;;  %v2795_v35 = vpop.f32.mrb[103].mxu0  ;;  %v2894_v59 = vmax.f32 %v2790_v34, 0.0 }
 0x420   : > { %v2796_v5 = vadd.f32 %v2795_v35, %v8835_v30  ;;  %v2895_v8 = vmax.f32 %v2792_v51, 0.0 }
 0x421   : > { %v2896_v58 = vmax.f32 %v2794_v22, 0.0 }
 0x422   : > { %v2897_v10 = vmax.f32 %v2796_v5, 0.0 }
 0x423   : > { %v2940_v25 = vpack.c.bf16 %v2896_v58, %v2894_v59 }
 0x424   : > { %v2941_v11 = vpack.c.bf16 %v2897_v10, %v2895_v8 }
 0x426   : > { %3282 = vmatprep.mubr.bf16.mxu1 %v2941_v11 }
 0x427   : > { %3283 = vmatmul.mubr.bf16.gmra.mrb[100].mxu1 %v2940_v25 }
 0x42f   : > { %v2799_v39 = vpop.f32.mrb[104].mxu0 }
 0x430   : > { %v2800_v61 = vadd.f32 %v2799_v39, %v8831_v52  ;;  %v2801_v26 = vpop.f32.mrb[105].mxu0 }
 0x431   : > { %v2802_v27 = vadd.f32 %v2801_v26, %v8835_v30  ;;  %v2803_v1 = vpop.f32.mrb[106].mxu0 }
 0x432   : > { %v2804_v13 = vadd.f32 %v2803_v1, %v8831_v52  ;;  %v2805_v18 = vpop.f32.mrb[107].mxu0  ;;  %v2898_v7 = vmax.f32 %v2800_v61, 0.0 }
 0x433   : > { %v2806_v15 = vadd.f32 %v2805_v18, %v8835_v30  ;;  %v2899_v49 = vmax.f32 %v2802_v27, 0.0 }
 0x434   : > { %v2900_v53 = vmax.f32 %v2804_v13, 0.0 }
 0x435   : > { %v2901_v50 = vmax.f32 %v2806_v15, 0.0 }
 0x436   : > { %v2942_v28 = vpack.c.bf16 %v2900_v53, %v2898_v7 }
 0x437   : > { %v2943_v23 = vpack.c.bf16 %v2901_v50, %v2899_v49 }
 0x439   : > { %3292 = vmatprep.mubr.bf16.mxu1 %v2943_v23 }
 0x43a   : > { %3293 = vmatmul.mubr.bf16.gmra.mrb[104].mxu1 %v2942_v28 }
 0x442   : > { %v2809_v29 = vpop.f32.mrb[108].mxu0 }
 0x443   : > { %v2810_v17 = vadd.f32 %v2809_v29, %v8831_v52  ;;  %v2811_v31 = vpop.f32.mrb[109].mxu0 }
 0x444   : > { %v2812_v32 = vadd.f32 %v2811_v31, %v8835_v30  ;;  %v2813_v33 = vpop.f32.mrb[110].mxu0 }
 0x445   : > { %v2814_v45 = vadd.f32 %v2813_v33, %v8831_v52  ;;  %v2815_v4 = vpop.f32.mrb[111].mxu0  ;;  %v2902_v63 = vmax.f32 %v2810_v17, 0.0 }
 0x446   : > { %v2816_v20 = vadd.f32 %v2815_v4, %v8835_v30  ;;  %v2903_v38 = vmax.f32 %v2812_v32, 0.0 }
 0x447   : > { %v2904_v0 = vmax.f32 %v2814_v45, 0.0 }
 0x448   : > { %v2905_v24 = vmax.f32 %v2816_v20, 0.0 }
 0x449   : > { %v2944_v19 = vpack.c.bf16 %v2904_v0, %v2902_v63 }
 0x44a   : > { %v2945_v40 = vpack.c.bf16 %v2905_v24, %v2903_v38 }
 0x44c   : > { %3302 = vmatprep.mubr.bf16.mxu1 %v2945_v40 }
 0x44d   : > { %3303 = vmatmul.mubr.bf16.gmra.mrb[108].mxu1 %v2944_v19 }
 0x455   : > { %v2819_v36 = vpop.f32.mrb[112].mxu0 }
 0x456   : > { %v2820_v62 = vadd.f32 %v2819_v36, %v8831_v52  ;;  %v2821_v37 = vpop.f32.mrb[113].mxu0 }
 0x457   : > { %v2822_v54 = vadd.f32 %v2821_v37, %v8835_v30  ;;  %v2823_v14 = vpop.f32.mrb[114].mxu0 }
 0x458   : > { %v2824_v55 = vadd.f32 %v2823_v14, %v8831_v52  ;;  %v2825_v41 = vpop.f32.mrb[115].mxu0  ;;  %v2906_v42 = vmax.f32 %v2820_v62, 0.0 }
 0x459   : > { %v2826_v46 = vadd.f32 %v2825_v41, %v8835_v30  ;;  %v3194_v47 = vpop.f32.mrb[64].mxu1  ;;  %v2907_v48 = vmax.f32 %v2822_v54, 0.0 }
 0x45a   : > { %v2908_v56 = vmax.f32 %v2824_v55, 0.0  ;;  %v3195_v57 = vadd.f32 %v3194_v47, %v9000_v3  ;;  %v3196_v21 = vpop.f32.mrb[65].mxu1 }
 0x45b   : > { %v2909_v60 = vmax.f32 %v2826_v46, 0.0  ;;  %v3197_v12 = vadd.f32 %v3196_v21, %v9004_v44  ;;  %v3198_v51 = vpop.f32.mrb[66].mxu1 }
 0x45c   : > { %v2946_v34 = vpack.c.bf16 %v2908_v56, %v2906_v42  ;;  %v3199_v22 = vadd.f32 %v3198_v51, %v9000_v3  ;;  %v3200_v35 = vpop.f32.mrb[67].mxu1  ;;  %v3353_v59 = vmax.f32 %v3195_v57, 0.0 }
 0x45d   : > { %v2947_v2 = vpack.c.bf16 %v2909_v60, %v2907_v48  ;;  %v3201_v5 = vadd.f32 %v3200_v35, %v9004_v44  ;;  %v3354_v8 = vmax.f32 %v3197_v12, 0.0 }
 0x45e   : > { %v3355_v58 = vmax.f32 %v3199_v22, 0.0 }
 0x45f   : > { %3312 = vmatprep.mubr.bf16.mxu1 %v2947_v2  ;;  %v3356_v10 = vmax.f32 %v3201_v5, 0.0 }
 0x460   : > { %3313 = vmatmul.mubr.bf16.gmra.mrb[112].mxu1 %v2946_v34  ;;  %v3417_v25 = vpack.c.bf16 %v3355_v58, %v3353_v59 }
 0x461   : > { %v3418_v11 = vpack.c.bf16 %v3356_v10, %v3354_v8 }
 0x462   : > { %v3204_v39 = vpop.f32.mrb[68].mxu1 }
 0x463   : > { %v3205_v61 = vadd.f32 %v3204_v39, %v9000_v3  ;;  %v3206_v26 = vpop.f32.mrb[69].mxu1  ;;  %3687 = vmatprep.mubr.bf16.mxu0 %v3418_v11  ;;  %v7382_v11 = vld [vmem:[%s10606_s3 + $0x504] ss:$8 sps:$4 sm:$0xff]  }
 0x464   : > { %v3207_v27 = vadd.f32 %v3206_v26, %v9004_v44  ;;  %v3208_v1 = vpop.f32.mrb[70].mxu1  ;;  %3688 = vmatmul.mubr.bf16.vlgmr.msra.gmra.mrb[128].mxu0 %v3417_v25  ;;  %v7380_v25 = vld [vmem:[%s10606_s3 + $0x500] ss:$8 sps:$4 sm:$0xff]   ;;  %4150 = vmatprep.subr.bf16.mxu1 %v7382_v11  ;;  %v7385_v26 = vld [vmem:[%s10606_s3 + $0x514] ss:$8 sps:$4 sm:$0xff]  }
 0x465   : > { %v3209_v13 = vadd.f32 %v3208_v1, %v9000_v3  ;;  %v3210_v18 = vpop.f32.mrb[71].mxu1  ;;  %v3357_v7 = vmax.f32 %v3205_v61, 0.0  ;;  %4151 = vmatpush1.bf16.msra.mxu1 %v7380_v25  ;;  %v7383_v61 = vld [vmem:[%s10606_s3 + $0x510] ss:$8 sps:$4 sm:$0xff]   ;;  %v7404_v11 = vld [vmem:[%s10606_s3 + $0x580] ss:$8 sps:$4 sm:$0xff]  }
 0x466   : > { %v3211_v15 = vadd.f32 %v3210_v18, %v9004_v44  ;;  %v3358_v49 = vmax.f32 %v3207_v27, 0.0  ;;  %v7388_v27 = vld [vmem:[%s10606_s3 + $0x524] ss:$8 sps:$4 sm:$0xff]   ;;  %4152 = vmatprep.subr.bf16.mxu1 %v7385_v26  ;;  %v7410_v26 = vld [vmem:[%s10606_s3 + $0x5a0] ss:$8 sps:$4 sm:$0xff]  }
 0x467   : > { %v3359_v53 = vmax.f32 %v3209_v13, 0.0 }
 0x468   : > { %v3360_v50 = vmax.f32 %v3211_v15, 0.0  ;;  %v2829_v28 = vpop.f32.mrb[116].mxu0  ;;  %v7386_v15 = vld [vmem:[%s10606_s3 + $0x520] ss:$8 sps:$4 sm:$0xff]  }
 0x469   : > { %v3419_v23 = vpack.c.bf16 %v3359_v53, %v3357_v7  ;;  %v2830_v29 = vadd.f32 %v2829_v28, %v8831_v52  ;;  %v2831_v17 = vpop.f32.mrb[117].mxu0  ;;  %4153 = vmatpush1.bf16.msra.mxu1 %v7383_v61  ;;  %v7407_v61 = vld [vmem:[%s10606_s3 + $0x590] ss:$8 sps:$4 sm:$0xff]  }
 0x46a   : > { %v3420_v31 = vpack.c.bf16 %v3360_v50, %v3358_v49  ;;  %v2832_v32 = vadd.f32 %v2831_v17, %v8835_v30  ;;  %v2833_v33 = vpop.f32.mrb[118].mxu0  ;;  %4154 = vmatprep.subr.bf16.mxu1 %v7388_v27  ;;  %v7412_v27 = vld [vmem:[%s10606_s3 + $0x5a4] ss:$8 sps:$4 sm:$0xff]  }
 0x46b   : > { %v2834_v45 = vadd.f32 %v2833_v33, %v8831_v52  ;;  %v2835_v4 = vpop.f32.mrb[119].mxu0  ;;  %v2910_v63 = vmax.f32 %v2830_v29, 0.0  ;;  %v7391_v33 = vld [vmem:[%s10606_s3 + $0x534] ss:$8 sps:$4 sm:$0xff]  }
 0x46c   : > { %v2836_v20 = vadd.f32 %v2835_v4, %v8835_v30  ;;  %3697 = vmatprep.mubr.bf16.mxu0 %v3420_v31  ;;  %v2911_v38 = vmax.f32 %v2832_v32, 0.0 }
 0x46d   : > { %v2912_v0 = vmax.f32 %v2834_v45, 0.0  ;;  %3698 = vmatmul.mubr.bf16.gmra.mrb[132].mxu0 %v3419_v23  ;;  %4155 = vmatpush1.bf16.msra.mxu1 %v7386_v15 }
 0x46e   : > { %v2913_v24 = vmax.f32 %v2836_v20, 0.0  ;;  %4156 = vmatprep.subr.bf16.mxu1 %v7391_v33 }
 0x46f   : > { %v2948_v19 = vpack.c.bf16 %v2912_v0, %v2910_v63  ;;  %v7389_v63 = vld [vmem:[%s10606_s3 + $0x530] ss:$8 sps:$4 sm:$0xff]  }
 0x470   : > { %v2949_v40 = vpack.c.bf16 %v2913_v24, %v2911_v38 }
 0x471   : > { %4157 = vmatpush1.bf16.msra.mxu1 %v7389_v63 }
 0x472   : > { %3322 = vmatprep.mubr.bf16.mxu1 %v2949_v40 }
 0x473   : > { %3323 = vmatmul.mubr.bf16.gmra.mrb[116].mxu1 %v2948_v19 }
 0x475   : > { %v3214_v43 = vpop.f32.mrb[72].mxu1 }
 0x476   : > { %v3215_v36 = vadd.f32 %v3214_v43, %v9000_v3  ;;  %v3216_v62 = vpop.f32.mrb[73].mxu1 }
 0x477   : > { %v3217_v37 = vadd.f32 %v3216_v62, %v9004_v44  ;;  %v3218_v54 = vpop.f32.mrb[74].mxu1 }
 0x478   : > { %v3219_v14 = vadd.f32 %v3218_v54, %v9000_v3  ;;  %v3220_v55 = vpop.f32.mrb[75].mxu1  ;;  %v3361_v46 = vmax.f32 %v3215_v36, 0.0  ;;  %v7394_v36 = vld [vmem:[%s10606_s3 + $0x544] ss:$8 sps:$4 sm:$0xff]   ;;  %v7392_v54 = vld [vmem:[%s10606_s3 + $0x540] ss:$8 sps:$4 sm:$0xff]  }
 0x479   : > { %v3221_v41 = vadd.f32 %v3220_v55, %v9004_v44  ;;  %v3362_v56 = vmax.f32 %v3217_v37, 0.0  ;;  %4158 = vmatprep.subr.bf16.mxu1 %v7394_v36  ;;  %v9145_v36 = vld [vmem:[%s7775_s30 + $0x58] sm:$0xff] }
 0x47a   : > { %v3363_v42 = vmax.f32 %v3219_v14, 0.0  ;;  %4159 = vmatpush1.bf16.msra.mxu1 %v7392_v54  ;;  %v7424_v54 = vld [vmem:[%s10606_s3 + $0x5e4] ss:$8 sps:$4 sm:$0xff]  }
 0x47b   : > { %v3364_v47 = vmax.f32 %v3221_v41, 0.0  ;;  %v2839_v48 = vpop.f32.mrb[120].mxu0 }
 0x47c   : > { %v3421_v60 = vpack.c.bf16 %v3363_v42, %v3361_v46  ;;  %v2840_v57 = vadd.f32 %v2839_v48, %v8831_v52  ;;  %v2841_v21 = vpop.f32.mrb[121].mxu0  ;;  %v7395_v46 = vld [vmem:[%s10606_s3 + $0x550] ss:$8 sps:$4 sm:$0xff]   ;;  %v7400_v42 = vld [vmem:[%s10606_s3 + $0x564] ss:$8 sps:$4 sm:$0xff]  }
 0x47d   : > { %v3422_v34 = vpack.c.bf16 %v3364_v47, %v3362_v56  ;;  %v2842_v12 = vadd.f32 %v2841_v21, %v8835_v30  ;;  %v2843_v51 = vpop.f32.mrb[122].mxu0  ;;  %v7398_v56 = vld [vmem:[%s10606_s3 + $0x560] ss:$8 sps:$4 sm:$0xff]   ;;  %v7403_v48 = vld [vmem:[%s10606_s3 + $0x574] ss:$8 sps:$4 sm:$0xff]  }
 0x47e   : > { %v2844_v2 = vadd.f32 %v2843_v51, %v8831_v52  ;;  %v2845_v22 = vpop.f32.mrb[123].mxu0  ;;  %v2914_v5 = vmax.f32 %v2840_v57, 0.0 }
 0x47f   : > { %v2846_v35 = vadd.f32 %v2845_v22, %v8835_v30  ;;  %3707 = vmatprep.mubr.bf16.mxu0 %v3422_v34  ;;  %v2915_v58 = vmax.f32 %v2842_v12, 0.0 }
 0x480   : > { %v2916_v59 = vmax.f32 %v2844_v2, 0.0  ;;  %3708 = vmatmul.mubr.bf16.gmra.mrb[136].mxu0 %v3421_v60  ;;  %v7401_v2 = vld [vmem:[%s10606_s3 + $0x570] ss:$8 sps:$4 sm:$0xff]  }
 0x481   : > { %v2917_v8 = vmax.f32 %v2846_v35, 0.0 }
 0x482   : > { %v2950_v10 = vpack.c.bf16 %v2916_v59, %v2914_v5 }
 0x483   : > { %v2951_v39 = vpack.c.bf16 %v2917_v8, %v2915_v58 }
 0x485   : > { %3332 = vmatprep.mubr.bf16.mxu1 %v2951_v39  ;;  %v7409_v39 = vld [vmem:[%s10606_s3 + $0x594] ss:$8 sps:$4 sm:$0xff]  }
 0x486   : > { %3333 = vmatmul.mubr.bf16.gmra.mrb[120].mxu1 %v2950_v10  ;;  %v7406_v10 = vld [vmem:[%s10606_s3 + $0x584] ss:$8 sps:$4 sm:$0xff]  }
 0x488   : > { %v3224_v1 = vpop.f32.mrb[76].mxu1 }
 0x489   : > { %v3225_v13 = vadd.f32 %v3224_v1, %v9000_v3  ;;  %v3226_v18 = vpop.f32.mrb[77].mxu1  ;;  %v7415_v1 = vld [vmem:[%s10606_s3 + $0x5b4] ss:$8 sps:$4 sm:$0xff]  }
 0x48a   : > { %v3227_v7 = vadd.f32 %v3226_v18, %v9004_v44  ;;  %v3228_v53 = vpop.f32.mrb[78].mxu1  ;;  %v9109_v18 = vld [vmem:[%s7775_s30 + $0x8] sm:$0xff] }
 0x48b   : > { %v3229_v49 = vadd.f32 %v3228_v53, %v9000_v3  ;;  %v3230_v50 = vpop.f32.mrb[79].mxu1  ;;  %v3365_v23 = vmax.f32 %v3225_v13, 0.0  ;;  %v7605_v13 = vmov 3   ;;  %v9116_v53 = vld [vmem:[%s7775_s30] sm:$0xff] }
 0x48c   : > { %v3231_v28 = vadd.f32 %v3230_v50, %v9004_v44  ;;  %v3366_v17 = vmax.f32 %v3227_v7, 0.0  ;;  %7135 = vset.pattern.permute.xlu1 %v7605_v13  ;;  %7134 = vset.pattern.permute.xlu0 %v7605_v13  ;;  %v7413_v7 = vld [vmem:[%s10606_s3 + $0x5b0] ss:$8 sps:$4 sm:$0xff]  }
 0x48d   : > { %v3367_v29 = vmax.f32 %v3229_v49, 0.0  ;;  %5078 = vperm.xlu1 %7135, %v9109_v18   ;;  %5074 = vperm.xlu0 %7134, %v9116_v53  }
 0x48e   : > { %v3368_v31 = vmax.f32 %v3231_v28, 0.0  ;;  %v2849_v32 = vpop.f32.mrb[124].mxu0  ;;  %v7418_v28 = vld [vmem:[%s10606_s3 + $0x5c4] ss:$8 sps:$4 sm:$0xff]  }
 0x48f   : > { %v3423_v45 = vpack.c.bf16 %v3367_v29, %v3365_v23  ;;  %v2850_v4 = vadd.f32 %v2849_v32, %v8831_v52  ;;  %v2851_v20 = vpop.f32.mrb[125].mxu0  ;;  %v9126_v32 = vld [vmem:[%s7775_s30 + $0x10] sm:$0xff] }
 0x490   : > { %v3424_v0 = vpack.c.bf16 %v3368_v31, %v3366_v17  ;;  %v2852_v38 = vadd.f32 %v2851_v20, %v8835_v30  ;;  %v2853_v24 = vpop.f32.mrb[126].mxu0 }
 0x491   : > { %v2854_v19 = vadd.f32 %v2853_v24, %v8831_v52  ;;  %v2855_v40 = vpop.f32.mrb[127].mxu0  ;;  %v2918_v62 = vmax.f32 %v2850_v4, 0.0  ;;  %5082 = vperm.xlu1 %7135, %v9126_v32   ;;  %v9134_v4 = vld [vmem:[%s7775_s30 + $0x48] sm:$0xff] }
 0x492   : > { %v2856_v43 = vadd.f32 %v2855_v40, %v8835_v30  ;;  %3717 = vmatprep.mubr.bf16.mxu0 %v3424_v0  ;;  %v2919_v14 = vmax.f32 %v2852_v38, 0.0  ;;  %v7397_v30 = vld [vmem:[%s10606_s3 + $0x554] ss:$8 sps:$4 sm:$0xff]   ;;  %5110 = vperm.xlu0 %7134, %v9134_v4  }
 0x493   : > { %v2920_v37 = vmax.f32 %v2854_v19, 0.0  ;;  %3718 = vmatmul.mubr.bf16.gmra.mrb[140].mxu0 %v3423_v45  ;;  %4160 = vmatprep.subr.bf16.mxu1 %v7397_v30  ;;  %v7416_v45 = vld [vmem:[%s10606_s3 + $0x5c0] ss:$8 sps:$4 sm:$0xff]   ;;  %v9138_v19 = vld [vmem:[%s7775_s30 + $0x18] sm:$0xff] }
 0x494   : > { %v2921_v55 = vmax.f32 %v2856_v43, 0.0  ;;  %4161 = vmatpush1.bf16.msra.mxu1 %v7395_v46  ;;  %v7421_v43 = vld [vmem:[%s10606_s3 + $0x5d4] ss:$8 sps:$4 sm:$0xff]   ;;  %v7425_v46 = vld [vmem:[%s10606_s3 + $0x5f0] ss:$8 sps:$4 sm:$0xff]  }
 0x495   : > { %v2952_v52 = vpack.c.bf16 %v2920_v37, %v2918_v62  ;;  %4162 = vmatprep.subr.bf16.mxu1 %v7400_v42  ;;  %5086 = vperm.xlu1 %7135, %v9138_v19   ;;  %v7419_v62 = vld [vmem:[%s10606_s3 + $0x5d0] ss:$8 sps:$4 sm:$0xff]   ;;  %v9152_v37 = vld [vmem:[%s7775_s30 + $0x20] sm:$0xff]  ;;  %v7427_v30 = vld [vmem:[%s10606_s3 + $0x5f4] ss:$8 sps:$4 sm:$0xff]  }
 0x496   : > { %v2953_v41 = vpack.c.bf16 %v2921_v55, %v2919_v14  ;;  %5118 = vperm.xlu0 %7134, %v9145_v36   ;;  %v9159_v14 = vld [vmem:[%s7775_s30 + $0x68] sm:$0xff] }
 0x497   : > { %v7422_v55 = vld [vmem:[%s10606_s3 + $0x5e0] ss:$8 sps:$4 sm:$0xff]  }
 0x498   : > { %3342 = vmatprep.mubr.bf16.mxu1 %v2953_v41  ;;  %4163 = vmatpush1.bf16.msra.mxu1 %v7398_v56  ;;  %v9173_v41 = vld [vmem:[%s7775_s30 + $0x78] sm:$0xff]  ;;  %v9180_v56 = vld [vmem:[%s7775_s30 + $0x30] sm:$0xff] }
 0x499   : > { %3343 = vmatmul.mubr.bf16.gmra.mrb[124].mxu1 %v2952_v52  ;;  %4164 = vmatprep.subr.bf16.mxu1 %v7403_v48  ;;  %v9166_v52 = vld [vmem:[%s7775_s30 + $0x28] sm:$0xff] }
 0x49a   : > { %5090 = vperm.xlu1 %7135, %v9152_v37   ;;  %5126 = vperm.xlu0 %7134, %v9159_v14  }
 0x49b   : > { %v3234_v47 = vpop.f32.mrb[80].mxu1 }
 0x49c   : > { %v3235_v60 = vadd.f32 %v3234_v47, %v9000_v3  ;;  %v3236_v57 = vpop.f32.mrb[81].mxu1  ;;  %4165 = vmatpush1.bf16.msra.mxu1 %v7401_v2  ;;  %v9192_v2 = vld [vmem:[%s7775_s30 + $0x38] sm:$0xff] }
 0x49d   : > { %v3237_v21 = vadd.f32 %v3236_v57, %v9004_v44  ;;  %v3238_v34 = vpop.f32.mrb[82].mxu1  ;;  %4166 = vmatprep.subr.bf16.mxu1 %v7406_v10 }
 0x49e   : > { %v3239_v12 = vadd.f32 %v3238_v34, %v9000_v3  ;;  %v3240_v51 = vpop.f32.mrb[83].mxu1  ;;  %v3369_v35 = vmax.f32 %v3235_v60, 0.0  ;;  %5094 = vperm.xlu1 %7135, %v9166_v52   ;;  %5134 = vperm.xlu0 %7134, %v9173_v41   ;;  %v9185_v60 = vld [vmem:[%s7775_s30 + $0x88] sm:$0xff] }
 0x49f   : > { %v3241_v22 = vadd.f32 %v3240_v51, %v9004_v44  ;;  %v3370_v59 = vmax.f32 %v3237_v21, 0.0 }
 0x4a0   : > { %v3371_v5 = vmax.f32 %v3239_v12, 0.0  ;;  %4167 = vmatpush1.bf16.msra.mxu1 %v7404_v11  ;;  %v9204_v11 = vld [vmem:[%s7775_s30 + $0xa8] sm:$0xff] }
 0x4a1   : > { %v3372_v58 = vmax.f32 %v3241_v22, 0.0  ;;  %4168 = vmatprep.subr.bf16.mxu1 %v7409_v39  ;;  %v9208_v39 = vld [vmem:[%s7775_s30 + $0x50] sm:$0xff] }
 0x4a2   : > { %v3425_v8 = vpack.c.bf16 %v3371_v5, %v3369_v35  ;;  %5098 = vperm.xlu1 %7135, %v9180_v56   ;;  %5142 = vperm.xlu0 %7134, %v9185_v60   ;;  %v9196_v5 = vld [vmem:[%s7775_s30 + $0x98] sm:$0xff] }
 0x4a3   : > { %v3426_v25 = vpack.c.bf16 %v3372_v58, %v3370_v59 }
 0x4a4   : > { %4169 = vmatpush1.bf16.msra.mxu1 %v7407_v61  ;;  %v9212_v61 = vld [vmem:[%s7775_s30 + $0xb8] sm:$0xff] }
 0x4a5   : > { %3727 = vmatprep.mubr.bf16.mxu0 %v3426_v25  ;;  %4170 = vmatprep.subr.bf16.mxu1 %v7412_v27  ;;  %v9200_v25 = vld [vmem:[%s7775_s30 + $0x40] sm:$0xff]  ;;  %v9220_v27 = vld [vmem:[%s7775_s30 + $0xc8] sm:$0xff] }
 0x4a6   : > { %3728 = vmatmul.mubr.bf16.gmra.mrb[144].mxu0 %v3425_v8  ;;  %5102 = vperm.xlu1 %7135, %v9192_v2  }
 0x4a7   : > { %5150 = vperm.xlu0 %7134, %v9196_v5  }
 0x4a8   : > { %4171 = vmatpush1.bf16.msra.mxu1 %v7410_v26  ;;  %v9216_v26 = vld [vmem:[%s7775_s30 + $0x60] sm:$0xff] }
 0x4a9   : > { %4172 = vmatprep.subr.bf16.mxu1 %v7415_v1 }
 0x4aa   : > { %5106 = vperm.xlu1 %7135, %v9200_v25  }
 0x4ab   : > { %5158 = vperm.xlu0 %7134, %v9204_v11  }
 0x4ac   : > { %4173 = vmatpush1.bf16.msra.mxu1 %v7413_v7  ;;  %v9225_v7 = vld [vmem:[%s7775_s30 + $0x70] sm:$0xff] }
 0x4ad   : > { %4174 = vmatprep.subr.bf16.mxu1 %v7418_v28  ;;  %v9230_v28 = vld [vmem:[%s7775_s30 + $0xd8] sm:$0xff] }
 0x4ae   : > { %v3244_v15 = vpop.f32.mrb[84].mxu1  ;;  %5114 = vperm.xlu1 %7135, %v9208_v39  }
 0x4af   : > { %v3245_v49 = vadd.f32 %v3244_v15, %v9000_v3  ;;  %v3246_v50 = vpop.f32.mrb[85].mxu1  ;;  %5166 = vperm.xlu0 %7134, %v9212_v61  }
 0x4b0   : > { %v3247_v23 = vadd.f32 %v3246_v50, %v9004_v44  ;;  %v3248_v29 = vpop.f32.mrb[86].mxu1  ;;  %4175 = vmatpush1.bf16.msra.mxu1 %v7416_v45  ;;  %v9236_v45 = vld [vmem:[%s7775_s30 + $0x80] sm:$0xff] }
 0x4b1   : > { %v3249_v17 = vadd.f32 %v3248_v29, %v9000_v3  ;;  %v3250_v31 = vpop.f32.mrb[87].mxu1  ;;  %v3373_v20 = vmax.f32 %v3245_v49, 0.0  ;;  %4176 = vmatprep.subr.bf16.mxu1 %v7421_v43  ;;  %v9248_v43 = vld [vmem:[%s7775_s30 + $0xf8] sm:$0xff] }
 0x4b2   : > { %v3251_v33 = vadd.f32 %v3250_v31, %v9004_v44  ;;  %v3374_v0 = vmax.f32 %v3247_v23, 0.0  ;;  %5122 = vperm.xlu1 %7135, %v9216_v26  }
 0x4b3   : > { %v3375_v63 = vmax.f32 %v3249_v17, 0.0  ;;  %5174 = vperm.xlu0 %7134, %v9220_v27  }
 0x4b4   : > { %v3376_v38 = vmax.f32 %v3251_v33, 0.0  ;;  %4177 = vmatpush1.bf16.msra.mxu1 %v7419_v62  ;;  %v9252_v62 = vld [vmem:[%s7775_s30 + $0xa0] sm:$0xff] }
 0x4b5   : > { %v3427_v24 = vpack.c.bf16 %v3375_v63, %v3373_v20  ;;  %4178 = vmatprep.subr.bf16.mxu1 %v7424_v54  ;;  %v9256_v54 = vld [vmem:[%s7775_s30 + $0xb0] sm:$0xff] }
 0x4b6   : > { %v3428_v40 = vpack.c.bf16 %v3376_v38, %v3374_v0  ;;  %5130 = vperm.xlu1 %7135, %v9225_v7   ;;  %v9240_v0 = vld [vmem:[%s7775_s30 + $0xe8] sm:$0xff] }
 0x4b7   : > { %5182 = vperm.xlu0 %7134, %v9230_v28  }
 0x4b8   : > { %3737 = vmatprep.mubr.bf16.mxu0 %v3428_v40  ;;  %4179 = vmatpush1.bf16.msra.mxu1 %v7422_v55  ;;  %v9244_v40 = vld [vmem:[%s7775_s30 + $0x90] sm:$0xff] }
 0x4b9   : > { %3738 = vmatmul.mubr.bf16.gmra.mrb[148].mxu0 %v3427_v24  ;;  %4180 = vmatprep.subr.bf16.mxu1 %v7427_v30 }
 0x4ba   : > { %5138 = vperm.xlu1 %7135, %v9236_v45  }
 0x4bb   : > { %5190 = vperm.xlu0 %7134, %v9240_v0  }
 0x4bc   : > { %4181 = vmatpush1.bf16.msra.mxu1 %v7425_v46 }
 0x4be   : > { %5146 = vperm.xlu1 %7135, %v9244_v40  }
 0x4bf   : > { %5198 = vperm.xlu0 %7134, %v9248_v43  }
 0x4c1   : > { %v3254_v42 = vpop.f32.mrb[88].mxu1 }
 0x4c2   : > { %v3255_v47 = vadd.f32 %v3254_v42, %v9000_v3  ;;  %v3256_v48 = vpop.f32.mrb[89].mxu1  ;;  %5154 = vperm.xlu1 %7135, %v9252_v62  }
 0x4c3   : > { %v3257_v57 = vadd.f32 %v3256_v48, %v9004_v44  ;;  %v3258_v21 = vpop.f32.mrb[90].mxu1  ;;  %v9262_v48 = vld [vmem:[%s7775_s30 + $0xc0] sm:$0xff] }
 0x4c4   : > { %v3259_v34 = vadd.f32 %v3258_v21, %v9000_v3  ;;  %v3260_v12 = vpop.f32.mrb[91].mxu1  ;;  %v3377_v22 = vmax.f32 %v3255_v47, 0.0 }
 0x4c5   : > { %v3261_v51 = vadd.f32 %v3260_v12, %v9004_v44  ;;  %v3378_v59 = vmax.f32 %v3257_v57, 0.0 }
 0x4c6   : > { %v3379_v35 = vmax.f32 %v3259_v34, 0.0  ;;  %5162 = vperm.xlu1 %7135, %v9256_v54  }
 0x4c7   : > { %v3380_v58 = vmax.f32 %v3261_v51, 0.0 }
 0x4c8   : > { %v3429_v8 = vpack.c.bf16 %v3379_v35, %v3377_v22 }
 0x4c9   : > { %v3430_v10 = vpack.c.bf16 %v3380_v58, %v3378_v59  ;;  %v9268_v59 = vld [vmem:[%s7775_s30 + $0xd0] sm:$0xff] }
 0x4ca   : > { %5170 = vperm.xlu1 %7135, %v9262_v48  }
 0x4cb   : > { %3747 = vmatprep.mubr.bf16.mxu0 %v3430_v10  ;;  %v9272_v10 = vld [vmem:[%s7775_s30 + $0xe0] sm:$0xff] }
 0x4cc   : > { %3748 = vmatmul.mubr.bf16.gmra.mrb[152].mxu0 %v3429_v8 }
 0x4ce   : > { %5178 = vperm.xlu1 %7135, %v9268_v59  }
 0x4d2   : > { %5186 = vperm.xlu1 %7135, %v9272_v10  }
 0x4d4   : > { %v3264_v1 = vpop.f32.mrb[92].mxu1 }
 0x4d5   : > { %v3265_v13 = vadd.f32 %v3264_v1, %v9000_v3  ;;  %v3266_v15 = vpop.f32.mrb[93].mxu1  ;;  %v9276_v1 = vld [vmem:[%s7775_s30 + $0xf0] sm:$0xff] }
 0x4d6   : > { %v3267_v49 = vadd.f32 %v3266_v15, %v9004_v44  ;;  %v3268_v50 = vpop.f32.mrb[94].mxu1  ;;  %5194 = vperm.xlu1 %7135, %v9276_v1  }
 0x4d7   : > { %v3269_v23 = vadd.f32 %v3268_v50, %v9000_v3  ;;  %v3270_v29 = vpop.f32.mrb[95].mxu1  ;;  %v3381_v31 = vmax.f32 %v3265_v13, 0.0  ;;  %v7606_v13 = vmov 4  }
 0x4d8   : > { %v3271_v17 = vadd.f32 %v3270_v29, %v9004_v44  ;;  %v3382_v20 = vmax.f32 %v3267_v49, 0.0  ;;  %7137 = vset.pattern.permute.xlu0 %v7606_v13 }
 0x4d9   : > { %v3383_v33 = vmax.f32 %v3269_v23, 0.0  ;;  %5242 = vperm.xlu0 %7137, %v9109_v18  }
 0x4da   : > { %v3384_v63 = vmax.f32 %v3271_v17, 0.0  ;;  %7136 = vset.pattern.permute.xlu1 %v7606_v13 }
 0x4db   : > { %v3431_v38 = vpack.c.bf16 %v3383_v33, %v3381_v31  ;;  %5238 = vperm.xlu1 %7136, %v9116_v53  }
 0x4dc   : > { %v3432_v24 = vpack.c.bf16 %v3384_v63, %v3382_v20 }
 0x4dd   : > { %5254 = vperm.xlu0 %7137, %v9152_v37  }
 0x4de   : > { %3757 = vmatprep.mubr.bf16.mxu0 %v3432_v24 }
 0x4df   : > { %3758 = vmatmul.mubr.bf16.gmra.mrb[156].mxu0 %v3431_v38  ;;  %5246 = vperm.xlu1 %7136, %v9126_v32  }
 0x4e1   : > { %5262 = vperm.xlu0 %7137, %v9180_v56  }
 0x4e3   : > { %5250 = vperm.xlu1 %7136, %v9138_v19  }
 0x4e5   : > { %5270 = vperm.xlu0 %7137, %v9200_v25  }
 0x4e7   : > { %v3274_v55 = vpop.f32.mrb[96].mxu1  ;;  %5258 = vperm.xlu1 %7136, %v9166_v52  }
 0x4e8   : > { %v3275_v30 = vadd.f32 %v3274_v55, %v9000_v3  ;;  %v3276_v46 = vpop.f32.mrb[97].mxu1 }
 0x4e9   : > { %v3277_v42 = vadd.f32 %v3276_v46, %v9004_v44  ;;  %v3278_v47 = vpop.f32.mrb[98].mxu1  ;;  %5278 = vperm.xlu0 %7137, %v9208_v39  }
 0x4ea   : > { %v3279_v57 = vadd.f32 %v3278_v47, %v9000_v3  ;;  %v3280_v21 = vpop.f32.mrb[99].mxu1  ;;  %v3385_v12 = vmax.f32 %v3275_v30, 0.0 }
 0x4eb   : > { %v3281_v34 = vadd.f32 %v3280_v21, %v9004_v44  ;;  %v3386_v22 = vmax.f32 %v3277_v42, 0.0  ;;  %5266 = vperm.xlu1 %7136, %v9192_v2  }
 0x4ec   : > { %v3387_v51 = vmax.f32 %v3279_v57, 0.0 }
 0x4ed   : > { %v3388_v35 = vmax.f32 %v3281_v34, 0.0  ;;  %5286 = vperm.xlu0 %7137, %v9216_v26  }
 0x4ee   : > { %v3433_v58 = vpack.c.bf16 %v3387_v51, %v3385_v12 }
 0x4ef   : > { %v3434_v8 = vpack.c.bf16 %v3388_v35, %v3386_v22  ;;  %5274 = vperm.xlu1 %7136, %v9134_v4  }
 0x4f1   : > { %3767 = vmatprep.mubr.bf16.mxu0 %v3434_v8  ;;  %5294 = vperm.xlu0 %7137, %v9225_v7  }
 0x4f2   : > { %3768 = vmatmul.mubr.bf16.gmra.mrb[160].mxu0 %v3433_v58 }
 0x4f3   : > { %5282 = vperm.xlu1 %7136, %v9145_v36  }
 0x4f5   : > { %5302 = vperm.xlu0 %7137, %v9236_v45  }
 0x4f7   : > { %5290 = vperm.xlu1 %7136, %v9159_v14  }
 0x4f9   : > { %5310 = vperm.xlu0 %7137, %v9244_v40  }
 0x4fa   : > { %v3284_v15 = vpop.f32.mrb[100].mxu1 }
 0x4fb   : > { %v3285_v49 = vadd.f32 %v3284_v15, %v9000_v3  ;;  %v3286_v50 = vpop.f32.mrb[101].mxu1  ;;  %5298 = vperm.xlu1 %7136, %v9173_v41  }
 0x4fc   : > { %v3287_v23 = vadd.f32 %v3286_v50, %v9004_v44  ;;  %v3288_v29 = vpop.f32.mrb[102].mxu1 }
 0x4fd   : > { %v3289_v17 = vadd.f32 %v3288_v29, %v9000_v3  ;;  %v3290_v31 = vpop.f32.mrb[103].mxu1  ;;  %v3389_v20 = vmax.f32 %v3285_v49, 0.0  ;;  %5318 = vperm.xlu0 %7137, %v9252_v62  }
 0x4fe   : > { %v3291_v33 = vadd.f32 %v3290_v31, %v9004_v44  ;;  %v3390_v38 = vmax.f32 %v3287_v23, 0.0 }
 0x4ff   : > { %v3391_v63 = vmax.f32 %v3289_v17, 0.0  ;;  %5306 = vperm.xlu1 %7136, %v9185_v60  }
 0x500   : > { %v3392_v24 = vmax.f32 %v3291_v33, 0.0 }
 0x501   : > { %v3435_v55 = vpack.c.bf16 %v3391_v63, %v3389_v20  ;;  %5326 = vperm.xlu0 %7137, %v9256_v54  }
 0x502   : > { %v3436_v30 = vpack.c.bf16 %v3392_v24, %v3390_v38 }
 0x503   : > { %5314 = vperm.xlu1 %7136, %v9196_v5  }
 0x504   : > { %3777 = vmatprep.mubr.bf16.mxu0 %v3436_v30 }
 0x505   : > { %3778 = vmatmul.mubr.bf16.gmra.mrb[164].mxu0 %v3435_v55  ;;  %5334 = vperm.xlu0 %7137, %v9262_v48  }
 0x507   : > { %5322 = vperm.xlu1 %7136, %v9204_v11  }
 0x509   : > { %5342 = vperm.xlu0 %7137, %v9268_v59  }
 0x50b   : > { %5330 = vperm.xlu1 %7136, %v9212_v61  }
 0x50d   : > { %v3294_v46 = vpop.f32.mrb[104].mxu1  ;;  %5350 = vperm.xlu0 %7137, %v9272_v10  }
 0x50e   : > { %v3295_v42 = vadd.f32 %v3294_v46, %v9000_v3  ;;  %v3296_v47 = vpop.f32.mrb[105].mxu1 }
 0x50f   : > { %v3297_v57 = vadd.f32 %v3296_v47, %v9004_v44  ;;  %v3298_v21 = vpop.f32.mrb[106].mxu1  ;;  %5338 = vperm.xlu1 %7136, %v9220_v27  }
 0x510   : > { %v3299_v34 = vadd.f32 %v3298_v21, %v9000_v3  ;;  %v3300_v12 = vpop.f32.mrb[107].mxu1  ;;  %v3393_v22 = vmax.f32 %v3295_v42, 0.0  ;;  %v6779_v42 = vld [vmem:[%s10607_s4 + $0x8] sm:$0x3] }
 0x511   : > { %v3301_v51 = vadd.f32 %v3300_v12, %v9004_v44  ;;  %v3394_v58 = vmax.f32 %v3297_v57, 0.0  ;;  %5358 = vperm.xlu0 %7137, %v9276_v1  }
 0x512   : > { %v3395_v35 = vmax.f32 %v3299_v34, 0.0 }
 0x513   : > { %v3396_v8 = vmax.f32 %v3301_v51, 0.0  ;;  %5346 = vperm.xlu1 %7136, %v9230_v28   ;;  %v9327_v51 = vrot.slane %v6779_v42, %v8003_v9 }
 0x514   : > { %v3437_v13 = vpack.c.bf16 %v3395_v35, %v3393_v22 }
 0x515   : > { %v3438_v15 = vpack.c.bf16 %v3396_v8, %v3394_v58  ;;  %v9331_v58 = vrot.slane %v6779_v42, %v7997_v6 }
 0x517   : > { %3787 = vmatprep.mubr.bf16.mxu0 %v3438_v15  ;;  %5354 = vperm.xlu1 %7136, %v9240_v0  }
 0x518   : > { %3788 = vmatmul.mubr.bf16.gmra.mrb[168].mxu0 %v3437_v13 }
 0x51b   : > { %5362 = vperm.xlu1 %7136, %v9248_v43  }
 0x520   : > { %v3304_v49 = vpop.f32.mrb[108].mxu1 }
 0x521   : > { %v3305_v50 = vadd.f32 %v3304_v49, %v9000_v3  ;;  %v3306_v23 = vpop.f32.mrb[109].mxu1 }
 0x522   : > { %v3307_v29 = vadd.f32 %v3306_v23, %v9004_v44  ;;  %v3308_v17 = vpop.f32.mrb[110].mxu1 }
 0x523   : > { %v3309_v31 = vadd.f32 %v3308_v17, %v9000_v3  ;;  %v3310_v33 = vpop.f32.mrb[111].mxu1  ;;  %v3397_v63 = vmax.f32 %v3305_v50, 0.0 }
 0x524   : > { %v3311_v20 = vadd.f32 %v3310_v33, %v9004_v44  ;;  %v3398_v24 = vmax.f32 %v3307_v29, 0.0 }
 0x525   : > { %v3399_v38 = vmax.f32 %v3309_v31, 0.0 }
 0x526   : > { %v3400_v55 = vmax.f32 %v3311_v20, 0.0 }
 0x527   : > { %v3439_v30 = vpack.c.bf16 %v3399_v38, %v3397_v63 }
 0x528   : > { %v3440_v46 = vpack.c.bf16 %v3400_v55, %v3398_v24 }
 0x52a   : > { %3797 = vmatprep.mubr.bf16.mxu0 %v3440_v46 }
 0x52b   : > { %3798 = vmatmul.mubr.bf16.gmra.mrb[172].mxu0 %v3439_v30 }
 0x533   : > { %v3314_v47 = vpop.f32.mrb[112].mxu1 }
 0x534   : > { %v3315_v57 = vadd.f32 %v3314_v47, %v9000_v3  ;;  %v3316_v21 = vpop.f32.mrb[113].mxu1 }
 0x535   : > { %v3317_v34 = vadd.f32 %v3316_v21, %v9004_v44  ;;  %v3318_v12 = vpop.f32.mrb[114].mxu1 }
 0x536   : > { %v3319_v22 = vadd.f32 %v3318_v12, %v9000_v3  ;;  %v3320_v35 = vpop.f32.mrb[115].mxu1  ;;  %v3401_v13 = vmax.f32 %v3315_v57, 0.0  ;;  %v7607_v57 = vmov 5  }
 0x537   : > { %v3321_v8 = vadd.f32 %v3320_v35, %v9004_v44  ;;  %v3689_v49 = vpop.f32.mrb[128].mxu0  ;;  %v3402_v50 = vmax.f32 %v3317_v34, 0.0  ;;  %7139 = vset.pattern.permute.xlu1 %v7607_v57  ;;  %7138 = vset.pattern.permute.xlu0 %v7607_v57 }
 0x538   : > { %v3403_v15 = vmax.f32 %v3319_v22, 0.0  ;;  %v3690_v29 = vadd.f32 %v3689_v49, %v9327_v51  ;;  %v3691_v17 = vpop.f32.mrb[129].mxu0  ;;  %5438 = vperm.xlu1 %7139, %v9109_v18   ;;  %5434 = vperm.xlu0 %7138, %v9116_v53  }
 0x539   : > { %v3404_v23 = vmax.f32 %v3321_v8, 0.0  ;;  %v3692_v33 = vadd.f32 %v3691_v17, %v9331_v58  ;;  %v3693_v20 = vpop.f32.mrb[130].mxu0 }
 0x53a   : > { %v3441_v31 = vpack.c.bf16 %v3403_v15, %v3401_v13  ;;  %v3694_v38 = vadd.f32 %v3693_v20, %v9327_v51  ;;  %v3695_v24 = vpop.f32.mrb[131].mxu0  ;;  %v3848_v30 = vmax.f32 %v3690_v29, 0.0 }
 0x53b   : > { %v3442_v63 = vpack.c.bf16 %v3404_v23, %v3402_v50  ;;  %v3696_v55 = vadd.f32 %v3695_v24, %v9331_v58  ;;  %v3849_v42 = vmax.f32 %v3692_v33, 0.0 }
 0x53c   : > { %v3850_v46 = vmax.f32 %v3694_v38, 0.0  ;;  %5442 = vperm.xlu1 %7139, %v9126_v32   ;;  %5446 = vperm.xlu0 %7138, %v9138_v19  }
 0x53d   : > { %3807 = vmatprep.mubr.bf16.mxu0 %v3442_v63  ;;  %v3851_v47 = vmax.f32 %v3696_v55, 0.0 }
 0x53e   : > { %3808 = vmatmul.mubr.bf16.gmra.mrb[176].mxu0 %v3441_v31  ;;  %v3912_v21 = vpack.c.bf16 %v3850_v46, %v3848_v30 }
 0x53f   : > { %v3913_v34 = vpack.c.bf16 %v3851_v47, %v3849_v42 }
 0x540   : > { %v3699_v12 = vpop.f32.mrb[132].mxu0  ;;  %5450 = vperm.xlu1 %7139, %v9152_v37   ;;  %5454 = vperm.xlu0 %7138, %v9166_v52  }
 0x541   : > { %v3700_v22 = vadd.f32 %v3699_v12, %v9327_v51  ;;  %v3701_v35 = vpop.f32.mrb[133].mxu0  ;;  %4182 = vmatprep.mubr.bf16.mxu1 %v3913_v34 }
 0x542   : > { %v3702_v8 = vadd.f32 %v3701_v35, %v9331_v58  ;;  %v3703_v13 = vpop.f32.mrb[134].mxu0  ;;  %4183 = vmatmul.mubr.bf16.vlgmr.msra.gmra.mrb[128].mxu1 %v3912_v21 }
 0x543   : > { %v3704_v15 = vadd.f32 %v3703_v13, %v9327_v51  ;;  %v3705_v49 = vpop.f32.mrb[135].mxu0  ;;  %v3852_v50 = vmax.f32 %v3700_v22, 0.0 }
 0x544   : > { %v3706_v18 = vadd.f32 %v3705_v49, %v9331_v58  ;;  %v3853_v53 = vmax.f32 %v3702_v8, 0.0  ;;  %5458 = vperm.xlu1 %7139, %v9180_v56   ;;  %5462 = vperm.xlu0 %7138, %v9192_v2  }
 0x545   : > { %v3854_v23 = vmax.f32 %v3704_v15, 0.0 }
 0x546   : > { %v3855_v29 = vmax.f32 %v3706_v18, 0.0  ;;  %v3324_v17 = vpop.f32.mrb[116].mxu1 }
 0x547   : > { %v3914_v31 = vpack.c.bf16 %v3854_v23, %v3852_v50  ;;  %v3325_v33 = vadd.f32 %v3324_v17, %v9000_v3  ;;  %v3326_v20 = vpop.f32.mrb[117].mxu1 }
 0x548   : > { %v3915_v63 = vpack.c.bf16 %v3855_v29, %v3853_v53  ;;  %v3327_v38 = vadd.f32 %v3326_v20, %v9004_v44  ;;  %v3328_v24 = vpop.f32.mrb[118].mxu1  ;;  %5466 = vperm.xlu1 %7139, %v9200_v25   ;;  %5470 = vperm.xlu0 %7138, %v9134_v4  }
 0x549   : > { %v3329_v32 = vadd.f32 %v3328_v24, %v9000_v3  ;;  %v3330_v19 = vpop.f32.mrb[119].mxu1  ;;  %v3405_v30 = vmax.f32 %v3325_v33, 0.0 }
 0x54a   : > { %v3331_v55 = vadd.f32 %v3330_v19, %v9004_v44  ;;  %4192 = vmatprep.mubr.bf16.mxu1 %v3915_v63  ;;  %v3406_v42 = vmax.f32 %v3327_v38, 0.0  ;;  %v7428_v38 = vld [vmem:[#allocation2] ss:$8 sps:$4 sm:$0xff]   ;;  %v7433_v19 = vld [vmem:[#allocation2 + $0x14] ss:$8 sps:$4 sm:$0xff]  }
 0x54b   : > { %v3407_v46 = vmax.f32 %v3329_v32, 0.0  ;;  %4193 = vmatmul.mubr.bf16.gmra.mrb[132].mxu1 %v3914_v31  ;;  %v9372_v31 = vpop.permute.xlu1 %5078  ;;  %v7431_v32 = vld [vmem:[#allocation2 + $0x10] ss:$8 sps:$4 sm:$0xff]  }
 0x54c   : > { %v3408_v47 = vmax.f32 %v3331_v55, 0.0  ;;  %5474 = vperm.xlu1 %7139, %v9208_v39   ;;  %5478 = vperm.xlu0 %7138, %v9145_v36   ;;  %10629 = vst [vmem:[#allocation9_spill] sm:$0xff] %v9372_v31  ;;  %v7436_v55 = vld [vmem:[#allocation2 + $0x24] ss:$8 sps:$4 sm:$0xff]  }
 0x54d   : > { %v3443_v37 = vpack.c.bf16 %v3407_v46, %v3405_v30 }
 0x54e   : > { %v3444_v57 = vpack.c.bf16 %v3408_v47, %v3406_v42  ;;  %v7434_v42 = vld [vmem:[#allocation2 + $0x20] ss:$8 sps:$4 sm:$0xff]  }
 0x550   : > { %3817 = vmatprep.mubr.bf16.mxu0 %v3444_v57  ;;  %5482 = vperm.xlu1 %7139, %v9216_v26  }
 0x551   : > { %3818 = vmatmul.mubr.bf16.gmra.mrb[180].mxu0 %v3443_v37  ;;  %5486 = vperm.xlu0 %7138, %v9159_v14  }
 0x553   : > { %v3709_v52 = vpop.f32.mrb[136].mxu0 }
 0x554   : > { %v3710_v21 = vadd.f32 %v3709_v52, %v9327_v51  ;;  %v3711_v34 = vpop.f32.mrb[137].mxu0  ;;  %5490 = vperm.xlu1 %7139, %v9225_v7   ;;  %v7430_v7 = vld [vmem:[#allocation2 + $0x4] ss:$8 sps:$4 sm:$0xff]  }
 0x555   : > { %v3712_v56 = vadd.f32 %v3711_v34, %v9331_v58  ;;  %v3713_v12 = vpop.f32.mrb[138].mxu0  ;;  %5494 = vperm.xlu0 %7138, %v9173_v41   ;;  %4643 = vmatprep.subr.bf16.mxu0 %v7430_v7  ;;  %v9376_v41 = vpop.permute.xlu1 %5082 }
 0x556   : > { %v3714_v2 = vadd.f32 %v3713_v12, %v9327_v51  ;;  %v3715_v22 = vpop.f32.mrb[139].mxu0  ;;  %v3856_v4 = vmax.f32 %v3710_v21, 0.0  ;;  %10630 = vst [vmem:[#allocation10_spill] sm:$0xff] %v9376_v41  ;;  %4644 = vmatpush1.bf16.msra.mxu0 %v7428_v38 }
 0x557   : > { %v3716_v25 = vadd.f32 %v3715_v22, %v9331_v58  ;;  %v3857_v39 = vmax.f32 %v3712_v56, 0.0  ;;  %4645 = vmatprep.subr.bf16.mxu0 %v7433_v19  ;;  %v7439_v22 = vld [vmem:[#allocation2 + $0x34] ss:$8 sps:$4 sm:$0xff]  }
 0x558   : > { %v3858_v35 = vmax.f32 %v3714_v2, 0.0  ;;  %5498 = vperm.xlu1 %7139, %v9236_v45  }
 0x559   : > { %v3859_v8 = vmax.f32 %v3716_v25, 0.0  ;;  %v3334_v13 = vpop.f32.mrb[120].mxu1  ;;  %5502 = vperm.xlu0 %7138, %v9185_v60   ;;  %v9380_v30 = vpop.permute.xlu1 %5086 }
 0x55a   : > { %v3916_v15 = vpack.c.bf16 %v3858_v35, %v3856_v4  ;;  %v3335_v36 = vadd.f32 %v3334_v13, %v9000_v3  ;;  %v3336_v49 = vpop.f32.mrb[121].mxu1  ;;  %10631 = vst [vmem:[#allocation11_spill] sm:$0xff] %v9380_v30  ;;  %4646 = vmatpush1.bf16.msra.mxu0 %v7431_v32  ;;  %v7437_v35 = vld [vmem:[#allocation2 + $0x30] ss:$8 sps:$4 sm:$0xff]  }
 0x55b   : > { %v3917_v18 = vpack.c.bf16 %v3859_v8, %v3857_v39  ;;  %v3337_v50 = vadd.f32 %v3336_v49, %v9004_v44  ;;  %v3338_v23 = vpop.f32.mrb[122].mxu1  ;;  %4647 = vmatprep.subr.bf16.mxu0 %v7436_v55  ;;  %v7442_v49 = vld [vmem:[#allocation2 + $0x44] ss:$8 sps:$4 sm:$0xff]  }
 0x55c   : > { %v3339_v53 = vadd.f32 %v3338_v23, %v9000_v3  ;;  %v3340_v26 = vpop.f32.mrb[123].mxu1  ;;  %v3409_v29 = vmax.f32 %v3335_v36, 0.0  ;;  %5506 = vperm.xlu1 %7139, %v9244_v40  }
 0x55d   : > { %v3341_v14 = vadd.f32 %v3340_v26, %v9004_v44  ;;  %4202 = vmatprep.mubr.bf16.mxu1 %v3917_v18  ;;  %v3410_v33 = vmax.f32 %v3337_v50, 0.0  ;;  %5510 = vperm.xlu0 %7138, %v9196_v5   ;;  %v9388_v52 = vpop.permute.xlu1 %5090 }
 0x55e   : > { %v3411_v17 = vmax.f32 %v3339_v53, 0.0  ;;  %4203 = vmatmul.mubr.bf16.gmra.mrb[136].mxu1 %v3916_v15  ;;  %10632 = vst [vmem:[#allocation12_spill] sm:$0xff] %v9388_v52  ;;  %4648 = vmatpush1.bf16.msra.mxu0 %v7434_v42 }
 0x55f   : > { %v3412_v20 = vmax.f32 %v3341_v14, 0.0  ;;  %4649 = vmatprep.subr.bf16.mxu0 %v7439_v22  ;;  %v7445_v14 = vld [vmem:[#allocation2 + $0x54] ss:$8 sps:$4 sm:$0xff]  }
 0x560   : > { %v3445_v63 = vpack.c.bf16 %v3411_v17, %v3409_v29  ;;  %5514 = vperm.xlu1 %7139, %v9252_v62   ;;  %v7448_v17 = vld [vmem:[#allocation2 + $0x64] ss:$8 sps:$4 sm:$0xff]   ;;  %v7463_v22 = vld [vmem:[#allocation2 + $0xb4] ss:$8 sps:$4 sm:$0xff]  }
 0x561   : > { %v3446_v24 = vpack.c.bf16 %v3412_v20, %v3410_v33  ;;  %5518 = vperm.xlu0 %7138, %v9204_v11   ;;  %v9394_v13 = vpop.permute.xlu1 %5094  ;;  %v7451_v20 = vld [vmem:[#allocation2 + $0x74] ss:$8 sps:$4 sm:$0xff]  }
 0x562   : > { %10633 = vst [vmem:[#allocation13_spill] sm:$0xff] %v9394_v13  ;;  %4650 = vmatpush1.bf16.msra.mxu0 %v7437_v35  ;;  %v7461_v35 = vld [vmem:[#allocation2 + $0xb0] ss:$8 sps:$4 sm:$0xff]  }
 0x563   : > { %3827 = vmatprep.mubr.bf16.mxu0 %v3446_v24  ;;  %4651 = vmatprep.subr.bf16.mxu0 %v7442_v49 }
 0x564   : > { %3828 = vmatmul.mubr.bf16.gmra.mrb[184].mxu0 %v3445_v63  ;;  %5522 = vperm.xlu1 %7139, %v9256_v54  }
 0x565   : > { %5526 = vperm.xlu0 %7138, %v9212_v61   ;;  %v7440_v61 = vld [vmem:[#allocation2 + $0x40] ss:$8 sps:$4 sm:$0xff]   ;;  %v9400_v26 = vpop.permute.xlu1 %5098 }
 0x566   : > { %v3719_v45 = vpop.f32.mrb[140].mxu0  ;;  %10634 = vst [vmem:[#allocation14_spill] sm:$0xff] %v9400_v26  ;;  %4652 = vmatpush1.bf16.msra.mxu0 %v7440_v61 }
 0x567   : > { %v3720_v60 = vadd.f32 %v3719_v45, %v9327_v51  ;;  %v3721_v46 = vpop.f32.mrb[141].mxu0  ;;  %4653 = vmatprep.subr.bf16.mxu0 %v7445_v14 }
 0x568   : > { %v3722_v47 = vadd.f32 %v3721_v46, %v9331_v58  ;;  %v3723_v37 = vpop.f32.mrb[142].mxu0  ;;  %5530 = vperm.xlu1 %7139, %v9262_v48  }
 0x569   : > { %v3724_v40 = vadd.f32 %v3723_v37, %v9327_v51  ;;  %v3725_v57 = vpop.f32.mrb[143].mxu0  ;;  %v3860_v21 = vmax.f32 %v3720_v60, 0.0  ;;  %5534 = vperm.xlu0 %7138, %v9220_v27   ;;  %v9404_v48 = vpop.permute.xlu1 %5102  ;;  %v7446_v27 = vld [vmem:[#allocation2 + $0x60] ss:$8 sps:$4 sm:$0xff]   ;;  %v7454_v37 = vld [vmem:[#allocation2 + $0x84] ss:$8 sps:$4 sm:$0xff]  }
 0x56a   : > { %v3726_v5 = vadd.f32 %v3725_v57, %v9331_v58  ;;  %v3861_v56 = vmax.f32 %v3722_v47, 0.0  ;;  %10635 = vst [vmem:[#allocation15_spill] sm:$0xff] %v9404_v48  ;;  %v9418_v60 = vpop.permute.xlu0 %5074  ;;  %v7452_v57 = vld [vmem:[#allocation2 + $0x80] ss:$8 sps:$4 sm:$0xff]  }
 0x56b   : > { %v3862_v34 = vmax.f32 %v3724_v40, 0.0  ;;  %10636 = vst [vmem:[#allocation16_spill] sm:$0xff] %v9418_v60 }
 0x56c   : > { %v3863_v12 = vmax.f32 %v3726_v5, 0.0  ;;  %v3344_v2 = vpop.f32.mrb[124].mxu1  ;;  %5538 = vperm.xlu1 %7139, %v9268_v59   ;;  %v7457_v5 = vld [vmem:[#allocation2 + $0x94] ss:$8 sps:$4 sm:$0xff]  }
 0x56d   : > { %v3918_v62 = vpack.c.bf16 %v3862_v34, %v3860_v21  ;;  %v3345_v25 = vadd.f32 %v3344_v2, %v9000_v3  ;;  %v3346_v4 = vpop.f32.mrb[125].mxu1  ;;  %5542 = vperm.xlu0 %7138, %v9230_v28   ;;  %v9409_v38 = vpop.permute.xlu1 %5106  ;;  %v7455_v21 = vld [vmem:[#allocation2 + $0x90] ss:$8 sps:$4 sm:$0xff]   ;;  %v7460_v2 = vld [vmem:[#allocation2 + $0xa4] ss:$8 sps:$4 sm:$0xff]  }
 0x56e   : > { %v3919_v11 = vpack.c.bf16 %v3863_v12, %v3861_v56  ;;  %v3347_v39 = vadd.f32 %v3346_v4, %v9004_v44  ;;  %v3348_v8 = vpop.f32.mrb[126].mxu1  ;;  %v7458_v12 = vld [vmem:[#allocation2 + $0xa0] ss:$8 sps:$4 sm:$0xff]  }
 0x56f   : > { %v3349_v15 = vadd.f32 %v3348_v8, %v9000_v3  ;;  %v3350_v36 = vpop.f32.mrb[127].mxu1  ;;  %v3413_v18 = vmax.f32 %v3345_v25, 0.0  ;;  %v7466_v8 = vld [vmem:[#allocation2 + $0xc4] ss:$8 sps:$4 sm:$0xff]  }
 0x570   : > { %v3351_v54 = vadd.f32 %v3350_v36, %v9004_v44  ;;  %4212 = vmatprep.mubr.bf16.mxu1 %v3919_v11  ;;  %v3414_v23 = vmax.f32 %v3347_v39, 0.0  ;;  %v7443_v44 = vld [vmem:[#allocation2 + $0x50] ss:$8 sps:$4 sm:$0xff]   ;;  %5546 = vperm.xlu1 %7139, %v9272_v10  }
 0x571   : > { %v3415_v50 = vmax.f32 %v3349_v15, 0.0  ;;  %4213 = vmatmul.mubr.bf16.gmra.mrb[140].mxu1 %v3918_v62  ;;  %4654 = vmatpush1.bf16.msra.mxu0 %v7443_v44  ;;  %v7449_v10 = vld [vmem:[#allocation2 + $0x70] ss:$8 sps:$4 sm:$0xff]   ;;  %v9416_v45 = vpop.permute.xlu1 %5114 }
 0x572   : > { %v3416_v53 = vmax.f32 %v3351_v54, 0.0  ;;  %4655 = vmatprep.subr.bf16.mxu0 %v7448_v17  ;;  %5550 = vperm.xlu0 %7138, %v9240_v0  }
 0x573   : > { %v3447_v3 = vpack.c.bf16 %v3415_v50, %v3413_v18 }
 0x574   : > { %v3448_v29 = vpack.c.bf16 %v3416_v53, %v3414_v23  ;;  %5554 = vperm.xlu1 %7139, %v9276_v1   ;;  %v7464_v23 = vld [vmem:[#allocation2 + $0xc0] ss:$8 sps:$4 sm:$0xff]  }
 0x575   : > { %4656 = vmatpush1.bf16.msra.mxu0 %v7446_v27  ;;  %v9420_v1 = vpop.permute.xlu1 %5122 }
 0x576   : > { %3837 = vmatprep.mubr.bf16.mxu0 %v3448_v29  ;;  %4657 = vmatprep.subr.bf16.mxu0 %v7451_v20  ;;  %v7469_v20 = vld [vmem:[#allocation2 + $0xd4] ss:$8 sps:$4 sm:$0xff]  }
 0x577   : > { %3838 = vmatmul.mubr.bf16.gmra.mrb[188].mxu0 %v3447_v3  ;;  %5558 = vperm.xlu0 %7138, %v9248_v43   ;;  %v9422_v43 = vpop.permute.xlu0 %5110 }
 0x579   : > { %v3729_v33 = vpop.f32.mrb[144].mxu0  ;;  %4658 = vmatpush1.bf16.msra.mxu0 %v7449_v10  ;;  %v9424_v34 = vpop.permute.xlu1 %5130 }
 0x57a   : > { %v3730_v59 = vadd.f32 %v3729_v33, %v9327_v51  ;;  %v3731_v63 = vpop.f32.mrb[145].mxu0  ;;  %4659 = vmatprep.subr.bf16.mxu0 %v7454_v37 }
 0x57b   : > { %v3732_v28 = vadd.f32 %v3731_v63, %v9331_v58  ;;  %v3733_v7 = vpop.f32.mrb[146].mxu0  ;;  %v9426_v56 = vpop.permute.xlu0 %5118 }
 0x57c   : > { %v3734_v24 = vadd.f32 %v3733_v7, %v9327_v51  ;;  %v3735_v32 = vpop.f32.mrb[147].mxu0  ;;  %v3864_v0 = vmax.f32 %v3730_v59, 0.0  ;;  %v7467_v59 = vld [vmem:[#allocation2 + $0xd0] ss:$8 sps:$4 sm:$0xff]   ;;  %v7472_v7 = vld [vmem:[#allocation2 + $0xe4] ss:$8 sps:$4 sm:$0xff]  }
 0x57d   : > { %v3736_v19 = vadd.f32 %v3735_v32, %v9331_v58  ;;  %v3865_v46 = vmax.f32 %v3732_v28, 0.0  ;;  %4660 = vmatpush1.bf16.msra.mxu0 %v7452_v57  ;;  %v9428_v62 = vpop.permute.xlu1 %5138 }
 0x57e   : > { %v3866_v55 = vmax.f32 %v3734_v24, 0.0  ;;  %4661 = vmatprep.subr.bf16.mxu0 %v7457_v5  ;;  %v7470_v24 = vld [vmem:[#allocation2 + $0xe0] ss:$8 sps:$4 sm:$0xff]  }
 0x57f   : > { %v3867_v42 = vmax.f32 %v3736_v19, 0.0  ;;  %v9430_v4 = vpop.permute.xlu0 %5126  ;;  %v7475_v19 = vld [vmem:[#allocation2 + $0xf4] ss:$8 sps:$4 sm:$0xff]  }
 0x580   : > { %v3920_v47 = vpack.c.bf16 %v3866_v55, %v3864_v0  ;;  %v7473_v0 = vld [vmem:[#allocation2 + $0xf0] ss:$8 sps:$4 sm:$0xff]  }
 0x581   : > { %v3921_v40 = vpack.c.bf16 %v3867_v42, %v3865_v46  ;;  %4662 = vmatpush1.bf16.msra.mxu0 %v7455_v21  ;;  %v9434_v54 = vpop.permute.xlu1 %5146 }
 0x582   : > { %4663 = vmatprep.subr.bf16.mxu0 %v7460_v2 }
 0x583   : > { %4222 = vmatprep.mubr.bf16.mxu1 %v3921_v40  ;;  %v9438_v61 = vpop.permute.xlu0 %5134 }
 0x584   : > { %4223 = vmatmul.mubr.bf16.gmra.mrb[144].mxu1 %v3920_v47 }
 0x585   : > { %4664 = vmatpush1.bf16.msra.mxu0 %v7458_v12  ;;  %v9440_v44 = vpop.permute.xlu1 %5154 }
 0x586   : > { %4665 = vmatprep.subr.bf16.mxu0 %v7463_v22 }
 0x587   : > { %v9442_v33 = vpop.permute.xlu0 %5142 }
 0x589   : > { %4666 = vmatpush1.bf16.msra.mxu0 %v7461_v35  ;;  %v9444_v63 = vpop.permute.xlu1 %5162 }
 0x58a   : > { %4667 = vmatprep.subr.bf16.mxu0 %v7466_v8 }
 0x58b   : > { %v9446_v28 = vpop.permute.xlu0 %5150 }
 0x58c   : > { %v3739_v25 = vpop.f32.mrb[148].mxu0 }
 0x58d   : > { %v3740_v11 = vadd.f32 %v3739_v25, %v9327_v51  ;;  %v3741_v39 = vpop.f32.mrb[149].mxu0  ;;  %4668 = vmatpush1.bf16.msra.mxu0 %v7464_v23  ;;  %v9448_v32 = vpop.permute.xlu1 %5170 }
 0x58e   : > { %v3742_v15 = vadd.f32 %v3741_v39, %v9331_v58  ;;  %v3743_v36 = vpop.f32.mrb[150].mxu0  ;;  %4669 = vmatprep.subr.bf16.mxu0 %v7469_v20 }
 0x58f   : > { %v3744_v49 = vadd.f32 %v3743_v36, %v9327_v51  ;;  %v3745_v18 = vpop.f32.mrb[151].mxu0  ;;  %v3868_v53 = vmax.f32 %v3740_v11, 0.0  ;;  %v9450_v10 = vpop.permute.xlu0 %5158 }
 0x590   : > { %v3746_v50 = vadd.f32 %v3745_v18, %v9331_v58  ;;  %v3869_v14 = vmax.f32 %v3742_v15, 0.0 }
 0x591   : > { %v3870_v3 = vmax.f32 %v3744_v49, 0.0  ;;  %4670 = vmatpush1.bf16.msra.mxu0 %v7467_v59  ;;  %v9452_v55 = vpop.permute.xlu1 %5178 }
 0x592   : > { %v3871_v29 = vmax.f32 %v3746_v50, 0.0  ;;  %4671 = vmatprep.subr.bf16.mxu0 %v7472_v7 }
 0x593   : > { %v3922_v17 = vpack.c.bf16 %v3870_v3, %v3868_v53  ;;  %v9455_v37 = vpop.permute.xlu0 %5166 }
 0x594   : > { %v3923_v27 = vpack.c.bf16 %v3871_v29, %v3869_v14 }
 0x595   : > { %4672 = vmatpush1.bf16.msra.mxu0 %v7470_v24  ;;  %v9459_v12 = vpop.permute.xlu1 %5186 }
 0x596   : > { %4232 = vmatprep.mubr.bf16.mxu1 %v3923_v27  ;;  %4673 = vmatprep.subr.bf16.mxu0 %v7475_v19 }
 0x597   : > { %4233 = vmatmul.mubr.bf16.gmra.mrb[148].mxu1 %v3922_v17  ;;  %v9462_v35 = vpop.permute.xlu0 %5174 }
 0x599   : > { %4674 = vmatpush1.bf16.msra.mxu0 %v7473_v0  ;;  %v9464_v15 = vpop.permute.xlu1 %5194 }
 0x59b   : > { %v9466_v49 = vpop.permute.xlu0 %5182 }
 0x59d   : > { %v9468_v18 = vpop.permute.xlu1 %5238 }
 0x59e   : > { %10637 = vst [vmem:[#allocation17_spill] sm:$0xff] %v9468_v18 }
 0x59f   : > { %v3749_v46 = vpop.f32.mrb[152].mxu0  ;;  %v9470_v50 = vpop.permute.xlu0 %5190 }
 0x5a0   : > { %v3750_v42 = vadd.f32 %v3749_v46, %v9327_v51  ;;  %v3751_v47 = vpop.f32.mrb[153].mxu0 }
 0x5a1   : > { %v3752_v40 = vadd.f32 %v3751_v47, %v9331_v58  ;;  %v3753_v57 = vpop.f32.mrb[154].mxu0  ;;  %v9472_v23 = vpop.permute.xlu1 %5246 }
 0x5a2   : > { %v3754_v5 = vadd.f32 %v3753_v57, %v9327_v51  ;;  %v3755_v21 = vpop.f32.mrb[155].mxu0  ;;  %v3872_v22 = vmax.f32 %v3750_v42, 0.0  ;;  %10638 = vst [vmem:[#allocation18_spill] sm:$0xff] %v9472_v23 }
 0x5a3   : > { %v3756_v2 = vadd.f32 %v3755_v21, %v9331_v58  ;;  %v3873_v11 = vmax.f32 %v3752_v40, 0.0  ;;  %v9474_v53 = vpop.permute.xlu0 %5198 }
 0x5a4   : > { %v3874_v25 = vmax.f32 %v3754_v5, 0.0 }
 0x5a5   : > { %v3875_v39 = vmax.f32 %v3756_v2, 0.0  ;;  %v9476_v14 = vpop.permute.xlu1 %5250 }
 0x5a6   : > { %v3924_v8 = vpack.c.bf16 %v3874_v25, %v3872_v22  ;;  %10639 = vst [vmem:[#allocation19_spill] sm:$0xff] %v9476_v14 }
 0x5a7   : > { %v3925_v36 = vpack.c.bf16 %v3875_v39, %v3873_v11  ;;  %v9480_v59 = vpop.permute.xlu0 %5242 }
 0x5a8   : > { %10640 = vst [vmem:[#allocation20_spill] sm:$0xff] %v9480_v59 }
 0x5a9   : > { %4242 = vmatprep.mubr.bf16.mxu1 %v3925_v36  ;;  %v9484_v0 = vpop.permute.xlu1 %5258 }
 0x5aa   : > { %4243 = vmatmul.mubr.bf16.gmra.mrb[152].mxu1 %v3924_v8  ;;  %10641 = vst [vmem:[#allocation21_spill] sm:$0xff] %v9484_v0 }
 0x5ab   : > { %v9486_v57 = vpop.permute.xlu0 %5254 }
 0x5ac   : > { %10642 = vst [vmem:[#allocation22_spill] sm:$0xff] %v9486_v57 }
 0x5ad   : > { %v9488_v2 = vpop.permute.xlu1 %5266 }
 0x5ae   : > { %10643 = vst [vmem:[#allocation23_spill] sm:$0xff] %v9488_v2 }
 0x5af   : > { %v9490_v22 = vpop.permute.xlu0 %5262 }
 0x5b0   : > { %10644 = vst [vmem:[#allocation24_spill] sm:$0xff] %v9490_v22 }
 0x5b1   : > { %v9492_v25 = vpop.permute.xlu1 %5274 }
 0x5b2   : > { %v3759_v3 = vpop.f32.mrb[156].mxu0 }
 0x5b3   : > { %v3760_v29 = vadd.f32 %v3759_v3, %v9327_v51  ;;  %v3761_v17 = vpop.f32.mrb[157].mxu0  ;;  %v9494_v11 = vpop.permute.xlu0 %5270 }
 0x5b4   : > { %v3762_v27 = vadd.f32 %v3761_v17, %v9331_v58  ;;  %v3763_v20 = vpop.f32.mrb[158].mxu0 }
 0x5b5   : > { %v3764_v7 = vadd.f32 %v3763_v20, %v9327_v51  ;;  %v3765_v24 = vpop.f32.mrb[159].mxu0  ;;  %v3876_v46 = vmax.f32 %v3760_v29, 0.0  ;;  %v9496_v39 = vpop.permute.xlu1 %5282 }
 0x5b6   : > { %v3766_v19 = vadd.f32 %v3765_v24, %v9331_v58  ;;  %v3877_v47 = vmax.f32 %v3762_v27, 0.0 }
 0x5b7   : > { %v3878_v42 = vmax.f32 %v3764_v7, 0.0  ;;  %v9498_v8 = vpop.permute.xlu0 %5278 }
 0x5b8   : > { %v3879_v40 = vmax.f32 %v3766_v19, 0.0 }
 0x5b9   : > { %v3926_v5 = vpack.c.bf16 %v3878_v42, %v3876_v46  ;;  %v9501_v17 = vpop.permute.xlu1 %5290 }
 0x5ba   : > { %v3927_v21 = vpack.c.bf16 %v3879_v40, %v3877_v47 }
 0x5bb   : > { %v9505_v19 = vpop.permute.xlu0 %5286 }
 0x5bc   : > { %4252 = vmatprep.mubr.bf16.mxu1 %v3927_v21 }
 0x5bd   : > { %4253 = vmatmul.mubr.bf16.gmra.mrb[156].mxu1 %v3926_v5  ;;  %v9508_v40 = vpop.permute.xlu1 %5298 }
 0x5bf   : > { %v9510_v2 = vpop.permute.xlu0 %5294 }
 0x5c1   : > { %v9512_v22 = vpop.permute.xlu1 %5306 }
 0x5c5   : > { %v3769_v36 = vpop.f32.mrb[160].mxu0 }
 0x5c6   : > { %v3770_v3 = vadd.f32 %v3769_v36, %v9327_v51  ;;  %v3771_v29 = vpop.f32.mrb[161].mxu0 }
 0x5c7   : > { %v3772_v27 = vadd.f32 %v3771_v29, %v9331_v58  ;;  %v3773_v20 = vpop.f32.mrb[162].mxu0  ;;  %v9514_v29 = vpop.permute.xlu0 %5302 }
 0x5c8   : > { %v3774_v7 = vadd.f32 %v3773_v20, %v9327_v51  ;;  %v3775_v24 = vpop.f32.mrb[163].mxu0  ;;  %v3880_v42 = vmax.f32 %v3770_v3, 0.0  ;;  %v9516_v20 = vpop.permute.xlu1 %5314 }
 0x5c9   : > { %v3776_v46 = vadd.f32 %v3775_v24, %v9331_v58  ;;  %v3881_v5 = vmax.f32 %v3772_v27, 0.0 }
 0x5ca   : > { %v3882_v47 = vmax.f32 %v3774_v7, 0.0 }
 0x5cb   : > { %v3883_v21 = vmax.f32 %v3776_v46, 0.0  ;;  %v9518_v26 = vpop.permute.xlu0 %5310 }
 0x5cc   : > { %v3928_v36 = vpack.c.bf16 %v3882_v47, %v3880_v42  ;;  %v9520_v3 = vpop.permute.xlu1 %5322 }
 0x5cd   : > { %v3929_v48 = vpack.c.bf16 %v3883_v21, %v3881_v5 }
 0x5cf   : > { %4262 = vmatprep.mubr.bf16.mxu1 %v3929_v48  ;;  %v9522_v24 = vpop.permute.xlu0 %5318 }
 0x5d0   : > { %4263 = vmatmul.mubr.bf16.gmra.mrb[160].mxu1 %v3928_v36  ;;  %v9526_v5 = vpop.permute.xlu1 %5330 }
 0x5d3   : > { %v9530_v0 = vpop.permute.xlu0 %5326 }
 0x5d4   : > { %v9532_v30 = vpop.permute.xlu1 %5338 }
 0x5d5   : > { %10645 = vst [vmem:[#allocation25_spill] sm:$0xff] %v9532_v30 }
 0x5d7   : > { %v9534_v41 = vpop.permute.xlu0 %5334 }
 0x5d8   : > { %v3779_v7 = vpop.f32.mrb[164].mxu0  ;;  %10646 = vst [vmem:[#allocation26_spill] sm:$0xff] %v9534_v41 }
 0x5d9   : > { %v3780_v27 = vadd.f32 %v3779_v7, %v9327_v51  ;;  %v3781_v46 = vpop.f32.mrb[165].mxu0 }
 0x5da   : > { %v3782_v42 = vadd.f32 %v3781_v46, %v9331_v58  ;;  %v3783_v47 = vpop.f32.mrb[166].mxu0  ;;  %v9536_v46 = vpop.permute.xlu1 %5346 }
 0x5db   : > { %v3784_v48 = vadd.f32 %v3783_v47, %v9327_v51  ;;  %v3785_v21 = vpop.f32.mrb[167].mxu0  ;;  %v3884_v13 = vmax.f32 %v3780_v27, 0.0  ;;  %10647 = vst [vmem:[#allocation27_spill] sm:$0xff] %v9536_v46  ;;  %v9538_v47 = vpop.permute.xlu0 %5342 }
 0x5dc   : > { %v3786_v36 = vadd.f32 %v3785_v21, %v9331_v58  ;;  %v3885_v52 = vmax.f32 %v3782_v42, 0.0  ;;  %10648 = vst [vmem:[#allocation28_spill] sm:$0xff] %v9538_v47 }
 0x5dd   : > { %v3886_v57 = vmax.f32 %v3784_v48, 0.0 }
 0x5de   : > { %v3887_v14 = vmax.f32 %v3786_v36, 0.0  ;;  %v9540_v59 = vpop.permute.xlu1 %5354 }
 0x5df   : > { %v3930_v7 = vpack.c.bf16 %v3886_v57, %v3884_v13  ;;  %10649 = vst [vmem:[#allocation29_spill] sm:$0xff] %v9540_v59  ;;  %v9542_v21 = vpop.permute.xlu0 %5350 }
 0x5e0   : > { %v3931_v23 = vpack.c.bf16 %v3887_v14, %v3885_v52  ;;  %10650 = vst [vmem:[#allocation30_spill] sm:$0xff] %v9542_v21 }
 0x5e2   : > { %4272 = vmatprep.mubr.bf16.mxu1 %v3931_v23  ;;  %v9544_v27 = vpop.permute.xlu1 %5362 }
 0x5e3   : > { %4273 = vmatmul.mubr.bf16.gmra.mrb[164].mxu1 %v3930_v7  ;;  %10651 = vst [vmem:[#allocation31_spill] sm:$0xff] %v9544_v27  ;;  %v9547_v13 = vpop.permute.xlu0 %5358 }
 0x5e4   : > { %10652 = vst [vmem:[#allocation32_spill] sm:$0xff] %v9547_v13 }
 0x5e6   : > { %v9551_v7 = vpop.permute.xlu1 %5438 }
 0x5e7   : > { %10653 = vst [vmem:[#allocation33_spill] sm:$0xff] %v9551_v7  ;;  %v9554_v21 = vpop.permute.xlu0 %5434 }
 0x5e8   : > { %10654 = vst [vmem:[#allocation34_spill] sm:$0xff] %v9554_v21 }
 0x5eb   : > { %v3789_v42 = vpop.f32.mrb[168].mxu0 }
 0x5ec   : > { %v3790_v48 = vadd.f32 %v3789_v42, %v9327_v51  ;;  %v3791_v36 = vpop.f32.mrb[169].mxu0  ;;  %v5008_v42 = vld [vmem:[%s10611_s8] sm:$0x7] }
 0x5ed   : > { %v3792_v52 = vadd.f32 %v3791_v36, %v9331_v58  ;;  %v3793_v23 = vpop.f32.mrb[170].mxu0  ;;  %v9559_v36 = vpop.permute.xlu1 %5442  ;;  %v9564_v7 = vrot.slane %v5008_v42, %v8003_v9 }
 0x5ee   : > { %v3794_v14 = vadd.f32 %v3793_v23, %v9327_v51  ;;  %v3795_v57 = vpop.f32.mrb[171].mxu0  ;;  %v3888_v18 = vmax.f32 %v3790_v48, 0.0  ;;  %10655 = vst [vmem:[#allocation35_spill] sm:$0xff] %v9559_v36  ;;  %v9561_v23 = vpop.permute.xlu0 %5446  ;;  %v9567_v48 = vrot.slane %v5008_v42, %v7997_v6 }
 0x5ef   : > { %v3796_v31 = vadd.f32 %v3795_v57, %v9331_v58  ;;  %v3889_v27 = vmax.f32 %v3792_v52, 0.0  ;;  %10656 = vst [vmem:[#allocation36_spill] sm:$0xff] %v9561_v23 }
 0x5f0   : > { %v3890_v60 = vmax.f32 %v3794_v14, 0.0 }
 0x5f1   : > { %v3891_v59 = vmax.f32 %v3796_v31, 0.0  ;;  %v9569_v52 = vpop.permute.xlu1 %5450 }
 0x5f2   : > { %v3932_v13 = vpack.c.bf16 %v3890_v60, %v3888_v18  ;;  %10657 = vst [vmem:[#allocation37_spill] sm:$0xff] %v9569_v52  ;;  %v9571_v31 = vpop.permute.xlu0 %5454  ;;  %v5213_v60 = vmul.f32 %v9564_v7, %v9409_v38  ;;  %v5377_v18 = vmul.f32 %v9567_v48, %v9494_v11  ;;  %v5215_v38 = vmul.f32 %v9564_v7, %v9416_v45 }
 0x5f3   : > { %v3933_v46 = vpack.c.bf16 %v3891_v59, %v3889_v27  ;;  %10658 = vst [vmem:[#allocation38_spill] sm:$0xff] %v9571_v31  ;;  %v9580_v27 = vrot.slane %v5008_v42, %v8006_v16  ;;  %v5216_v11 = vmul.f32 %v9564_v7, %v9426_v56  ;;  %v5217_v45 = vmul.f32 %v9564_v7, %v9420_v1 }
 0x5f4   : > { %v5409_v57 = vadd.f32 %v5377_v18, %v5213_v60  ;;  %v5381_v56 = vmul.f32 %v9567_v48, %v9505_v19  ;;  %v5382_v1 = vmul.f32 %v9567_v48, %v9501_v17 }
 0x5f5   : > { %4282 = vmatprep.mubr.bf16.mxu1 %v3933_v46  ;;  %v9577_v59 = vpop.permute.xlu1 %5458  ;;  %v5214_v46 = vmul.f32 %v9564_v7, %v9422_v43  ;;  %v5380_v43 = vmul.f32 %v9567_v48, %v9496_v39  ;;  %v5219_v39 = vmul.f32 %v9564_v7, %v9424_v34 }
 0x5f6   : > { %4283 = vmatmul.mubr.bf16.gmra.mrb[168].mxu1 %v3932_v13  ;;  %10659 = vst [vmem:[#allocation39_spill] sm:$0xff] %v9577_v59  ;;  %v5378_v13 = vmul.f32 %v9567_v48, %v9492_v25  ;;  %v9586_v14 = vpop.permute.xlu0 %5462  ;;  %v5379_v25 = vmul.f32 %v9567_v48, %v9498_v8  ;;  %v5413_v34 = vadd.f32 %v5381_v56, %v5217_v45 }
 0x5f7   : > { %10660 = vst [vmem:[#allocation40_spill] sm:$0xff] %v9586_v14 }
 0x5f8   : > { %v5410_v16 = vadd.f32 %v5378_v13, %v5214_v46  ;;  %v5411_v47 = vadd.f32 %v5379_v25, %v5215_v38 }
 0x5f9   : > { %v5467_v59 = vpop.permute.xlu1 %5466 }
 0x5fa   : > { %v5573_v14 = vmul.f32 %v9580_v27, %v5467_v59 }
 0x5fc   : > { %v9606_v8 = vadd.f32 %v5573_v14, %v5409_v57 }
 0x5fd   : > { %v5475_v19 = vpop.permute.xlu1 %5474 }
 0x5fe   : > { %v3799_v31 = vpop.f32.mrb[172].mxu0  ;;  %10661 = vst [vmem:[#allocation41_spill] sm:$0xff] %v9606_v8  ;;  %v5575_v8 = vmul.f32 %v9580_v27, %v5475_v19 }
 0x5ff   : > { %v3800_v42 = vadd.f32 %v3799_v31, %v9327_v51  ;;  %v3801_v52 = vpop.f32.mrb[173].mxu0  ;;  %v5471_v31 = vpop.permute.xlu0 %5470 }
 0x600   : > { %v3802_v60 = vadd.f32 %v3801_v52, %v9331_v58  ;;  %v3803_v18 = vpop.f32.mrb[174].mxu0  ;;  %v5218_v52 = vmul.f32 %v9564_v7, %v9430_v4  ;;  %v5574_v46 = vmul.f32 %v9580_v27, %v5471_v31  ;;  %v5383_v4 = vmul.f32 %v9567_v48, %v9510_v2 }
 0x601   : > { %v3804_v23 = vadd.f32 %v3803_v18, %v9327_v51  ;;  %v3805_v36 = vpop.f32.mrb[175].mxu0  ;;  %v3892_v13 = vmax.f32 %v3800_v42, 0.0  ;;  %v5412_v18 = vadd.f32 %v5380_v43, %v5216_v11  ;;  %v5483_v38 = vpop.permute.xlu1 %5482  ;;  %v9627_v42 = vadd.f32 %v5575_v8, %v5411_v47 }
 0x602   : > { %v3806_v59 = vadd.f32 %v3805_v36, %v9331_v58  ;;  %v3893_v41 = vmax.f32 %v3802_v60, 0.0  ;;  %v9614_v14 = vadd.f32 %v5574_v46, %v5410_v16  ;;  %v5414_v11 = vadd.f32 %v5382_v1, %v5218_v52  ;;  %v6844_v16 = vld [vmem:[%s10607_s4 + $0xa] sm:$0x3] }
 0x603   : > { %v3894_v21 = vmax.f32 %v3804_v23, 0.0  ;;  %v5479_v57 = vpop.permute.xlu0 %5478  ;;  %v5220_v23 = vmul.f32 %v9564_v7, %v9438_v61  ;;  %v5577_v43 = vmul.f32 %v9580_v27, %v5483_v38  ;;  %v5225_v61 = vmul.f32 %v9564_v7, %v9440_v44 }
 0x604   : > { %v3895_v30 = vmax.f32 %v3806_v59, 0.0  ;;  %v5576_v17 = vmul.f32 %v9580_v27, %v5479_v57  ;;  %v5415_v47 = vadd.f32 %v5383_v4, %v5219_v39  ;;  %v5385_v60 = vmul.f32 %v9567_v48, %v9514_v29 }
 0x605   : > { %v3934_v36 = vpack.c.bf16 %v3894_v21, %v3892_v13  ;;  %v5384_v21 = vmul.f32 %v9567_v48, %v9508_v40  ;;  %v4836_v40 = vld [vmem:[%s10613_s10] sm:$0x3]  ;;  %v9643_v45 = vadd.f32 %v5577_v43, %v5413_v34  ;;  %v9649_v56 = vrot.slane %v6844_v16, %v8003_v9  ;;  %v5491_v39 = vpop.permute.xlu1 %5490 }
 0x606   : > { %v3935_v31 = vpack.c.bf16 %v3895_v30, %v3893_v41  ;;  %v9629_v2 = vadd.f32 %v5576_v17, %v5412_v18  ;;  %v5221_v41 = vmul.f32 %v9564_v7, %v9428_v62  ;;  %v5223_v30 = vmul.f32 %v9564_v7, %v9434_v54 }
 0x607   : > { %v5487_v25 = vpop.permute.xlu0 %5486  ;;  %v5222_v54 = vmul.f32 %v9564_v7, %v9442_v33  ;;  %v9652_v44 = vrot.slane %v6844_v16, %v7997_v6  ;;  %v5386_v8 = vmul.f32 %v9567_v48, %v9512_v22  ;;  %v5227_v29 = vmul.f32 %v9564_v7, %v9444_v63 }
 0x608   : > { %4292 = vmatprep.mubr.bf16.mxu1 %v3935_v31  ;;  %v5578_v62 = vmul.f32 %v9580_v27, %v5487_v25  ;;  %v5416_v59 = vadd.f32 %v5384_v21, %v5220_v23  ;;  %v5579_v1 = vmul.f32 %v9580_v27, %v5491_v39  ;;  %v9662_v33 = vrot.slane %v4836_v40, %v8003_v9 }
 0x609   : > { %4293 = vmatmul.mubr.bf16.gmra.mrb[172].mxu1 %v3934_v36  ;;  %v5224_v46 = vmul.f32 %v9564_v7, %v9446_v28  ;;  %v9667_v19 = vrot.slane %v4836_v40, %v7997_v6  ;;  %v9671_v22 = vmul.f32 %v9564_v7, %v9448_v32  ;;  %v5226_v63 = vmul.f32 %v9564_v7, %v9450_v10  ;;  %v5499_v17 = vpop.permute.xlu1 %5498 }
 0x60a   : > { %v9658_v52 = vadd.f32 %v5578_v62, %v5414_v11  ;;  %v5417_v18 = vadd.f32 %v5385_v60, %v5221_v41  ;;  %v9675_v34 = vadd.f32 %v5579_v1, %v5415_v47  ;;  %v9680_v36 = vmul.f32 %v9564_v7, %v9452_v55 }
 0x60b   : > { %v5495_v13 = vpop.permute.xlu0 %5494  ;;  %v5228_v28 = vmul.f32 %v9564_v7, %v9455_v37  ;;  %v9686_v32 = vmul.f32 %v9564_v7, %v9459_v12  ;;  %v5418_v4 = vadd.f32 %v5386_v8, %v5222_v54  ;;  %v5388_v10 = vmul.f32 %v9567_v48, %v9516_v20 }
 0x60c   : > { %v5580_v57 = vmul.f32 %v9580_v27, %v5495_v13  ;;  %v5387_v31 = vmul.f32 %v9567_v48, %v9518_v26  ;;  %v5581_v55 = vmul.f32 %v9580_v27, %v5499_v17  ;;  %v9697_v11 = vmul.f32 %v9564_v7, %v9462_v35 }
 0x60d   : > { %v5390_v37 = vmul.f32 %v9567_v48, %v9520_v3  ;;  %v5389_v12 = vmul.f32 %v9567_v48, %v9522_v24  ;;  %v5392_v20 = vmul.f32 %v9567_v48, %v9526_v5  ;;  %v9707_v26 = vmul.f32 %v9564_v7, %v9464_v15 }
 0x60e   : > { %v9692_v23 = vadd.f32 %v5580_v57, %v5416_v59  ;;  %v5391_v21 = vmul.f32 %v9567_v48, %v9530_v0  ;;  %v9711_v35 = vadd.f32 %v5581_v55, %v5417_v18  ;;  %v9717_v24 = vmul.f32 %v9564_v7, %v9466_v49  ;;  %v5507_v0 = vpop.permute.xlu1 %5506 }
 0x60f   : > { %v5503_v38 = vpop.permute.xlu0 %5502  ;;  %v9721_v5 = vmul.f32 %v9564_v7, %v9470_v50  ;;  %v9725_v15 = vmul.f32 %v9564_v7, %v9474_v53  ;;  %v5420_v47 = vadd.f32 %v5388_v10, %v5224_v46  ;;  %v5419_v60 = vadd.f32 %v5387_v31, %v5223_v30  ;;  %v10662_v53 = vld [vmem:[#allocation25_spill] sm:$0xff] }
 0x610   : > { %v5582_v43 = vmul.f32 %v9580_v27, %v5503_v38  ;;  %v5422_v8 = vadd.f32 %v5390_v37, %v5226_v63  ;;  %v5421_v39 = vadd.f32 %v5389_v12, %v5225_v61  ;;  %v5424_v59 = vadd.f32 %v5392_v20, %v5228_v28 }
 0x611   : > { %v3809_v16 = vpop.f32.mrb[176].mxu0  ;;  %v5423_v13 = vadd.f32 %v5391_v21, %v5227_v29  ;;  %v5394_v18 = vmul.f32 %v9567_v48, %v10662_v53  ;;  %v5583_v57 = vmul.f32 %v9580_v27, %v5507_v0 }
 0x612   : > { %v3810_v3 = vadd.f32 %v3809_v16, %v9327_v51  ;;  %v3811_v41 = vpop.f32.mrb[177].mxu0  ;;  %v9728_v62 = vadd.f32 %v5582_v43, %v5418_v4  ;;  %v10663_v4 = vld [vmem:[#allocation26_spill] sm:$0xff]  ;;  %v5515_v63 = vpop.permute.xlu1 %5514 }
 0x613   : > { %v3812_v25 = vadd.f32 %v3811_v41, %v9331_v58  ;;  %v3813_v40 = vpop.f32.mrb[178].mxu0  ;;  %v5511_v50 = vpop.permute.xlu0 %5510  ;;  %v5393_v10 = vmul.f32 %v9567_v48, %v10663_v4  ;;  %v9739_v29 = vadd.f32 %v5583_v57, %v5419_v60  ;;  %v5585_v21 = vmul.f32 %v9580_v27, %v5515_v63 }
 0x614   : > { %v3814_v54 = vadd.f32 %v3813_v40, %v9327_v51  ;;  %v3815_v49 = vpop.f32.mrb[179].mxu0  ;;  %v3896_v17 = vmax.f32 %v3810_v3, 0.0  ;;  %v5584_v31 = vmul.f32 %v9580_v27, %v5511_v50 }
 0x615   : > { %v3816_v1 = vadd.f32 %v3815_v49, %v9331_v58  ;;  %v4184_v30 = vpop.f32.mrb[128].mxu1  ;;  %v3897_v61 = vmax.f32 %v3812_v25, 0.0  ;;  %v10664_v49 = vld [vmem:[#allocation28_spill] sm:$0xff]  ;;  %v5425_v63 = vadd.f32 %v5393_v10, %v9671_v22 }
 0x616   : > { %v3898_v46 = vmax.f32 %v3814_v54, 0.0  ;;  %v4185_v55 = vadd.f32 %v4184_v30, %v9649_v56  ;;  %v4186_v37 = vpop.f32.mrb[129].mxu1  ;;  %v9742_v16 = vadd.f32 %v5584_v31, %v5420_v47  ;;  %v5395_v50 = vmul.f32 %v9567_v48, %v10664_v49  ;;  %v5523_v47 = vpop.permute.xlu1 %5522 }
 0x617   : > { %v3899_v28 = vmax.f32 %v3816_v1, 0.0  ;;  %v4187_v20 = vadd.f32 %v4186_v37, %v9652_v44  ;;  %v4188_v38 = vpop.f32.mrb[130].mxu1  ;;  %v5519_v43 = vpop.permute.xlu0 %5518  ;;  %v9750_v1 = vadd.f32 %v5585_v21, %v5421_v39  ;;  %v5426_v31 = vadd.f32 %v5394_v18, %v9697_v11 }
 0x618   : > { %v3936_v12 = vpack.c.bf16 %v3898_v46, %v3896_v17  ;;  %v4343_v41 = vmax.f32 %v4185_v55, 0.0  ;;  %v4189_v0 = vadd.f32 %v4188_v38, %v9649_v56  ;;  %v4190_v25 = vpop.f32.mrb[131].mxu1  ;;  %v5586_v40 = vmul.f32 %v9580_v27, %v5519_v43  ;;  %v10665_v43 = vld [vmem:[#allocation27_spill] sm:$0xff] }
 0x619   : > { %v3937_v3 = vpack.c.bf16 %v3899_v28, %v3897_v61  ;;  %v4344_v54 = vmax.f32 %v4187_v20, 0.0  ;;  %v4191_v60 = vadd.f32 %v4190_v25, %v9652_v44  ;;  %v5587_v46 = vmul.f32 %v9580_v27, %v5523_v47 }
 0x61a   : > { %v4848_v53 = vmul.f32 %v9662_v33, %v4343_v41  ;;  %v4345_v57 = vmax.f32 %v4189_v0, 0.0  ;;  %v9753_v17 = vadd.f32 %v5586_v40, %v5422_v8  ;;  %v5427_v18 = vadd.f32 %v5395_v50, %v9680_v36  ;;  %v10666_v40 = vld [vmem:[#allocation29_spill] sm:$0xff] }
 0x61b   : > { %4302 = vmatprep.mubr.bf16.mxu1 %v3937_v3  ;;  %v4849_v30 = vmul.f32 %v9667_v19, %v4344_v54  ;;  %v4346_v4 = vmax.f32 %v4191_v60, 0.0  ;;  %v5527_v61 = vpop.permute.xlu0 %5526  ;;  %v9760_v55 = vadd.f32 %v5587_v46, %v5423_v13  ;;  %v5531_v3 = vpop.permute.xlu1 %5530 }
 0x61c   : > { %4303 = vmatmul.mubr.bf16.gmra.mrb[176].mxu1 %v3936_v12  ;;  %v4407_v39 = vpack.c.bf16 %v4345_v57, %v4343_v41  ;;  %v4850_v28 = vmul.f32 %v9662_v33, %v4345_v57  ;;  %v5588_v37 = vmul.f32 %v9580_v27, %v5527_v61  ;;  %v5396_v12 = vmul.f32 %v9567_v48, %v10665_v43  ;;  %v10668_v43 = vld [vmem:[#allocation32_spill] sm:$0xff] }
 0x61d   : > { %v4408_v8 = vpack.c.bf16 %v4346_v4, %v4344_v54  ;;  %v4851_v20 = vmul.f32 %v9667_v19, %v4346_v4  ;;  %v4912_v21 = vadd.f32 %v4849_v30, %v4848_v53  ;;  %v5589_v13 = vmul.f32 %v9580_v27, %v5531_v3  ;;  %v10667_v30 = vld [vmem:[#allocation30_spill] sm:$0xff] }
 0x61e   : > { %v4194_v38 = vpop.f32.mrb[132].mxu1  ;;  %v9768_v10 = vadd.f32 %v5588_v37, %v5424_v59  ;;  %v5398_v54 = vmul.f32 %v9567_v48, %v10666_v40  ;;  %v5428_v46 = vadd.f32 %v5396_v12, %v9717_v24  ;;  %v5397_v4 = vmul.f32 %v9567_v48, %v10667_v30 }
 0x61f   : > { %v4195_v11 = vadd.f32 %v4194_v38, %v9649_v56  ;;  %v4196_v22 = vpop.f32.mrb[133].mxu1  ;;  %4675 = vmatprep.mubr.bf16.mxu0 %v4408_v8  ;;  %4913 = vadd.xlane.f32.xlu1 %v4912_v21  ;;  %v4915_v25 = vadd.f32 %v4851_v20, %v4850_v28  ;;  %v5535_v60 = vpop.permute.xlu0 %5534  ;;  %v9775_v36 = vadd.f32 %v5589_v13, %v5425_v63 }
 0x620   : > { %v4197_v41 = vadd.f32 %v4196_v22, %v9652_v44  ;;  %v4198_v0 = vpop.f32.mrb[134].mxu1  ;;  %4676 = vmatmul.mubr.bf16.vlgmr.msra.gmra.mrb[192].mxu0 %v4407_v39  ;;  %v5590_v59 = vmul.f32 %v9580_v27, %v5535_v60  ;;  %v5539_v61 = vpop.permute.xlu1 %5538  ;;  %v5430_v21 = vadd.f32 %v5398_v54, %v9721_v5  ;;  %v5399_v24 = vmul.f32 %v9567_v48, %v10668_v43 }
 0x621   : > { %v4347_v49 = vmax.f32 %v4195_v11, 0.0  ;;  %v4199_v47 = vadd.f32 %v4198_v0, %v9649_v56  ;;  %v4200_v53 = vpop.f32.mrb[135].mxu1  ;;  %4916 = vadd.xlane.f32.xlu0 %v4915_v25  ;;  %v5591_v63 = vmul.f32 %v9580_v27, %v5539_v61 }
 0x622   : > { %v4348_v50 = vmax.f32 %v4197_v41, 0.0  ;;  %v4201_v57 = vadd.f32 %v4200_v53, %v9652_v44  ;;  %v9783_v8 = vadd.f32 %v5590_v59, %v5426_v31  ;;  %v10669_v53 = vld [vmem:[#allocation31_spill] sm:$0xff]  ;;  %v5431_v30 = vadd.f32 %v5399_v24, %v9707_v26 }
 0x623   : > { %v4852_v28 = vmul.f32 %v9662_v33, %v4347_v49  ;;  %v4349_v37 = vmax.f32 %v4199_v47, 0.0  ;;  %v5543_v12 = vpop.permute.xlu0 %5542  ;;  %v9792_v31 = vadd.f32 %v5591_v63, %v5427_v18  ;;  %v5400_v59 = vmul.f32 %v9567_v48, %v10669_v53 }
 0x624   : > { %v4853_v39 = vmul.f32 %v9667_v19, %v4348_v50  ;;  %v4350_v20 = vmax.f32 %v4201_v57, 0.0  ;;  %v3819_v38 = vpop.f32.mrb[180].mxu0  ;;  %v5547_v5 = vpop.permute.xlu1 %5546  ;;  %v5592_v57 = vmul.f32 %v9580_v27, %v5543_v12 }
 0x625   : > { %v4409_v3 = vpack.c.bf16 %v4349_v37, %v4347_v49  ;;  %v4854_v11 = vmul.f32 %v9662_v33, %v4349_v37  ;;  %v3820_v22 = vadd.f32 %v3819_v38, %v9327_v51  ;;  %v3821_v13 = vpop.f32.mrb[181].mxu0  ;;  %v5429_v49 = vadd.f32 %v5397_v4, %v9686_v32 }
 0x626   : > { %v4410_v41 = vpack.c.bf16 %v4350_v20, %v4348_v50  ;;  %v4855_v0 = vmul.f32 %v9667_v19, %v4350_v20  ;;  %v3822_v25 = vadd.f32 %v3821_v13, %v9331_v58  ;;  %v3823_v40 = vpop.f32.mrb[182].mxu0  ;;  %v4918_v60 = vadd.f32 %v4853_v39, %v4852_v28 }
 0x627   : > { %v3824_v54 = vadd.f32 %v3823_v40, %v9327_v51  ;;  %v3825_v47 = vpop.f32.mrb[183].mxu0  ;;  %v5551_v61 = vpop.permute.xlu0 %5550  ;;  %v3900_v28 = vmax.f32 %v3820_v22, 0.0  ;;  %v9803_v63 = vadd.f32 %v5592_v57, %v5428_v46  ;;  %v5593_v32 = vmul.f32 %v9580_v27, %v5547_v5 }
 0x628   : > { %v3826_v18 = vadd.f32 %v3825_v47, %v9331_v58  ;;  %4919 = vadd.xlane.f32.xlu0 %v4918_v60  ;;  %4685 = vmatprep.mubr.bf16.mxu0 %v4410_v41  ;;  %v4921_v50 = vadd.f32 %v4855_v0, %v4854_v11  ;;  %v3901_v4 = vmax.f32 %v3822_v25, 0.0  ;;  %v5594_v20 = vmul.f32 %v9580_v27, %v5551_v61  ;;  %v5555_v38 = vpop.permute.xlu1 %5554 }
 0x629   : > { %v3902_v37 = vmax.f32 %v3824_v54, 0.0  ;;  %4686 = vmatmul.mubr.bf16.gmra.mrb[196].mxu0 %v4409_v3  ;;  %v5432_v12 = vadd.f32 %v5400_v59, %v9725_v15  ;;  %v9808_v11 = vadd.f32 %v5593_v32, %v5429_v49  ;;  %v5595_v26 = vmul.f32 %v9580_v27, %v5555_v38 }
 0x62a   : > { %v3903_v39 = vmax.f32 %v3826_v18, 0.0  ;;  %4922 = vadd.xlane.f32.xlu1 %v4921_v50  ;;  %v9811_v22 = vadd.f32 %v5594_v20, %v5430_v21 }
 0x62b   : > { %v3938_v43 = vpack.c.bf16 %v3902_v37, %v3900_v28  ;;  %v5559_v46 = vpop.permute.xlu0 %5558  ;;  %v9813_v3 = vadd.f32 %v5595_v26, %v5431_v30 }
 0x62c   : > { %v3939_v24 = vpack.c.bf16 %v3903_v39, %v3901_v4  ;;  %v5596_v13 = vmul.f32 %v9580_v27, %v5559_v46 }
 0x62e   : > { %4312 = vmatprep.mubr.bf16.mxu1 %v3939_v24  ;;  %v9816_v41 = vadd.f32 %v5596_v13, %v5432_v12 }
 0x62f   : > { %4313 = vmatmul.mubr.bf16.gmra.mrb[180].mxu1 %v3938_v43 }
 0x631   : > { %v4204_v0 = vpop.f32.mrb[136].mxu1 }
 0x632   : > { %v4205_v25 = vadd.f32 %v4204_v0, %v9649_v56  ;;  %v4206_v15 = vpop.f32.mrb[137].mxu1 }
 0x633   : > { %v4207_v40 = vadd.f32 %v4206_v15, %v9652_v44  ;;  %v4208_v60 = vpop.f32.mrb[138].mxu1 }
 0x634   : > { %v4351_v5 = vmax.f32 %v4205_v25, 0.0  ;;  %v4209_v21 = vadd.f32 %v4208_v60, %v9649_v56  ;;  %v4210_v54 = vpop.f32.mrb[139].mxu1 }
 0x635   : > { %v4352_v47 = vmax.f32 %v4207_v40, 0.0  ;;  %v4211_v49 = vadd.f32 %v4210_v54, %v9652_v44 }
 0x636   : > { %v4856_v53 = vmul.f32 %v9662_v33, %v4351_v5  ;;  %v4353_v59 = vmax.f32 %v4209_v21, 0.0 }
 0x637   : > { %v4857_v57 = vmul.f32 %v9667_v19, %v4352_v47  ;;  %v4354_v18 = vmax.f32 %v4211_v49, 0.0  ;;  %v3829_v50 = vpop.f32.mrb[184].mxu0 }
 0x638   : > { %v4411_v30 = vpack.c.bf16 %v4353_v59, %v4351_v5  ;;  %v4858_v61 = vmul.f32 %v9662_v33, %v4353_v59  ;;  %v3830_v28 = vadd.f32 %v3829_v50, %v9327_v51  ;;  %v3831_v37 = vpop.f32.mrb[185].mxu0 }
 0x639   : > { %v4412_v32 = vpack.c.bf16 %v4354_v18, %v4352_v47  ;;  %v4859_v4 = vmul.f32 %v9667_v19, %v4354_v18  ;;  %v3832_v39 = vadd.f32 %v3831_v37, %v9331_v58  ;;  %v3833_v20 = vpop.f32.mrb[186].mxu0  ;;  %v4924_v38 = vadd.f32 %v4857_v57, %v4856_v53 }
 0x63a   : > { %v3834_v43 = vadd.f32 %v3833_v20, %v9327_v51  ;;  %v3835_v12 = vpop.f32.mrb[187].mxu0  ;;  %v3904_v46 = vmax.f32 %v3830_v28, 0.0 }
 0x63b   : > { %v3836_v26 = vadd.f32 %v3835_v12, %v9331_v58  ;;  %4925 = vadd.xlane.f32.xlu0 %v4924_v38  ;;  %4695 = vmatprep.mubr.bf16.mxu0 %v4412_v32  ;;  %v4927_v24 = vadd.f32 %v4859_v4, %v4858_v61  ;;  %v3905_v0 = vmax.f32 %v3832_v39, 0.0 }
 0x63c   : > { %v3906_v13 = vmax.f32 %v3834_v43, 0.0  ;;  %4696 = vmatmul.mubr.bf16.gmra.mrb[200].mxu0 %v4411_v30 }
 0x63d   : > { %v3907_v25 = vmax.f32 %v3836_v26, 0.0  ;;  %4928 = vadd.xlane.f32.xlu1 %v4927_v24 }
 0x63e   : > { %v3940_v15 = vpack.c.bf16 %v3906_v13, %v3904_v46 }
 0x63f   : > { %v3941_v40 = vpack.c.bf16 %v3907_v25, %v3905_v0 }
 0x641   : > { %4322 = vmatprep.mubr.bf16.mxu1 %v3941_v40 }
 0x642   : > { %4323 = vmatmul.mubr.bf16.gmra.mrb[184].mxu1 %v3940_v15 }
 0x644   : > { %v4214_v60 = vpop.f32.mrb[140].mxu1 }
 0x645   : > { %v4215_v5 = vadd.f32 %v4214_v60, %v9649_v56  ;;  %v4216_v21 = vpop.f32.mrb[141].mxu1 }
 0x646   : > { %v4217_v54 = vadd.f32 %v4216_v21, %v9652_v44  ;;  %v4218_v47 = vpop.f32.mrb[142].mxu1 }
 0x647   : > { %v4355_v49 = vmax.f32 %v4215_v5, 0.0  ;;  %v4219_v53 = vadd.f32 %v4218_v47, %v9649_v56  ;;  %v4220_v59 = vpop.f32.mrb[143].mxu1 }
 0x648   : > { %v4356_v57 = vmax.f32 %v4217_v54, 0.0  ;;  %v4221_v18 = vadd.f32 %v4220_v59, %v9652_v44 }
 0x649   : > { %v4860_v50 = vmul.f32 %v9662_v33, %v4355_v49  ;;  %v4357_v30 = vmax.f32 %v4219_v53, 0.0 }
 0x64a   : > { %v4861_v61 = vmul.f32 %v9667_v19, %v4356_v57  ;;  %v4358_v28 = vmax.f32 %v4221_v18, 0.0  ;;  %v3839_v37 = vpop.f32.mrb[188].mxu0 }
 0x64b   : > { %v4413_v32 = vpack.c.bf16 %v4357_v30, %v4355_v49  ;;  %v4862_v4 = vmul.f32 %v9662_v33, %v4357_v30  ;;  %v3840_v39 = vadd.f32 %v3839_v37, %v9327_v51  ;;  %v3841_v20 = vpop.f32.mrb[189].mxu0  ;;  %v7476_v37 = vld [vmem:[#allocation4 + $0x40] sm:$0xff]  }
 0x64c   : > { %v4414_v38 = vpack.c.bf16 %v4358_v28, %v4356_v57  ;;  %v4863_v43 = vmul.f32 %v9667_v19, %v4358_v28  ;;  %v3842_v12 = vadd.f32 %v3841_v20, %v9331_v58  ;;  %v3843_v26 = vpop.f32.mrb[190].mxu0  ;;  %v4930_v24 = vadd.f32 %v4861_v61, %v4860_v50  ;;  %6929 = vmatprep.subr.bf16.mxu1 %v7476_v37  ;;  %v7486_v37 = vld [vmem:[#allocation4 + $0x68] sm:$0xff]  }
 0x64d   : > { %v3844_v46 = vadd.f32 %v3843_v26, %v9327_v51  ;;  %v3845_v13 = vpop.f32.mrb[191].mxu0  ;;  %v3908_v15 = vmax.f32 %v3840_v39, 0.0  ;;  %v7477_v39 = vld [vmem:[#allocation4] sm:$0xff]  }
 0x64e   : > { %v3846_v0 = vadd.f32 %v3845_v13, %v9331_v58  ;;  %4931 = vadd.xlane.f32.xlu0 %v4930_v24  ;;  %4705 = vmatprep.mubr.bf16.mxu0 %v4414_v38  ;;  %v4933_v25 = vadd.f32 %v4863_v43, %v4862_v4  ;;  %v3909_v60 = vmax.f32 %v3842_v12, 0.0  ;;  %v7478_v24 = vld [vmem:[#allocation4 + $0x48] sm:$0xff]  }
 0x64f   : > { %v3910_v40 = vmax.f32 %v3844_v46, 0.0  ;;  %4706 = vmatmul.mubr.bf16.gmra.mrb[204].mxu0 %v4413_v32  ;;  %6930 = vmatpush3.bf16.msra.mxu1 %v7477_v39  ;;  %v7479_v13 = vld [vmem:[#allocation4 + $0x8] sm:$0xff]  }
 0x650   : > { %v3911_v5 = vmax.f32 %v3846_v0, 0.0  ;;  %4934 = vadd.xlane.f32.xlu1 %v4933_v25  ;;  %6931 = vmatprep.subr.bf16.mxu1 %v7478_v24  ;;  %v7480_v0 = vld [vmem:[#allocation4 + $0x50] sm:$0xff]   ;;  %v7487_v39 = vld [vmem:[#allocation4 + $0x28] sm:$0xff]  }
 0x651   : > { %v3942_v21 = vpack.c.bf16 %v3910_v40, %v3908_v15  ;;  %v7481_v25 = vld [vmem:[#allocation4 + $0x10] sm:$0xff]   ;;  %v7482_v15 = vld [vmem:[#allocation4 + $0x58] sm:$0xff]  }
 0x652   : > { %v3943_v54 = vpack.c.bf16 %v3911_v5, %v3909_v60  ;;  %v7483_v40 = vld [vmem:[#allocation4 + $0x18] sm:$0xff]   ;;  %v7484_v60 = vld [vmem:[#allocation4 + $0x60] sm:$0xff]   ;;  %v7489_v24 = vld [vmem:[#allocation4 + $0x30] sm:$0xff]  }
 0x653   : > { %6932 = vmatpush3.bf16.msra.mxu1 %v7479_v13  ;;  %v7491_v13 = vld [vmem:[#allocation4 + $0x38] sm:$0xff]  }
 0x654   : > { %4332 = vmatprep.mubr.bf16.mxu1 %v3943_v54  ;;  %6933 = vmatprep.subr.bf16.mxu1 %v7480_v0 }
 0x655   : > { %4333 = vmatmul.mubr.bf16.gmra.mrb[188].mxu1 %v3942_v21 }
 0x657   : > { %v4224_v47 = vpop.f32.mrb[144].mxu1  ;;  %6934 = vmatpush3.bf16.msra.mxu1 %v7481_v25 }
 0x658   : > { %v4225_v49 = vadd.f32 %v4224_v47, %v9649_v56  ;;  %v4226_v51 = vpop.f32.mrb[145].mxu1  ;;  %6935 = vmatprep.subr.bf16.mxu1 %v7482_v15  ;;  %v7485_v47 = vld [vmem:[#allocation4 + $0x20] sm:$0xff]  }
 0x659   : > { %v4227_v53 = vadd.f32 %v4226_v51, %v9652_v44  ;;  %v4228_v58 = vpop.f32.mrb[146].mxu1 }
 0x65a   : > { %v4359_v59 = vmax.f32 %v4225_v49, 0.0  ;;  %v4229_v57 = vadd.f32 %v4228_v58, %v9649_v56  ;;  %v4230_v18 = vpop.f32.mrb[147].mxu1 }
 0x65b   : > { %v4360_v50 = vmax.f32 %v4227_v53, 0.0  ;;  %v4231_v30 = vadd.f32 %v4230_v18, %v9652_v44  ;;  %6936 = vmatpush3.bf16.msra.mxu1 %v7483_v40 }
 0x65c   : > { %v4864_v61 = vmul.f32 %v9662_v33, %v4359_v59  ;;  %v4361_v28 = vmax.f32 %v4229_v57, 0.0  ;;  %6937 = vmatprep.subr.bf16.mxu1 %v7484_v60 }
 0x65d   : > { %v4865_v32 = vmul.f32 %v9667_v19, %v4360_v50  ;;  %v4362_v4 = vmax.f32 %v4231_v30, 0.0 }
 0x65e   : > { %v4415_v20 = vpack.c.bf16 %v4361_v28, %v4359_v59  ;;  %v4866_v38 = vmul.f32 %v9662_v33, %v4361_v28 }
 0x65f   : > { %v4416_v43 = vpack.c.bf16 %v4362_v4, %v4360_v50  ;;  %v4867_v12 = vmul.f32 %v9667_v19, %v4362_v4  ;;  %v4936_v26 = vadd.f32 %v4865_v32, %v4864_v61  ;;  %6938 = vmatpush3.bf16.msra.mxu1 %v7485_v47 }
 0x660   : > { %6939 = vmatprep.subr.bf16.mxu1 %v7486_v37 }
 0x661   : > { %4937 = vadd.xlane.f32.xlu0 %v4936_v26  ;;  %4715 = vmatprep.mubr.bf16.mxu0 %v4416_v43  ;;  %v4939_v46 = vadd.f32 %v4867_v12, %v4866_v38  ;;  %v7488_v26 = vld [vmem:[#allocation4 + $0x70] sm:$0xff]  }
 0x662   : > { %4716 = vmatmul.mubr.bf16.gmra.mrb[208].mxu0 %v4415_v20 }
 0x663   : > { %4940 = vadd.xlane.f32.xlu1 %v4939_v46  ;;  %6940 = vmatpush3.bf16.msra.mxu1 %v7487_v39  ;;  %v7490_v46 = vld [vmem:[#allocation4 + $0x78] sm:$0xff]  }
 0x664   : > { %6941 = vmatprep.subr.bf16.mxu1 %v7488_v26 }
 0x667   : > { %6942 = vmatpush3.bf16.msra.mxu1 %v7489_v24 }
 0x668   : > { %6943 = vmatprep.subr.bf16.mxu1 %v7490_v46 }
 0x66a   : > { %v4234_v5 = vpop.f32.mrb[148].mxu1 }
 0x66b   : > { %v4235_v21 = vadd.f32 %v4234_v5, %v9649_v56  ;;  %v4236_v54 = vpop.f32.mrb[149].mxu1  ;;  %6944 = vmatpush3.bf16.msra.mxu1 %v7491_v13 }
 0x66c   : > { %v4237_v49 = vadd.f32 %v4236_v54, %v9652_v44  ;;  %v4238_v51 = vpop.f32.mrb[150].mxu1 }
 0x66d   : > { %v4363_v53 = vmax.f32 %v4235_v21, 0.0  ;;  %v4239_v58 = vadd.f32 %v4238_v51, %v9649_v56  ;;  %v4240_v59 = vpop.f32.mrb[151].mxu1 }
 0x66e   : > { %v4364_v57 = vmax.f32 %v4237_v49, 0.0  ;;  %v4241_v18 = vadd.f32 %v4240_v59, %v9652_v44 }
 0x66f   : > { %v4868_v50 = vmul.f32 %v9662_v33, %v4363_v53  ;;  %v4365_v30 = vmax.f32 %v4239_v58, 0.0 }
 0x670   : > { %v4869_v61 = vmul.f32 %v9667_v19, %v4364_v57  ;;  %v4366_v28 = vmax.f32 %v4241_v18, 0.0 }
 0x671   : > { %v4417_v32 = vpack.c.bf16 %v4365_v30, %v4363_v53  ;;  %v4870_v4 = vmul.f32 %v9662_v33, %v4365_v30 }
 0x672   : > { %v4418_v20 = vpack.c.bf16 %v4366_v28, %v4364_v57  ;;  %v4871_v38 = vmul.f32 %v9667_v19, %v4366_v28  ;;  %v4942_v43 = vadd.f32 %v4869_v61, %v4868_v50 }
 0x674   : > { %4943 = vadd.xlane.f32.xlu0 %v4942_v43  ;;  %4725 = vmatprep.mubr.bf16.mxu0 %v4418_v20  ;;  %v4945_v12 = vadd.f32 %v4871_v38, %v4870_v4 }
 0x675   : > { %4726 = vmatmul.mubr.bf16.gmra.mrb[212].mxu0 %v4417_v32 }
 0x676   : > { %4946 = vadd.xlane.f32.xlu1 %v4945_v12 }
 0x67d   : > { %v4244_v0 = vpop.f32.mrb[152].mxu1 }
 0x67e   : > { %v4245_v25 = vadd.f32 %v4244_v0, %v9649_v56  ;;  %v4246_v15 = vpop.f32.mrb[153].mxu1 }
 0x67f   : > { %v4247_v40 = vadd.f32 %v4246_v15, %v9652_v44  ;;  %v4248_v60 = vpop.f32.mrb[154].mxu1 }
 0x680   : > { %v4367_v5 = vmax.f32 %v4245_v25, 0.0  ;;  %v4249_v21 = vadd.f32 %v4248_v60, %v9649_v56  ;;  %v4250_v54 = vpop.f32.mrb[155].mxu1 }
 0x681   : > { %v4368_v47 = vmax.f32 %v4247_v40, 0.0  ;;  %v4251_v49 = vadd.f32 %v4250_v54, %v9652_v44 }
 0x682   : > { %v4872_v51 = vmul.f32 %v9662_v33, %v4367_v5  ;;  %v4369_v53 = vmax.f32 %v4249_v21, 0.0 }
 0x683   : > { %v4873_v58 = vmul.f32 %v9667_v19, %v4368_v47  ;;  %v4370_v59 = vmax.f32 %v4251_v49, 0.0 }
 0x684   : > { %v4419_v57 = vpack.c.bf16 %v4369_v53, %v4367_v5  ;;  %v4874_v18 = vmul.f32 %v9662_v33, %v4369_v53 }
 0x685   : > { %v4420_v50 = vpack.c.bf16 %v4370_v59, %v4368_v47  ;;  %v4875_v30 = vmul.f32 %v9667_v19, %v4370_v59  ;;  %v4948_v61 = vadd.f32 %v4873_v58, %v4872_v51 }
 0x687   : > { %4949 = vadd.xlane.f32.xlu0 %v4948_v61  ;;  %4735 = vmatprep.mubr.bf16.mxu0 %v4420_v50  ;;  %v4951_v28 = vadd.f32 %v4875_v30, %v4874_v18 }
 0x688   : > { %4736 = vmatmul.mubr.bf16.gmra.mrb[216].mxu0 %v4419_v57 }
 0x689   : > { %4952 = vadd.xlane.f32.xlu1 %v4951_v28 }
 0x690   : > { %v4254_v37 = vpop.f32.mrb[156].mxu1 }
 0x691   : > { %v4255_v32 = vadd.f32 %v4254_v37, %v9649_v56  ;;  %v4256_v4 = vpop.f32.mrb[157].mxu1 }
 0x692   : > { %v4257_v39 = vadd.f32 %v4256_v4, %v9652_v44  ;;  %v4258_v20 = vpop.f32.mrb[158].mxu1 }
 0x693   : > { %v4371_v38 = vmax.f32 %v4255_v32, 0.0  ;;  %v4259_v43 = vadd.f32 %v4258_v20, %v9649_v56  ;;  %v4260_v12 = vpop.f32.mrb[159].mxu1 }
 0x694   : > { %v4372_v26 = vmax.f32 %v4257_v39, 0.0  ;;  %v4261_v24 = vadd.f32 %v4260_v12, %v9652_v44 }
 0x695   : > { %v4876_v46 = vmul.f32 %v9662_v33, %v4371_v38  ;;  %v4373_v13 = vmax.f32 %v4259_v43, 0.0 }
 0x696   : > { %v4877_v0 = vmul.f32 %v9667_v19, %v4372_v26  ;;  %v4374_v25 = vmax.f32 %v4261_v24, 0.0 }
 0x697   : > { %v4421_v15 = vpack.c.bf16 %v4373_v13, %v4371_v38  ;;  %v4878_v40 = vmul.f32 %v9662_v33, %v4373_v13 }
 0x698   : > { %v4422_v60 = vpack.c.bf16 %v4374_v25, %v4372_v26  ;;  %v4879_v5 = vmul.f32 %v9667_v19, %v4374_v25  ;;  %v4954_v21 = vadd.f32 %v4877_v0, %v4876_v46 }
 0x69a   : > { %4955 = vadd.xlane.f32.xlu0 %v4954_v21  ;;  %4745 = vmatprep.mubr.bf16.mxu0 %v4422_v60  ;;  %v4957_v54 = vadd.f32 %v4879_v5, %v4878_v40 }
 0x69b   : > { %4746 = vmatmul.mubr.bf16.gmra.mrb[220].mxu0 %v4421_v15 }
 0x69c   : > { %4958 = vadd.xlane.f32.xlu1 %v4957_v54 }
 0x6a3   : > { %v4264_v47 = vpop.f32.mrb[160].mxu1 }
 0x6a4   : > { %v4265_v49 = vadd.f32 %v4264_v47, %v9649_v56  ;;  %v4266_v51 = vpop.f32.mrb[161].mxu1 }
 0x6a5   : > { %v4267_v53 = vadd.f32 %v4266_v51, %v9652_v44  ;;  %v4268_v58 = vpop.f32.mrb[162].mxu1 }
 0x6a6   : > { %v4375_v59 = vmax.f32 %v4265_v49, 0.0  ;;  %v4269_v57 = vadd.f32 %v4268_v58, %v9649_v56  ;;  %v4270_v18 = vpop.f32.mrb[163].mxu1 }
 0x6a7   : > { %v4376_v50 = vmax.f32 %v4267_v53, 0.0  ;;  %v4271_v30 = vadd.f32 %v4270_v18, %v9652_v44 }
 0x6a8   : > { %v4880_v61 = vmul.f32 %v9662_v33, %v4375_v59  ;;  %v4377_v28 = vmax.f32 %v4269_v57, 0.0 }
 0x6a9   : > { %v4881_v37 = vmul.f32 %v9667_v19, %v4376_v50  ;;  %v4378_v32 = vmax.f32 %v4271_v30, 0.0 }
 0x6aa   : > { %v4423_v4 = vpack.c.bf16 %v4377_v28, %v4375_v59  ;;  %v4882_v39 = vmul.f32 %v9662_v33, %v4377_v28 }
 0x6ab   : > { %v4424_v20 = vpack.c.bf16 %v4378_v32, %v4376_v50  ;;  %v4883_v38 = vmul.f32 %v9667_v19, %v4378_v32  ;;  %v4960_v43 = vadd.f32 %v4881_v37, %v4880_v61 }
 0x6ad   : > { %4961 = vadd.xlane.f32.xlu0 %v4960_v43  ;;  %4755 = vmatprep.mubr.bf16.mxu0 %v4424_v20  ;;  %v4963_v12 = vadd.f32 %v4883_v38, %v4882_v39 }
 0x6ae   : > { %4756 = vmatmul.mubr.bf16.gmra.mrb[224].mxu0 %v4423_v4 }
 0x6af   : > { %4964 = vadd.xlane.f32.xlu1 %v4963_v12 }
 0x6b6   : > { %v4274_v26 = vpop.f32.mrb[164].mxu1 }
 0x6b7   : > { %v4275_v24 = vadd.f32 %v4274_v26, %v9649_v56  ;;  %v4276_v46 = vpop.f32.mrb[165].mxu1 }
 0x6b8   : > { %v4277_v13 = vadd.f32 %v4276_v46, %v9652_v44  ;;  %v4278_v0 = vpop.f32.mrb[166].mxu1 }
 0x6b9   : > { %v4379_v25 = vmax.f32 %v4275_v24, 0.0  ;;  %v4279_v15 = vadd.f32 %v4278_v0, %v9649_v56  ;;  %v4280_v40 = vpop.f32.mrb[167].mxu1 }
 0x6ba   : > { %v4380_v60 = vmax.f32 %v4277_v13, 0.0  ;;  %v4281_v5 = vadd.f32 %v4280_v40, %v9652_v44 }
 0x6bb   : > { %v4884_v21 = vmul.f32 %v9662_v33, %v4379_v25  ;;  %v4381_v54 = vmax.f32 %v4279_v15, 0.0 }
 0x6bc   : > { %v4885_v47 = vmul.f32 %v9667_v19, %v4380_v60  ;;  %v4382_v49 = vmax.f32 %v4281_v5, 0.0 }
 0x6bd   : > { %v4425_v51 = vpack.c.bf16 %v4381_v54, %v4379_v25  ;;  %v4886_v53 = vmul.f32 %v9662_v33, %v4381_v54 }
 0x6be   : > { %v4426_v58 = vpack.c.bf16 %v4382_v49, %v4380_v60  ;;  %v4887_v59 = vmul.f32 %v9667_v19, %v4382_v49  ;;  %v4966_v57 = vadd.f32 %v4885_v47, %v4884_v21 }
 0x6c0   : > { %4967 = vadd.xlane.f32.xlu0 %v4966_v57  ;;  %4765 = vmatprep.mubr.bf16.mxu0 %v4426_v58  ;;  %v4969_v18 = vadd.f32 %v4887_v59, %v4886_v53 }
 0x6c1   : > { %4766 = vmatmul.mubr.bf16.gmra.mrb[228].mxu0 %v4425_v51 }
 0x6c2   : > { %4970 = vadd.xlane.f32.xlu1 %v4969_v18 }
 0x6c9   : > { %v4284_v50 = vpop.f32.mrb[168].mxu1 }
 0x6ca   : > { %v4285_v30 = vadd.f32 %v4284_v50, %v9649_v56  ;;  %v4286_v61 = vpop.f32.mrb[169].mxu1 }
 0x6cb   : > { %v4287_v28 = vadd.f32 %v4286_v61, %v9652_v44  ;;  %v4288_v37 = vpop.f32.mrb[170].mxu1 }
 0x6cc   : > { %v4383_v32 = vmax.f32 %v4285_v30, 0.0  ;;  %v4289_v4 = vadd.f32 %v4288_v37, %v9649_v56  ;;  %v4290_v39 = vpop.f32.mrb[171].mxu1 }
 0x6cd   : > { %v4384_v20 = vmax.f32 %v4287_v28, 0.0  ;;  %v4291_v38 = vadd.f32 %v4290_v39, %v9652_v44 }
 0x6ce   : > { %v4888_v43 = vmul.f32 %v9662_v33, %v4383_v32  ;;  %v4385_v12 = vmax.f32 %v4289_v4, 0.0 }
 0x6cf   : > { %v4889_v26 = vmul.f32 %v9667_v19, %v4384_v20  ;;  %v4386_v24 = vmax.f32 %v4291_v38, 0.0  ;;  %v4471_v38 = vld [vmem:[%s10609_s6] sm:$0x3] }
 0x6d0   : > { %v4427_v46 = vpack.c.bf16 %v4385_v12, %v4383_v32  ;;  %v4890_v13 = vmul.f32 %v9662_v33, %v4385_v12 }
 0x6d1   : > { %v4428_v0 = vpack.c.bf16 %v4386_v24, %v4384_v20  ;;  %v4891_v25 = vmul.f32 %v9667_v19, %v4386_v24  ;;  %v4972_v15 = vadd.f32 %v4889_v26, %v4888_v43 }
 0x6d3   : > { %4973 = vadd.xlane.f32.xlu0 %v4972_v15  ;;  %4775 = vmatprep.mubr.bf16.mxu0 %v4428_v0  ;;  %v4975_v40 = vadd.f32 %v4891_v25, %v4890_v13  ;;  %v9913_v25 = vrot.slane %v4471_v38, %v8003_v9 }
 0x6d4   : > { %4776 = vmatmul.mubr.bf16.gmra.mrb[232].mxu0 %v4427_v46 }
 0x6d5   : > { %4976 = vadd.xlane.f32.xlu1 %v4975_v40 }
 0x6dc   : > { %v4294_v60 = vpop.f32.mrb[172].mxu1 }
 0x6dd   : > { %v4295_v5 = vadd.f32 %v4294_v60, %v9649_v56  ;;  %v4296_v21 = vpop.f32.mrb[173].mxu1 }
 0x6de   : > { %v4297_v54 = vadd.f32 %v4296_v21, %v9652_v44  ;;  %v4298_v47 = vpop.f32.mrb[174].mxu1 }
 0x6df   : > { %v4387_v49 = vmax.f32 %v4295_v5, 0.0  ;;  %v4299_v51 = vadd.f32 %v4298_v47, %v9649_v56  ;;  %v4300_v53 = vpop.f32.mrb[175].mxu1 }
 0x6e0   : > { %v4388_v58 = vmax.f32 %v4297_v54, 0.0  ;;  %v4301_v59 = vadd.f32 %v4300_v53, %v9652_v44  ;;  %v9918_v54 = vrot.slane %v4471_v38, %v7997_v6 }
 0x6e1   : > { %v4892_v57 = vmul.f32 %v9662_v33, %v4387_v49  ;;  %v4389_v18 = vmax.f32 %v4299_v51, 0.0 }
 0x6e2   : > { %v4893_v50 = vmul.f32 %v9667_v19, %v4388_v58  ;;  %v4390_v30 = vmax.f32 %v4301_v59, 0.0 }
 0x6e3   : > { %v4429_v61 = vpack.c.bf16 %v4389_v18, %v4387_v49  ;;  %v4894_v28 = vmul.f32 %v9662_v33, %v4389_v18 }
 0x6e4   : > { %v4430_v37 = vpack.c.bf16 %v4390_v30, %v4388_v58  ;;  %v4895_v32 = vmul.f32 %v9667_v19, %v4390_v30  ;;  %v4978_v4 = vadd.f32 %v4893_v50, %v4892_v57 }
 0x6e6   : > { %4979 = vadd.xlane.f32.xlu0 %v4978_v4  ;;  %4785 = vmatprep.mubr.bf16.mxu0 %v4430_v37  ;;  %v4981_v39 = vadd.f32 %v4895_v32, %v4894_v28 }
 0x6e7   : > { %4786 = vmatmul.mubr.bf16.gmra.mrb[236].mxu0 %v4429_v61 }
 0x6e8   : > { %4982 = vadd.xlane.f32.xlu1 %v4981_v39 }
 0x6ef   : > { %v4304_v20 = vpop.f32.mrb[176].mxu1 }
 0x6f0   : > { %v4305_v43 = vadd.f32 %v4304_v20, %v9649_v56  ;;  %v4306_v12 = vpop.f32.mrb[177].mxu1 }
 0x6f1   : > { %v4307_v26 = vadd.f32 %v4306_v12, %v9652_v44  ;;  %v4308_v24 = vpop.f32.mrb[178].mxu1 }
 0x6f2   : > { %v4391_v46 = vmax.f32 %v4305_v43, 0.0  ;;  %v4309_v13 = vadd.f32 %v4308_v24, %v9649_v56  ;;  %v4310_v0 = vpop.f32.mrb[179].mxu1 }
 0x6f3   : > { %v4392_v15 = vmax.f32 %v4307_v26, 0.0  ;;  %v4311_v40 = vadd.f32 %v4310_v0, %v9652_v44  ;;  %v4677_v21 = vpop.f32.mrb[192].mxu0 }
 0x6f4   : > { %v4896_v60 = vmul.f32 %v9662_v33, %v4391_v46  ;;  %v4393_v5 = vmax.f32 %v4309_v13, 0.0  ;;  %v4679_v51 = vpop.f32.mrb[193].mxu0  ;;  %v4678_v59 = vadd.f32 %v4677_v21, %v9913_v25 }
 0x6f5   : > { %v4897_v47 = vmul.f32 %v9667_v19, %v4392_v15  ;;  %v4394_v49 = vmax.f32 %v4311_v40, 0.0  ;;  %v4681_v57 = vpop.f32.mrb[194].mxu0  ;;  %v4680_v37 = vadd.f32 %v4679_v51, %v9918_v54 }
 0x6f6   : > { %v4431_v53 = vpack.c.bf16 %v4393_v5, %v4391_v46  ;;  %v4898_v58 = vmul.f32 %v9662_v33, %v4393_v5  ;;  %v4682_v30 = vadd.f32 %v4681_v57, %v9913_v25  ;;  %v4683_v61 = vpop.f32.mrb[195].mxu0 }
 0x6f7   : > { %v4432_v18 = vpack.c.bf16 %v4394_v49, %v4392_v15  ;;  %v4899_v50 = vmul.f32 %v9667_v19, %v4394_v49  ;;  %v4984_v28 = vadd.f32 %v4897_v47, %v4896_v60  ;;  %v4684_v32 = vadd.f32 %v4683_v61, %v9918_v54 }
 0x6f8   : > { %v5009_v4 = vpack.c.bf16 %v4682_v30, %v4678_v59 }
 0x6f9   : > { %4985 = vadd.xlane.f32.xlu0 %v4984_v28  ;;  %4795 = vmatprep.mubr.bf16.mxu0 %v4432_v18  ;;  %v4987_v39 = vadd.f32 %v4899_v50, %v4898_v58  ;;  %v5010_v20 = vpack.c.bf16 %v4684_v32, %v4680_v37 }
 0x6fa   : > { %4796 = vmatmul.mubr.bf16.gmra.mrb[240].mxu0 %v4431_v53 }
 0x6fb   : > { %4988 = vadd.xlane.f32.xlu1 %v4987_v39  ;;  %5796 = vmatprep.mubr.bf16.mxu1 %v5010_v20 }
 0x6fc   : > { %v4687_v38 = vpop.f32.mrb[196].mxu0  ;;  %5797 = vmatmul.mubr.bf16.vlgmr.msra.gmra.mrb[192].mxu1 %v5009_v4 }
 0x6fd   : > { %v4689_v43 = vpop.f32.mrb[197].mxu0  ;;  %v4688_v26 = vadd.f32 %v4687_v38, %v9913_v25 }
 0x6fe   : > { %v4691_v12 = vpop.f32.mrb[198].mxu0  ;;  %v4690_v13 = vadd.f32 %v4689_v43, %v9918_v54  ;;  %v9942_v43 = vld [vmem:[%s10612_s9] ss:$0 sm:$0xff] }
 0x6ff   : > { %v4692_v24 = vadd.f32 %v4691_v12, %v9913_v25  ;;  %v4693_v46 = vpop.f32.mrb[199].mxu0 }
 0x700   : > { %v4694_v0 = vadd.f32 %v4693_v46, %v9918_v54 }
 0x701   : > { %v5011_v15 = vpack.c.bf16 %v4692_v24, %v4688_v26 }
 0x702   : > { %v5012_v40 = vpack.c.bf16 %v4694_v0, %v4690_v13  ;;  %v4314_v60 = vpop.f32.mrb[180].mxu1 }
 0x703   : > { %v4315_v5 = vadd.f32 %v4314_v60, %v9649_v56  ;;  %v4316_v21 = vpop.f32.mrb[181].mxu1  ;;  %v9953_v60 = vadd.f32 %v9942_v43, %v9627_v42  ;;  %v9974_v42 = vadd.f32 %v9942_v43, %v9750_v1 }
 0x704   : > { %v4317_v47 = vadd.f32 %v4316_v21, %v9652_v44  ;;  %v4318_v49 = vpop.f32.mrb[182].mxu1  ;;  %5804 = vmatprep.mubr.bf16.mxu1 %v5012_v40  ;;  %v9958_v21 = vadd.f32 %v9942_v43, %v9643_v45  ;;  %v9978_v45 = vadd.f32 %v9942_v43, %v9760_v55  ;;  %v9995_v55 = vadd.f32 %v9942_v43, %v9813_v3 }
 0x705   : > { %v4395_v51 = vmax.f32 %v4315_v5, 0.0  ;;  %v4319_v53 = vadd.f32 %v4318_v49, %v9649_v56  ;;  %v4320_v58 = vpop.f32.mrb[183].mxu1  ;;  %5805 = vmatmul.mubr.bf16.gmra.mrb[196].mxu1 %v5011_v15  ;;  %v10670_v15 = vld [vmem:[#allocation41_spill] sm:$0xff]  ;;  %v9966_v49 = vadd.f32 %v9942_v43, %v9711_v35  ;;  %v9986_v35 = vadd.f32 %v9942_v43, %v9792_v31 }
 0x706   : > { %v4396_v59 = vmax.f32 %v4317_v47, 0.0  ;;  %v4321_v57 = vadd.f32 %v4320_v58, %v9652_v44  ;;  %v9949_v40 = vadd.f32 %v9942_v43, %v10670_v15  ;;  %v9962_v47 = vadd.f32 %v9942_v43, %v9675_v34 }
 0x707   : > { %v4900_v18 = vmul.f32 %v9662_v33, %v4395_v51  ;;  %v4397_v50 = vmax.f32 %v4319_v53, 0.0  ;;  %v9970_v53 = vadd.f32 %v9942_v43, %v9739_v29  ;;  %v9990_v29 = vadd.f32 %v9942_v43, %v9808_v11 }
 0x708   : > { %v4901_v30 = vmul.f32 %v9667_v19, %v4396_v59  ;;  %v4398_v61 = vmax.f32 %v4321_v57, 0.0 }
 0x709   : > { %v4433_v28 = vpack.c.bf16 %v4397_v50, %v4395_v51  ;;  %v4902_v37 = vmul.f32 %v9662_v33, %v4397_v50 }
 0x70a   : > { %v4434_v32 = vpack.c.bf16 %v4398_v61, %v4396_v59  ;;  %v4903_v4 = vmul.f32 %v9667_v19, %v4398_v61  ;;  %v4990_v39 = vadd.f32 %v4901_v30, %v4900_v18  ;;  %v9982_v59 = vadd.f32 %v9942_v43, %v9775_v36 }
 0x70c   : > { %4991 = vadd.xlane.f32.xlu0 %v4990_v39  ;;  %4805 = vmatprep.mubr.bf16.mxu0 %v4434_v32  ;;  %v4993_v20 = vadd.f32 %v4903_v4, %v4902_v37 }
 0x70d   : > { %4806 = vmatmul.mubr.bf16.gmra.mrb[244].mxu0 %v4433_v28 }
 0x70e   : > { %4994 = vadd.xlane.f32.xlu1 %v4993_v20 }
 0x70f   : > { %v4697_v38 = vpop.f32.mrb[200].mxu0 }
 0x710   : > { %v4699_v12 = vpop.f32.mrb[201].mxu0  ;;  %v4698_v26 = vadd.f32 %v4697_v38, %v9913_v25 }
 0x711   : > { %v4701_v24 = vpop.f32.mrb[202].mxu0  ;;  %v4700_v46 = vadd.f32 %v4699_v12, %v9918_v54 }
 0x712   : > { %v4702_v13 = vadd.f32 %v4701_v24, %v9913_v25  ;;  %v4703_v0 = vpop.f32.mrb[203].mxu0 }
 0x713   : > { %v4704_v5 = vadd.f32 %v4703_v0, %v9918_v54 }
 0x714   : > { %v5013_v51 = vpack.c.bf16 %v4702_v13, %v4698_v26 }
 0x715   : > { %v5014_v58 = vpack.c.bf16 %v4704_v5, %v4700_v46  ;;  %v4324_v34 = vpop.f32.mrb[184].mxu1 }
 0x716   : > { %v4325_v1 = vadd.f32 %v4324_v34, %v9649_v56  ;;  %v4326_v57 = vpop.f32.mrb[185].mxu1 }
 0x717   : > { %v4327_v18 = vadd.f32 %v4326_v57, %v9652_v44  ;;  %v4328_v50 = vpop.f32.mrb[186].mxu1  ;;  %5812 = vmatprep.mubr.bf16.mxu1 %v5014_v58 }
 0x718   : > { %v4399_v36 = vmax.f32 %v4325_v1, 0.0  ;;  %v4329_v30 = vadd.f32 %v4328_v50, %v9649_v56  ;;  %v4330_v31 = vpop.f32.mrb[187].mxu1  ;;  %5813 = vmatmul.mubr.bf16.gmra.mrb[200].mxu1 %v5013_v51 }
 0x719   : > { %v4400_v61 = vmax.f32 %v4327_v18, 0.0  ;;  %v4331_v11 = vadd.f32 %v4330_v31, %v9652_v44 }
 0x71a   : > { %v4904_v28 = vmul.f32 %v9662_v33, %v4399_v36  ;;  %v4401_v37 = vmax.f32 %v4329_v30, 0.0 }
 0x71b   : > { %v4905_v32 = vmul.f32 %v9667_v19, %v4400_v61  ;;  %v4402_v4 = vmax.f32 %v4331_v11, 0.0 }
 0x71c   : > { %v4435_v3 = vpack.c.bf16 %v4401_v37, %v4399_v36  ;;  %v4906_v39 = vmul.f32 %v9662_v33, %v4401_v37 }
 0x71d   : > { %v4436_v20 = vpack.c.bf16 %v4402_v4, %v4400_v61  ;;  %v4907_v38 = vmul.f32 %v9667_v19, %v4402_v4  ;;  %v4996_v12 = vadd.f32 %v4905_v32, %v4904_v28 }
 0x71f   : > { %4997 = vadd.xlane.f32.xlu0 %v4996_v12  ;;  %4815 = vmatprep.mubr.bf16.mxu0 %v4436_v20  ;;  %v4999_v26 = vadd.f32 %v4907_v38, %v4906_v39 }
 0x720   : > { %4816 = vmatmul.mubr.bf16.gmra.mrb[248].mxu0 %v4435_v3 }
 0x721   : > { %5000 = vadd.xlane.f32.xlu1 %v4999_v26 }
 0x722   : > { %v4707_v24 = vpop.f32.mrb[204].mxu0 }
 0x723   : > { %v4709_v46 = vpop.f32.mrb[205].mxu0  ;;  %v4708_v0 = vadd.f32 %v4707_v24, %v9913_v25 }
 0x724   : > { %v4711_v13 = vpop.f32.mrb[206].mxu0  ;;  %v4710_v51 = vadd.f32 %v4709_v46, %v9918_v54 }
 0x725   : > { %v4712_v15 = vadd.f32 %v4711_v13, %v9913_v25  ;;  %v4713_v5 = vpop.f32.mrb[207].mxu0  ;;  %v10022_v13 = vadd.f32 %v9942_v43, %v9629_v2 }
 0x726   : > { %v4714_v58 = vadd.f32 %v4713_v5, %v9918_v54 }
 0x727   : > { %v5015_v34 = vpack.c.bf16 %v4712_v15, %v4708_v0  ;;  %v10030_v0 = vadd.f32 %v9942_v43, %v9692_v23  ;;  %v10034_v15 = vadd.f32 %v9942_v43, %v9728_v62  ;;  %v10051_v23 = vadd.f32 %v9942_v43, %v9783_v8 }
 0x728   : > { %v5016_v1 = vpack.c.bf16 %v4714_v58, %v4710_v51  ;;  %v4334_v57 = vpop.f32.mrb[188].mxu1  ;;  %v10047_v51 = vadd.f32 %v9942_v43, %v9768_v10 }
 0x729   : > { %v4335_v18 = vadd.f32 %v4334_v57, %v9649_v56  ;;  %v4336_v50 = vpop.f32.mrb[189].mxu1 }
 0x72a   : > { %v4337_v36 = vadd.f32 %v4336_v50, %v9652_v44  ;;  %v4338_v30 = vpop.f32.mrb[190].mxu1  ;;  %5820 = vmatprep.mubr.bf16.mxu1 %v5016_v1 }
 0x72b   : > { %v4403_v31 = vmax.f32 %v4335_v18, 0.0  ;;  %v4339_v61 = vadd.f32 %v4338_v30, %v9649_v56  ;;  %v4340_v11 = vpop.f32.mrb[191].mxu1  ;;  %5821 = vmatmul.mubr.bf16.gmra.mrb[204].mxu1 %v5015_v34  ;;  %v10060_v34 = vadd.f32 %v9942_v43, %v9811_v22 }
 0x72c   : > { %v4404_v28 = vmax.f32 %v4337_v36, 0.0  ;;  %v4341_v37 = vadd.f32 %v4340_v11, %v9652_v44  ;;  %v10018_v44 = vadd.f32 %v9942_v43, %v9614_v14  ;;  %v10038_v14 = vadd.f32 %v9942_v43, %v9742_v16 }
 0x72d   : > { %v4908_v32 = vmul.f32 %v9662_v33, %v4403_v31  ;;  %v4405_v4 = vmax.f32 %v4339_v61, 0.0  ;;  %v10056_v16 = vadd.f32 %v9942_v43, %v9803_v63 }
 0x72e   : > { %v4909_v3 = vmul.f32 %v9667_v19, %v4404_v28  ;;  %v4406_v39 = vmax.f32 %v4341_v37, 0.0 }
 0x72f   : > { %v4437_v20 = vpack.c.bf16 %v4405_v4, %v4403_v31  ;;  %v4910_v38 = vmul.f32 %v9662_v33, %v4405_v4  ;;  %v10026_v33 = vadd.f32 %v9942_v43, %v9658_v52  ;;  %v10043_v52 = vadd.f32 %v9942_v43, %v9753_v17 }
 0x730   : > { %v4438_v12 = vpack.c.bf16 %v4406_v39, %v4404_v28  ;;  %v4911_v26 = vmul.f32 %v9667_v19, %v4406_v39  ;;  %v5002_v24 = vadd.f32 %v4909_v3, %v4908_v32  ;;  %v10064_v17 = vadd.f32 %v9942_v43, %v9816_v41 }
 0x732   : > { %4825 = vmatprep.mubr.bf16.mxu0 %v4438_v12  ;;  %5003 = vadd.xlane.f32.xlu0 %v5002_v24  ;;  %v5005_v56 = vadd.f32 %v4911_v26, %v4910_v38 }
 0x733   : > { %4826 = vmatmul.mubr.bf16.gmra.mrb[252].mxu0 %v4437_v20 }
 0x734   : > { %5006 = vadd.xlane.f32.xlu1 %v5005_v56 }
 0x735   : > { %v4717_v46 = vpop.f32.mrb[208].mxu0 }
 0x736   : > { %v4719_v19 = vpop.f32.mrb[209].mxu0  ;;  %v4718_v2 = vadd.f32 %v4717_v46, %v9913_v25 }
 0x737   : > { %v4721_v5 = vpop.f32.mrb[210].mxu0  ;;  %v4720_v10 = vadd.f32 %v4719_v19, %v9918_v54 }
 0x738   : > { %v4722_v62 = vadd.f32 %v4721_v5, %v9913_v25  ;;  %v4723_v58 = vpop.f32.mrb[211].mxu0 }
 0x739   : > { %v4724_v8 = vadd.f32 %v4723_v58, %v9918_v54 }
 0x73a   : > { %v5017_v1 = vpack.c.bf16 %v4722_v62, %v4718_v2 }
 0x73b   : > { %v5018_v57 = vpack.c.bf16 %v4724_v8, %v4720_v10 }
 0x73d   : > { %5828 = vmatprep.mubr.bf16.mxu1 %v5018_v57 }
 0x73e   : > { %5829 = vmatmul.mubr.bf16.gmra.mrb[208].mxu1 %v5017_v1 }
 0x748   : > { %v4727_v18 = vpop.f32.mrb[212].mxu0 }
 0x749   : > { %v4729_v50 = vpop.f32.mrb[213].mxu0  ;;  %v4728_v36 = vadd.f32 %v4727_v18, %v9913_v25 }
 0x74a   : > { %v4731_v63 = vpop.f32.mrb[214].mxu0  ;;  %v4730_v31 = vadd.f32 %v4729_v50, %v9918_v54 }
 0x74b   : > { %v4732_v22 = vadd.f32 %v4731_v63, %v9913_v25  ;;  %v4733_v30 = vpop.f32.mrb[215].mxu0 }
 0x74c   : > { %v4734_v41 = vadd.f32 %v4733_v30, %v9918_v54 }
 0x74d   : > { %v5019_v61 = vpack.c.bf16 %v4732_v22, %v4728_v36 }
 0x74e   : > { %v5020_v11 = vpack.c.bf16 %v4734_v41, %v4730_v31 }
 0x750   : > { %5836 = vmatprep.mubr.bf16.mxu1 %v5020_v11 }
 0x751   : > { %5837 = vmatmul.mubr.bf16.gmra.mrb[212].mxu1 %v5019_v61 }
 0x75b   : > { %v4737_v28 = vpop.f32.mrb[216].mxu0 }
 0x75c   : > { %v4739_v37 = vpop.f32.mrb[217].mxu0  ;;  %v4738_v4 = vadd.f32 %v4737_v28, %v9913_v25 }
 0x75d   : > { %v4741_v32 = vpop.f32.mrb[218].mxu0  ;;  %v4740_v20 = vadd.f32 %v4739_v37, %v9918_v54 }
 0x75e   : > { %v4742_v3 = vadd.f32 %v4741_v32, %v9913_v25  ;;  %v4743_v39 = vpop.f32.mrb[219].mxu0 }
 0x75f   : > { %v4744_v38 = vadd.f32 %v4743_v39, %v9918_v54 }
 0x760   : > { %v5021_v12 = vpack.c.bf16 %v4742_v3, %v4738_v4 }
 0x761   : > { %v5022_v26 = vpack.c.bf16 %v4744_v38, %v4740_v20 }
 0x763   : > { %5844 = vmatprep.mubr.bf16.mxu1 %v5022_v26 }
 0x764   : > { %5845 = vmatmul.mubr.bf16.gmra.mrb[216].mxu1 %v5021_v12 }
 0x76e   : > { %v4747_v24 = vpop.f32.mrb[220].mxu0 }
 0x76f   : > { %v4749_v56 = vpop.f32.mrb[221].mxu0  ;;  %v4748_v19 = vadd.f32 %v4747_v24, %v9913_v25 }
 0x770   : > { %v4751_v46 = vpop.f32.mrb[222].mxu0  ;;  %v4750_v62 = vadd.f32 %v4749_v56, %v9918_v54 }
 0x771   : > { %v4752_v2 = vadd.f32 %v4751_v46, %v9913_v25  ;;  %v4753_v5 = vpop.f32.mrb[223].mxu0 }
 0x772   : > { %v4754_v58 = vadd.f32 %v4753_v5, %v9918_v54 }
 0x773   : > { %v5023_v10 = vpack.c.bf16 %v4752_v2, %v4748_v19 }
 0x774   : > { %v5024_v8 = vpack.c.bf16 %v4754_v58, %v4750_v62 }
 0x776   : > { %5852 = vmatprep.mubr.bf16.mxu1 %v5024_v8 }
 0x777   : > { %5853 = vmatmul.mubr.bf16.gmra.mrb[220].mxu1 %v5023_v10 }
 0x781   : > { %v4757_v1 = vpop.f32.mrb[224].mxu0 }
 0x782   : > { %v4759_v57 = vpop.f32.mrb[225].mxu0  ;;  %v4758_v50 = vadd.f32 %v4757_v1, %v9913_v25 }
 0x783   : > { %v4761_v18 = vpop.f32.mrb[226].mxu0  ;;  %v4760_v22 = vadd.f32 %v4759_v57, %v9918_v54 }
 0x784   : > { %v4762_v63 = vadd.f32 %v4761_v18, %v9913_v25  ;;  %v4763_v36 = vpop.f32.mrb[227].mxu0 }
 0x785   : > { %v4764_v30 = vadd.f32 %v4763_v36, %v9918_v54 }
 0x786   : > { %v5025_v31 = vpack.c.bf16 %v4762_v63, %v4758_v50 }
 0x787   : > { %v5026_v41 = vpack.c.bf16 %v4764_v30, %v4760_v22 }
 0x789   : > { %5860 = vmatprep.mubr.bf16.mxu1 %v5026_v41 }
 0x78a   : > { %5861 = vmatmul.mubr.bf16.gmra.mrb[224].mxu1 %v5025_v31  ;;  %v10671_v31 = vld [vmem:[#allocation16_spill] sm:$0xff] }
 0x78b   : > { %v5205_v41 = vmul.f32 %v9564_v7, %v10671_v31 }
 0x794   : > { %v4767_v61 = vpop.f32.mrb[228].mxu0 }
 0x795   : > { %v4769_v11 = vpop.f32.mrb[229].mxu0  ;;  %v4768_v37 = vadd.f32 %v4767_v61, %v9913_v25  ;;  %v10672_v61 = vld [vmem:[#allocation17_spill] sm:$0xff] }
 0x796   : > { %v4771_v28 = vpop.f32.mrb[230].mxu0  ;;  %v4770_v3 = vadd.f32 %v4769_v11, %v9918_v54  ;;  %v5369_v11 = vmul.f32 %v9567_v48, %v10672_v61 }
 0x797   : > { %v4772_v32 = vadd.f32 %v4771_v28, %v9913_v25  ;;  %v4773_v4 = vpop.f32.mrb[231].mxu0  ;;  %v10673_v28 = vld [vmem:[#allocation9_spill] sm:$0xff] }
 0x798   : > { %v4774_v39 = vadd.f32 %v4773_v4, %v9918_v54 }
 0x799   : > { %v5027_v20 = vpack.c.bf16 %v4772_v32, %v4768_v37  ;;  %v5206_v37 = vmul.f32 %v9564_v7, %v10673_v28  ;;  %v10674_v32 = vld [vmem:[#allocation20_spill] sm:$0xff]  ;;  %v10681_v28 = vld [vmem:[#allocation35_spill] sm:$0xff] }
 0x79a   : > { %v5028_v38 = vpack.c.bf16 %v4774_v39, %v4770_v3  ;;  %v5370_v4 = vmul.f32 %v9567_v48, %v10674_v32  ;;  %v5401_v3 = vadd.f32 %v5369_v11, %v5205_v41  ;;  %v10675_v39 = vld [vmem:[#allocation34_spill] sm:$0xff]  ;;  %v5957_v11 = vld [vmem:[%s10614_s11] sm:$0x7] }
 0x79c   : > { %5868 = vmatprep.mubr.bf16.mxu1 %v5028_v38  ;;  %v5402_v38 = vadd.f32 %v5370_v4, %v5206_v37  ;;  %v5567_v37 = vmul.f32 %v9580_v27, %v10681_v28 }
 0x79d   : > { %5869 = vmatmul.mubr.bf16.gmra.mrb[228].mxu1 %v5027_v20  ;;  %v5565_v20 = vmul.f32 %v9580_v27, %v10675_v39 }
 0x7a7   : > { %v4777_v12 = vpop.f32.mrb[232].mxu0 }
 0x7a8   : > { %v4779_v26 = vpop.f32.mrb[233].mxu0  ;;  %v4778_v56 = vadd.f32 %v4777_v12, %v9913_v25  ;;  %v10676_v12 = vld [vmem:[#allocation33_spill] sm:$0xff] }
 0x7a9   : > { %v4781_v24 = vpop.f32.mrb[234].mxu0  ;;  %v4780_v2 = vadd.f32 %v4779_v26, %v9918_v54  ;;  %v5566_v26 = vmul.f32 %v9580_v27, %v10676_v12 }
 0x7aa   : > { %v4782_v46 = vadd.f32 %v4781_v24, %v9913_v25  ;;  %v4783_v19 = vpop.f32.mrb[235].mxu0  ;;  %v10677_v24 = vld [vmem:[#allocation10_spill] sm:$0xff] }
 0x7ab   : > { %v4784_v5 = vadd.f32 %v4783_v19, %v9918_v54 }
 0x7ac   : > { %v5029_v62 = vpack.c.bf16 %v4782_v46, %v4778_v56  ;;  %v5207_v56 = vmul.f32 %v9564_v7, %v10677_v24  ;;  %v10678_v46 = vld [vmem:[#allocation18_spill] sm:$0xff] }
 0x7ad   : > { %v5030_v58 = vpack.c.bf16 %v4784_v5, %v4780_v2  ;;  %v5371_v19 = vmul.f32 %v9567_v48, %v10678_v46  ;;  %v5597_v5 = vadd.f32 %v5565_v20, %v5401_v3 }
 0x7af   : > { %5876 = vmatprep.mubr.bf16.mxu1 %v5030_v58  ;;  %v10679_v58 = vld [vmem:[#allocation11_spill] sm:$0xff]  ;;  %v5636_v4 = vadd.f32 %v9942_v43, %v5597_v5 }
 0x7b0   : > { %5877 = vmatmul.mubr.bf16.gmra.mrb[232].mxu1 %v5029_v62 }
 0x7ba   : > { %v4787_v10 = vpop.f32.mrb[236].mxu0 }
 0x7bb   : > { %v4789_v8 = vpop.f32.mrb[237].mxu0  ;;  %v4788_v57 = vadd.f32 %v4787_v10, %v9913_v25  ;;  %v5208_v10 = vmul.f32 %v9564_v7, %v10679_v58 }
 0x7bc   : > { %v4791_v1 = vpop.f32.mrb[238].mxu0  ;;  %v4790_v63 = vadd.f32 %v4789_v8, %v9918_v54  ;;  %v10680_v8 = vld [vmem:[#allocation19_spill] sm:$0xff] }
 0x7bd   : > { %v4792_v18 = vadd.f32 %v4791_v1, %v9913_v25  ;;  %v4793_v50 = vpop.f32.mrb[239].mxu0  ;;  %v5372_v1 = vmul.f32 %v9567_v48, %v10680_v8 }
 0x7be   : > { %v4794_v36 = vadd.f32 %v4793_v50, %v9918_v54 }
 0x7bf   : > { %v5031_v22 = vpack.c.bf16 %v4792_v18, %v4788_v57  ;;  %v5598_v57 = vadd.f32 %v5566_v26, %v5402_v38  ;;  %v5404_v20 = vadd.f32 %v5372_v1, %v5208_v10  ;;  %v10682_v38 = vld [vmem:[#allocation36_spill] sm:$0xff] }
 0x7c0   : > { %v5032_v30 = vpack.c.bf16 %v4794_v36, %v4790_v63  ;;  %v5568_v12 = vmul.f32 %v9580_v27, %v10682_v38 }
 0x7c1   : > { %v5637_v24 = vadd.f32 %v9942_v43, %v5598_v57 }
 0x7c2   : > { %5884 = vmatprep.mubr.bf16.mxu1 %v5032_v30  ;;  %v5403_v30 = vadd.f32 %v5371_v19, %v5207_v56  ;;  %v5600_v10 = vadd.f32 %v5568_v12, %v5404_v20  ;;  %v10684_v12 = vld [vmem:[#allocation12_spill] sm:$0xff] }
 0x7c3   : > { %5885 = vmatmul.mubr.bf16.gmra.mrb[236].mxu1 %v5031_v22 }
 0x7c4   : > { %v5599_v5 = vadd.f32 %v5567_v37, %v5403_v30 }
 0x7cd   : > { %v4797_v2 = vpop.f32.mrb[240].mxu0 }
 0x7ce   : > { %v4799_v62 = vpop.f32.mrb[241].mxu0  ;;  %v4798_v50 = vadd.f32 %v4797_v2, %v9913_v25  ;;  %v10130_v2 = vrot.slane %v5957_v11, %v7997_v6 }
 0x7cf   : > { %v4801_v18 = vpop.f32.mrb[242].mxu0  ;;  %v6945_v36 = vpop.f32.mrb[192].mxu1  ;;  %v4800_v31 = vadd.f32 %v4799_v62, %v9918_v54  ;;  %v10133_v62 = vrot.slane %v5957_v11, %v8003_v9 }
 0x7d0   : > { %v4802_v63 = vadd.f32 %v4801_v18, %v9913_v25  ;;  %v4803_v22 = vpop.f32.mrb[243].mxu0  ;;  %v6946_v61 = vpop.f32.mrb[193].mxu1 }
 0x7d1   : > { %v4804_v41 = vadd.f32 %v4803_v22, %v9918_v54  ;;  %v6947_v3 = vadd.f32 %v6946_v61, %v6945_v36  ;;  %v6948_v39 = vpop.f32.mrb[194].mxu1  ;;  %v5638_v22 = vadd.f32 %v9942_v43, %v5599_v5 }
 0x7d2   : > { %v5033_v32 = vpack.c.bf16 %v4802_v63, %v4798_v50  ;;  %v6949_v56 = vpop.f32.mrb[195].mxu1  ;;  %v10683_v63 = vld [vmem:[#allocation8_spill] sm:$0xff] }
 0x7d3   : > { %v5034_v26 = vpack.c.bf16 %v4804_v41, %v4800_v31  ;;  %v5799_v46 = vadd.f32 %v6947_v3, %v5636_v4  ;;  %v6950_v19 = vadd.f32 %v6949_v56, %v6948_v39  ;;  %v10138_v36 = vrot.slane %v5957_v11, %v10683_v63 }
 0x7d4   : > { %v5639_v31 = vadd.f32 %v9942_v43, %v5600_v10  ;;  %v10687_v10 = vld [vmem:[#allocation21_spill] sm:$0xff] }
 0x7d5   : > { %5892 = vmatprep.mubr.bf16.mxu1 %v5034_v26  ;;  %v5925_v58 = vmax.f32 %v5799_v46, 0.0  ;;  %v5802_v8 = vadd.f32 %v6950_v19, %v5637_v24  ;;  %v5209_v26 = vmul.f32 %v9564_v7, %v10684_v12  ;;  %v10685_v24 = vld [vmem:[#allocation22_spill] sm:$0xff] }
 0x7d6   : > { %5893 = vmatmul.mubr.bf16.gmra.mrb[240].mxu1 %v5033_v32  ;;  %v5373_v56 = vmul.f32 %v9567_v48, %v10685_v24 }
 0x7d7   : > { %v5926_v1 = vmax.f32 %v5802_v8, 0.0  ;;  %v6062_v50 = vmul.f32 %v10130_v2, %v5925_v58  ;;  %v5962_v57 = vmul.f32 %v10133_v62, %v5925_v58  ;;  %v6162_v37 = vmul.f32 %v10138_v36, %v5925_v58  ;;  %v10686_v58 = vld [vmem:[#allocation13_spill] sm:$0xff] }
 0x7d8   : > { %v6951_v18 = vpop.f32.mrb[196].mxu1  ;;  %v5210_v8 = vmul.f32 %v9564_v7, %v10686_v58 }
 0x7d9   : > { %v6952_v6 = vpop.f32.mrb[197].mxu1  ;;  %6094 = vadd.xlane.f32.xlu0 %v6062_v50  ;;  %5994 = vadd.xlane.f32.xlu1 %v5962_v57  ;;  %v6063_v32 = vmul.f32 %v10130_v2, %v5926_v1  ;;  %v6163_v20 = vmul.f32 %v10138_v36, %v5926_v1  ;;  %v5963_v38 = vmul.f32 %v10133_v62, %v5926_v1 }
 0x7da   : > { %v6953_v9 = vadd.f32 %v6952_v6, %v6951_v18  ;;  %v6954_v30 = vpop.f32.mrb[198].mxu1  ;;  %v5374_v18 = vmul.f32 %v9567_v48, %v10687_v10 }
 0x7db   : > { %v6955_v41 = vpop.f32.mrb[199].mxu1 }
 0x7dc   : > { %v5807_v61 = vadd.f32 %v6953_v9, %v5638_v22  ;;  %v6956_v28 = vadd.f32 %v6955_v41, %v6954_v30  ;;  %v5405_v9 = vadd.f32 %v5373_v56, %v5209_v26  ;;  %v10688_v30 = vld [vmem:[#allocation37_spill] sm:$0xff] }
 0x7dd   : > { %6194 = vadd.xlane.f32.xlu0 %v6162_v37  ;;  %6096 = vadd.xlane.f32.xlu1 %v6063_v32  ;;  %v10689_v37 = vld [vmem:[#allocation38_spill] sm:$0xff] }
 0x7de   : > { %v5810_v4 = vadd.f32 %v6956_v28, %v5639_v31  ;;  %v5927_v11 = vmax.f32 %v5807_v61, 0.0  ;;  %v5569_v31 = vmul.f32 %v9580_v27, %v10688_v30  ;;  %v5406_v28 = vadd.f32 %v5374_v18, %v5210_v8 }
 0x7df   : > { %v5570_v32 = vmul.f32 %v9580_v27, %v10689_v37  ;;  %v10693_v37 = vld [vmem:[#allocation23_spill] sm:$0xff] }
 0x7e0   : > { %v5928_v3 = vmax.f32 %v5810_v4, 0.0  ;;  %v4807_v39 = vpop.f32.mrb[244].mxu0  ;;  %v5964_v22 = vmul.f32 %v10133_v62, %v5927_v11  ;;  %v6164_v56 = vmul.f32 %v10138_v36, %v5927_v11 }
 0x7e1   : > { %v4809_v46 = vpop.f32.mrb[245].mxu0  ;;  %6196 = vadd.xlane.f32.xlu1 %v6163_v20  ;;  %5996 = vadd.xlane.f32.xlu0 %v5963_v38  ;;  %v4808_v1 = vadd.f32 %v4807_v39, %v9913_v25  ;;  %v6064_v39 = vmul.f32 %v10130_v2, %v5927_v11  ;;  %v5601_v20 = vadd.f32 %v5569_v31, %v5405_v9 }
 0x7e2   : > { %v4811_v19 = vpop.f32.mrb[246].mxu0  ;;  %v5965_v5 = vmul.f32 %v10133_v62, %v5928_v3  ;;  %v4810_v63 = vadd.f32 %v4809_v46, %v9918_v54  ;;  %v6065_v4 = vmul.f32 %v10130_v2, %v5928_v3  ;;  %v5602_v38 = vadd.f32 %v5570_v32, %v5406_v28 }
 0x7e3   : > { %v4812_v50 = vadd.f32 %v4811_v19, %v9913_v25  ;;  %v4813_v57 = vpop.f32.mrb[247].mxu0  ;;  %v6165_v24 = vmul.f32 %v10138_v36, %v5928_v3  ;;  %v5640_v46 = vadd.f32 %v9942_v43, %v5601_v20  ;;  %v10690_v3 = vld [vmem:[#allocation14_spill] sm:$0xff]  ;;  %v5376_v32 = vmul.f32 %v9567_v48, %v10693_v37 }
 0x7e4   : > { %v4814_v6 = vadd.f32 %v4813_v57, %v9918_v54  ;;  %v5641_v10 = vadd.f32 %v9942_v43, %v5602_v38  ;;  %v5211_v11 = vmul.f32 %v9564_v7, %v10690_v3 }
 0x7e5   : > { %v5035_v41 = vpack.c.bf16 %v4812_v50, %v4808_v1  ;;  %6000 = vadd.xlane.f32.xlu1 %v5965_v5  ;;  %5998 = vadd.xlane.f32.xlu0 %v5964_v22  ;;  %v10691_v22 = vld [vmem:[#allocation24_spill] sm:$0xff] }
 0x7e6   : > { %v5036_v61 = vpack.c.bf16 %v4814_v6, %v4810_v63  ;;  %v5375_v9 = vmul.f32 %v9567_v48, %v10691_v22 }
 0x7e8   : > { %5900 = vmatprep.mubr.bf16.mxu1 %v5036_v61  ;;  %v10692_v61 = vld [vmem:[#allocation15_spill] sm:$0xff] }
 0x7e9   : > { %5901 = vmatmul.mubr.bf16.gmra.mrb[244].mxu1 %v5035_v41  ;;  %6100 = vadd.xlane.f32.xlu1 %v6065_v4  ;;  %v5212_v28 = vmul.f32 %v9564_v7, %v10692_v61 }
 0x7ea   : > { %6098 = vadd.xlane.f32.xlu0 %v6064_v39 }
 0x7eb   : > { %v6957_v12 = vpop.f32.mrb[200].mxu1 }
 0x7ec   : > { %v6958_v26 = vpop.f32.mrb[201].mxu1 }
 0x7ed   : > { %v6959_v19 = vadd.f32 %v6958_v26, %v6957_v12  ;;  %v6960_v5 = vpop.f32.mrb[202].mxu1  ;;  %6200 = vadd.xlane.f32.xlu1 %v6165_v24  ;;  %v5407_v24 = vadd.f32 %v5375_v9, %v5211_v11 }
 0x7ee   : > { %6198 = vadd.xlane.f32.xlu0 %v6164_v56  ;;  %v6961_v58 = vpop.f32.mrb[203].mxu1  ;;  %v10694_v56 = vld [vmem:[#allocation39_spill] sm:$0xff] }
 0x7ef   : > { %v5815_v8 = vadd.f32 %v6959_v19, %v5640_v46  ;;  %v6962_v18 = vadd.f32 %v6961_v58, %v6960_v5  ;;  %v5571_v46 = vmul.f32 %v9580_v27, %v10694_v56  ;;  %v5408_v5 = vadd.f32 %v5376_v32, %v5212_v28  ;;  %v10695_v58 = vld [vmem:[#allocation40_spill] sm:$0xff] }
 0x7f1   : > { %v5929_v1 = vmax.f32 %v5815_v8, 0.0  ;;  %v5818_v50 = vadd.f32 %v6962_v18, %v5641_v10  ;;  %v5572_v8 = vmul.f32 %v9580_v27, %v10695_v58  ;;  %v5603_v18 = vadd.f32 %v5571_v46, %v5407_v24 }
 0x7f3   : > { %v5930_v57 = vmax.f32 %v5818_v50, 0.0  ;;  %v4817_v63 = vpop.f32.mrb[248].mxu0  ;;  %v5966_v6 = vmul.f32 %v10133_v62, %v5929_v1  ;;  %v6066_v26 = vmul.f32 %v10130_v2, %v5929_v1  ;;  %v6166_v10 = vmul.f32 %v10138_v36, %v5929_v1 }
 0x7f4   : > { %v4819_v30 = vpop.f32.mrb[249].mxu0  ;;  %v4818_v4 = vadd.f32 %v4817_v63, %v9913_v25  ;;  %v5604_v63 = vadd.f32 %v5572_v8, %v5408_v5  ;;  %v5642_v11 = vadd.f32 %v9942_v43, %v5603_v18 }
 0x7f5   : > { %v4821_v31 = vpop.f32.mrb[250].mxu0  ;;  %6002 = vadd.xlane.f32.xlu0 %v5966_v6  ;;  %v5967_v41 = vmul.f32 %v10133_v62, %v5930_v57  ;;  %v4820_v38 = vadd.f32 %v4819_v30, %v9918_v54  ;;  %v6067_v48 = vmul.f32 %v10130_v2, %v5930_v57  ;;  %v6167_v50 = vmul.f32 %v10138_v36, %v5930_v57 }
 0x7f6   : > { %v4822_v39 = vadd.f32 %v4821_v31, %v9913_v25  ;;  %v4823_v20 = vpop.f32.mrb[251].mxu0  ;;  %v5643_v27 = vadd.f32 %v9942_v43, %v5604_v63 }
 0x7f7   : > { %v4824_v12 = vadd.f32 %v4823_v20, %v9918_v54  ;;  %6004 = vadd.xlane.f32.xlu1 %v5967_v41 }
 0x7f8   : > { %v5037_v7 = vpack.c.bf16 %v4822_v39, %v4818_v4 }
 0x7f9   : > { %v5038_v19 = vpack.c.bf16 %v4824_v12, %v4820_v38  ;;  %6102 = vadd.xlane.f32.xlu0 %v6066_v26 }
 0x7fb   : > { %5908 = vmatprep.mubr.bf16.mxu1 %v5038_v19  ;;  %6104 = vadd.xlane.f32.xlu1 %v6067_v48 }
 0x7fc   : > { %5909 = vmatmul.mubr.bf16.gmra.mrb[248].mxu1 %v5037_v7 }
 0x7fd   : > { %6202 = vadd.xlane.f32.xlu0 %v6166_v10 }
 0x7fe   : > { %v6963_v6 = vpop.f32.mrb[204].mxu1 }
 0x7ff   : > { %v6964_v3 = vpop.f32.mrb[205].mxu1  ;;  %6204 = vadd.xlane.f32.xlu1 %v6167_v50 }
 0x800   : > { %v6965_v22 = vadd.f32 %v6964_v3, %v6963_v6  ;;  %v6966_v9 = vpop.f32.mrb[206].mxu1 }
 0x801   : > { %v6967_v30 = vpop.f32.mrb[207].mxu1 }
 0x802   : > { %v5823_v31 = vadd.f32 %v6965_v22, %v5642_v11  ;;  %v6968_v41 = vadd.f32 %v6967_v30, %v6966_v9 }
 0x804   : > { %v5931_v61 = vmax.f32 %v5823_v31, 0.0  ;;  %v5826_v1 = vadd.f32 %v6968_v41, %v5643_v27  ;;  %v10212_v27 = vpop.xlane.xlu0 %4916 }
 0x806   : > { %v5932_v28 = vmax.f32 %v5826_v1, 0.0  ;;  %v4827_v37 = vpop.f32.mrb[252].mxu0  ;;  %v5968_v32 = vmul.f32 %v10133_v62, %v5931_v61  ;;  %v6068_v24 = vmul.f32 %v10130_v2, %v5931_v61  ;;  %v6168_v19 = vmul.f32 %v10138_v36, %v5931_v61  ;;  %v10214_v1 = vpop.xlane.xlu1 %4913 }
 0x807   : > { %v4829_v57 = vpop.f32.mrb[253].mxu0  ;;  %v4828_v20 = vadd.f32 %v4827_v37, %v9913_v25 }
 0x808   : > { %v4831_v4 = vpop.f32.mrb[254].mxu0  ;;  %6006 = vadd.xlane.f32.xlu0 %v5968_v32  ;;  %v5969_v39 = vmul.f32 %v10133_v62, %v5932_v28  ;;  %v4830_v26 = vadd.f32 %v4829_v57, %v9918_v54  ;;  %v6069_v7 = vmul.f32 %v10130_v2, %v5932_v28  ;;  %v10217_v57 = vpop.xlane.xlu0 %4919 }
 0x809   : > { %v4832_v38 = vadd.f32 %v4831_v4, %v9913_v25  ;;  %v4833_v12 = vpop.f32.mrb[255].mxu0  ;;  %v6169_v25 = vmul.f32 %v10138_v36, %v5932_v28 }
 0x80a   : > { %v4834_v43 = vadd.f32 %v4833_v12, %v9918_v54  ;;  %6008 = vadd.xlane.f32.xlu1 %v5969_v39 }
 0x80b   : > { %v5039_v56 = vpack.c.bf16 %v4832_v38, %v4828_v20  ;;  %v10220_v20 = vpop.xlane.xlu1 %4922 }
 0x80c   : > { %v5040_v46 = vpack.c.bf16 %v4834_v43, %v4830_v26  ;;  %6106 = vadd.xlane.f32.xlu0 %v6068_v24  ;;  %v10223_v26 = vpop.xlane.xlu0 %4925 }
 0x80e   : > { %5916 = vmatprep.mubr.bf16.mxu1 %v5040_v46  ;;  %6108 = vadd.xlane.f32.xlu1 %v6069_v7 }
 0x80f   : > { %5917 = vmatmul.mubr.bf16.gmra.mrb[252].mxu1 %v5039_v56  ;;  %v10226_v24 = vpop.xlane.xlu1 %4928 }
 0x810   : > { %6206 = vadd.xlane.f32.xlu0 %v6168_v19  ;;  %v10229_v56 = vpop.xlane.xlu0 %4931 }
 0x811   : > { %v6969_v48 = vpop.f32.mrb[208].mxu1 }
 0x812   : > { %v6970_v5 = vpop.f32.mrb[209].mxu1  ;;  %6208 = vadd.xlane.f32.xlu1 %v6169_v25 }
 0x813   : > { %v6971_v54 = vadd.f32 %v6970_v5, %v6969_v48  ;;  %v6972_v58 = vpop.f32.mrb[210].mxu1  ;;  %v10232_v46 = vpop.xlane.xlu1 %4934 }
 0x814   : > { %v6973_v8 = vpop.f32.mrb[211].mxu1  ;;  %v10235_v19 = vpop.xlane.xlu0 %4937 }
 0x815   : > { %v5831_v10 = vadd.f32 %v6971_v54, %v9949_v40  ;;  %v6974_v18 = vadd.f32 %v6973_v8, %v6972_v58 }
 0x817   : > { %v5933_v50 = vmax.f32 %v5831_v10, 0.0  ;;  %v5834_v63 = vadd.f32 %v6974_v18, %v10018_v44  ;;  %v10238_v48 = vpop.xlane.xlu1 %4940 }
 0x818   : > { %v10240_v10 = vpop.xlane.xlu0 %4943 }
 0x819   : > { %v5934_v6 = vmax.f32 %v5834_v63, 0.0  ;;  %v5970_v3 = vmul.f32 %v10133_v62, %v5933_v50  ;;  %v6070_v22 = vmul.f32 %v10130_v2, %v5933_v50  ;;  %v6170_v30 = vmul.f32 %v10138_v36, %v5933_v50 }
 0x81b   : > { %6010 = vadd.xlane.f32.xlu0 %v5970_v3  ;;  %v5971_v11 = vmul.f32 %v10133_v62, %v5934_v6  ;;  %v6071_v9 = vmul.f32 %v10130_v2, %v5934_v6  ;;  %v6171_v40 = vmul.f32 %v10138_v36, %v5934_v6  ;;  %v10242_v50 = vpop.xlane.xlu1 %4946 }
 0x81d   : > { %6012 = vadd.xlane.f32.xlu1 %v5971_v11 }
 0x81f   : > { %6110 = vadd.xlane.f32.xlu0 %v6070_v22  ;;  %v10246_v22 = vpop.xlane.xlu0 %4949 }
 0x821   : > { %6112 = vadd.xlane.f32.xlu1 %v6071_v9  ;;  %v10248_v9 = vpop.xlane.xlu1 %4952 }
 0x823   : > { %6210 = vadd.xlane.f32.xlu0 %v6170_v30 }
 0x824   : > { %v6975_v31 = vpop.f32.mrb[212].mxu1 }
 0x825   : > { %v6976_v44 = vpop.f32.mrb[213].mxu1  ;;  %6212 = vadd.xlane.f32.xlu1 %v6171_v40 }
 0x826   : > { %v6977_v41 = vadd.f32 %v6976_v44, %v6975_v31  ;;  %v6978_v61 = vpop.f32.mrb[214].mxu1  ;;  %v10252_v44 = vpop.xlane.xlu0 %4955 }
 0x827   : > { %v6979_v28 = vpop.f32.mrb[215].mxu1 }
 0x828   : > { %v5839_v37 = vadd.f32 %v6977_v41, %v9953_v60  ;;  %v6980_v32 = vadd.f32 %v6979_v28, %v6978_v61  ;;  %v10254_v41 = vpop.xlane.xlu1 %4958 }
 0x82a   : > { %v5935_v4 = vmax.f32 %v5839_v37, 0.0  ;;  %v5842_v39 = vadd.f32 %v6980_v32, %v10022_v13  ;;  %v10258_v61 = vpop.xlane.xlu0 %4961 }
 0x82c   : > { %v5936_v38 = vmax.f32 %v5842_v39, 0.0  ;;  %v5972_v12 = vmul.f32 %v10133_v62, %v5935_v4  ;;  %v6072_v60 = vmul.f32 %v10130_v2, %v5935_v4  ;;  %v6172_v7 = vmul.f32 %v10138_v36, %v5935_v4  ;;  %v10260_v28 = vpop.xlane.xlu1 %4964 }
 0x82e   : > { %6014 = vadd.xlane.f32.xlu0 %v5972_v12  ;;  %v5973_v43 = vmul.f32 %v10133_v62, %v5936_v38  ;;  %v6073_v13 = vmul.f32 %v10130_v2, %v5936_v38  ;;  %v6173_v25 = vmul.f32 %v10138_v36, %v5936_v38  ;;  %v10264_v4 = vpop.xlane.xlu0 %4967 }
 0x830   : > { %6016 = vadd.xlane.f32.xlu1 %v5973_v43  ;;  %v10266_v38 = vpop.xlane.xlu1 %4970 }
 0x832   : > { %6114 = vadd.xlane.f32.xlu0 %v6072_v60 }
 0x834   : > { %6116 = vadd.xlane.f32.xlu1 %v6073_v13 }
 0x836   : > { %6214 = vadd.xlane.f32.xlu0 %v6172_v7  ;;  %v10268_v7 = vpop.xlane.xlu0 %4973 }
 0x837   : > { %v6981_v5 = vpop.f32.mrb[216].mxu1 }
 0x838   : > { %v6982_v54 = vpop.f32.mrb[217].mxu1  ;;  %6216 = vadd.xlane.f32.xlu1 %v6173_v25 }
 0x839   : > { %v6983_v58 = vadd.f32 %v6982_v54, %v6981_v5  ;;  %v6984_v8 = vpop.f32.mrb[218].mxu1  ;;  %v10271_v54 = vpop.xlane.xlu1 %4976 }
 0x83a   : > { %v6985_v18 = vpop.f32.mrb[219].mxu1 }
 0x83b   : > { %v5847_v63 = vadd.f32 %v6983_v58, %v9958_v21  ;;  %v6986_v6 = vadd.f32 %v6985_v18, %v6984_v8  ;;  %v10274_v18 = vpop.xlane.xlu0 %4979 }
 0x83d   : > { %v5937_v3 = vmax.f32 %v5847_v63, 0.0  ;;  %v5850_v11 = vadd.f32 %v6986_v6, %v10026_v33 }
 0x83f   : > { %v5938_v30 = vmax.f32 %v5850_v11, 0.0  ;;  %v5974_v40 = vmul.f32 %v10133_v62, %v5937_v3  ;;  %v6074_v21 = vmul.f32 %v10130_v2, %v5937_v3  ;;  %v6174_v37 = vmul.f32 %v10138_v36, %v5937_v3  ;;  %v10277_v3 = vpop.xlane.xlu1 %4982 }
 0x841   : > { %6018 = vadd.xlane.f32.xlu0 %v5974_v40  ;;  %v5975_v31 = vmul.f32 %v10133_v62, %v5938_v30  ;;  %v6075_v33 = vmul.f32 %v10130_v2, %v5938_v30  ;;  %v6175_v32 = vmul.f32 %v10138_v36, %v5938_v30  ;;  %v10280_v30 = vpop.xlane.xlu0 %4985 }
 0x843   : > { %6020 = vadd.xlane.f32.xlu1 %v5975_v31  ;;  %v10283_v40 = vpop.xlane.xlu1 %4988 }
 0x845   : > { %6118 = vadd.xlane.f32.xlu0 %v6074_v21  ;;  %v10286_v31 = vpop.xlane.xlu0 %4991 }
 0x847   : > { %6120 = vadd.xlane.f32.xlu1 %v6075_v33  ;;  %v10289_v33 = vpop.xlane.xlu1 %4994 }
 0x849   : > { %6218 = vadd.xlane.f32.xlu0 %v6174_v37 }
 0x84a   : > { %v6987_v39 = vpop.f32.mrb[220].mxu1 }
 0x84b   : > { %v6988_v12 = vpop.f32.mrb[221].mxu1  ;;  %6220 = vadd.xlane.f32.xlu1 %v6175_v32 }
 0x84c   : > { %v6989_v43 = vadd.f32 %v6988_v12, %v6987_v39  ;;  %v6990_v60 = vpop.f32.mrb[222].mxu1  ;;  %v10292_v39 = vpop.xlane.xlu0 %4997 }
 0x84d   : > { %v6991_v13 = vpop.f32.mrb[223].mxu1 }
 0x84e   : > { %v5855_v25 = vadd.f32 %v6989_v43, %v9962_v47  ;;  %v6992_v5 = vadd.f32 %v6991_v13, %v6990_v60  ;;  %v10294_v43 = vpop.xlane.xlu1 %5000 }
 0x850   : > { %v5939_v58 = vmax.f32 %v5855_v25, 0.0  ;;  %v5858_v8 = vadd.f32 %v6992_v5, %v10030_v0 }
 0x852   : > { %v5940_v63 = vmax.f32 %v5858_v8, 0.0  ;;  %v5976_v6 = vmul.f32 %v10133_v62, %v5939_v58  ;;  %v6076_v47 = vmul.f32 %v10130_v2, %v5939_v58  ;;  %v6176_v21 = vmul.f32 %v10138_v36, %v5939_v58  ;;  %v10299_v58 = vpop.xlane.xlu1 %5006 }
 0x853   : > { %10697 = vst [vmem:[#allocation26_spill] sm:$0xff] %v10299_v58 }
 0x854   : > { %6022 = vadd.xlane.f32.xlu0 %v5976_v6  ;;  %v5977_v11 = vmul.f32 %v10133_v62, %v5940_v63  ;;  %v6077_v0 = vmul.f32 %v10130_v2, %v5940_v63  ;;  %v6177_v37 = vmul.f32 %v10138_v36, %v5940_v63  ;;  %v10297_v6 = vpop.xlane.xlu0 %5003 }
 0x855   : > { %10696 = vst [vmem:[#allocation25_spill] sm:$0xff] %v10297_v6 }
 0x856   : > { %6024 = vadd.xlane.f32.xlu1 %v5977_v11 }
 0x858   : > { %6122 = vadd.xlane.f32.xlu0 %v6076_v47 }
 0x85a   : > { %6124 = vadd.xlane.f32.xlu1 %v6077_v0 }
 0x85c   : > { %6222 = vadd.xlane.f32.xlu0 %v6176_v21 }
 0x85d   : > { %v6993_v32 = vpop.f32.mrb[224].mxu1 }
 0x85e   : > { %v6994_v12 = vpop.f32.mrb[225].mxu1  ;;  %6224 = vadd.xlane.f32.xlu1 %v6177_v37 }
 0x85f   : > { %v6995_v60 = vadd.f32 %v6994_v12, %v6993_v32  ;;  %v6996_v13 = vpop.f32.mrb[226].mxu1 }
 0x860   : > { %v6997_v25 = vpop.f32.mrb[227].mxu1 }
 0x861   : > { %v5863_v5 = vadd.f32 %v6995_v60, %v9966_v49  ;;  %v6998_v8 = vadd.f32 %v6997_v25, %v6996_v13 }
 0x863   : > { %v5941_v11 = vmax.f32 %v5863_v5, 0.0  ;;  %v5866_v63 = vadd.f32 %v6998_v8, %v10034_v15  ;;  %v10309_v15 = vld [vmem:[%s10615_s12] ss:$0 sm:$0xff] }
 0x865   : > { %v5942_v47 = vmax.f32 %v5866_v63, 0.0  ;;  %v5978_v0 = vmul.f32 %v10133_v62, %v5941_v11  ;;  %v6078_v49 = vmul.f32 %v10130_v2, %v5941_v11  ;;  %v6178_v63 = vmul.f32 %v10138_v36, %v5941_v11 }
 0x866   : > { %v6095_v21 = vpop.xlane.xlu0 %6094  ;;  %v5995_v37 = vpop.xlane.xlu1 %5994 }
 0x867   : > { %6026 = vadd.xlane.f32.xlu0 %v5978_v0  ;;  %v5979_v32 = vmul.f32 %v10133_v62, %v5942_v47  ;;  %v6259_v12 = vsel %vm6258_vm0, %v5995_v37, %v6095_v21  ;;  %v6079_v25 = vmul.f32 %v10130_v2, %v5942_v47 }
 0x869   : > { %6028 = vadd.xlane.f32.xlu1 %v5979_v32  ;;  %v6179_v32 = vmul.f32 %v10138_v36, %v5942_v47 }
 0x86a   : > { %v6195_v60 = vpop.xlane.xlu0 %6194  ;;  %v6097_v13 = vpop.xlane.xlu1 %6096 }
 0x86b   : > { %6126 = vadd.xlane.f32.xlu0 %v6078_v49  ;;  %v6292_v5 = vsel %vm6291_vm1, %v6259_v12, %v6195_v60 }
 0x86c   : > { %v6325_v8 = vsel %vm6324_vm2, %v6292_v5, %v10214_v1 }
 0x86d   : > { %6128 = vadd.xlane.f32.xlu1 %v6079_v25  ;;  %v6364_v0 = vadd.f32 %v10309_v15, %v6325_v8 }
 0x86e   : > { %v5997_v21 = vpop.xlane.xlu0 %5996  ;;  %v6197_v37 = vpop.xlane.xlu1 %6196 }
 0x86f   : > { %6226 = vadd.xlane.f32.xlu0 %v6178_v63  ;;  %6397 = vst.msk [vmem:[%s10318_s17] sm:$0xff] %vm6396_vm3, %v6364_v0  ;;  %v6260_v49 = vsel %vm6258_vm0, %v5997_v21, %v6097_v13 }
 0x870   : > { %v6999_v12 = vpop.f32.mrb[228].mxu1  ;;  %v6293_v60 = vsel %vm6291_vm1, %v6260_v49, %v6197_v37 }
 0x871   : > { %v7000_v58 = vpop.f32.mrb[229].mxu1  ;;  %6228 = vadd.xlane.f32.xlu1 %v6179_v32  ;;  %v6326_v1 = vsel %vm6324_vm2, %v6293_v60, %v10212_v27 }
 0x872   : > { %v7001_v11 = vadd.f32 %v7000_v58, %v6999_v12  ;;  %v7002_v25 = vpop.f32.mrb[230].mxu1  ;;  %v6365_v5 = vadd.f32 %v10309_v15, %v6326_v1  ;;  %v5999_v8 = vpop.xlane.xlu0 %5998 }
 0x873   : > { %v6001_v63 = vpop.xlane.xlu1 %6000  ;;  %v7003_v6 = vpop.f32.mrb[231].mxu1 }
 0x874   : > { %v5871_v47 = vadd.f32 %v7001_v11, %v9970_v53  ;;  %6398 = vst.msk [vmem:[%s10318_s17 + $0x8] sm:$0xff] %vm6396_vm3, %v6365_v5  ;;  %v7004_v13 = vadd.f32 %v7003_v6, %v7002_v25 }
 0x876   : > { %v5943_v0 = vmax.f32 %v5871_v47, 0.0  ;;  %v5874_v21 = vadd.f32 %v7004_v13, %v10038_v14 }
 0x877   : > { %v6099_v37 = vpop.xlane.xlu0 %6098  ;;  %v6101_v32 = vpop.xlane.xlu1 %6100 }
 0x878   : > { %v5980_v49 = vmul.f32 %v10133_v62, %v5943_v0  ;;  %v5944_v27 = vmax.f32 %v5874_v21, 0.0  ;;  %v6261_v58 = vsel %vm6258_vm0, %v5999_v8, %v6099_v37  ;;  %v6262_v12 = vsel %vm6258_vm0, %v6001_v63, %v6101_v32 }
 0x879   : > { %v6080_v11 = vmul.f32 %v10130_v2, %v5943_v0  ;;  %v6180_v13 = vmul.f32 %v10138_v36, %v5943_v0 }
 0x87a   : > { %6030 = vadd.xlane.f32.xlu0 %v5980_v49  ;;  %v5981_v1 = vmul.f32 %v10133_v62, %v5944_v27  ;;  %v6081_v47 = vmul.f32 %v10130_v2, %v5944_v27 }
 0x87b   : > { %v6199_v53 = vpop.xlane.xlu0 %6198  ;;  %v6201_v60 = vpop.xlane.xlu1 %6200 }
 0x87c   : > { %v6294_v6 = vsel %vm6291_vm1, %v6261_v58, %v6199_v53  ;;  %v6295_v14 = vsel %vm6291_vm1, %v6262_v12, %v6201_v60  ;;  %6032 = vadd.xlane.f32.xlu1 %v5981_v1 }
 0x87d   : > { %v6327_v25 = vsel %vm6324_vm2, %v6294_v6, %v10217_v57  ;;  %v6328_v5 = vsel %vm6324_vm2, %v6295_v14, %v10220_v20  ;;  %v6181_v20 = vmul.f32 %v10138_v36, %v5944_v27 }
 0x87e   : > { %v6366_v8 = vadd.f32 %v10309_v15, %v6327_v25  ;;  %v6367_v63 = vadd.f32 %v10309_v15, %v6328_v5  ;;  %6130 = vadd.xlane.f32.xlu0 %v6080_v11 }
 0x880   : > { %6399 = vst.msk [vmem:[%s10318_s17 + $0x10] sm:$0xff] %vm6396_vm3, %v6366_v8  ;;  %6400 = vst.msk [vmem:[%s10318_s17 + $0x18] sm:$0xff] %vm6396_vm3, %v6367_v63  ;;  %6132 = vadd.xlane.f32.xlu1 %v6081_v47 }
 0x882   : > { %v6003_v21 = vpop.xlane.xlu0 %6002  ;;  %6230 = vadd.xlane.f32.xlu0 %v6180_v13 }
 0x883   : > { %v7005_v57 = vpop.f32.mrb[232].mxu1 }
 0x884   : > { %v7006_v37 = vpop.f32.mrb[233].mxu1  ;;  %v6005_v32 = vpop.xlane.xlu1 %6004  ;;  %6232 = vadd.xlane.f32.xlu1 %v6181_v20 }
 0x885   : > { %v7007_v49 = vadd.f32 %v7006_v37, %v7005_v57  ;;  %v7008_v58 = vpop.f32.mrb[234].mxu1 }
 0x886   : > { %v7009_v12 = vpop.f32.mrb[235].mxu1  ;;  %v6103_v53 = vpop.xlane.xlu0 %6102 }
 0x887   : > { %v5879_v60 = vadd.f32 %v7007_v49, %v9974_v42  ;;  %v7010_v1 = vadd.f32 %v7009_v12, %v7008_v58  ;;  %v6263_v11 = vsel %vm6258_vm0, %v6003_v21, %v6103_v53 }
 0x888   : > { %v6105_v6 = vpop.xlane.xlu1 %6104 }
 0x889   : > { %v5945_v14 = vmax.f32 %v5879_v60, 0.0  ;;  %v5882_v0 = vadd.f32 %v7010_v1, %v10043_v52  ;;  %v6264_v63 = vsel %vm6258_vm0, %v6005_v32, %v6105_v6 }
 0x88a   : > { %v6203_v25 = vpop.xlane.xlu0 %6202 }
 0x88b   : > { %v5946_v27 = vmax.f32 %v5882_v0, 0.0  ;;  %v6296_v5 = vsel %vm6291_vm1, %v6263_v11, %v6203_v25  ;;  %v5982_v8 = vmul.f32 %v10133_v62, %v5945_v14  ;;  %v6082_v37 = vmul.f32 %v10130_v2, %v5945_v14 }
 0x88c   : > { %v6329_v42 = vsel %vm6324_vm2, %v6296_v5, %v10223_v26  ;;  %v6205_v47 = vpop.xlane.xlu1 %6204  ;;  %v6182_v32 = vmul.f32 %v10138_v36, %v5945_v14 }
 0x88d   : > { %v6368_v13 = vadd.f32 %v10309_v15, %v6329_v42  ;;  %v6297_v57 = vsel %vm6291_vm1, %v6264_v63, %v6205_v47  ;;  %6034 = vadd.xlane.f32.xlu0 %v5982_v8  ;;  %v5983_v52 = vmul.f32 %v10133_v62, %v5946_v27  ;;  %v6083_v26 = vmul.f32 %v10130_v2, %v5946_v27 }
 0x88e   : > { %v6330_v21 = vsel %vm6324_vm2, %v6297_v57, %v10226_v24  ;;  %v6183_v58 = vmul.f32 %v10138_v36, %v5946_v27 }
 0x88f   : > { %6401 = vst.msk [vmem:[%s10318_s17 + $0x20] sm:$0xff] %vm6396_vm3, %v6368_v13  ;;  %v6369_v20 = vadd.f32 %v10309_v15, %v6330_v21  ;;  %6036 = vadd.xlane.f32.xlu1 %v5983_v52 }
 0x891   : > { %6402 = vst.msk [vmem:[%s10318_s17 + $0x28] sm:$0xff] %vm6396_vm3, %v6369_v20  ;;  %6134 = vadd.xlane.f32.xlu0 %v6082_v37 }
 0x893   : > { %6136 = vadd.xlane.f32.xlu1 %v6083_v26 }
 0x895   : > { %v6007_v49 = vpop.xlane.xlu0 %6006  ;;  %6234 = vadd.xlane.f32.xlu0 %v6182_v32 }
 0x896   : > { %v7011_v24 = vpop.f32.mrb[236].mxu1 }
 0x897   : > { %v7012_v12 = vpop.f32.mrb[237].mxu1  ;;  %6236 = vadd.xlane.f32.xlu1 %v6183_v58  ;;  %v6009_v53 = vpop.xlane.xlu1 %6008 }
 0x898   : > { %v7013_v60 = vadd.f32 %v7012_v12, %v7011_v24  ;;  %v7014_v1 = vpop.f32.mrb[238].mxu1 }
 0x899   : > { %v7015_v6 = vpop.f32.mrb[239].mxu1  ;;  %v6107_v0 = vpop.xlane.xlu0 %6106 }
 0x89a   : > { %v5887_v11 = vadd.f32 %v7013_v60, %v9978_v45  ;;  %v7016_v25 = vadd.f32 %v7015_v6, %v7014_v1  ;;  %v6265_v63 = vsel %vm6258_vm0, %v6007_v49, %v6107_v0 }
 0x89b   : > { %v6109_v5 = vpop.xlane.xlu1 %6108 }
 0x89c   : > { %v5947_v8 = vmax.f32 %v5887_v11, 0.0  ;;  %v5890_v14 = vadd.f32 %v7016_v25, %v10047_v51  ;;  %v6266_v57 = vsel %vm6258_vm0, %v6009_v53, %v6109_v5 }
 0x89d   : > { %v6207_v42 = vpop.xlane.xlu0 %6206 }
 0x89e   : > { %v5948_v27 = vmax.f32 %v5890_v14, 0.0  ;;  %v6298_v47 = vsel %vm6291_vm1, %v6265_v63, %v6207_v42  ;;  %v5984_v13 = vmul.f32 %v10133_v62, %v5947_v8  ;;  %v6084_v32 = vmul.f32 %v10130_v2, %v5947_v8 }
 0x89f   : > { %v6331_v45 = vsel %vm6324_vm2, %v6298_v47, %v10229_v56  ;;  %v6209_v52 = vpop.xlane.xlu1 %6208  ;;  %v6184_v49 = vmul.f32 %v10138_v36, %v5947_v8 }
 0x8a0   : > { %v6370_v21 = vadd.f32 %v10309_v15, %v6331_v45  ;;  %v6299_v20 = vsel %vm6291_vm1, %v6266_v57, %v6209_v52  ;;  %6038 = vadd.xlane.f32.xlu0 %v5984_v13  ;;  %v5985_v51 = vmul.f32 %v10133_v62, %v5948_v27  ;;  %v6085_v56 = vmul.f32 %v10130_v2, %v5948_v27 }
 0x8a1   : > { %v6332_v37 = vsel %vm6324_vm2, %v6299_v20, %v10232_v46  ;;  %v6185_v24 = vmul.f32 %v10138_v36, %v5948_v27 }
 0x8a2   : > { %6403 = vst.msk [vmem:[%s10318_s17 + $0x30] sm:$0xff] %vm6396_vm3, %v6370_v21  ;;  %v6371_v26 = vadd.f32 %v10309_v15, %v6332_v37  ;;  %6040 = vadd.xlane.f32.xlu1 %v5985_v51 }
 0x8a4   : > { %6404 = vst.msk [vmem:[%s10318_s17 + $0x38] sm:$0xff] %vm6396_vm3, %v6371_v26  ;;  %6138 = vadd.xlane.f32.xlu0 %v6084_v32 }
 0x8a6   : > { %6140 = vadd.xlane.f32.xlu1 %v6085_v56 }
 0x8a8   : > { %v6011_v58 = vpop.xlane.xlu0 %6010  ;;  %6238 = vadd.xlane.f32.xlu0 %v6184_v49 }
 0x8a9   : > { %v7017_v46 = vpop.f32.mrb[240].mxu1 }
 0x8aa   : > { %v7018_v12 = vpop.f32.mrb[241].mxu1  ;;  %6240 = vadd.xlane.f32.xlu1 %v6185_v24  ;;  %v6013_v53 = vpop.xlane.xlu1 %6012 }
 0x8ab   : > { %v7019_v60 = vadd.f32 %v7018_v12, %v7017_v46  ;;  %v7020_v1 = vpop.f32.mrb[242].mxu1 }
 0x8ac   : > { %v7021_v6 = vpop.f32.mrb[243].mxu1  ;;  %v6111_v0 = vpop.xlane.xlu0 %6110 }
 0x8ad   : > { %v5895_v11 = vadd.f32 %v7019_v60, %v9982_v59  ;;  %v7022_v25 = vadd.f32 %v7021_v6, %v7020_v1  ;;  %v6267_v63 = vsel %vm6258_vm0, %v6011_v58, %v6111_v0 }
 0x8ae   : > { %v6113_v5 = vpop.xlane.xlu1 %6112 }
 0x8af   : > { %v5949_v14 = vmax.f32 %v5895_v11, 0.0  ;;  %v5898_v8 = vadd.f32 %v7022_v25, %v10051_v23  ;;  %v6268_v57 = vsel %vm6258_vm0, %v6013_v53, %v6113_v5 }
 0x8b0   : > { %v6211_v42 = vpop.xlane.xlu0 %6210 }
 0x8b1   : > { %v5950_v27 = vmax.f32 %v5898_v8, 0.0  ;;  %v6300_v47 = vsel %vm6291_vm1, %v6267_v63, %v6211_v42  ;;  %v5986_v13 = vmul.f32 %v10133_v62, %v5949_v14  ;;  %v6086_v37 = vmul.f32 %v10130_v2, %v5949_v14 }
 0x8b2   : > { %v6333_v59 = vsel %vm6324_vm2, %v6300_v47, %v10235_v19  ;;  %v6213_v45 = vpop.xlane.xlu1 %6212  ;;  %v6186_v26 = vmul.f32 %v10138_v36, %v5949_v14 }
 0x8b3   : > { %v6372_v52 = vadd.f32 %v10309_v15, %v6333_v59  ;;  %v6301_v21 = vsel %vm6291_vm1, %v6268_v57, %v6213_v45  ;;  %6042 = vadd.xlane.f32.xlu0 %v5986_v13  ;;  %v5987_v23 = vmul.f32 %v10133_v62, %v5950_v27  ;;  %v6087_v19 = vmul.f32 %v10130_v2, %v5950_v27 }
 0x8b4   : > { %v6334_v20 = vsel %vm6324_vm2, %v6301_v21, %v10238_v48  ;;  %v6187_v56 = vmul.f32 %v10138_v36, %v5950_v27 }
 0x8b5   : > { %6405 = vst.msk [vmem:[%s10318_s17 + $0x40] sm:$0xff] %vm6396_vm3, %v6372_v52  ;;  %v6373_v51 = vadd.f32 %v10309_v15, %v6334_v20  ;;  %6044 = vadd.xlane.f32.xlu1 %v5987_v23 }
 0x8b7   : > { %6406 = vst.msk [vmem:[%s10318_s17 + $0x48] sm:$0xff] %vm6396_vm3, %v6373_v51  ;;  %6142 = vadd.xlane.f32.xlu0 %v6086_v37 }
 0x8b9   : > { %6144 = vadd.xlane.f32.xlu1 %v6087_v19 }
 0x8bb   : > { %v6015_v32 = vpop.xlane.xlu0 %6014  ;;  %6242 = vadd.xlane.f32.xlu0 %v6186_v26 }
 0x8bc   : > { %v7023_v48 = vpop.f32.mrb[244].mxu1 }
 0x8bd   : > { %v7024_v49 = vpop.f32.mrb[245].mxu1  ;;  %6244 = vadd.xlane.f32.xlu1 %v6187_v56  ;;  %v6017_v58 = vpop.xlane.xlu1 %6016 }
 0x8be   : > { %v7025_v24 = vadd.f32 %v7024_v49, %v7023_v48  ;;  %v7026_v46 = vpop.f32.mrb[246].mxu1 }
 0x8bf   : > { %v7027_v12 = vpop.f32.mrb[247].mxu1  ;;  %v6115_v53 = vpop.xlane.xlu0 %6114 }
 0x8c0   : > { %v5903_v60 = vadd.f32 %v7025_v24, %v9986_v35  ;;  %v7028_v1 = vadd.f32 %v7027_v12, %v7026_v46  ;;  %v6269_v25 = vsel %vm6258_vm0, %v6015_v32, %v6115_v53 }
 0x8c1   : > { %v6117_v6 = vpop.xlane.xlu1 %6116 }
 0x8c2   : > { %v5951_v0 = vmax.f32 %v5903_v60, 0.0  ;;  %v5906_v11 = vadd.f32 %v7028_v1, %v10056_v16  ;;  %v6270_v42 = vsel %vm6258_vm0, %v6017_v58, %v6117_v6 }
 0x8c3   : > { %v6215_v5 = vpop.xlane.xlu0 %6214 }
 0x8c4   : > { %v5952_v14 = vmax.f32 %v5906_v11, 0.0  ;;  %v6302_v8 = vsel %vm6291_vm1, %v6269_v25, %v6215_v5  ;;  %v5988_v63 = vmul.f32 %v10133_v62, %v5951_v0  ;;  %v6088_v45 = vmul.f32 %v10130_v2, %v5951_v0 }
 0x8c5   : > { %v6335_v35 = vsel %vm6324_vm2, %v6302_v8, %v10240_v10  ;;  %v6217_v27 = vpop.xlane.xlu1 %6216  ;;  %v6188_v52 = vmul.f32 %v10138_v36, %v5951_v0 }
 0x8c6   : > { %v6374_v47 = vadd.f32 %v10309_v15, %v6335_v35  ;;  %v6303_v13 = vsel %vm6291_vm1, %v6270_v42, %v6217_v27  ;;  %6046 = vadd.xlane.f32.xlu0 %v5988_v63  ;;  %v5989_v16 = vmul.f32 %v10133_v62, %v5952_v14  ;;  %v6089_v10 = vmul.f32 %v10130_v2, %v5952_v14 }
 0x8c7   : > { %v6336_v57 = vsel %vm6324_vm2, %v6303_v13, %v10242_v50  ;;  %v6189_v23 = vmul.f32 %v10138_v36, %v5952_v14 }
 0x8c8   : > { %6407 = vst.msk [vmem:[%s10318_s17 + $0x50] sm:$0xff] %vm6396_vm3, %v6374_v47  ;;  %v6375_v59 = vadd.f32 %v10309_v15, %v6336_v57  ;;  %6048 = vadd.xlane.f32.xlu1 %v5989_v16 }
 0x8ca   : > { %6408 = vst.msk [vmem:[%s10318_s17 + $0x58] sm:$0xff] %vm6396_vm3, %v6375_v59  ;;  %6146 = vadd.xlane.f32.xlu0 %v6088_v45 }
 0x8cc   : > { %6148 = vadd.xlane.f32.xlu1 %v6089_v10 }
 0x8ce   : > { %v6019_v21 = vpop.xlane.xlu0 %6018  ;;  %6246 = vadd.xlane.f32.xlu0 %v6188_v52 }
 0x8cf   : > { %v7029_v50 = vpop.f32.mrb[248].mxu1 }
 0x8d0   : > { %v7030_v20 = vpop.f32.mrb[249].mxu1  ;;  %6248 = vadd.xlane.f32.xlu1 %v6189_v23  ;;  %v6021_v51 = vpop.xlane.xlu1 %6020 }
 0x8d1   : > { %v7031_v37 = vadd.f32 %v7030_v20, %v7029_v50  ;;  %v7032_v19 = vpop.f32.mrb[250].mxu1 }
 0x8d2   : > { %v7033_v26 = vpop.f32.mrb[251].mxu1  ;;  %v6119_v32 = vpop.xlane.xlu0 %6118 }
 0x8d3   : > { %v5911_v56 = vadd.f32 %v7031_v37, %v9990_v29  ;;  %v7034_v48 = vadd.f32 %v7033_v26, %v7032_v19  ;;  %v6271_v46 = vsel %vm6258_vm0, %v6019_v21, %v6119_v32 }
 0x8d4   : > { %v6121_v49 = vpop.xlane.xlu1 %6120 }
 0x8d5   : > { %v5953_v58 = vmax.f32 %v5911_v56, 0.0  ;;  %v5914_v24 = vadd.f32 %v7034_v48, %v10060_v34  ;;  %v6272_v6 = vsel %vm6258_vm0, %v6021_v51, %v6121_v49 }
 0x8d6   : > { %v6219_v12 = vpop.xlane.xlu0 %6218 }
 0x8d7   : > { %v5954_v53 = vmax.f32 %v5914_v24, 0.0  ;;  %v6304_v60 = vsel %vm6291_vm1, %v6271_v46, %v6219_v12  ;;  %v5990_v1 = vmul.f32 %v10133_v62, %v5953_v58  ;;  %v6090_v8 = vmul.f32 %v10130_v2, %v5953_v58 }
 0x8d8   : > { %v6337_v29 = vsel %vm6324_vm2, %v6304_v60, %v10246_v22  ;;  %v6221_v0 = vpop.xlane.xlu1 %6220  ;;  %v6190_v63 = vmul.f32 %v10138_v36, %v5953_v58 }
 0x8d9   : > { %v6376_v11 = vadd.f32 %v10309_v15, %v6337_v29  ;;  %v6305_v25 = vsel %vm6291_vm1, %v6272_v6, %v6221_v0  ;;  %6050 = vadd.xlane.f32.xlu0 %v5990_v1  ;;  %v5991_v34 = vmul.f32 %v10133_v62, %v5954_v53  ;;  %v6091_v22 = vmul.f32 %v10130_v2, %v5954_v53 }
 0x8da   : > { %v6338_v5 = vsel %vm6324_vm2, %v6305_v25, %v10248_v9  ;;  %v6191_v35 = vmul.f32 %v10138_v36, %v5954_v53 }
 0x8db   : > { %6409 = vst.msk [vmem:[%s10318_s17 + $0x60] sm:$0xff] %vm6396_vm3, %v6376_v11  ;;  %v6377_v14 = vadd.f32 %v10309_v15, %v6338_v5  ;;  %6052 = vadd.xlane.f32.xlu1 %v5991_v34 }
 0x8dd   : > { %6410 = vst.msk [vmem:[%s10318_s17 + $0x68] sm:$0xff] %vm6396_vm3, %v6377_v14  ;;  %6150 = vadd.xlane.f32.xlu0 %v6090_v8 }
 0x8df   : > { %6152 = vadd.xlane.f32.xlu1 %v6091_v22 }
 0x8e1   : > { %v6023_v42 = vpop.xlane.xlu0 %6022  ;;  %6250 = vadd.xlane.f32.xlu0 %v6190_v63 }
 0x8e2   : > { %v7035_v9 = vpop.f32.mrb[252].mxu1 }
 0x8e3   : > { %v7036_v27 = vpop.f32.mrb[253].mxu1  ;;  %6252 = vadd.xlane.f32.xlu1 %v6191_v35  ;;  %v6025_v47 = vpop.xlane.xlu1 %6024 }
 0x8e4   : > { %v7037_v13 = vadd.f32 %v7036_v27, %v7035_v9  ;;  %v7038_v16 = vpop.f32.mrb[254].mxu1 }
 0x8e5   : > { %v7039_v57 = vpop.f32.mrb[255].mxu1  ;;  %v6123_v59 = vpop.xlane.xlu0 %6122 }
 0x8e6   : > { %v5919_v45 = vadd.f32 %v7037_v13, %v9995_v55  ;;  %v7040_v10 = vadd.f32 %v7039_v57, %v7038_v16  ;;  %v6273_v50 = vsel %vm6258_vm0, %v6023_v42, %v6123_v59 }
 0x8e7   : > { %v6125_v52 = vpop.xlane.xlu1 %6124 }
 0x8e8   : > { %v5955_v21 = vmax.f32 %v5919_v45, 0.0  ;;  %v5922_v23 = vadd.f32 %v7040_v10, %v10064_v17  ;;  %v6274_v26 = vsel %vm6258_vm0, %v6025_v47, %v6125_v52 }
 0x8e9   : > { %v6223_v20 = vpop.xlane.xlu0 %6222 }
 0x8ea   : > { %v5956_v51 = vmax.f32 %v5922_v23, 0.0  ;;  %v6306_v37 = vsel %vm6291_vm1, %v6273_v50, %v6223_v20  ;;  %v5992_v19 = vmul.f32 %v10133_v62, %v5955_v21  ;;  %v6092_v24 = vmul.f32 %v10130_v2, %v5955_v21 }
 0x8eb   : > { %v6339_v55 = vsel %vm6324_vm2, %v6306_v37, %v10252_v44  ;;  %v6225_v32 = vpop.xlane.xlu1 %6224  ;;  %v6192_v46 = vmul.f32 %v10138_v36, %v5955_v21 }
 0x8ec   : > { %v6378_v56 = vadd.f32 %v10309_v15, %v6339_v55  ;;  %v6307_v48 = vsel %vm6291_vm1, %v6274_v26, %v6225_v32  ;;  %6054 = vadd.xlane.f32.xlu0 %v5992_v19  ;;  %v5993_v17 = vmul.f32 %v10133_v62, %v5956_v51  ;;  %v6093_v44 = vmul.f32 %v10130_v2, %v5956_v51 }
 0x8ed   : > { %v6340_v49 = vsel %vm6324_vm2, %v6307_v48, %v10254_v41  ;;  %v6193_v62 = vmul.f32 %v10138_v36, %v5956_v51 }
 0x8ee   : > { %6411 = vst.msk [vmem:[%s10318_s17 + $0x70] sm:$0xff] %vm6396_vm3, %v6378_v56  ;;  %v6379_v58 = vadd.f32 %v10309_v15, %v6340_v49  ;;  %6056 = vadd.xlane.f32.xlu1 %v5993_v17 }
 0x8f0   : > { %6412 = vst.msk [vmem:[%s10318_s17 + $0x78] sm:$0xff] %vm6396_vm3, %v6379_v58  ;;  %6154 = vadd.xlane.f32.xlu0 %v6092_v24 }
 0x8f2   : > { %6156 = vadd.xlane.f32.xlu1 %v6093_v44 }
 0x8f4   : > { %v6027_v12 = vpop.xlane.xlu0 %6026  ;;  %6254 = vadd.xlane.f32.xlu0 %v6192_v46 }
 0x8f6   : > { %6256 = vadd.xlane.f32.xlu1 %v6193_v62  ;;  %v6029_v41 = vpop.xlane.xlu1 %6028 }
 0x8f8   : > { %v6127_v53 = vpop.xlane.xlu0 %6126 }
 0x8f9   : > { %v6275_v1 = vsel %vm6258_vm0, %v6027_v12, %v6127_v53 }
 0x8fa   : > { %v6129_v60 = vpop.xlane.xlu1 %6128 }
 0x8fb   : > { %v6276_v2 = vsel %vm6258_vm0, %v6029_v41, %v6129_v60 }
 0x8fc   : > { %v6227_v6 = vpop.xlane.xlu0 %6226 }
 0x8fd   : > { %v6308_v29 = vsel %vm6291_vm1, %v6275_v1, %v6227_v6 }
 0x8fe   : > { %v6341_v0 = vsel %vm6324_vm2, %v6308_v29, %v10258_v61  ;;  %v6229_v11 = vpop.xlane.xlu1 %6228 }
 0x8ff   : > { %v6380_v25 = vadd.f32 %v10309_v15, %v6341_v0  ;;  %v6309_v36 = vsel %vm6291_vm1, %v6276_v2, %v6229_v11 }
 0x900   : > { %v6342_v34 = vsel %vm6324_vm2, %v6309_v36, %v10260_v28 }
 0x901   : > { %6413 = vst.msk [vmem:[%s10318_s17 + $0x80] sm:$0xff] %vm6396_vm3, %v6380_v25  ;;  %v6381_v5 = vadd.f32 %v10309_v15, %v6342_v34 }
 0x903   : > { %6414 = vst.msk [vmem:[%s10318_s17 + $0x88] sm:$0xff] %vm6396_vm3, %v6381_v5 }
 0x907   : > { %v6031_v14 = vpop.xlane.xlu0 %6030 }
 0x909   : > { %v6033_v8 = vpop.xlane.xlu1 %6032 }
 0x90b   : > { %v6131_v22 = vpop.xlane.xlu0 %6130 }
 0x90c   : > { %v6277_v63 = vsel %vm6258_vm0, %v6031_v14, %v6131_v22 }
 0x90d   : > { %v6133_v61 = vpop.xlane.xlu1 %6132 }
 0x90e   : > { %v6278_v9 = vsel %vm6258_vm0, %v6033_v8, %v6133_v61 }
 0x90f   : > { %v6231_v42 = vpop.xlane.xlu0 %6230 }
 0x910   : > { %v6310_v35 = vsel %vm6291_vm1, %v6277_v63, %v6231_v42 }
 0x911   : > { %v6343_v28 = vsel %vm6324_vm2, %v6310_v35, %v10264_v4  ;;  %v6233_v47 = vpop.xlane.xlu1 %6232 }
 0x912   : > { %v6382_v27 = vadd.f32 %v10309_v15, %v6343_v28  ;;  %v6311_v13 = vsel %vm6291_vm1, %v6278_v9, %v6233_v47 }
 0x913   : > { %v6344_v16 = vsel %vm6324_vm2, %v6311_v13, %v10266_v38 }
 0x914   : > { %6415 = vst.msk [vmem:[%s10318_s17 + $0x90] sm:$0xff] %vm6396_vm3, %v6382_v27  ;;  %v6383_v57 = vadd.f32 %v10309_v15, %v6344_v16 }
 0x916   : > { %6416 = vst.msk [vmem:[%s10318_s17 + $0x98] sm:$0xff] %vm6396_vm3, %v6383_v57 }
 0x91a   : > { %v6035_v59 = vpop.xlane.xlu0 %6034 }
 0x91c   : > { %v6037_v4 = vpop.xlane.xlu1 %6036 }
 0x91e   : > { %v6135_v45 = vpop.xlane.xlu0 %6134 }
 0x91f   : > { %v6279_v52 = vsel %vm6258_vm0, %v6035_v59, %v6135_v45 }
 0x920   : > { %v6137_v10 = vpop.xlane.xlu1 %6136 }
 0x921   : > { %v6280_v50 = vsel %vm6258_vm0, %v6037_v4, %v6137_v10 }
 0x922   : > { %v6235_v21 = vpop.xlane.xlu0 %6234 }
 0x923   : > { %v6312_v23 = vsel %vm6291_vm1, %v6279_v52, %v6235_v21 }
 0x924   : > { %v6345_v38 = vsel %vm6324_vm2, %v6312_v23, %v10268_v7  ;;  %v6237_v20 = vpop.xlane.xlu1 %6236 }
 0x925   : > { %v6384_v51 = vadd.f32 %v10309_v15, %v6345_v38  ;;  %v6313_v37 = vsel %vm6291_vm1, %v6280_v50, %v6237_v20 }
 0x926   : > { %v6346_v19 = vsel %vm6324_vm2, %v6313_v37, %v10271_v54 }
 0x927   : > { %6417 = vst.msk [vmem:[%s10318_s17 + $0xa0] sm:$0xff] %vm6396_vm3, %v6384_v51  ;;  %v6385_v26 = vadd.f32 %v10309_v15, %v6346_v19 }
 0x929   : > { %6418 = vst.msk [vmem:[%s10318_s17 + $0xa8] sm:$0xff] %vm6396_vm3, %v6385_v26 }
 0x92d   : > { %v6039_v55 = vpop.xlane.xlu0 %6038 }
 0x92f   : > { %v6041_v32 = vpop.xlane.xlu1 %6040 }
 0x931   : > { %v6139_v56 = vpop.xlane.xlu0 %6138 }
 0x932   : > { %v6281_v48 = vsel %vm6258_vm0, %v6039_v55, %v6139_v56 }
 0x933   : > { %v6141_v7 = vpop.xlane.xlu1 %6140 }
 0x934   : > { %v6282_v58 = vsel %vm6258_vm0, %v6041_v32, %v6141_v7 }
 0x935   : > { %v6239_v17 = vpop.xlane.xlu0 %6238 }
 0x936   : > { %v6314_v49 = vsel %vm6291_vm1, %v6281_v48, %v6239_v17 }
 0x937   : > { %v6347_v54 = vsel %vm6324_vm2, %v6314_v49, %v10274_v18  ;;  %v6241_v24 = vpop.xlane.xlu1 %6240  ;;  %v10699_v49 = vld [vmem:[#allocation26_spill] sm:$0xff] }
 0x938   : > { %v6386_v44 = vadd.f32 %v10309_v15, %v6347_v54  ;;  %v6315_v46 = vsel %vm6291_vm1, %v6282_v58, %v6241_v24 }
 0x939   : > { %v6348_v12 = vsel %vm6324_vm2, %v6315_v46, %v10277_v3 }
 0x93a   : > { %6419 = vst.msk [vmem:[%s10318_s17 + $0xb0] sm:$0xff] %vm6396_vm3, %v6386_v44  ;;  %v6387_v62 = vadd.f32 %v10309_v15, %v6348_v12 }
 0x93c   : > { %6420 = vst.msk [vmem:[%s10318_s17 + $0xb8] sm:$0xff] %vm6396_vm3, %v6387_v62 }
 0x940   : > { %v6043_v41 = vpop.xlane.xlu0 %6042 }
 0x942   : > { %v6045_v53 = vpop.xlane.xlu1 %6044 }
 0x944   : > { %v6143_v60 = vpop.xlane.xlu0 %6142 }
 0x945   : > { %v6283_v1 = vsel %vm6258_vm0, %v6043_v41, %v6143_v60 }
 0x946   : > { %v6145_v18 = vpop.xlane.xlu1 %6144 }
 0x947   : > { %v6284_v2 = vsel %vm6258_vm0, %v6045_v53, %v6145_v18 }
 0x948   : > { %v6243_v6 = vpop.xlane.xlu0 %6242 }
 0x949   : > { %v6316_v29 = vsel %vm6291_vm1, %v6283_v1, %v6243_v6 }
 0x94a   : > { %v6349_v3 = vsel %vm6324_vm2, %v6316_v29, %v10280_v30  ;;  %v6245_v0 = vpop.xlane.xlu1 %6244 }
 0x94b   : > { %v6388_v11 = vadd.f32 %v10309_v15, %v6349_v3  ;;  %v6317_v25 = vsel %vm6291_vm1, %v6284_v2, %v6245_v0 }
 0x94c   : > { %v6350_v36 = vsel %vm6324_vm2, %v6317_v25, %v10283_v40 }
 0x94d   : > { %6421 = vst.msk [vmem:[%s10318_s17 + $0xc0] sm:$0xff] %vm6396_vm3, %v6388_v11  ;;  %v6389_v34 = vadd.f32 %v10309_v15, %v6350_v36 }
 0x94f   : > { %6422 = vst.msk [vmem:[%s10318_s17 + $0xc8] sm:$0xff] %vm6396_vm3, %v6389_v34 }
 0x953   : > { %v6047_v5 = vpop.xlane.xlu0 %6046 }
 0x955   : > { %v6049_v14 = vpop.xlane.xlu1 %6048 }
 0x957   : > { %v6147_v8 = vpop.xlane.xlu0 %6146 }
 0x958   : > { %v6285_v22 = vsel %vm6258_vm0, %v6047_v5, %v6147_v8 }
 0x959   : > { %v6149_v30 = vpop.xlane.xlu1 %6148 }
 0x95a   : > { %v6286_v42 = vsel %vm6258_vm0, %v6049_v14, %v6149_v30 }
 0x95b   : > { %v6247_v61 = vpop.xlane.xlu0 %6246 }
 0x95c   : > { %v6318_v63 = vsel %vm6291_vm1, %v6285_v22, %v6247_v61 }
 0x95d   : > { %v6351_v40 = vsel %vm6324_vm2, %v6318_v63, %v10286_v31  ;;  %v6249_v35 = vpop.xlane.xlu1 %6248 }
 0x95e   : > { %v6390_v28 = vadd.f32 %v10309_v15, %v6351_v40  ;;  %v6319_v9 = vsel %vm6291_vm1, %v6286_v42, %v6249_v35 }
 0x95f   : > { %v6352_v27 = vsel %vm6324_vm2, %v6319_v9, %v10289_v33 }
 0x960   : > { %6423 = vst.msk [vmem:[%s10318_s17 + $0xd0] sm:$0xff] %vm6396_vm3, %v6390_v28  ;;  %v6391_v47 = vadd.f32 %v10309_v15, %v6352_v27 }
 0x962   : > { %6424 = vst.msk [vmem:[%s10318_s17 + $0xd8] sm:$0xff] %vm6396_vm3, %v6391_v47 }
 0x966   : > { %v6051_v13 = vpop.xlane.xlu0 %6050 }
 0x968   : > { %v6053_v16 = vpop.xlane.xlu1 %6052 }
 0x96a   : > { %v6151_v57 = vpop.xlane.xlu0 %6150 }
 0x96b   : > { %v6287_v59 = vsel %vm6258_vm0, %v6051_v13, %v6151_v57 }
 0x96c   : > { %v6153_v31 = vpop.xlane.xlu1 %6152 }
 0x96d   : > { %v6288_v10 = vsel %vm6258_vm0, %v6053_v16, %v6153_v31 }
 0x96e   : > { %v6251_v4 = vpop.xlane.xlu0 %6250 }
 0x96f   : > { %v6320_v45 = vsel %vm6291_vm1, %v6287_v59, %v6251_v4 }
 0x970   : > { %v6353_v33 = vsel %vm6324_vm2, %v6320_v45, %v10292_v39  ;;  %v6253_v52 = vpop.xlane.xlu1 %6252 }
 0x971   : > { %v6392_v21 = vadd.f32 %v10309_v15, %v6353_v33  ;;  %v6321_v23 = vsel %vm6291_vm1, %v6288_v10, %v6253_v52 }
 0x972   : > { %v6354_v50 = vsel %vm6324_vm2, %v6321_v23, %v10294_v43  ;;  %v10698_v43 = vld [vmem:[#allocation25_spill] sm:$0xff] }
 0x973   : > { %6425 = vst.msk [vmem:[%s10318_s17 + $0xe0] sm:$0xff] %vm6396_vm3, %v6392_v21  ;;  %v6393_v38 = vadd.f32 %v10309_v15, %v6354_v50 }
 0x975   : > { %6426 = vst.msk [vmem:[%s10318_s17 + $0xe8] sm:$0xff] %vm6396_vm3, %v6393_v38 }
 0x979   : > { %v6055_v20 = vpop.xlane.xlu0 %6054 }
 0x97b   : > { %v6057_v51 = vpop.xlane.xlu1 %6056 }
 0x97d   : > { %v6155_v37 = vpop.xlane.xlu0 %6154 }
 0x97e   : > { %v6289_v19 = vsel %vm6258_vm0, %v6055_v20, %v6155_v37 }
 0x97f   : > { %v6157_v39 = vpop.xlane.xlu1 %6156 }
 0x980   : > { %v6290_v32 = vsel %vm6258_vm0, %v6057_v51, %v6157_v39 }
 0x981   : > { %v6255_v26 = vpop.xlane.xlu0 %6254 }
 0x982   : > { %v6322_v55 = vsel %vm6291_vm1, %v6289_v19, %v6255_v26 }
 0x983   : > { %v6355_v56 = vsel %vm6324_vm2, %v6322_v55, %v10698_v43  ;;  %v6257_v7 = vpop.xlane.xlu1 %6256 }
 0x984   : > { %v6394_v48 = vadd.f32 %v10309_v15, %v6355_v56  ;;  %v6323_v17 = vsel %vm6291_vm1, %v6290_v32, %v6257_v7 }
 0x985   : > { %v6356_v58 = vsel %vm6324_vm2, %v6323_v17, %v10699_v49 }
 0x986   : > { %6427 = vst.msk [vmem:[%s10318_s17 + $0xf0] sm:$0xff] %vm6396_vm3, %v6394_v48  ;;  %v6395_v54 = vadd.f32 %v10309_v15, %v6356_v58 }
 0x988   : > { %6428 = vst.msk [vmem:[%s10318_s17 + $0xf8] sm:$0xff] %vm6396_vm3, %v6395_v54 }
 0x989 PF: > { %s25_s25 = sadd.s32 1, %s7594_s25  }
 0x98a   : > { %p22_p2 = scmp.ge.s32.totalorder %s25_s25, 4  }
 0x98c   :  { %24 = sbr.rel (!%p22_p2) target bundleno = 2 (0x2), region = 121 }
 0x993   :  { %6451 = vsyncpa [#allocation3], 1 }
 0x994   :  { %6453 = vsyncpa [#allocation3 + $0x1], 1 }
 0x995   :  { %6454 = vsyncpa [#allocation5], 1 }

</bundles_post_ra>
